<compile_context>
chip_gen: v7x
topology: tpu7x:2x2x1
jax: 0.10.0
libtpu: 0.0.40
codegen_flags: <defaults>
</compile_context>

<pallas_src>
import functools

import jax
import jax.numpy as jnp
from jax.experimental import pallas as pl
from jax.experimental.pallas import tpu as pltpu

GN_EPS = 1e-5    # torch.nn.GroupNorm default
LN_EPS = 1e-6    # timm LayerNorm2d default


# --------------------------------------------------------------------------
# in-kernel math helpers
# --------------------------------------------------------------------------
def _gelu(x):
    # TODO(synk): tanh-approx GELU (lands on the EUP tanh slot) instead of the
    # exact erf form of torch.nn.GELU(); max abs deviation ~1e-3.
    c = 0.7978845608028654  # sqrt(2/pi)
    return 0.5 * x * (1.0 + jnp.tanh(c * (x + 0.044715 * x * x * x)))


def _sigmoid(x):
    # numerically stable (no exp overflow); exact: sigmoid(x) = 0.5*(tanh(x/2)+1)
    return 0.5 * (jnp.tanh(0.5 * x) + 1.0)


# --------------------------------------------------------------------------
# fused CAA kernel: AggregationNetwork (accumulated over l) + MbConvBlock
# --------------------------------------------------------------------------
def _caa_kernel(H, W, BB, num_groups, L,
                x_ref, wcat_ref, w2_ref, w3_ref,
                g1w_ref, g1b_ref, g2w_ref, g2b_ref,
                g3w_ref, g3b_ref, gscw_ref, gscb_ref,
                lng_ref, lnb_ref, wdw_ref, se1_ref, se2_ref, pw_ref,
                mb_ref, mtb_ref, mp_ref, mtp_ref, masks_ref,
                out_ref):
    l = pl.program_id(1)
    hw = H * W
    n_rows = BB * hw
    bott = g1w_ref.shape[-1]
    proj = g3w_ref.shape[-1]

    x = x_ref[0, 0]                          # (BB*HW, 768) bf16
    masks = masks_ref[...]                   # (BB*HW, 9) f32 {0,1}
    m_b, mt_b = mb_ref[...], mtb_ref[...]    # (bott,G), (G,bott)
    m_p, mt_p = mp_ref[...], mtp_ref[...]    # (proj,G), (G,proj)

    def shift_mask(v, t):
        """out[p] = v[p + dy*W + dx] (tap t), zeroed off-image / off-batch."""
        dy, dx = t // 3 - 1, t % 3 - 1
        off = dy * W + dx
        rolled = v if off == 0 else pltpu.roll(v, shift=(-off) % n_rows, axis=0)
        return rolled * masks[:, t:t + 1]

    def gn_from_stats(x3, s, ss, gamma, beta, m, mt, eps=GN_EPS):
        """Per-image GroupNorm from precomputed per-image sums.

        x3: (BB, HW, C); s, ss: (BB, C) per-image sum / sum-of-squares.
        Stats matmuls are batched: one (2*BB,C)@(C,G) and one (2*BB,G)@(G,C).
        """
        c = x3.shape[-1]
        inv_cnt = 1.0 / float(hw * (c // num_groups))
        stats = jnp.concatenate([s, ss], axis=0)                         # (2BB, C)
        g = jnp.dot(stats, m, preferred_element_type=jnp.float32) * inv_cnt
        mean_g = g[:BB]                                                  # (BB, G)
        var_g = jnp.maximum(g[BB:] - mean_g * mean_g, 0.0)               # clamp >= 0
        pack = jnp.concatenate([mean_g, jax.lax.rsqrt(var_g + eps)], axis=0)
        cc = jnp.dot(pack, mt, preferred_element_type=jnp.float32)       # (2BB, C)
        mean_c = cc[:BB].reshape(BB, 1, c)
        inv_c = cc[BB:].reshape(BB, 1, c)
        return (x3 - mean_c) * inv_c * gamma + beta                      # (BB, HW, C)

    def group_norm(x2, gamma, beta, m, mt):
        n, c = x2.shape
        x3 = x2.reshape(BB, hw, c)
        s = jnp.sum(x3, axis=1)
        ss = jnp.sum(x3 * x3, axis=1)
        return gn_from_stats(x3, s, ss, gamma, beta, m, mt).reshape(n, c)

    # ---- BottleneckBlock[l] ----
    # conv1 (1x1) and the shortcut 1x1 fused into one K=768 bf16 MXU pass.
    # wcat columns: [:proj] = shortcut weight, [proj:] = conv1 weight.
    z = jnp.dot(x, wcat_ref[0], preferred_element_type=jnp.float32)  # (BBHW, proj+bott)
    z3 = z.reshape(BB, hw, proj + bott)
    s_all = jnp.sum(z3, axis=1)                                      # (BB, proj+bott)
    ss_all = jnp.sum(z3 * z3, axis=1)
    sc = gn_from_stats(z3[:, :, :proj], s_all[:, :proj], ss_all[:, :proj],
                       gscw_ref[l], gscb_ref[l], m_p, mt_p).reshape(n_rows, proj)
    y = gn_from_stats(z3[:, :, proj:], s_all[:, proj:], ss_all[:, proj:],
                      g1w_ref[l], g1b_ref[l], m_b, mt_b).reshape(n_rows, bott)
    y = jnp.maximum(y, 0.0)

    # conv2 (3x3, pad 1): one lane-dense (K=bott, N=9*bott) matmul, then
    # per-tap output-side shift + boundary mask + accumulate (row shifts and
    # row masks commute with the channel contraction -> exact).
    z2 = jnp.dot(y.astype(jnp.bfloat16), w2_ref[0],
                 preferred_element_type=jnp.float32)                 # (BBHW, 9*bott)
    acc = shift_mask(z2[:, :bott], 0)
    for t in range(1, 9):
        acc = acc + shift_mask(z2[:, t * bott:(t + 1) * bott], t)
    y = jnp.maximum(group_norm(acc, g2w_ref[l], g2b_ref[l], m_b, mt_b), 0.0)

    # conv3 (1x1) -> GN; residual with shortcut; relu.  The softmax mixing
    # weight mw[l] > 0 is pre-folded into the GN3 / GN_sc affine params, so
    # relu(y + sc) here already equals mw[l] * relu(y_orig + sc_orig).
    y = jnp.dot(y.astype(jnp.bfloat16), w3_ref[0],
                preferred_element_type=jnp.float32)                  # (BBHW, proj)
    y = group_norm(y, g3w_ref[l], g3b_ref[l], m_p, mt_p)
    contrib = jnp.maximum(y + sc, 0.0)

    @pl.when(l == 0)
    def _():
        out_ref[0] = contrib

    @pl.when(l != 0)
    def _():
        out_ref[0] = out_ref[0] + contrib

    # ---- MbConvBlock fused onto the last aggregation step ----
    @pl.when(l == L - 1)
    def _():
        a = out_ref[0]                                   # aggregated (BBHW, proj)
        shortcut = a
        # LayerNorm2d: per spatial position, normalize over channels
        mu = jnp.mean(a, axis=-1, keepdims=True)
        ac = a - mu
        var = jnp.mean(ac * ac, axis=-1, keepdims=True)
        yv = ac * jax.lax.rsqrt(var + LN_EPS) * lng_ref[...] + lnb_ref[...]
        # depthwise 3x3 conv (groups == channels) + GELU
        wdw = wdw_ref[...]                               # (9, proj)
        dacc = shift_mask(yv, 0) * wdw[0:1, :]
        for t in range(1, 9):
            dacc = dacc + shift_mask(yv, t) * wdw[t:t + 1, :]
        yv = _gelu(dacc)
        # squeeze-excite: per-image GAP -> fc1 -> GELU -> fc2 -> sigmoid gate
        gap = jnp.mean(yv.reshape(BB, hw, proj), axis=1)             # (BB, proj)
        sgate = _gelu(jnp.dot(gap.astype(jnp.bfloat16), se1_ref[...],
                              preferred_element_type=jnp.float32))
        sgate = jnp.dot(sgate.astype(jnp.bfloat16), se2_ref[...],
                        preferred_element_type=jnp.float32)
        gate = _sigmoid(sgate).reshape(BB, 1, proj)
        yv = (yv.reshape(BB, hw, proj) * gate).reshape(n_rows, proj)
        # pointwise 1x1 conv + residual (drop_path is identity in eval)
        yv = jnp.dot(yv.astype(jnp.bfloat16), pw_ref[...],
                     preferred_element_type=jnp.float32)
        out_ref[0] = yv + shortcut


# --------------------------------------------------------------------------
# JAX wrapper: layout plumbing + weight folding + pallas_call
# --------------------------------------------------------------------------
def caa_forward(x_nchw, params, H, W, num_groups=32, block_batch=None):
    B = x_nchw.shape[0]
    L, feature_dim, bott = params["w1"].shape
    proj = params["w3"].shape[-1]
    rd = params["se_fc1"].shape[-1]
    HW = H * W

    if block_batch is None:
        block_batch = next(bb for bb in (4, 2, 1) if B % bb == 0)
    BB = block_batch
    assert B % BB == 0, (B, BB)
    Bg = B // BB
    n_rows = BB * HW

    # NCHW -> (Bg, L, BB*HW, 768): BB images stacked per grid step; bf16
    # halves the activation DMA and feeds the MXU in its native dtype.
    x = (x_nchw.reshape(B, L, feature_dim, H, W)
         .transpose(0, 1, 3, 4, 2)
         .reshape(Bg, BB, L, HW, feature_dim)
         .transpose(0, 2, 1, 3, 4)
         .reshape(Bg, L, n_rows, feature_dim)
         .astype(jnp.bfloat16))

    # softmax mixing weights are strictly positive, so
    #   mw[l] * relu(y_l + sc_l) == relu(mw[l]*y_l + mw[l]*sc_l),
    # and mw[l] folds into the affine GN3 / GN_shortcut parameters.
    mw = jax.nn.softmax(params["mixing_weights"].astype(jnp.float32))   # (L,)
    mwl = mw[:, None, None]
    g3w, g3b = params["gn3_w"] * mwl, params["gn3_b"] * mwl
    gscw, gscb = params["gnsc_w"] * mwl, params["gnsc_b"] * mwl

    # fused conv1 + shortcut weight (bf16): cols [:proj] shortcut, [proj:] conv1
    wcat = jnp.concatenate([params["wsc"], params["w1"]],
                           axis=-1).astype(jnp.bfloat16)        # (L, 768, proj+bott)
    # conv2 weight as one (bott, 9*bott) slab: column block t = tap-t (in,out)
    w2 = (params["w2"].transpose(0, 2, 1, 3)
          .reshape(L, bott, 9 * bott).astype(jnp.bfloat16))
    w3 = params["w3"].astype(jnp.bfloat16)
    se1 = params["se_fc1"].astype(jnp.bfloat16)
    se2 = params["se_fc2"].astype(jnp.bfloat16)
    pw = params["pw_w"].astype(jnp.bfloat16)

    # hoisted per-grid constants: GN one-hots (f32 for exact stats) and the
    # 3x3 boundary masks (also zero cross-image roll leakage when BB > 1).
    def onehots(c):
        gs = c // num_groups
        grp = jnp.arange(c, dtype=jnp.int32) // gs
        m = (grp[:, None] == jnp.arange(num_groups, dtype=jnp.int32)[None, :])
        return m.astype(jnp.float32), m.T.astype(jnp.float32)

    m_b, mt_b = onehots(bott)
    m_p, mt_p = onehots(proj)

    local = jnp.arange(n_rows, dtype=jnp.int32) % HW
    hh, ww = local // W, local % W
    masks = jnp.stack(
        [((hh + t // 3 - 1 >= 0) & (hh + t // 3 - 1 < H) &
          (ww + t % 3 - 1 >= 0) & (ww + t % 3 - 1 < W)).astype(jnp.float32)
         for t in range(9)], axis=1)                            # (n_rows, 9)

    kernel = functools.partial(_caa_kernel, H, W, BB, num_groups, L)
    res3 = lambda b, l: (0, 0, 0)       # grid-resident 3-D weights (DMA'd once)
    res2 = lambda b, l: (0, 0)          # grid-resident 2-D weights
    perl = lambda b, l: (l, 0, 0)       # per-l weights (prefetch under compute)

    out = pl.pallas_call(
        kernel,
        out_shape=jax.ShapeDtypeStruct((Bg, n_rows, proj), jnp.float32),
        grid_spec=pltpu.PrefetchScalarGridSpec(
            num_scalar_prefetch=0,
            grid=(Bg, L),
            in_specs=[
                pl.BlockSpec((1, 1, n_rows, feature_dim), lambda b, l: (b, l, 0, 0)),
                pl.BlockSpec((1, feature_dim, proj + bott), perl),  # conv1+shortcut w
                pl.BlockSpec((1, bott, 9 * bott), perl),            # conv2 w (one slab)
                pl.BlockSpec((1, bott, proj), perl),                # conv3 w
                pl.BlockSpec((L, 1, bott), res3),                   # gn1 gamma
                pl.BlockSpec((L, 1, bott), res3),                   # gn1 beta
                pl.BlockSpec((L, 1, bott), res3),                   # gn2 gamma
                pl.BlockSpec((L, 1, bott), res3),                   # gn2 beta
                pl.BlockSpec((L, 1, proj), res3),                   # gn3 gamma (x mw)
                pl.BlockSpec((L, 1, proj), res3),                   # gn3 beta  (x mw)
                pl.BlockSpec((L, 1, proj), res3),                   # gn_sc gamma (x mw)
                pl.BlockSpec((L, 1, proj), res3),                   # gn_sc beta  (x mw)
                # MbConvBlock weights (grid-resident)
                pl.BlockSpec((1, proj), res2),                      # LN gamma
                pl.BlockSpec((1, proj), res2),                      # LN beta
                pl.BlockSpec((9, proj), res2),                      # depthwise w
                pl.BlockSpec((proj, rd), res2),                     # SE fc1 (bf16)
                pl.BlockSpec((rd, proj), res2),                     # SE fc2 (bf16)
                pl.BlockSpec((proj, proj), res2),                   # pointwise (bf16)
                # hoisted constants (grid-resident)
                pl.BlockSpec((bott, num_groups), res2),             # GN one-hot C->G
                pl.BlockSpec((num_groups, bott), res2),             # GN one-hot G->C
                pl.BlockSpec((proj, num_groups), res2),             # GN one-hot C->G
                pl.BlockSpec((num_groups, proj), res2),             # GN one-hot G->C
                pl.BlockSpec((n_rows, 9), res2),                    # 3x3 boundary masks
            ],
            out_specs=pl.BlockSpec((1, n_rows, proj), lambda b, l: (b, 0, 0)),
        ),
        compiler_params=pltpu.CompilerParams(
            dimension_semantics=("parallel", "arbitrary"),
            vmem_limit_bytes=32 * 1024 * 1024),
    )(x, wcat, w2, w3,
      params["gn1_w"], params["gn1_b"], params["gn2_w"], params["gn2_b"],
      g3w, g3b, gscw, gscb,
      params["ln_w"], params["ln_b"], params["dw_w"],
      se1, se2, pw,
      m_b, mt_b, m_p, mt_p, masks)

    # (Bg, BB*HW, proj) -> NCHW
    return (out.reshape(B, H, W, proj).transpose(0, 3, 1, 2))


# --------------------------------------------------------------------------
# deterministic parameter init (channels-last weight storage)
# --------------------------------------------------------------------------
def init_params(key, feature_dim=768, proj=256, rd=64, L=2):
    bott = proj // 4
    ks = jax.random.split(key, 18)

    def nrm(k, shape, scale):
        return scale * jax.random.normal(k, shape, jnp.float32)

    return dict(
        mixing_weights=jnp.ones((L,), jnp.float32),
        # BottleneckBlock weights, channels-last: (in, out); conv2 as (tap, in, out)
        # with tap = ky*3 + kx in cross-correlation order.
        w1=nrm(ks[0], (L, feature_dim, bott), 0.03),
        gn1_w=1.0 + nrm(ks[1], (L, 1, bott), 0.1),
        gn1_b=nrm(ks[2], (L, 1, bott), 0.1),
        w2=nrm(ks[3], (L, 9, bott, bott), 0.05),
        gn2_w=1.0 + nrm(ks[4], (L, 1, bott), 0.1),
        gn2_b=nrm(ks[5], (L, 1, bott), 0.1),
        w3=nrm(ks[6], (L, bott, proj), 0.05),
        gn3_w=1.0 + nrm(ks[7], (L, 1, proj), 0.1),
        gn3_b=nrm(ks[8], (L, 1, proj), 0.1),
        wsc=nrm(ks[9], (L, feature_dim, proj), 0.03),
        gnsc_w=1.0 + nrm(ks[10], (L, 1, proj), 0.1),
        gnsc_b=nrm(ks[11], (L, 1, proj), 0.1),
        # MbConvBlock weights
        ln_w=1.0 + nrm(ks[12], (1, proj), 0.1),
        ln_b=nrm(ks[13], (1, proj), 0.1),
        dw_w=nrm(ks[14], (9, proj), 0.1),
        se_fc1=nrm(ks[15], (proj, rd), 0.05),
        se_fc2=nrm(ks[16], (rd, proj), 0.05),
        pw_w=nrm(ks[17], (proj, proj), 0.05),
    )


if __name__ == "__main__":
    key = jax.random.PRNGKey(0)
    kx, kp = jax.random.split(key)
    # C = sum(feature_dims) = 768 + 768 = 1536 is fixed by the module.
    B, C, H, W = 2, 1536, 8, 8
    x = jax.random.normal(kx, (B, C, H, W), jnp.float32)      # PyTorch NCHW input
    params = init_params(kp)

    y = caa_forward(x, params, H=H, W=W)
    y = jax.block_until_ready(y)

    assert y.shape == (B, 256, H, W), y.shape
    assert bool(jnp.all(jnp.isfinite(y)))
    print("KERNEL_OK")
</pallas_src>

<mosaic_0001>
module attributes {stable_mosaic.version = 11 : i64} {
  func.func @_caa_kernel(%arg0: i32, %arg1: i32, %arg2: memref<1x1x128x768xbf16, #tpu.memory_space<vmem>>, %arg3: memref<1x768x320xbf16, #tpu.memory_space<vmem>>, %arg4: memref<1x64x576xbf16, #tpu.memory_space<vmem>>, %arg5: memref<1x64x256xbf16, #tpu.memory_space<vmem>>, %arg6: memref<2x1x64xf32, #tpu.memory_space<vmem>>, %arg7: memref<2x1x64xf32, #tpu.memory_space<vmem>>, %arg8: memref<2x1x64xf32, #tpu.memory_space<vmem>>, %arg9: memref<2x1x64xf32, #tpu.memory_space<vmem>>, %arg10: memref<2x1x256xf32, #tpu.memory_space<vmem>>, %arg11: memref<2x1x256xf32, #tpu.memory_space<vmem>>, %arg12: memref<2x1x256xf32, #tpu.memory_space<vmem>>, %arg13: memref<2x1x256xf32, #tpu.memory_space<vmem>>, %arg14: memref<1x256xf32, #tpu.memory_space<vmem>>, %arg15: memref<1x256xf32, #tpu.memory_space<vmem>>, %arg16: memref<9x256xf32, #tpu.memory_space<vmem>>, %arg17: memref<256x64xbf16, #tpu.memory_space<vmem>>, %arg18: memref<64x256xbf16, #tpu.memory_space<vmem>>, %arg19: memref<256x256xbf16, #tpu.memory_space<vmem>>, %arg20: memref<64x32xf32, #tpu.memory_space<vmem>>, %arg21: memref<32x64xf32, #tpu.memory_space<vmem>>, %arg22: memref<256x32xf32, #tpu.memory_space<vmem>>, %arg23: memref<32x256xf32, #tpu.memory_space<vmem>>, %arg24: memref<128x9xf32, #tpu.memory_space<vmem>>, %arg25: memref<1x128x256xf32, #tpu.memory_space<vmem>>) attributes {dimension_semantics = [#tpu.dimension_semantics<parallel>, #tpu.dimension_semantics<arbitrary>], iteration_bounds = array<i64: 1, 2>, scalar_prefetch = 0 : i64, scratch_operands = 0 : i64, tpu.core_type = #tpu.core_type<tc>, window_params = [{transform_indices = @transform_0, window_bounds = array<i64: 1, 1, 128, 768>}, {transform_indices = @transform_1, window_bounds = array<i64: 1, 768, 320>}, {transform_indices = @transform_2, window_bounds = array<i64: 1, 64, 576>}, {transform_indices = @transform_3, window_bounds = array<i64: 1, 64, 256>}, {pipeline_mode = #tpu.pipeline_mode<synchronous>, transform_indices = @transform_4, window_bounds = array<i64: 2, 1, 64>}, {pipeline_mode = #tpu.pipeline_mode<synchronous>, transform_indices = @transform_5, window_bounds = array<i64: 2, 1, 64>}, {pipeline_mode = #tpu.pipeline_mode<synchronous>, transform_indices = @transform_6, window_bounds = array<i64: 2, 1, 64>}, {pipeline_mode = #tpu.pipeline_mode<synchronous>, transform_indices = @transform_7, window_bounds = array<i64: 2, 1, 64>}, {pipeline_mode = #tpu.pipeline_mode<synchronous>, transform_indices = @transform_8, window_bounds = array<i64: 2, 1, 256>}, {pipeline_mode = #tpu.pipeline_mode<synchronous>, transform_indices = @transform_9, window_bounds = array<i64: 2, 1, 256>}, {pipeline_mode = #tpu.pipeline_mode<synchronous>, transform_indices = @transform_10, window_bounds = array<i64: 2, 1, 256>}, {pipeline_mode = #tpu.pipeline_mode<synchronous>, transform_indices = @transform_11, window_bounds = array<i64: 2, 1, 256>}, {pipeline_mode = #tpu.pipeline_mode<synchronous>, transform_indices = @transform_12, window_bounds = array<i64: 1, 256>}, {pipeline_mode = #tpu.pipeline_mode<synchronous>, transform_indices = @transform_13, window_bounds = array<i64: 1, 256>}, {pipeline_mode = #tpu.pipeline_mode<synchronous>, transform_indices = @transform_14, window_bounds = array<i64: 9, 256>}, {pipeline_mode = #tpu.pipeline_mode<synchronous>, transform_indices = @transform_15, window_bounds = array<i64: 256, 64>}, {pipeline_mode = #tpu.pipeline_mode<synchronous>, transform_indices = @transform_16, window_bounds = array<i64: 64, 256>}, {pipeline_mode = #tpu.pipeline_mode<synchronous>, transform_indices = @transform_17, window_bounds = array<i64: 256, 256>}, {pipeline_mode = #tpu.pipeline_mode<synchronous>, transform_indices = @transform_18, window_bounds = array<i64: 64, 32>}, {pipeline_mode = #tpu.pipeline_mode<synchronous>, transform_indices = @transform_19, window_bounds = array<i64: 32, 64>}, {pipeline_mode = #tpu.pipeline_mode<synchronous>, transform_indices = @transform_20, window_bounds = array<i64: 256, 32>}, {pipeline_mode = #tpu.pipeline_mode<synchronous>, transform_indices = @transform_21, window_bounds = array<i64: 32, 256>}, {pipeline_mode = #tpu.pipeline_mode<synchronous>, transform_indices = @transform_22, window_bounds = array<i64: 128, 9>}, {transform_indices = @transform_23, window_bounds = array<i64: 1, 128, 256>}]} {
    %c0 = arith.constant 0 : index
    %c0_0 = arith.constant 0 : index
    %c0_1 = arith.constant 0 : index
    %c0_2 = arith.constant 0 : index
    %0 = vector.load %arg2[%c0, %c0_0, %c0_1, %c0_2] : memref<1x1x128x768xbf16, #tpu.memory_space<vmem>>, vector<1x1x128x768xbf16>
    %1 = vector.shape_cast %0 : vector<1x1x128x768xbf16> to vector<128x768xbf16>
    %c0_3 = arith.constant 0 : index
    %c0_4 = arith.constant 0 : index
    %2 = vector.load %arg24[%c0_3, %c0_4] : memref<128x9xf32, #tpu.memory_space<vmem>>, vector<128x9xf32>
    %c0_5 = arith.constant 0 : index
    %c0_6 = arith.constant 0 : index
    %3 = vector.load %arg20[%c0_5, %c0_6] : memref<64x32xf32, #tpu.memory_space<vmem>>, vector<64x32xf32>
    %c0_7 = arith.constant 0 : index
    %c0_8 = arith.constant 0 : index
    %4 = vector.load %arg21[%c0_7, %c0_8] : memref<32x64xf32, #tpu.memory_space<vmem>>, vector<32x64xf32>
    %c0_9 = arith.constant 0 : index
    %c0_10 = arith.constant 0 : index
    %5 = vector.load %arg22[%c0_9, %c0_10] : memref<256x32xf32, #tpu.memory_space<vmem>>, vector<256x32xf32>
    %c0_11 = arith.constant 0 : index
    %c0_12 = arith.constant 0 : index
    %6 = vector.load %arg23[%c0_11, %c0_12] : memref<32x256xf32, #tpu.memory_space<vmem>>, vector<32x256xf32>
    %c0_13 = arith.constant 0 : index
    %c0_14 = arith.constant 0 : index
    %c0_15 = arith.constant 0 : index
    %7 = vector.load %arg3[%c0_13, %c0_14, %c0_15] : memref<1x768x320xbf16, #tpu.memory_space<vmem>>, vector<1x768x320xbf16>
    %8 = vector.shape_cast %7 : vector<1x768x320xbf16> to vector<768x320xbf16>
    %cst = arith.constant dense<0.000000e+00> : vector<128x320xf32>
    %9 = tpu.matmul %1, %8, %cst {dimension_numbers = #tpu.dot_dimension_numbers<[1], [0], [0], [1], [0, 0, 1, 1], [], []>} : vector<128x768xbf16>, vector<768x320xbf16>, vector<128x320xf32> -> vector<128x320xf32>
    %10 = vector.shape_cast %9 : vector<128x320xf32> to vector<2x64x320xf32>
    %cst_16 = arith.constant dense<0.000000e+00> : vector<2x320xf32>
    %11 = vector.multi_reduction <add>, %10, %cst_16 [1] : vector<2x64x320xf32> to vector<2x320xf32>
    %12 = arith.mulf %10, %10 : vector<2x64x320xf32>
    %cst_17 = arith.constant dense<0.000000e+00> : vector<2x320xf32>
    %13 = vector.multi_reduction <add>, %12, %cst_17 [1] : vector<2x64x320xf32> to vector<2x320xf32>
    %14 = vector.extract_strided_slice %10 {offsets = [0, 0, 0], sizes = [2, 64, 256], strides = [1, 1, 1]} : vector<2x64x320xf32> to vector<2x64x256xf32>
    %15 = vector.extract_strided_slice %11 {offsets = [0, 0], sizes = [2, 256], strides = [1, 1]} : vector<2x320xf32> to vector<2x256xf32>
    %16 = vector.extract_strided_slice %13 {offsets = [0, 0], sizes = [2, 256], strides = [1, 1]} : vector<2x320xf32> to vector<2x256xf32>
    %17 = arith.index_cast %arg1 : i32 to index
    %c0_18 = arith.constant 0 : index
    %c0_19 = arith.constant 0 : index
    %18 = vector.load %arg12[%17, %c0_18, %c0_19] : memref<2x1x256xf32, #tpu.memory_space<vmem>>, vector<1x1x256xf32>
    %19 = vector.shape_cast %18 : vector<1x1x256xf32> to vector<1x256xf32>
    %20 = arith.index_cast %arg1 : i32 to index
    %c0_20 = arith.constant 0 : index
    %c0_21 = arith.constant 0 : index
    %21 = vector.load %arg13[%20, %c0_20, %c0_21] : memref<2x1x256xf32, #tpu.memory_space<vmem>>, vector<1x1x256xf32>
    %22 = vector.shape_cast %21 : vector<1x1x256xf32> to vector<1x256xf32>
    %23 = tpu.concatenate %15, %16 in 0 : vector<2x256xf32>, vector<2x256xf32> -> vector<4x256xf32>
    %cst_22 = arith.constant dense<0.000000e+00> : vector<4x32xf32>
    %24 = tpu.matmul %23, %5, %cst_22 {dimension_numbers = #tpu.dot_dimension_numbers<[1], [0], [0], [1], [0, 0, 1, 1], [], []>} : vector<4x256xf32>, vector<256x32xf32>, vector<4x32xf32> -> vector<4x32xf32>
    %cst_23 = arith.constant 0.001953125 : f32
    %25 = vector.broadcast %cst_23 : f32 to vector<4x32xf32>
    %26 = arith.mulf %24, %25 : vector<4x32xf32>
    %27 = vector.extract_strided_slice %26 {offsets = [0, 0], sizes = [2, 32], strides = [1, 1]} : vector<4x32xf32> to vector<2x32xf32>
    %28 = vector.extract_strided_slice %26 {offsets = [2, 0], sizes = [2, 32], strides = [1, 1]} : vector<4x32xf32> to vector<2x32xf32>
    %29 = arith.mulf %27, %27 : vector<2x32xf32>
    %30 = arith.subf %28, %29 : vector<2x32xf32>
    %cst_24 = arith.constant 0.000000e+00 : f32
    %31 = vector.broadcast %cst_24 : f32 to vector<2x32xf32>
    %32 = arith.maximumf %30, %31 : vector<2x32xf32>
    %cst_25 = arith.constant 9.99999974E-6 : f32
    %33 = vector.broadcast %cst_25 : f32 to vector<2x32xf32>
    %34 = arith.addf %32, %33 : vector<2x32xf32>
    %35 = math.rsqrt %34 : vector<2x32xf32>
    %36 = tpu.concatenate %27, %35 in 0 : vector<2x32xf32>, vector<2x32xf32> -> vector<4x32xf32>
    %cst_26 = arith.constant dense<0.000000e+00> : vector<4x256xf32>
    %37 = tpu.matmul %36, %6, %cst_26 {dimension_numbers = #tpu.dot_dimension_numbers<[1], [0], [0], [1], [0, 0, 1, 1], [], []>} : vector<4x32xf32>, vector<32x256xf32>, vector<4x256xf32> -> vector<4x256xf32>
    %38 = vector.extract_strided_slice %37 {offsets = [0, 0], sizes = [2, 256], strides = [1, 1]} : vector<4x256xf32> to vector<2x256xf32>
    %39 = vector.shape_cast %38 : vector<2x256xf32> to vector<2x1x256xf32>
    %40 = vector.extract_strided_slice %37 {offsets = [2, 0], sizes = [2, 256], strides = [1, 1]} : vector<4x256xf32> to vector<2x256xf32>
    %41 = vector.shape_cast %40 : vector<2x256xf32> to vector<2x1x256xf32>
    %42 = vector.broadcast %39 : vector<2x1x256xf32> to vector<2x64x256xf32>
    %43 = arith.subf %14, %42 : vector<2x64x256xf32>
    %44 = vector.broadcast %41 : vector<2x1x256xf32> to vector<2x64x256xf32>
    %45 = arith.mulf %43, %44 : vector<2x64x256xf32>
    %46 = vector.shape_cast %19 : vector<1x256xf32> to vector<1x1x256xf32>
    %47 = vector.broadcast %46 : vector<1x1x256xf32> to vector<2x64x256xf32>
    %48 = arith.mulf %45, %47 : vector<2x64x256xf32>
    %49 = vector.shape_cast %22 : vector<1x256xf32> to vector<1x1x256xf32>
    %50 = vector.broadcast %49 : vector<1x1x256xf32> to vector<2x64x256xf32>
    %51 = arith.addf %48, %50 : vector<2x64x256xf32>
    %52 = vector.shape_cast %51 : vector<2x64x256xf32> to vector<128x256xf32>
    %53 = vector.extract_strided_slice %10 {offsets = [0, 0, 256], sizes = [2, 64, 64], strides = [1, 1, 1]} : vector<2x64x320xf32> to vector<2x64x64xf32>
    %54 = vector.extract_strided_slice %11 {offsets = [0, 256], sizes = [2, 64], strides = [1, 1]} : vector<2x320xf32> to vector<2x64xf32>
    %55 = vector.extract_strided_slice %13 {offsets = [0, 256], sizes = [2, 64], strides = [1, 1]} : vector<2x320xf32> to vector<2x64xf32>
    %56 = arith.index_cast %arg1 : i32 to index
    %c0_27 = arith.constant 0 : index
    %c0_28 = arith.constant 0 : index
    %57 = vector.load %arg6[%56, %c0_27, %c0_28] : memref<2x1x64xf32, #tpu.memory_space<vmem>>, vector<1x1x64xf32>
    %58 = vector.shape_cast %57 : vector<1x1x64xf32> to vector<1x64xf32>
    %59 = arith.index_cast %arg1 : i32 to index
    %c0_29 = arith.constant 0 : index
    %c0_30 = arith.constant 0 : index
    %60 = vector.load %arg7[%59, %c0_29, %c0_30] : memref<2x1x64xf32, #tpu.memory_space<vmem>>, vector<1x1x64xf32>
    %61 = vector.shape_cast %60 : vector<1x1x64xf32> to vector<1x64xf32>
    %62 = tpu.concatenate %54, %55 in 0 : vector<2x64xf32>, vector<2x64xf32> -> vector<4x64xf32>
    %cst_31 = arith.constant dense<0.000000e+00> : vector<4x32xf32>
    %63 = tpu.matmul %62, %3, %cst_31 {dimension_numbers = #tpu.dot_dimension_numbers<[1], [0], [0], [1], [0, 0, 1, 1], [], []>} : vector<4x64xf32>, vector<64x32xf32>, vector<4x32xf32> -> vector<4x32xf32>
    %cst_32 = arith.constant 7.812500e-03 : f32
    %64 = vector.broadcast %cst_32 : f32 to vector<4x32xf32>
    %65 = arith.mulf %63, %64 : vector<4x32xf32>
    %66 = vector.extract_strided_slice %65 {offsets = [0, 0], sizes = [2, 32], strides = [1, 1]} : vector<4x32xf32> to vector<2x32xf32>
    %67 = vector.extract_strided_slice %65 {offsets = [2, 0], sizes = [2, 32], strides = [1, 1]} : vector<4x32xf32> to vector<2x32xf32>
    %68 = arith.mulf %66, %66 : vector<2x32xf32>
    %69 = arith.subf %67, %68 : vector<2x32xf32>
    %cst_33 = arith.constant 0.000000e+00 : f32
    %70 = vector.broadcast %cst_33 : f32 to vector<2x32xf32>
    %71 = arith.maximumf %69, %70 : vector<2x32xf32>
    %cst_34 = arith.constant 9.99999974E-6 : f32
    %72 = vector.broadcast %cst_34 : f32 to vector<2x32xf32>
    %73 = arith.addf %71, %72 : vector<2x32xf32>
    %74 = math.rsqrt %73 : vector<2x32xf32>
    %75 = tpu.concatenate %66, %74 in 0 : vector<2x32xf32>, vector<2x32xf32> -> vector<4x32xf32>
    %cst_35 = arith.constant dense<0.000000e+00> : vector<4x64xf32>
    %76 = tpu.matmul %75, %4, %cst_35 {dimension_numbers = #tpu.dot_dimension_numbers<[1], [0], [0], [1], [0, 0, 1, 1], [], []>} : vector<4x32xf32>, vector<32x64xf32>, vector<4x64xf32> -> vector<4x64xf32>
    %77 = vector.extract_strided_slice %76 {offsets = [0, 0], sizes = [2, 64], strides = [1, 1]} : vector<4x64xf32> to vector<2x64xf32>
    %78 = vector.shape_cast %77 : vector<2x64xf32> to vector<2x1x64xf32>
    %79 = vector.extract_strided_slice %76 {offsets = [2, 0], sizes = [2, 64], strides = [1, 1]} : vector<4x64xf32> to vector<2x64xf32>
    %80 = vector.shape_cast %79 : vector<2x64xf32> to vector<2x1x64xf32>
    %81 = vector.broadcast %78 : vector<2x1x64xf32> to vector<2x64x64xf32>
    %82 = arith.subf %53, %81 : vector<2x64x64xf32>
    %83 = vector.broadcast %80 : vector<2x1x64xf32> to vector<2x64x64xf32>
    %84 = arith.mulf %82, %83 : vector<2x64x64xf32>
    %85 = vector.shape_cast %58 : vector<1x64xf32> to vector<1x1x64xf32>
    %86 = vector.broadcast %85 : vector<1x1x64xf32> to vector<2x64x64xf32>
    %87 = arith.mulf %84, %86 : vector<2x64x64xf32>
    %88 = vector.shape_cast %61 : vector<1x64xf32> to vector<1x1x64xf32>
    %89 = vector.broadcast %88 : vector<1x1x64xf32> to vector<2x64x64xf32>
    %90 = arith.addf %87, %89 : vector<2x64x64xf32>
    %91 = vector.shape_cast %90 : vector<2x64x64xf32> to vector<128x64xf32>
    %cst_36 = arith.constant 0.000000e+00 : f32
    %92 = vector.broadcast %cst_36 : f32 to vector<128x64xf32>
    %93 = arith.maximumf %91, %92 : vector<128x64xf32>
    %94 = arith.truncf %93 : vector<128x64xf32> to vector<128x64xbf16>
    %c0_37 = arith.constant 0 : index
    %c0_38 = arith.constant 0 : index
    %c0_39 = arith.constant 0 : index
    %95 = vector.load %arg4[%c0_37, %c0_38, %c0_39] : memref<1x64x576xbf16, #tpu.memory_space<vmem>>, vector<1x64x576xbf16>
    %96 = vector.shape_cast %95 : vector<1x64x576xbf16> to vector<64x576xbf16>
    %cst_40 = arith.constant dense<0.000000e+00> : vector<128x576xf32>
    %97 = tpu.matmul %94, %96, %cst_40 {dimension_numbers = #tpu.dot_dimension_numbers<[1], [0], [0], [1], [0, 0, 1, 1], [], []>} : vector<128x64xbf16>, vector<64x576xbf16>, vector<128x576xf32> -> vector<128x576xf32>
    %98 = vector.extract_strided_slice %97 {offsets = [0, 0], sizes = [128, 64], strides = [1, 1]} : vector<128x576xf32> to vector<128x64xf32>
    %c9_i32 = arith.constant 9 : i32
    %99 = tpu.dynamic_rotate %98 by %c9_i32 dim 0 : vector<128x64xf32>, i32 -> vector<128x64xf32>
    %100 = vector.extract_strided_slice %2 {offsets = [0, 0], sizes = [128, 1], strides = [1, 1]} : vector<128x9xf32> to vector<128x1xf32>
    %101 = vector.broadcast %100 : vector<128x1xf32> to vector<128x64xf32>
    %102 = arith.mulf %99, %101 : vector<128x64xf32>
    %103 = vector.extract_strided_slice %97 {offsets = [0, 64], sizes = [128, 64], strides = [1, 1]} : vector<128x576xf32> to vector<128x64xf32>
    %c8_i32 = arith.constant 8 : i32
    %104 = tpu.dynamic_rotate %103 by %c8_i32 dim 0 : vector<128x64xf32>, i32 -> vector<128x64xf32>
    %105 = vector.extract_strided_slice %2 {offsets = [0, 1], sizes = [128, 1], strides = [1, 1]} : vector<128x9xf32> to vector<128x1xf32>
    %106 = vector.broadcast %105 : vector<128x1xf32> to vector<128x64xf32>
    %107 = arith.mulf %104, %106 : vector<128x64xf32>
    %108 = arith.addf %102, %107 : vector<128x64xf32>
    %109 = vector.extract_strided_slice %97 {offsets = [0, 128], sizes = [128, 64], strides = [1, 1]} : vector<128x576xf32> to vector<128x64xf32>
    %c7_i32 = arith.constant 7 : i32
    %110 = tpu.dynamic_rotate %109 by %c7_i32 dim 0 : vector<128x64xf32>, i32 -> vector<128x64xf32>
    %111 = vector.extract_strided_slice %2 {offsets = [0, 2], sizes = [128, 1], strides = [1, 1]} : vector<128x9xf32> to vector<128x1xf32>
    %112 = vector.broadcast %111 : vector<128x1xf32> to vector<128x64xf32>
    %113 = arith.mulf %110, %112 : vector<128x64xf32>
    %114 = arith.addf %108, %113 : vector<128x64xf32>
    %115 = vector.extract_strided_slice %97 {offsets = [0, 192], sizes = [128, 64], strides = [1, 1]} : vector<128x576xf32> to vector<128x64xf32>
    %c1_i32 = arith.constant 1 : i32
    %116 = tpu.dynamic_rotate %115 by %c1_i32 dim 0 : vector<128x64xf32>, i32 -> vector<128x64xf32>
    %117 = vector.extract_strided_slice %2 {offsets = [0, 3], sizes = [128, 1], strides = [1, 1]} : vector<128x9xf32> to vector<128x1xf32>
    %118 = vector.broadcast %117 : vector<128x1xf32> to vector<128x64xf32>
    %119 = arith.mulf %116, %118 : vector<128x64xf32>
    %120 = arith.addf %114, %119 : vector<128x64xf32>
    %121 = vector.extract_strided_slice %97 {offsets = [0, 256], sizes = [128, 64], strides = [1, 1]} : vector<128x576xf32> to vector<128x64xf32>
    %122 = vector.extract_strided_slice %2 {offsets = [0, 4], sizes = [128, 1], strides = [1, 1]} : vector<128x9xf32> to vector<128x1xf32>
    %123 = vector.broadcast %122 : vector<128x1xf32> to vector<128x64xf32>
    %124 = arith.mulf %121, %123 : vector<128x64xf32>
    %125 = arith.addf %120, %124 : vector<128x64xf32>
    %126 = vector.extract_strided_slice %97 {offsets = [0, 320], sizes = [128, 64], strides = [1, 1]} : vector<128x576xf32> to vector<128x64xf32>
    %c127_i32 = arith.constant 127 : i32
    %127 = tpu.dynamic_rotate %126 by %c127_i32 dim 0 : vector<128x64xf32>, i32 -> vector<128x64xf32>
    %128 = vector.extract_strided_slice %2 {offsets = [0, 5], sizes = [128, 1], strides = [1, 1]} : vector<128x9xf32> to vector<128x1xf32>
    %129 = vector.broadcast %128 : vector<128x1xf32> to vector<128x64xf32>
    %130 = arith.mulf %127, %129 : vector<128x64xf32>
    %131 = arith.addf %125, %130 : vector<128x64xf32>
    %132 = vector.extract_strided_slice %97 {offsets = [0, 384], sizes = [128, 64], strides = [1, 1]} : vector<128x576xf32> to vector<128x64xf32>
    %c121_i32 = arith.constant 121 : i32
    %133 = tpu.dynamic_rotate %132 by %c121_i32 dim 0 : vector<128x64xf32>, i32 -> vector<128x64xf32>
    %134 = vector.extract_strided_slice %2 {offsets = [0, 6], sizes = [128, 1], strides = [1, 1]} : vector<128x9xf32> to vector<128x1xf32>
    %135 = vector.broadcast %134 : vector<128x1xf32> to vector<128x64xf32>
    %136 = arith.mulf %133, %135 : vector<128x64xf32>
    %137 = arith.addf %131, %136 : vector<128x64xf32>
    %138 = vector.extract_strided_slice %97 {offsets = [0, 448], sizes = [128, 64], strides = [1, 1]} : vector<128x576xf32> to vector<128x64xf32>
    %c120_i32 = arith.constant 120 : i32
    %139 = tpu.dynamic_rotate %138 by %c120_i32 dim 0 : vector<128x64xf32>, i32 -> vector<128x64xf32>
    %140 = vector.extract_strided_slice %2 {offsets = [0, 7], sizes = [128, 1], strides = [1, 1]} : vector<128x9xf32> to vector<128x1xf32>
    %141 = vector.broadcast %140 : vector<128x1xf32> to vector<128x64xf32>
    %142 = arith.mulf %139, %141 : vector<128x64xf32>
    %143 = arith.addf %137, %142 : vector<128x64xf32>
    %144 = vector.extract_strided_slice %97 {offsets = [0, 512], sizes = [128, 64], strides = [1, 1]} : vector<128x576xf32> to vector<128x64xf32>
    %c119_i32 = arith.constant 119 : i32
    %145 = tpu.dynamic_rotate %144 by %c119_i32 dim 0 : vector<128x64xf32>, i32 -> vector<128x64xf32>
    %146 = vector.extract_strided_slice %2 {offsets = [0, 8], sizes = [128, 1], strides = [1, 1]} : vector<128x9xf32> to vector<128x1xf32>
    %147 = vector.broadcast %146 : vector<128x1xf32> to vector<128x64xf32>
    %148 = arith.mulf %145, %147 : vector<128x64xf32>
    %149 = arith.addf %143, %148 : vector<128x64xf32>
    %150 = arith.index_cast %arg1 : i32 to index
    %c0_41 = arith.constant 0 : index
    %c0_42 = arith.constant 0 : index
    %151 = vector.load %arg8[%150, %c0_41, %c0_42] : memref<2x1x64xf32, #tpu.memory_space<vmem>>, vector<1x1x64xf32>
    %152 = vector.shape_cast %151 : vector<1x1x64xf32> to vector<1x64xf32>
    %153 = arith.index_cast %arg1 : i32 to index
    %c0_43 = arith.constant 0 : index
    %c0_44 = arith.constant 0 : index
    %154 = vector.load %arg9[%153, %c0_43, %c0_44] : memref<2x1x64xf32, #tpu.memory_space<vmem>>, vector<1x1x64xf32>
    %155 = vector.shape_cast %154 : vector<1x1x64xf32> to vector<1x64xf32>
    %156 = vector.shape_cast %149 : vector<128x64xf32> to vector<2x64x64xf32>
    %cst_45 = arith.constant dense<0.000000e+00> : vector<2x64xf32>
    %157 = vector.multi_reduction <add>, %156, %cst_45 [1] : vector<2x64x64xf32> to vector<2x64xf32>
    %158 = arith.mulf %156, %156 : vector<2x64x64xf32>
    %cst_46 = arith.constant dense<0.000000e+00> : vector<2x64xf32>
    %159 = vector.multi_reduction <add>, %158, %cst_46 [1] : vector<2x64x64xf32> to vector<2x64xf32>
    %160 = tpu.concatenate %157, %159 in 0 : vector<2x64xf32>, vector<2x64xf32> -> vector<4x64xf32>
    %cst_47 = arith.constant dense<0.000000e+00> : vector<4x32xf32>
    %161 = tpu.matmul %160, %3, %cst_47 {dimension_numbers = #tpu.dot_dimension_numbers<[1], [0], [0], [1], [0, 0, 1, 1], [], []>} : vector<4x64xf32>, vector<64x32xf32>, vector<4x32xf32> -> vector<4x32xf32>
    %cst_48 = arith.constant 7.812500e-03 : f32
    %162 = vector.broadcast %cst_48 : f32 to vector<4x32xf32>
    %163 = arith.mulf %161, %162 : vector<4x32xf32>
    %164 = vector.extract_strided_slice %163 {offsets = [0, 0], sizes = [2, 32], strides = [1, 1]} : vector<4x32xf32> to vector<2x32xf32>
    %165 = vector.extract_strided_slice %163 {offsets = [2, 0], sizes = [2, 32], strides = [1, 1]} : vector<4x32xf32> to vector<2x32xf32>
    %166 = arith.mulf %164, %164 : vector<2x32xf32>
    %167 = arith.subf %165, %166 : vector<2x32xf32>
    %cst_49 = arith.constant 0.000000e+00 : f32
    %168 = vector.broadcast %cst_49 : f32 to vector<2x32xf32>
    %169 = arith.maximumf %167, %168 : vector<2x32xf32>
    %cst_50 = arith.constant 9.99999974E-6 : f32
    %170 = vector.broadcast %cst_50 : f32 to vector<2x32xf32>
    %171 = arith.addf %169, %170 : vector<2x32xf32>
    %172 = math.rsqrt %171 : vector<2x32xf32>
    %173 = tpu.concatenate %164, %172 in 0 : vector<2x32xf32>, vector<2x32xf32> -> vector<4x32xf32>
    %cst_51 = arith.constant dense<0.000000e+00> : vector<4x64xf32>
    %174 = tpu.matmul %173, %4, %cst_51 {dimension_numbers = #tpu.dot_dimension_numbers<[1], [0], [0], [1], [0, 0, 1, 1], [], []>} : vector<4x32xf32>, vector<32x64xf32>, vector<4x64xf32> -> vector<4x64xf32>
    %175 = vector.extract_strided_slice %174 {offsets = [0, 0], sizes = [2, 64], strides = [1, 1]} : vector<4x64xf32> to vector<2x64xf32>
    %176 = vector.shape_cast %175 : vector<2x64xf32> to vector<2x1x64xf32>
    %177 = vector.extract_strided_slice %174 {offsets = [2, 0], sizes = [2, 64], strides = [1, 1]} : vector<4x64xf32> to vector<2x64xf32>
    %178 = vector.shape_cast %177 : vector<2x64xf32> to vector<2x1x64xf32>
    %179 = vector.broadcast %176 : vector<2x1x64xf32> to vector<2x64x64xf32>
    %180 = arith.subf %156, %179 : vector<2x64x64xf32>
    %181 = vector.broadcast %178 : vector<2x1x64xf32> to vector<2x64x64xf32>
    %182 = arith.mulf %180, %181 : vector<2x64x64xf32>
    %183 = vector.shape_cast %152 : vector<1x64xf32> to vector<1x1x64xf32>
    %184 = vector.broadcast %183 : vector<1x1x64xf32> to vector<2x64x64xf32>
    %185 = arith.mulf %182, %184 : vector<2x64x64xf32>
    %186 = vector.shape_cast %155 : vector<1x64xf32> to vector<1x1x64xf32>
    %187 = vector.broadcast %186 : vector<1x1x64xf32> to vector<2x64x64xf32>
    %188 = arith.addf %185, %187 : vector<2x64x64xf32>
    %189 = vector.shape_cast %188 : vector<2x64x64xf32> to vector<128x64xf32>
    %cst_52 = arith.constant 0.000000e+00 : f32
    %190 = vector.broadcast %cst_52 : f32 to vector<128x64xf32>
    %191 = arith.maximumf %189, %190 : vector<128x64xf32>
    %192 = arith.truncf %191 : vector<128x64xf32> to vector<128x64xbf16>
    %c0_53 = arith.constant 0 : index
    %c0_54 = arith.constant 0 : index
    %c0_55 = arith.constant 0 : index
    %193 = vector.load %arg5[%c0_53, %c0_54, %c0_55] : memref<1x64x256xbf16, #tpu.memory_space<vmem>>, vector<1x64x256xbf16>
    %194 = vector.shape_cast %193 : vector<1x64x256xbf16> to vector<64x256xbf16>
    %cst_56 = arith.constant dense<0.000000e+00> : vector<128x256xf32>
    %195 = tpu.matmul %192, %194, %cst_56 {dimension_numbers = #tpu.dot_dimension_numbers<[1], [0], [0], [1], [0, 0, 1, 1], [], []>} : vector<128x64xbf16>, vector<64x256xbf16>, vector<128x256xf32> -> vector<128x256xf32>
    %196 = arith.index_cast %arg1 : i32 to index
    %c0_57 = arith.constant 0 : index
    %c0_58 = arith.constant 0 : index
    %197 = vector.load %arg10[%196, %c0_57, %c0_58] : memref<2x1x256xf32, #tpu.memory_space<vmem>>, vector<1x1x256xf32>
    %198 = vector.shape_cast %197 : vector<1x1x256xf32> to vector<1x256xf32>
    %199 = arith.index_cast %arg1 : i32 to index
    %c0_59 = arith.constant 0 : index
    %c0_60 = arith.constant 0 : index
    %200 = vector.load %arg11[%199, %c0_59, %c0_60] : memref<2x1x256xf32, #tpu.memory_space<vmem>>, vector<1x1x256xf32>
    %201 = vector.shape_cast %200 : vector<1x1x256xf32> to vector<1x256xf32>
    %202 = vector.shape_cast %195 : vector<128x256xf32> to vector<2x64x256xf32>
    %cst_61 = arith.constant dense<0.000000e+00> : vector<2x256xf32>
    %203 = vector.multi_reduction <add>, %202, %cst_61 [1] : vector<2x64x256xf32> to vector<2x256xf32>
    %204 = arith.mulf %202, %202 : vector<2x64x256xf32>
    %cst_62 = arith.constant dense<0.000000e+00> : vector<2x256xf32>
    %205 = vector.multi_reduction <add>, %204, %cst_62 [1] : vector<2x64x256xf32> to vector<2x256xf32>
    %206 = tpu.concatenate %203, %205 in 0 : vector<2x256xf32>, vector<2x256xf32> -> vector<4x256xf32>
    %cst_63 = arith.constant dense<0.000000e+00> : vector<4x32xf32>
    %207 = tpu.matmul %206, %5, %cst_63 {dimension_numbers = #tpu.dot_dimension_numbers<[1], [0], [0], [1], [0, 0, 1, 1], [], []>} : vector<4x256xf32>, vector<256x32xf32>, vector<4x32xf32> -> vector<4x32xf32>
    %cst_64 = arith.constant 0.001953125 : f32
    %208 = vector.broadcast %cst_64 : f32 to vector<4x32xf32>
    %209 = arith.mulf %207, %208 : vector<4x32xf32>
    %210 = vector.extract_strided_slice %209 {offsets = [0, 0], sizes = [2, 32], strides = [1, 1]} : vector<4x32xf32> to vector<2x32xf32>
    %211 = vector.extract_strided_slice %209 {offsets = [2, 0], sizes = [2, 32], strides = [1, 1]} : vector<4x32xf32> to vector<2x32xf32>
    %212 = arith.mulf %210, %210 : vector<2x32xf32>
    %213 = arith.subf %211, %212 : vector<2x32xf32>
    %cst_65 = arith.constant 0.000000e+00 : f32
    %214 = vector.broadcast %cst_65 : f32 to vector<2x32xf32>
    %215 = arith.maximumf %213, %214 : vector<2x32xf32>
    %cst_66 = arith.constant 9.99999974E-6 : f32
    %216 = vector.broadcast %cst_66 : f32 to vector<2x32xf32>
    %217 = arith.addf %215, %216 : vector<2x32xf32>
    %218 = math.rsqrt %217 : vector<2x32xf32>
    %219 = tpu.concatenate %210, %218 in 0 : vector<2x32xf32>, vector<2x32xf32> -> vector<4x32xf32>
    %cst_67 = arith.constant dense<0.000000e+00> : vector<4x256xf32>
    %220 = tpu.matmul %219, %6, %cst_67 {dimension_numbers = #tpu.dot_dimension_numbers<[1], [0], [0], [1], [0, 0, 1, 1], [], []>} : vector<4x32xf32>, vector<32x256xf32>, vector<4x256xf32> -> vector<4x256xf32>
    %221 = vector.extract_strided_slice %220 {offsets = [0, 0], sizes = [2, 256], strides = [1, 1]} : vector<4x256xf32> to vector<2x256xf32>
    %222 = vector.shape_cast %221 : vector<2x256xf32> to vector<2x1x256xf32>
    %223 = vector.extract_strided_slice %220 {offsets = [2, 0], sizes = [2, 256], strides = [1, 1]} : vector<4x256xf32> to vector<2x256xf32>
    %224 = vector.shape_cast %223 : vector<2x256xf32> to vector<2x1x256xf32>
    %225 = vector.broadcast %222 : vector<2x1x256xf32> to vector<2x64x256xf32>
    %226 = arith.subf %202, %225 : vector<2x64x256xf32>
    %227 = vector.broadcast %224 : vector<2x1x256xf32> to vector<2x64x256xf32>
    %228 = arith.mulf %226, %227 : vector<2x64x256xf32>
    %229 = vector.shape_cast %198 : vector<1x256xf32> to vector<1x1x256xf32>
    %230 = vector.broadcast %229 : vector<1x1x256xf32> to vector<2x64x256xf32>
    %231 = arith.mulf %228, %230 : vector<2x64x256xf32>
    %232 = vector.shape_cast %201 : vector<1x256xf32> to vector<1x1x256xf32>
    %233 = vector.broadcast %232 : vector<1x1x256xf32> to vector<2x64x256xf32>
    %234 = arith.addf %231, %233 : vector<2x64x256xf32>
    %235 = vector.shape_cast %234 : vector<2x64x256xf32> to vector<128x256xf32>
    %236 = arith.addf %235, %52 : vector<128x256xf32>
    %cst_68 = arith.constant 0.000000e+00 : f32
    %237 = vector.broadcast %cst_68 : f32 to vector<128x256xf32>
    %238 = arith.maximumf %236, %237 : vector<128x256xf32>
    %c0_i32 = arith.constant 0 : i32
    %239 = arith.cmpi eq, %arg1, %c0_i32 : i32
    %240 = arith.extui %239 : i1 to i32
    %c0_i32_69 = arith.constant 0 : i32
    %241 = arith.cmpi ne, %240, %c0_i32_69 : i32
    scf.if %241 {
      %c0_74 = arith.constant 0 : index
      %c0_75 = arith.constant 0 : index
      %c0_76 = arith.constant 0 : index
      %248 = vector.load %arg25[%c0_74, %c0_75, %c0_76] : memref<1x128x256xf32, #tpu.memory_space<vmem>>, vector<1x128x256xf32>
      %249 = vector.shape_cast %248 : vector<1x128x256xf32> to vector<128x256xf32>
      %250 = vector.shape_cast %238 : vector<128x256xf32> to vector<1x128x256xf32>
      tpu.vector_store %arg25[%c0_74, %c0_75, %c0_76], %250 {strides = array<i32>} : memref<1x128x256xf32, #tpu.memory_space<vmem>>, vector<1x128x256xf32>,
    } else {
    }
    %c0_i32_70 = arith.constant 0 : i32
    %242 = arith.cmpi ne, %arg1, %c0_i32_70 : i32
    %243 = arith.extui %242 : i1 to i32
    %c0_i32_71 = arith.constant 0 : i32
    %244 = arith.cmpi ne, %243, %c0_i32_71 : i32
    scf.if %244 {
      %c0_74 = arith.constant 0 : index
      %c0_75 = arith.constant 0 : index
      %c0_76 = arith.constant 0 : index
      %248 = vector.load %arg25[%c0_74, %c0_75, %c0_76] : memref<1x128x256xf32, #tpu.memory_space<vmem>>, vector<1x128x256xf32>
      %249 = vector.shape_cast %248 : vector<1x128x256xf32> to vector<128x256xf32>
      %250 = arith.addf %249, %238 : vector<128x256xf32>
      %c0_77 = arith.constant 0 : index
      %c0_78 = arith.constant 0 : index
      %c0_79 = arith.constant 0 : index
      %251 = vector.load %arg25[%c0_77, %c0_78, %c0_79] : memref<1x128x256xf32, #tpu.memory_space<vmem>>, vector<1x128x256xf32>
      %252 = vector.shape_cast %251 : vector<1x128x256xf32> to vector<128x256xf32>
      %253 = vector.shape_cast %250 : vector<128x256xf32> to vector<1x128x256xf32>
      tpu.vector_store %arg25[%c0_77, %c0_78, %c0_79], %253 {strides = array<i32>} : memref<1x128x256xf32, #tpu.memory_space<vmem>>, vector<1x128x256xf32>,
    } else {
    }
    %c1_i32_72 = arith.constant 1 : i32
    %245 = arith.cmpi eq, %arg1, %c1_i32_72 : i32
    %246 = arith.extui %245 : i1 to i32
    %c0_i32_73 = arith.constant 0 : i32
    %247 = arith.cmpi ne, %246, %c0_i32_73 : i32
    scf.if %247 {
      %c0_74 = arith.constant 0 : index
      %c0_75 = arith.constant 0 : index
      %c0_76 = arith.constant 0 : index
      %248 = vector.load %arg25[%c0_74, %c0_75, %c0_76] : memref<1x128x256xf32, #tpu.memory_space<vmem>>, vector<1x128x256xf32>
      %249 = vector.shape_cast %248 : vector<1x128x256xf32> to vector<128x256xf32>
      %cst_77 = arith.constant dense<0.000000e+00> : vector<128xf32>
      %250 = vector.multi_reduction <add>, %249, %cst_77 [1] : vector<128x256xf32> to vector<128xf32>
      %251 = vector.shape_cast %250 : vector<128xf32> to vector<128x1xf32>
      %cst_78 = arith.constant 2.560000e+02 : f32
      %252 = vector.broadcast %cst_78 : f32 to vector<128x1xf32>
      %253 = arith.divf %251, %252 : vector<128x1xf32>
      %254 = vector.broadcast %253 : vector<128x1xf32> to vector<128x256xf32>
      %255 = arith.subf %249, %254 : vector<128x256xf32>
      %256 = arith.mulf %255, %255 : vector<128x256xf32>
      %cst_79 = arith.constant dense<0.000000e+00> : vector<128xf32>
      %257 = vector.multi_reduction <add>, %256, %cst_79 [1] : vector<128x256xf32> to vector<128xf32>
      %258 = vector.shape_cast %257 : vector<128xf32> to vector<128x1xf32>
      %cst_80 = arith.constant 2.560000e+02 : f32
      %259 = vector.broadcast %cst_80 : f32 to vector<128x1xf32>
      %260 = arith.divf %258, %259 : vector<128x1xf32>
      %cst_81 = arith.constant 9.99999997E-7 : f32
      %261 = vector.broadcast %cst_81 : f32 to vector<128x1xf32>
      %262 = arith.addf %260, %261 : vector<128x1xf32>
      %263 = math.rsqrt %262 : vector<128x1xf32>
      %264 = vector.broadcast %263 : vector<128x1xf32> to vector<128x256xf32>
      %265 = arith.mulf %255, %264 : vector<128x256xf32>
      %c0_82 = arith.constant 0 : index
      %c0_83 = arith.constant 0 : index
      %266 = vector.load %arg14[%c0_82, %c0_83] : memref<1x256xf32, #tpu.memory_space<vmem>>, vector<1x256xf32>
      %267 = vector.broadcast %266 : vector<1x256xf32> to vector<128x256xf32>
      %268 = arith.mulf %265, %267 : vector<128x256xf32>
      %c0_84 = arith.constant 0 : index
      %c0_85 = arith.constant 0 : index
      %269 = vector.load %arg15[%c0_84, %c0_85] : memref<1x256xf32, #tpu.memory_space<vmem>>, vector<1x256xf32>
      %270 = vector.broadcast %269 : vector<1x256xf32> to vector<128x256xf32>
      %271 = arith.addf %268, %270 : vector<128x256xf32>
      %c0_86 = arith.constant 0 : index
      %c0_87 = arith.constant 0 : index
      %272 = vector.load %arg16[%c0_86, %c0_87] : memref<9x256xf32, #tpu.memory_space<vmem>>, vector<9x256xf32>
      %c9_i32_88 = arith.constant 9 : i32
      %273 = tpu.dynamic_rotate %271 by %c9_i32_88 dim 0 : vector<128x256xf32>, i32 -> vector<128x256xf32>
      %274 = vector.extract_strided_slice %2 {offsets = [0, 0], sizes = [128, 1], strides = [1, 1]} : vector<128x9xf32> to vector<128x1xf32>
      %275 = vector.broadcast %274 : vector<128x1xf32> to vector<128x256xf32>
      %276 = arith.mulf %273, %275 : vector<128x256xf32>
      %277 = vector.extract_strided_slice %272 {offsets = [0, 0], sizes = [1, 256], strides = [1, 1]} : vector<9x256xf32> to vector<1x256xf32>
      %278 = vector.broadcast %277 : vector<1x256xf32> to vector<128x256xf32>
      %279 = arith.mulf %276, %278 : vector<128x256xf32>
      %c8_i32_89 = arith.constant 8 : i32
      %280 = tpu.dynamic_rotate %271 by %c8_i32_89 dim 0 : vector<128x256xf32>, i32 -> vector<128x256xf32>
      %281 = vector.extract_strided_slice %2 {offsets = [0, 1], sizes = [128, 1], strides = [1, 1]} : vector<128x9xf32> to vector<128x1xf32>
      %282 = vector.broadcast %281 : vector<128x1xf32> to vector<128x256xf32>
      %283 = arith.mulf %280, %282 : vector<128x256xf32>
      %284 = vector.extract_strided_slice %272 {offsets = [1, 0], sizes = [1, 256], strides = [1, 1]} : vector<9x256xf32> to vector<1x256xf32>
      %285 = vector.broadcast %284 : vector<1x256xf32> to vector<128x256xf32>
      %286 = arith.mulf %283, %285 : vector<128x256xf32>
      %287 = arith.addf %279, %286 : vector<128x256xf32>
      %c7_i32_90 = arith.constant 7 : i32
      %288 = tpu.dynamic_rotate %271 by %c7_i32_90 dim 0 : vector<128x256xf32>, i32 -> vector<128x256xf32>
      %289 = vector.extract_strided_slice %2 {offsets = [0, 2], sizes = [128, 1], strides = [1, 1]} : vector<128x9xf32> to vector<128x1xf32>
      %290 = vector.broadcast %289 : vector<128x1xf32> to vector<128x256xf32>
      %291 = arith.mulf %288, %290 : vector<128x256xf32>
      %292 = vector.extract_strided_slice %272 {offsets = [2, 0], sizes = [1, 256], strides = [1, 1]} : vector<9x256xf32> to vector<1x256xf32>
      %293 = vector.broadcast %292 : vector<1x256xf32> to vector<128x256xf32>
      %294 = arith.mulf %291, %293 : vector<128x256xf32>
      %295 = arith.addf %287, %294 : vector<128x256xf32>
      %c1_i32_91 = arith.constant 1 : i32
      %296 = tpu.dynamic_rotate %271 by %c1_i32_91 dim 0 : vector<128x256xf32>, i32 -> vector<128x256xf32>
      %297 = vector.extract_strided_slice %2 {offsets = [0, 3], sizes = [128, 1], strides = [1, 1]} : vector<128x9xf32> to vector<128x1xf32>
      %298 = vector.broadcast %297 : vector<128x1xf32> to vector<128x256xf32>
      %299 = arith.mulf %296, %298 : vector<128x256xf32>
      %300 = vector.extract_strided_slice %272 {offsets = [3, 0], sizes = [1, 256], strides = [1, 1]} : vector<9x256xf32> to vector<1x256xf32>
      %301 = vector.broadcast %300 : vector<1x256xf32> to vector<128x256xf32>
      %302 = arith.mulf %299, %301 : vector<128x256xf32>
      %303 = arith.addf %295, %302 : vector<128x256xf32>
      %304 = vector.extract_strided_slice %2 {offsets = [0, 4], sizes = [128, 1], strides = [1, 1]} : vector<128x9xf32> to vector<128x1xf32>
      %305 = vector.broadcast %304 : vector<128x1xf32> to vector<128x256xf32>
      %306 = arith.mulf %271, %305 : vector<128x256xf32>
      %307 = vector.extract_strided_slice %272 {offsets = [4, 0], sizes = [1, 256], strides = [1, 1]} : vector<9x256xf32> to vector<1x256xf32>
      %308 = vector.broadcast %307 : vector<1x256xf32> to vector<128x256xf32>
      %309 = arith.mulf %306, %308 : vector<128x256xf32>
      %310 = arith.addf %303, %309 : vector<128x256xf32>
      %c127_i32_92 = arith.constant 127 : i32
      %311 = tpu.dynamic_rotate %271 by %c127_i32_92 dim 0 : vector<128x256xf32>, i32 -> vector<128x256xf32>
      %312 = vector.extract_strided_slice %2 {offsets = [0, 5], sizes = [128, 1], strides = [1, 1]} : vector<128x9xf32> to vector<128x1xf32>
      %313 = vector.broadcast %312 : vector<128x1xf32> to vector<128x256xf32>
      %314 = arith.mulf %311, %313 : vector<128x256xf32>
      %315 = vector.extract_strided_slice %272 {offsets = [5, 0], sizes = [1, 256], strides = [1, 1]} : vector<9x256xf32> to vector<1x256xf32>
      %316 = vector.broadcast %315 : vector<1x256xf32> to vector<128x256xf32>
      %317 = arith.mulf %314, %316 : vector<128x256xf32>
      %318 = arith.addf %310, %317 : vector<128x256xf32>
      %c121_i32_93 = arith.constant 121 : i32
      %319 = tpu.dynamic_rotate %271 by %c121_i32_93 dim 0 : vector<128x256xf32>, i32 -> vector<128x256xf32>
      %320 = vector.extract_strided_slice %2 {offsets = [0, 6], sizes = [128, 1], strides = [1, 1]} : vector<128x9xf32> to vector<128x1xf32>
      %321 = vector.broadcast %320 : vector<128x1xf32> to vector<128x256xf32>
      %322 = arith.mulf %319, %321 : vector<128x256xf32>
      %323 = vector.extract_strided_slice %272 {offsets = [6, 0], sizes = [1, 256], strides = [1, 1]} : vector<9x256xf32> to vector<1x256xf32>
      %324 = vector.broadcast %323 : vector<1x256xf32> to vector<128x256xf32>
      %325 = arith.mulf %322, %324 : vector<128x256xf32>
      %326 = arith.addf %318, %325 : vector<128x256xf32>
      %c120_i32_94 = arith.constant 120 : i32
      %327 = tpu.dynamic_rotate %271 by %c120_i32_94 dim 0 : vector<128x256xf32>, i32 -> vector<128x256xf32>
      %328 = vector.extract_strided_slice %2 {offsets = [0, 7], sizes = [128, 1], strides = [1, 1]} : vector<128x9xf32> to vector<128x1xf32>
      %329 = vector.broadcast %328 : vector<128x1xf32> to vector<128x256xf32>
      %330 = arith.mulf %327, %329 : vector<128x256xf32>
      %331 = vector.extract_strided_slice %272 {offsets = [7, 0], sizes = [1, 256], strides = [1, 1]} : vector<9x256xf32> to vector<1x256xf32>
      %332 = vector.broadcast %331 : vector<1x256xf32> to vector<128x256xf32>
      %333 = arith.mulf %330, %332 : vector<128x256xf32>
      %334 = arith.addf %326, %333 : vector<128x256xf32>
      %c119_i32_95 = arith.constant 119 : i32
      %335 = tpu.dynamic_rotate %271 by %c119_i32_95 dim 0 : vector<128x256xf32>, i32 -> vector<128x256xf32>
      %336 = vector.extract_strided_slice %2 {offsets = [0, 8], sizes = [128, 1], strides = [1, 1]} : vector<128x9xf32> to vector<128x1xf32>
      %337 = vector.broadcast %336 : vector<128x1xf32> to vector<128x256xf32>
      %338 = arith.mulf %335, %337 : vector<128x256xf32>
      %339 = vector.extract_strided_slice %272 {offsets = [8, 0], sizes = [1, 256], strides = [1, 1]} : vector<9x256xf32> to vector<1x256xf32>
      %340 = vector.broadcast %339 : vector<1x256xf32> to vector<128x256xf32>
      %341 = arith.mulf %338, %340 : vector<128x256xf32>
      %342 = arith.addf %334, %341 : vector<128x256xf32>
      %cst_96 = arith.constant 5.000000e-01 : f32
      %343 = vector.broadcast %cst_96 : f32 to vector<128x256xf32>
      %344 = arith.mulf %343, %342 : vector<128x256xf32>
      %cst_97 = arith.constant 4.471500e-02 : f32
      %345 = vector.broadcast %cst_97 : f32 to vector<128x256xf32>
      %346 = arith.mulf %345, %342 : vector<128x256xf32>
      %347 = arith.mulf %346, %342 : vector<128x256xf32>
      %348 = arith.mulf %347, %342 : vector<128x256xf32>
      %349 = arith.addf %342, %348 : vector<128x256xf32>
      %cst_98 = arith.constant 0.797884583 : f32
      %350 = vector.broadcast %cst_98 : f32 to vector<128x256xf32>
      %351 = arith.mulf %350, %349 : vector<128x256xf32>
      %352 = math.tanh %351 : vector<128x256xf32>
      %cst_99 = arith.constant 1.000000e+00 : f32
      %353 = vector.broadcast %cst_99 : f32 to vector<128x256xf32>
      %354 = arith.addf %353, %352 : vector<128x256xf32>
      %355 = arith.mulf %344, %354 : vector<128x256xf32>
      %356 = vector.shape_cast %355 : vector<128x256xf32> to vector<2x64x256xf32>
      %cst_100 = arith.constant dense<0.000000e+00> : vector<2x256xf32>
      %357 = vector.multi_reduction <add>, %356, %cst_100 [1] : vector<2x64x256xf32> to vector<2x256xf32>
      %cst_101 = arith.constant 6.400000e+01 : f32
      %358 = vector.broadcast %cst_101 : f32 to vector<2x256xf32>
      %359 = arith.divf %357, %358 : vector<2x256xf32>
      %360 = arith.truncf %359 : vector<2x256xf32> to vector<2x256xbf16>
      %c0_102 = arith.constant 0 : index
      %c0_103 = arith.constant 0 : index
      %361 = vector.load %arg17[%c0_102, %c0_103] : memref<256x64xbf16, #tpu.memory_space<vmem>>, vector<256x64xbf16>
      %cst_104 = arith.constant dense<0.000000e+00> : vector<2x64xf32>
      %362 = tpu.matmul %360, %361, %cst_104 {dimension_numbers = #tpu.dot_dimension_numbers<[1], [0], [0], [1], [0, 0, 1, 1], [], []>} : vector<2x256xbf16>, vector<256x64xbf16>, vector<2x64xf32> -> vector<2x64xf32>
      %cst_105 = arith.constant 5.000000e-01 : f32
      %363 = vector.broadcast %cst_105 : f32 to vector<2x64xf32>
      %364 = arith.mulf %363, %362 : vector<2x64xf32>
      %cst_106 = arith.constant 4.471500e-02 : f32
      %365 = vector.broadcast %cst_106 : f32 to vector<2x64xf32>
      %366 = arith.mulf %365, %362 : vector<2x64xf32>
      %367 = arith.mulf %366, %362 : vector<2x64xf32>
      %368 = arith.mulf %367, %362 : vector<2x64xf32>
      %369 = arith.addf %362, %368 : vector<2x64xf32>
      %cst_107 = arith.constant 0.797884583 : f32
      %370 = vector.broadcast %cst_107 : f32 to vector<2x64xf32>
      %371 = arith.mulf %370, %369 : vector<2x64xf32>
      %372 = math.tanh %371 : vector<2x64xf32>
      %cst_108 = arith.constant 1.000000e+00 : f32
      %373 = vector.broadcast %cst_108 : f32 to vector<2x64xf32>
      %374 = arith.addf %373, %372 : vector<2x64xf32>
      %375 = arith.mulf %364, %374 : vector<2x64xf32>
      %376 = arith.truncf %375 : vector<2x64xf32> to vector<2x64xbf16>
      %c0_109 = arith.constant 0 : index
      %c0_110 = arith.constant 0 : index
      %377 = vector.load %arg18[%c0_109, %c0_110] : memref<64x256xbf16, #tpu.memory_space<vmem>>, vector<64x256xbf16>
      %cst_111 = arith.constant dense<0.000000e+00> : vector<2x256xf32>
      %378 = tpu.matmul %376, %377, %cst_111 {dimension_numbers = #tpu.dot_dimension_numbers<[1], [0], [0], [1], [0, 0, 1, 1], [], []>} : vector<2x64xbf16>, vector<64x256xbf16>, vector<2x256xf32> -> vector<2x256xf32>
      %cst_112 = arith.constant 5.000000e-01 : f32
      %379 = vector.broadcast %cst_112 : f32 to vector<2x256xf32>
      %380 = arith.mulf %379, %378 : vector<2x256xf32>
      %381 = math.tanh %380 : vector<2x256xf32>
      %cst_113 = arith.constant 1.000000e+00 : f32
      %382 = vector.broadcast %cst_113 : f32 to vector<2x256xf32>
      %383 = arith.addf %381, %382 : vector<2x256xf32>
      %cst_114 = arith.constant 5.000000e-01 : f32
      %384 = vector.broadcast %cst_114 : f32 to vector<2x256xf32>
      %385 = arith.mulf %384, %383 : vector<2x256xf32>
      %386 = vector.shape_cast %385 : vector<2x256xf32> to vector<2x1x256xf32>
      %387 = vector.shape_cast %355 : vector<128x256xf32> to vector<2x64x256xf32>
      %388 = vector.broadcast %386 : vector<2x1x256xf32> to vector<2x64x256xf32>
      %389 = arith.mulf %387, %388 : vector<2x64x256xf32>
      %390 = vector.shape_cast %389 : vector<2x64x256xf32> to vector<128x256xf32>
      %391 = arith.truncf %390 : vector<128x256xf32> to vector<128x256xbf16>
      %c0_115 = arith.constant 0 : index
      %c0_116 = arith.constant 0 : index
      %392 = vector.load %arg19[%c0_115, %c0_116] : memref<256x256xbf16, #tpu.memory_space<vmem>>, vector<256x256xbf16>
      %cst_117 = arith.constant dense<0.000000e+00> : vector<128x256xf32>
      %393 = tpu.matmul %391, %392, %cst_117 {dimension_numbers = #tpu.dot_dimension_numbers<[1], [0], [0], [1], [0, 0, 1, 1], [], []>} : vector<128x256xbf16>, vector<256x256xbf16>, vector<128x256xf32> -> vector<128x256xf32>
      %394 = arith.addf %393, %249 : vector<128x256xf32>
      %c0_118 = arith.constant 0 : index
      %c0_119 = arith.constant 0 : index
      %c0_120 = arith.constant 0 : index
      %395 = vector.load %arg25[%c0_118, %c0_119, %c0_120] : memref<1x128x256xf32, #tpu.memory_space<vmem>>, vector<1x128x256xf32>
      %396 = vector.shape_cast %395 : vector<1x128x256xf32> to vector<128x256xf32>
      %397 = vector.shape_cast %394 : vector<128x256xf32> to vector<1x128x256xf32>
      tpu.vector_store %arg25[%c0_118, %c0_119, %c0_120], %397 {strides = array<i32>} : memref<1x128x256xf32, #tpu.memory_space<vmem>>, vector<1x128x256xf32>,
    } else {
    }
    return
  }
  func.func @transform_0(%arg0: i32, %arg1: i32) -> (i32, i32, i32, i32) {
    %c0_i32 = arith.constant 0 : i32
    %c0_i32_0 = arith.constant 0 : i32
    %c0_i32_1 = arith.constant 0 : i32
    return %arg0, %arg1, %c0_i32, %c0_i32_0 : i32, i32, i32, i32
  }
  func.func @transform_1(%arg0: i32, %arg1: i32) -> (i32, i32, i32) {
    %c0_i32 = arith.constant 0 : i32
    %c0_i32_0 = arith.constant 0 : i32
    %c0_i32_1 = arith.constant 0 : i32
    return %arg1, %c0_i32, %c0_i32_0 : i32, i32, i32
  }
  func.func @transform_2(%arg0: i32, %arg1: i32) -> (i32, i32, i32) {
    %c0_i32 = arith.constant 0 : i32
    %c0_i32_0 = arith.constant 0 : i32
    %c0_i32_1 = arith.constant 0 : i32
    return %arg1, %c0_i32, %c0_i32_0 : i32, i32, i32
  }
  func.func @transform_3(%arg0: i32, %arg1: i32) -> (i32, i32, i32) {
    %c0_i32 = arith.constant 0 : i32
    %c0_i32_0 = arith.constant 0 : i32
    %c0_i32_1 = arith.constant 0 : i32
    return %arg1, %c0_i32, %c0_i32_0 : i32, i32, i32
  }
  func.func @transform_4(%arg0: i32, %arg1: i32) -> (i32, i32, i32) {
    %c0_i32 = arith.constant 0 : i32
    %c0_i32_0 = arith.constant 0 : i32
    %c0_i32_1 = arith.constant 0 : i32
    %c0_i32_2 = arith.constant 0 : i32
    return %c0_i32, %c0_i32_0, %c0_i32_1 : i32, i32, i32
  }
  func.func @transform_5(%arg0: i32, %arg1: i32) -> (i32, i32, i32) {
    %c0_i32 = arith.constant 0 : i32
    %c0_i32_0 = arith.constant 0 : i32
    %c0_i32_1 = arith.constant 0 : i32
    %c0_i32_2 = arith.constant 0 : i32
    return %c0_i32, %c0_i32_0, %c0_i32_1 : i32, i32, i32
  }
  func.func @transform_6(%arg0: i32, %arg1: i32) -> (i32, i32, i32) {
    %c0_i32 = arith.constant 0 : i32
    %c0_i32_0 = arith.constant 0 : i32
    %c0_i32_1 = arith.constant 0 : i32
    %c0_i32_2 = arith.constant 0 : i32
    return %c0_i32, %c0_i32_0, %c0_i32_1 : i32, i32, i32
  }
  func.func @transform_7(%arg0: i32, %arg1: i32) -> (i32, i32, i32) {
    %c0_i32 = arith.constant 0 : i32
    %c0_i32_0 = arith.constant 0 : i32
    %c0_i32_1 = arith.constant 0 : i32
    %c0_i32_2 = arith.constant 0 : i32
    return %c0_i32, %c0_i32_0, %c0_i32_1 : i32, i32, i32
  }
  func.func @transform_8(%arg0: i32, %arg1: i32) -> (i32, i32, i32) {
    %c0_i32 = arith.constant 0 : i32
    %c0_i32_0 = arith.constant 0 : i32
    %c0_i32_1 = arith.constant 0 : i32
    %c0_i32_2 = arith.constant 0 : i32
    return %c0_i32, %c0_i32_0, %c0_i32_1 : i32, i32, i32
  }
  func.func @transform_9(%arg0: i32, %arg1: i32) -> (i32, i32, i32) {
    %c0_i32 = arith.constant 0 : i32
    %c0_i32_0 = arith.constant 0 : i32
    %c0_i32_1 = arith.constant 0 : i32
    %c0_i32_2 = arith.constant 0 : i32
    return %c0_i32, %c0_i32_0, %c0_i32_1 : i32, i32, i32
  }
  func.func @transform_10(%arg0: i32, %arg1: i32) -> (i32, i32, i32) {
    %c0_i32 = arith.constant 0 : i32
    %c0_i32_0 = arith.constant 0 : i32
    %c0_i32_1 = arith.constant 0 : i32
    %c0_i32_2 = arith.constant 0 : i32
    return %c0_i32, %c0_i32_0, %c0_i32_1 : i32, i32, i32
  }
  func.func @transform_11(%arg0: i32, %arg1: i32) -> (i32, i32, i32) {
    %c0_i32 = arith.constant 0 : i32
    %c0_i32_0 = arith.constant 0 : i32
    %c0_i32_1 = arith.constant 0 : i32
    %c0_i32_2 = arith.constant 0 : i32
    return %c0_i32, %c0_i32_0, %c0_i32_1 : i32, i32, i32
  }
  func.func @transform_12(%arg0: i32, %arg1: i32) -> (i32, i32) {
    %c0_i32 = arith.constant 0 : i32
    %c0_i32_0 = arith.constant 0 : i32
    %c0_i32_1 = arith.constant 0 : i32
    return %c0_i32, %c0_i32_0 : i32, i32
  }
  func.func @transform_13(%arg0: i32, %arg1: i32) -> (i32, i32) {
    %c0_i32 = arith.constant 0 : i32
    %c0_i32_0 = arith.constant 0 : i32
    %c0_i32_1 = arith.constant 0 : i32
    return %c0_i32, %c0_i32_0 : i32, i32
  }
  func.func @transform_14(%arg0: i32, %arg1: i32) -> (i32, i32) {
    %c0_i32 = arith.constant 0 : i32
    %c0_i32_0 = arith.constant 0 : i32
    %c0_i32_1 = arith.constant 0 : i32
    return %c0_i32, %c0_i32_0 : i32, i32
  }
  func.func @transform_15(%arg0: i32, %arg1: i32) -> (i32, i32) {
    %c0_i32 = arith.constant 0 : i32
    %c0_i32_0 = arith.constant 0 : i32
    %c0_i32_1 = arith.constant 0 : i32
    return %c0_i32, %c0_i32_0 : i32, i32
  }
  func.func @transform_16(%arg0: i32, %arg1: i32) -> (i32, i32) {
    %c0_i32 = arith.constant 0 : i32
    %c0_i32_0 = arith.constant 0 : i32
    %c0_i32_1 = arith.constant 0 : i32
    return %c0_i32, %c0_i32_0 : i32, i32
  }
  func.func @transform_17(%arg0: i32, %arg1: i32) -> (i32, i32) {
    %c0_i32 = arith.constant 0 : i32
    %c0_i32_0 = arith.constant 0 : i32
    %c0_i32_1 = arith.constant 0 : i32
    return %c0_i32, %c0_i32_0 : i32, i32
  }
  func.func @transform_18(%arg0: i32, %arg1: i32) -> (i32, i32) {
    %c0_i32 = arith.constant 0 : i32
    %c0_i32_0 = arith.constant 0 : i32
    %c0_i32_1 = arith.constant 0 : i32
    return %c0_i32, %c0_i32_0 : i32, i32
  }
  func.func @transform_19(%arg0: i32, %arg1: i32) -> (i32, i32) {
    %c0_i32 = arith.constant 0 : i32
    %c0_i32_0 = arith.constant 0 : i32
    %c0_i32_1 = arith.constant 0 : i32
    return %c0_i32, %c0_i32_0 : i32, i32
  }
  func.func @transform_20(%arg0: i32, %arg1: i32) -> (i32, i32) {
    %c0_i32 = arith.constant 0 : i32
    %c0_i32_0 = arith.constant 0 : i32
    %c0_i32_1 = arith.constant 0 : i32
    return %c0_i32, %c0_i32_0 : i32, i32
  }
  func.func @transform_21(%arg0: i32, %arg1: i32) -> (i32, i32) {
    %c0_i32 = arith.constant 0 : i32
    %c0_i32_0 = arith.constant 0 : i32
    %c0_i32_1 = arith.constant 0 : i32
    return %c0_i32, %c0_i32_0 : i32, i32
  }
  func.func @transform_22(%arg0: i32, %arg1: i32) -> (i32, i32) {
    %c0_i32 = arith.constant 0 : i32
    %c0_i32_0 = arith.constant 0 : i32
    %c0_i32_1 = arith.constant 0 : i32
    return %c0_i32, %c0_i32_0 : i32, i32
  }
  func.func @transform_23(%arg0: i32, %arg1: i32) -> (i32, i32, i32) {
    %c0_i32 = arith.constant 0 : i32
    %c0_i32_0 = arith.constant 0 : i32
    %c0_i32_1 = arith.constant 0 : i32
    return %arg0, %c0_i32, %c0_i32_0 : i32, i32, i32
  }
}

</mosaic_0001>

<bundles_post_ra>
// kernel: tpu_custom_call.1
= control target key start
LH: loop header
LB: loop body
LE: loop exit
PB: predicated region body
PF: predicated region fallthrough
CT: control target
= control target key end

     0   :  { %s17736_s0 = inlined_call_operand.vmem [shape: bf16[1,2,128,768], index: 0, kind: input, shape index: {}]   ;;  %s17737_s1 = inlined_call_operand.vmem [shape: bf16[2,768,320], index: 1, kind: input, shape index: {}]   ;;  %s17738_s2 = inlined_call_operand.vmem [shape: bf16[2,64,576], index: 2, kind: input, shape index: {}]   ;;  %s17739_s3 = inlined_call_operand.vmem [shape: bf16[2,64,256], index: 3, kind: input, shape index: {}]   ;;  %s17740_s4 = inlined_call_operand.vmem [shape: f32[2,1,64], index: 4, kind: input, shape index: {}]   ;;  %s17741_s5 = inlined_call_operand.vmem [shape: f32[2,1,64], index: 5, kind: input, shape index: {}]   ;;  %s17742_s6 = inlined_call_operand.vmem [shape: f32[2,1,64], index: 6, kind: input, shape index: {}]   ;;  %s17743_s7 = inlined_call_operand.vmem [shape: f32[2,1,64], index: 7, kind: input, shape index: {}]   ;;  %s17744_s8 = inlined_call_operand.vmem [shape: f32[2,1,256], index: 8, kind: input, shape index: {}]   ;;  %s17745_s9 = inlined_call_operand.vmem [shape: f32[2,1,256], index: 9, kind: input, shape index: {}]   ;;  %s17746_s10 = inlined_call_operand.vmem [shape: f32[2,1,256], index: 10, kind: input, shape index: {}]   ;;  %s17747_s11 = inlined_call_operand.vmem [shape: f32[2,1,256], index: 11, kind: input, shape index: {}]   ;;  %s17748_s12 = inlined_call_operand.vmem [shape: f32[1,256], index: 12, kind: input, shape index: {}]   ;;  %s17749_s13 = inlined_call_operand.vmem [shape: f32[1,256], index: 13, kind: input, shape index: {}]   ;;  %s17750_s14 = inlined_call_operand.vmem [shape: f32[9,256], index: 14, kind: input, shape index: {}]   ;;  %s17751_s15 = inlined_call_operand.vmem [shape: bf16[256,64], index: 15, kind: input, shape index: {}]   ;;  %s17752_s16 = inlined_call_operand.vmem [shape: bf16[64,256], index: 16, kind: input, shape index: {}]   ;;  %s17753_s17 = inlined_call_operand.vmem [shape: bf16[256,256], index: 17, kind: input, shape index: {}]   ;;  %s17754_s18 = inlined_call_operand.vmem [shape: f32[64,32], index: 18, kind: input, shape index: {}]   ;;  %s17755_s19 = inlined_call_operand.vmem [shape: f32[32,64], index: 19, kind: input, shape index: {}]   ;;  %s17756_s20 = inlined_call_operand.vmem [shape: f32[256,32], index: 20, kind: input, shape index: {}]   ;;  %s17757_s21 = inlined_call_operand.vmem [shape: f32[32,256], index: 21, kind: input, shape index: {}]   ;;  %s17758_s22 = inlined_call_operand.vmem [shape: f32[128,9], index: 22, kind: input, shape index: {}]   ;;  %s17759_s23 = inlined_call_operand.hbm [shape: f32[1,128,256], index: 23, kind: output, shape index: {}]  }
   0x1   :  { %18142 = sst [smem:[#allocation328_spill]] %s17736_s0 }
   0x2   :  { %18143 = sst [smem:[#allocation329_spill]] %s17737_s1 }
   0x3   :  { %18144 = sst [smem:[#allocation330_spill]] %s17738_s2 }
   0x4   :  { %18145 = sst [smem:[#allocation331_spill]] %s17739_s3 }
   0x5   :  { %18146 = sst [smem:[#allocation332_spill]] %s17740_s4 }
   0x6   :  { %18147 = sst [smem:[#allocation333_spill]] %s17741_s5 }
   0x7   :  { %18148 = sst [smem:[#allocation334_spill]] %s17742_s6 }
   0x8   :  { %18149 = sst [smem:[#allocation335_spill]] %s17743_s7 }
   0x9   :  { %18150 = sst [smem:[#allocation336_spill]] %s17746_s10 }
   0xa   :  { %18151 = sst [smem:[#allocation337_spill]] %s17747_s11 }
   0xb   :  { %28 = vsyncpa [#allocation3], 0  ;;  %s11221_s4 = smov 0   ;;  %s11223_s30 = smov 0  }
   0xc   :  { %s11225_s24 = smov 0  }
   0xd LB: > { %s43_s5 = sadd.s32 1, %s11077_s30  ;;  %p9413_p1 = scmp.ge.s32.totalorder %s11081_s24, 1  ;;  %s11081_s24 = sphi %s11225_s24, %s34_s24   ;;  %s11077_s30 = sphi %s11223_s30, %s19327_s30   ;;  %s11073_s4 = sphi %s11221_s4, %s19326_s4  }
   0xe   : > { %p44_p0 = scmp.ge.s32.totalorder %s43_s5, 2  ;;  %p686_p2 = scmp.lt.s32.totalorder %s11081_s24, 3 }
  0x10   : > { %s19329_s5 = smov (%p44_p0, %s43_s5), 0  ;;  %p687_p3 = pnand %p9413_p1, %p686_p2 }
  0x12   : > { %690 = sbr.rel (%p687_p3) target bundleno = 4537 (0x11b9), region = 112 }
  0x19   : > { %p766_p4 = scmp.lt.s32.totalorder %s11073_s4, 1  ;;  %s18152_s27 = sld [smem:[#allocation329_spill]]  ;;  %vm2981_vm0 = vcmask 1041409   ;;  %vm2990_vm1 = vcmask 1043459   ;;  %vm2995_vm2 = vcmask 1041408   ;;  %vm11085_vm3 = vmmov 0  }
  0x1a   : > { %s18153_s0 = sld [smem:[#allocation328_spill]]  ;;  %vm2761_vm4 = vcmask 523264   ;;  %vm3078_vm5 = vcmask 261120   ;;  %s12233_s25 = sshll.u32 %s11073_s4, 1 }
  0x1b   : > { %s11244_s1 = scalar_select %p766_p4, %s11073_s4, 1 }
  0x1c   : > { %s18223_s10 = sld [smem:[#allocation336_spill]]  ;;  %s18258_s11 = sld [smem:[#allocation337_spill]] }
  0x1d   : > { %s10378_s26 = smul.u32 1152, %s11244_s1  ;;  %s18296_s2 = sld [smem:[#allocation330_spill]] }
  0x1e   : > { %s10377_s28 = smul.u32 384, %s11244_s1  ;;  %p9682_p5 = scmp.ne.s32.totalorder %s11073_s4, 0 }
  0x1f   : > { %s11250_s7 = scalar_lea.vmem %s18152_s27, %s10378_s26  ;;  %s10379_s29 = smul.u32 160, %s11244_s1 }
  0x20   : > { %v10499_v0 = vld [vmem:[%s11250_s7 + $0x4] ss:$12 sps:$4 sm:$0xff]   ;;  %v10501_v1 = vld [vmem:[%s11250_s7] ss:$12 sps:$4 sm:$0xff]   ;;  %v10502_v2 = vld [vmem:[%s11250_s7 + $0x1c] ss:$12 sps:$4 sm:$0xff]   ;;  %s11268_s26 = scalar_lea.vmem %s18153_s0, %s10377_s28 }
  0x21   : > { %2105 = vmatprep.subr.bf16.mxu0 %v10499_v0  ;;  %v10504_v3 = vld [vmem:[%s11250_s7 + $0x18] ss:$12 sps:$4 sm:$0xff]   ;;  %v10505_v4 = vld [vmem:[%s11250_s7 + $0x34] ss:$12 sps:$4 sm:$0xff]   ;;  %v10507_v5 = vld [vmem:[%s11250_s7 + $0x30] ss:$12 sps:$4 sm:$0xff]  }
  0x22   : > { %2106 = vmatpush1.bf16.msra.mxu0 %v10501_v1  ;;  %v10508_v6 = vld [vmem:[%s11250_s7 + $0x4c] ss:$12 sps:$4 sm:$0xff]   ;;  %v10510_v7 = vld [vmem:[%s11250_s7 + $0x48] ss:$12 sps:$4 sm:$0xff]   ;;  %v10511_v8 = vld [vmem:[%s11250_s7 + $0x64] ss:$12 sps:$4 sm:$0xff]   ;;  %s12263_s3 = scalar_lea.vmem %s18223_s10, %s12233_s25  ;;  %s12360_s27 = scalar_lea.vmem %s18258_s11, %s12233_s25 }
  0x23   : > { %2107 = vmatprep.subr.bf16.mxu0 %v10502_v2  ;;  %v10513_v9 = vld [vmem:[%s11250_s7 + $0x60] ss:$12 sps:$4 sm:$0xff]   ;;  %v10514_v10 = vld [vmem:[%s11250_s7 + $0x7c] ss:$12 sps:$4 sm:$0xff]   ;;  %v10516_v11 = vld [vmem:[%s11250_s7 + $0x78] ss:$12 sps:$4 sm:$0xff]   ;;  %s12517_s6 = scalar_lea.vmem %s18296_s2, %s10379_s29 }
  0x24   : > { %v10517_v12 = vld [vmem:[%s11250_s7 + $0x94] ss:$12 sps:$4 sm:$0xff]   ;;  %v10549_v13 = vld [vmem:[%s11268_s26 + $0x4] ss:$24 sps:$4 sm:$0xff]   ;;  %v10520_v15 = vld [vmem:[%s11250_s7 + $0xac] ss:$12 sps:$4 sm:$0xff]  }
  0x25   : > { %v10519_v14 = vld [vmem:[%s11250_s7 + $0x90] ss:$12 sps:$4 sm:$0xff]   ;;  %2137 = vmatprep.mubr.bf16.mxu0 %v10549_v13  ;;  %2476 = vmatprep.mubr.bf16.mxu1 %v10549_v13  ;;  %v10522_v16 = vld [vmem:[%s11250_s7 + $0xa8] ss:$12 sps:$4 sm:$0xff]   ;;  %v10525_v19 = vld [vmem:[%s11250_s7 + $0xc0] ss:$12 sps:$4 sm:$0xff]  }
  0x26   : > { %2108 = vmatpush1.bf16.msra.mxu0 %v10504_v3  ;;  %v10523_v17 = vld [vmem:[%s11250_s7 + $0xc4] ss:$12 sps:$4 sm:$0xff]   ;;  %v10565_v18 = vld [vmem:[%s11250_s7 + $0xc8] ss:$12 sps:$4 sm:$0xff]   ;;  %v10573_v23 = vld [vmem:[%s11250_s7 + $0xe0] ss:$12 sps:$4 sm:$0xff]  }
  0x27   : > { %2109 = vmatprep.subr.bf16.mxu0 %v10505_v4  ;;  %v10526_v20 = vld [vmem:[%s11250_s7 + $0xdc] ss:$12 sps:$4 sm:$0xff]   ;;  %9749 = vmatprep.subr.bf16.mxu1 %v10565_v18  ;;  %v10528_v22 = vld [vmem:[%s11250_s7 + $0xd8] ss:$12 sps:$4 sm:$0xff]   ;;  %v10574_v24 = vld [vmem:[%s11250_s7 + $0x20] ss:$12 sps:$4 sm:$0xff]  }
  0x28   : > { %v10568_v21 = vld [vmem:[%s11250_s7 + $0x8] ss:$12 sps:$4 sm:$0xff]   ;;  %v10578_v26 = vld [vmem:[%s11250_s7 + $0xf8] ss:$12 sps:$4 sm:$0xff]   ;;  %v10531_v27 = vld [vmem:[%s11250_s7 + $0xf0] ss:$12 sps:$4 sm:$0xff]  }
  0x29   : > { %9750 = vmatpush3.bf16.msra.mxu1 %v10568_v21  ;;  %v10529_v25 = vld [vmem:[%s11250_s7 + $0xf4] ss:$12 sps:$4 sm:$0xff]   ;;  %v10532_v28 = vld [vmem:[%s11250_s7 + $0x10c] ss:$12 sps:$4 sm:$0xff]   ;;  %v10586_v31 = vld [vmem:[%s11250_s7 + $0x110] ss:$12 sps:$4 sm:$0xff]  }
  0x2a   : > { %2110 = vmatpush1.bf16.msra.mxu0 %v10507_v5  ;;  %9751 = vmatprep.subr.bf16.mxu1 %v10573_v23  ;;  %v10581_v29 = vld [vmem:[%s11250_s7 + $0x38] ss:$12 sps:$4 sm:$0xff]   ;;  %v10534_v30 = vld [vmem:[%s11250_s7 + $0x108] ss:$12 sps:$4 sm:$0xff]   ;;  %v10587_v32 = vld [vmem:[%s11250_s7 + $0x50] ss:$12 sps:$4 sm:$0xff]  }
  0x2b   : > { %2111 = vmatprep.subr.bf16.mxu0 %v10508_v6  ;;  %v10535_v33 = vld [vmem:[%s11250_s7 + $0x124] ss:$12 sps:$4 sm:$0xff]   ;;  %v10591_v34 = vld [vmem:[%s11250_s7 + $0x128] ss:$12 sps:$4 sm:$0xff]   ;;  %v10537_v35 = vld [vmem:[%s11250_s7 + $0x120] ss:$12 sps:$4 sm:$0xff]  }
  0x2c   : > { %v10538_v36 = vld [vmem:[%s11250_s7 + $0x13c] ss:$12 sps:$4 sm:$0xff]   ;;  %v10540_v38 = vld [vmem:[%s11250_s7 + $0x138] ss:$12 sps:$4 sm:$0xff]   ;;  %v10599_v39 = vld [vmem:[%s11250_s7 + $0x140] ss:$12 sps:$4 sm:$0xff]  }
  0x2d   : > { %9752 = vmatpush3.bf16.msra.mxu1 %v10574_v24  ;;  %v10594_v37 = vld [vmem:[%s11250_s7 + $0x68] ss:$12 sps:$4 sm:$0xff]   ;;  %v10600_v40 = vld [vmem:[%s11250_s7 + $0x80] ss:$12 sps:$4 sm:$0xff]   ;;  %v10604_v42 = vld [vmem:[%s11250_s7 + $0x158] ss:$12 sps:$4 sm:$0xff]  }
  0x2e   : > { %2112 = vmatpush1.bf16.msra.mxu0 %v10510_v7  ;;  %9753 = vmatprep.subr.bf16.mxu1 %v10578_v26  ;;  %v10541_v41 = vld [vmem:[%s11250_s7 + $0x154] ss:$12 sps:$4 sm:$0xff]   ;;  %v10543_v43 = vld [vmem:[%s11250_s7 + $0x150] ss:$12 sps:$4 sm:$0xff]   ;;  %v10544_v44 = vld [vmem:[%s11250_s7 + $0x16c] ss:$12 sps:$4 sm:$0xff]  }
  0x2f   : > { %2113 = vmatprep.subr.bf16.mxu0 %v10511_v8  ;;  %v10607_v45 = vld [vmem:[%s11250_s7 + $0x98] ss:$12 sps:$4 sm:$0xff]   ;;  %v10546_v46 = vld [vmem:[%s11250_s7 + $0x168] ss:$12 sps:$4 sm:$0xff]   ;;  %v10612_v47 = vld [vmem:[%s11250_s7 + $0x170] ss:$12 sps:$4 sm:$0xff]  }
  0x30   : > { %v10613_v48 = vld [vmem:[%s11250_s7 + $0xb0] ss:$12 sps:$4 sm:$0xff]   ;;  %v10547_v50 = vld [vmem:[%s11268_s26] ss:$24 sps:$4 sm:$0xff]   ;;  %v10556_v52 = vld [vmem:[%s11268_s26 + $0x34] ss:$24 sps:$4 sm:$0xff]  }
  0x31   : > { %9754 = vmatpush3.bf16.msra.mxu1 %v10581_v29  ;;  %v10552_v49 = vld [vmem:[%s11250_s7 + $0x184] ss:$12 sps:$4 sm:$0xff]   ;;  %v10550_v51 = vld [vmem:[%s11250_s7 + $0x180] ss:$12 sps:$4 sm:$0xff]   ;;  %v10555_v53 = vld [vmem:[%s11250_s7 + $0x19c] ss:$12 sps:$4 sm:$0xff]  }
  0x32   : > { %2114 = vmatpush1.bf16.msra.mxu0 %v10513_v9  ;;  %9755 = vmatprep.subr.bf16.mxu1 %v10586_v31  ;;  %v10553_v54 = vld [vmem:[%s11250_s7 + $0x198] ss:$12 sps:$4 sm:$0xff]   ;;  %v10561_v55 = vld [vmem:[%s11250_s7 + $0x1b4] ss:$12 sps:$4 sm:$0xff]   ;;  %v10558_v56 = vld [vmem:[%s11268_s26 + $0x30] ss:$24 sps:$4 sm:$0xff]  }
  0x33   : > { %2115 = vmatprep.subr.bf16.mxu0 %v10514_v10  ;;  %v10559_v57 = vld [vmem:[%s11250_s7 + $0x1b0] ss:$12 sps:$4 sm:$0xff]   ;;  %v10564_v59 = vld [vmem:[%s11250_s7 + $0x1cc] ss:$12 sps:$4 sm:$0xff]   ;;  %v10562_v60 = vld [vmem:[%s11250_s7 + $0x1c8] ss:$12 sps:$4 sm:$0xff]  }
  0x34   : > { %v10566_v58 = vld [vmem:[%s11268_s26 + $0x64] ss:$24 sps:$4 sm:$0xff]   ;;  %v10569_v61 = vld [vmem:[%s11268_s26 + $0x60] ss:$24 sps:$4 sm:$0xff]   ;;  %v10653_v0 = vld [vmem:[%s11250_s7 + $0x248] ss:$12 sps:$4 sm:$0xff]  }
  0x35   : > { %9756 = vmatpush3.bf16.msra.mxu1 %v10587_v32  ;;  %v10572_v62 = vld [vmem:[%s11250_s7 + $0x1e4] ss:$12 sps:$4 sm:$0xff]   ;;  %v10570_v63 = vld [vmem:[%s11250_s7 + $0x1e0] ss:$12 sps:$4 sm:$0xff]   ;;  %v10577_v2 = vld [vmem:[%s11250_s7 + $0x1fc] ss:$12 sps:$4 sm:$0xff]  }
  0x36   : > { %2116 = vmatpush1.bf16.msra.mxu0 %v10516_v11  ;;  %9757 = vmatprep.subr.bf16.mxu1 %v10591_v34  ;;  %v10579_v1 = vld [vmem:[%s11268_s26 + $0x94] ss:$24 sps:$4 sm:$0xff]   ;;  %v10575_v4 = vld [vmem:[%s11250_s7 + $0x1f8] ss:$12 sps:$4 sm:$0xff]   ;;  %v10582_v7 = vld [vmem:[%s11268_s26 + $0x90] ss:$24 sps:$4 sm:$0xff]  }
  0x37   : > { %2117 = vmatprep.subr.bf16.mxu0 %v10517_v12  ;;  %v10656_v3 = vld [vmem:[%s11250_s7 + $0x188] ss:$12 sps:$4 sm:$0xff]   ;;  %v10661_v5 = vld [vmem:[%s11250_s7 + $0x260] ss:$12 sps:$4 sm:$0xff]   ;;  %v10583_v9 = vld [vmem:[%s11250_s7 + $0x210] ss:$12 sps:$4 sm:$0xff]  }
  0x38   : > { %v10585_v6 = vld [vmem:[%s11250_s7 + $0x214] ss:$12 sps:$4 sm:$0xff]   ;;  %v10666_v10 = vld [vmem:[%s11250_s7 + $0x278] ss:$12 sps:$4 sm:$0xff]   ;;  %v10675_v18 = vld [vmem:[%s11250_s7 + $0x1d0] ss:$12 sps:$4 sm:$0xff]  }
  0x39   : > { %9758 = vmatpush3.bf16.msra.mxu1 %v10594_v37  ;;  %v10662_v8 = vld [vmem:[%s11250_s7 + $0x1a0] ss:$12 sps:$4 sm:$0xff]   ;;  %v10592_v11 = vld [vmem:[%s11268_s26 + $0xc4] ss:$24 sps:$4 sm:$0xff]   ;;  %v10682_v23 = vld [vmem:[%s11250_s7 + $0x1e8] ss:$12 sps:$4 sm:$0xff]  }
  0x3a   : > { %2118 = vmatpush1.bf16.msra.mxu0 %v10519_v14  ;;  %9759 = vmatprep.subr.bf16.mxu1 %v10599_v39  ;;  %v10590_v12 = vld [vmem:[%s11250_s7 + $0x22c] ss:$12 sps:$4 sm:$0xff]   ;;  %v10588_v14 = vld [vmem:[%s11250_s7 + $0x228] ss:$12 sps:$4 sm:$0xff]   ;;  %v10609_v29 = vld [vmem:[%s11250_s7 + $0x270] ss:$12 sps:$4 sm:$0xff]  }
  0x3b   : > { %2119 = vmatprep.subr.bf16.mxu0 %v10520_v15  ;;  %v10669_v13 = vld [vmem:[%s11250_s7 + $0x1b8] ss:$12 sps:$4 sm:$0xff]   ;;  %v10674_v15 = vld [vmem:[%s11250_s7 + $0x290] ss:$12 sps:$4 sm:$0xff]   ;;  %v10605_v21 = vld [vmem:[%s11268_s26 + $0xf4] ss:$24 sps:$4 sm:$0xff]  }
  0x3c   : > { %v10601_v24 = vld [vmem:[%s11250_s7 + $0x258] ss:$12 sps:$4 sm:$0xff]   ;;  %v10611_v26 = vld [vmem:[%s11250_s7 + $0x274] ss:$12 sps:$4 sm:$0xff]   ;;  %v10701_v37 = vld [vmem:[%s11250_s7 + $0x230] ss:$12 sps:$4 sm:$0xff]  }
  0x3d   : > { %9760 = vmatpush3.bf16.msra.mxu1 %v10600_v40  ;;  %v10617_v31 = vld [vmem:[%s11268_s26 + $0x124] ss:$24 sps:$4 sm:$0xff]   ;;  %v10616_v32 = vld [vmem:[%s11250_s7 + $0x28c] ss:$12 sps:$4 sm:$0xff]   ;;  %v10614_v34 = vld [vmem:[%s11250_s7 + $0x288] ss:$12 sps:$4 sm:$0xff]  }
  0x3e   : > { %2120 = vmatpush1.bf16.msra.mxu0 %v10522_v16  ;;  %9761 = vmatprep.subr.bf16.mxu1 %v10604_v42  ;;  %v10598_v16 = vld [vmem:[%s11250_s7 + $0x244] ss:$12 sps:$4 sm:$0xff]   ;;  %v10620_v39 = vld [vmem:[%s11250_s7 + $0x2a0] ss:$12 sps:$4 sm:$0xff]   ;;  %s18332_s29 = sld [smem:[#allocation332_spill]]  ;;  %s18333_s10 = sld [smem:[#allocation333_spill]] }
  0x3f   : > { %2121 = vmatprep.subr.bf16.mxu0 %v10523_v17  ;;  %v10595_v17 = vld [vmem:[%s11268_s26 + $0xc0] ss:$24 sps:$4 sm:$0xff]   ;;  %v10626_v40 = vld [vmem:[%s11268_s26 + $0x154] ss:$24 sps:$4 sm:$0xff]   ;;  %s18723_s2 = sld [smem:[#allocation335_spill]] }
  0x40   : > { %v10623_v42 = vld [vmem:[%s11250_s7 + $0x2b8] ss:$12 sps:$4 sm:$0xff]  }
  0x41   : > { %9762 = vmatpush3.bf16.msra.mxu1 %v10607_v45  ;;  %v10629_v45 = vld [vmem:[%s11250_s7 + $0x2d0] ss:$12 sps:$4 sm:$0xff]  }
  0x42   : > { %2122 = vmatpush1.bf16.msra.mxu0 %v10525_v19  ;;  %9763 = vmatprep.subr.bf16.mxu1 %v10612_v47  ;;  %v10596_v19 = vld [vmem:[%s11250_s7 + $0x240] ss:$12 sps:$4 sm:$0xff]  }
  0x43   : > { %2123 = vmatprep.subr.bf16.mxu0 %v10526_v20  ;;  %v10679_v20 = vld [vmem:[%s11250_s7 + $0x2a8] ss:$12 sps:$4 sm:$0xff]   ;;  %v10637_v47 = vld [vmem:[%s11268_s26 + $0xc] ss:$24 sps:$4 sm:$0xff]  }
  0x44   : > { %s3370_s0 = scalar_lea.vmem %s18332_s29, %s11073_s4  ;;  %s3372_s11 = scalar_lea.vmem %s18333_s10, %s11073_s4 }
  0x45   : > { %9764 = vmatpush3.bf16.msra.mxu1 %v10613_v48  ;;  %v10729_v48 = vld [vmem:[%s11250_s7 + $0x3c8] ss:$12 sps:$4 sm:$0xff]   ;;  %s18722_s29 = sld [smem:[#allocation334_spill]]  ;;  %s5477_s10 = scalar_lea.vmem %s18723_s2, %s11073_s4 }
  0x46   : > { %2124 = vmatpush1.bf16.msra.mxu0 %v10528_v22  ;;  %9813 = vmatprep.subr.bf16.mxu1 %v10653_v0  ;;  %v10603_v22 = vld [vmem:[%s11250_s7 + $0x25c] ss:$12 sps:$4 sm:$0xff]   ;;  %v10654_v0 = vld [vmem:[%s11268_s26 + $0x6c] ss:$24 sps:$4 sm:$0xff]  }
  0x47   : > { %2125 = vmatprep.subr.bf16.mxu0 %v10529_v25  ;;  %v10687_v25 = vld [vmem:[%s11250_s7 + $0x2c0] ss:$12 sps:$4 sm:$0xff]  }
  0x48   : > { %2477 = vmatmul.mubr.bf16.vlgmr.msra.gmra.mrb[0].mxu1 %v10547_v50 }
  0x49   : > { %2484 = vmatprep.mubr.bf16.mxu1 %v10556_v52  ;;  %9814 = vmatpush3.bf16.msra.mxu1 %v10656_v3  ;;  %v10650_v3 = vld [vmem:[%s11250_s7 + $0x348] ss:$12 sps:$4 sm:$0xff]  }
  0x4a   : > { %2126 = vmatpush1.bf16.msra.mxu0 %v10531_v27  ;;  %9815 = vmatprep.subr.bf16.mxu1 %v10661_v5  ;;  %v10608_v27 = vld [vmem:[%s11268_s26 + $0xf0] ss:$24 sps:$4 sm:$0xff]  }
  0x4b   : > { %2127 = vmatprep.subr.bf16.mxu0 %v10532_v28  ;;  %v10688_v28 = vld [vmem:[%s11250_s7 + $0x200] ss:$12 sps:$4 sm:$0xff]   ;;  %v10742_v5 = vld [vmem:[%s11250_s7 + $0x350] ss:$12 sps:$4 sm:$0xff]  }
  0x4d   : > { %9816 = vmatpush3.bf16.msra.mxu1 %v10662_v8  ;;  %v10658_v8 = vld [vmem:[%s11250_s7 + $0x360] ss:$12 sps:$4 sm:$0xff]  }
  0x4e   : > { %2128 = vmatpush1.bf16.msra.mxu0 %v10534_v30  ;;  %9817 = vmatprep.subr.bf16.mxu1 %v10666_v10  ;;  %v10692_v30 = vld [vmem:[%s11250_s7 + $0x2d8] ss:$12 sps:$4 sm:$0xff]   ;;  %v10665_v10 = vld [vmem:[%s11250_s7 + $0x37c] ss:$12 sps:$4 sm:$0xff]  }
  0x4f   : > { %2129 = vmatprep.subr.bf16.mxu0 %v10535_v33  ;;  %v10695_v33 = vld [vmem:[%s11250_s7 + $0x218] ss:$12 sps:$4 sm:$0xff]  }
  0x50   : > { %2485 = vmatmul.mubr.bf16.gmra.mrb[4].mxu1 %v10558_v56 }
  0x51   : > { %2492 = vmatprep.mubr.bf16.mxu1 %v10566_v58  ;;  %9818 = vmatpush3.bf16.msra.mxu1 %v10669_v13  ;;  %v10663_v13 = vld [vmem:[%s11250_s7 + $0x378] ss:$12 sps:$4 sm:$0xff]  }
  0x52   : > { %2130 = vmatpush1.bf16.msra.mxu0 %v10537_v35  ;;  %9819 = vmatprep.subr.bf16.mxu1 %v10674_v15  ;;  %v10700_v35 = vld [vmem:[%s11250_s7 + $0x2f0] ss:$12 sps:$4 sm:$0xff]   ;;  %v10749_v15 = vld [vmem:[%s11250_s7 + $0x380] ss:$12 sps:$4 sm:$0xff]  }
  0x53   : > { %2131 = vmatprep.subr.bf16.mxu0 %v10538_v36  ;;  %v10622_v36 = vld [vmem:[%s11250_s7 + $0x2a4] ss:$12 sps:$4 sm:$0xff]  }
  0x55   : > { %9820 = vmatpush3.bf16.msra.mxu1 %v10675_v18  ;;  %v10671_v18 = vld [vmem:[%s11250_s7 + $0x390] ss:$12 sps:$4 sm:$0xff]  }
  0x56   : > { %2132 = vmatpush1.bf16.msra.mxu0 %v10540_v38  ;;  %9821 = vmatprep.subr.bf16.mxu1 %v10679_v20  ;;  %v10619_v38 = vld [vmem:[%s11268_s26 + $0x120] ss:$24 sps:$4 sm:$0xff]  }
  0x57   : > { %2133 = vmatprep.subr.bf16.mxu0 %v10541_v41  ;;  %v10625_v41 = vld [vmem:[%s11250_s7 + $0x2bc] ss:$12 sps:$4 sm:$0xff]   ;;  %v10678_v20 = vld [vmem:[%s11250_s7 + $0x3ac] ss:$12 sps:$4 sm:$0xff]  }
  0x58   : > { %2493 = vmatmul.mubr.bf16.gmra.mrb[8].mxu1 %v10569_v61 }
  0x59   : > { %2500 = vmatprep.mubr.bf16.mxu1 %v10579_v1  ;;  %9822 = vmatpush3.bf16.msra.mxu1 %v10682_v23  ;;  %v10676_v23 = vld [vmem:[%s11250_s7 + $0x3a8] ss:$12 sps:$4 sm:$0xff]  }
  0x5a   : > { %2134 = vmatpush1.bf16.msra.mxu0 %v10543_v43  ;;  %9823 = vmatprep.subr.bf16.mxu1 %v10687_v25  ;;  %v10631_v43 = vld [vmem:[%s11250_s7 + $0x2d4] ss:$12 sps:$4 sm:$0xff]   ;;  %v10756_v25 = vld [vmem:[%s11250_s7 + $0x3b0] ss:$12 sps:$4 sm:$0xff]  }
  0x5b   : > { %2135 = vmatprep.subr.bf16.mxu0 %v10544_v44  ;;  %v10628_v44 = vld [vmem:[%s11268_s26 + $0x150] ss:$24 sps:$4 sm:$0xff]  }
  0x5d   : > { %9824 = vmatpush3.bf16.msra.mxu1 %v10688_v28  ;;  %v10693_v28 = vld [vmem:[%s11268_s26 + $0xfc] ss:$24 sps:$4 sm:$0xff]  }
  0x5e   : > { %2136 = vmatpush1.bf16.msra.mxu0 %v10546_v46  ;;  %9825 = vmatprep.subr.bf16.mxu1 %v10692_v30  ;;  %v10634_v46 = vld [vmem:[%s11250_s7 + $0x2ec] ss:$12 sps:$4 sm:$0xff]  }
  0x5f   : > { %2218 = vmatprep.subr.bf16.mxu0 %v10552_v49  ;;  %v10632_v49 = vld [vmem:[%s11250_s7 + $0x2e8] ss:$12 sps:$4 sm:$0xff]   ;;  %v10689_v30 = vld [vmem:[%s11250_s7 + $0x3d8] ss:$12 sps:$4 sm:$0xff]  }
  0x60   : > { %2501 = vmatmul.mubr.bf16.gmra.mrb[12].mxu1 %v10582_v7 }
  0x61   : > { %2138 = vmatmul.mubr.bf16.vlgmr.msra.gmra.mrb[0].mxu0 %v10547_v50  ;;  %2508 = vmatprep.mubr.bf16.mxu1 %v10592_v11  ;;  %v10640_v50 = vld [vmem:[%s11250_s7 + $0x304] ss:$12 sps:$4 sm:$0xff]  }
  0x62   : > { %2219 = vmatpush1.bf16.msra.mxu0 %v10550_v51  ;;  %2147 = vmatprep.mubr.bf16.mxu0 %v10556_v52  ;;  %v10635_v51 = vld [vmem:[%s11268_s26 + $0x8] ss:$24 sps:$4 sm:$0xff]  }
  0x63   : > { %2220 = vmatprep.subr.bf16.mxu0 %v10555_v53  ;;  %9826 = vmatpush3.bf16.msra.mxu1 %v10695_v33  ;;  %v10638_v52 = vld [vmem:[%s11250_s7 + $0x300] ss:$12 sps:$4 sm:$0xff]   ;;  %v10644_v53 = vld [vmem:[%s11268_s26 + $0x3c] ss:$24 sps:$4 sm:$0xff]  }
  0x64   : > { %9827 = vmatprep.subr.bf16.mxu1 %v10700_v35  ;;  %v10697_v33 = vld [vmem:[%s11250_s7 + $0x3f0] ss:$12 sps:$4 sm:$0xff]   ;;  %v10704_v35 = vld [vmem:[%s11250_s7 + $0x40c] ss:$12 sps:$4 sm:$0xff]  }
  0x66   : > { %2221 = vmatpush1.bf16.msra.mxu0 %v10553_v54  ;;  %v10643_v54 = vld [vmem:[%s11250_s7 + $0x31c] ss:$12 sps:$4 sm:$0xff]  }
  0x67   : > { %2222 = vmatprep.subr.bf16.mxu0 %v10561_v55  ;;  %9828 = vmatpush3.bf16.msra.mxu1 %v10701_v37  ;;  %v10732_v55 = vld [vmem:[%s11250_s7 + $0x308] ss:$12 sps:$4 sm:$0xff]   ;;  %v10710_v37 = vld [vmem:[%s11250_s7 + $0x424] ss:$12 sps:$4 sm:$0xff]  }
  0x68   : > { %2509 = vmatmul.mubr.bf16.gmra.mrb[16].mxu1 %v10595_v17  ;;  %9877 = vmatprep.subr.bf16.mxu1 %v10729_v48  ;;  %v10720_v48 = vld [vmem:[%s11250_s7 + $0x468] ss:$12 sps:$4 sm:$0xff]  }
  0x69   : > { %2148 = vmatmul.mubr.bf16.gmra.mrb[4].mxu0 %v10558_v56  ;;  %2516 = vmatprep.mubr.bf16.mxu1 %v10605_v21  ;;  %v10734_v56 = vld [vmem:[%s11250_s7 + $0x3e0] ss:$12 sps:$4 sm:$0xff]  }
  0x6a   : > { %2223 = vmatpush1.bf16.msra.mxu0 %v10559_v57  ;;  %2157 = vmatprep.mubr.bf16.mxu0 %v10566_v58  ;;  %v10641_v57 = vld [vmem:[%s11250_s7 + $0x318] ss:$12 sps:$4 sm:$0xff]   ;;  %v10649_v58 = vld [vmem:[%s11250_s7 + $0x334] ss:$12 sps:$4 sm:$0xff]  }
  0x6b   : > { %2224 = vmatprep.subr.bf16.mxu0 %v10564_v59  ;;  %v10646_v59 = vld [vmem:[%s11268_s26 + $0x38] ss:$24 sps:$4 sm:$0xff]  }
  0x6e   : > { %2225 = vmatpush1.bf16.msra.mxu0 %v10562_v60  ;;  %v10735_v60 = vld [vmem:[%s11250_s7 + $0x320] ss:$12 sps:$4 sm:$0xff]  }
  0x6f   : > { %2226 = vmatprep.subr.bf16.mxu0 %v10572_v62  ;;  %v10736_v62 = vld [vmem:[%s11250_s7 + $0x3f8] ss:$12 sps:$4 sm:$0xff]  }
  0x70   : > { %2517 = vmatmul.mubr.bf16.gmra.mrb[20].mxu1 %v10608_v27 }
  0x71   : > { %2158 = vmatmul.mubr.bf16.gmra.mrb[8].mxu0 %v10569_v61  ;;  %2524 = vmatprep.mubr.bf16.mxu1 %v10617_v31  ;;  %v10647_v61 = vld [vmem:[%s11250_s7 + $0x330] ss:$12 sps:$4 sm:$0xff]  }
  0x72   : > { %2227 = vmatpush1.bf16.msra.mxu0 %v10570_v63  ;;  %2167 = vmatprep.mubr.bf16.mxu0 %v10579_v1  ;;  %v10652_v63 = vld [vmem:[%s11250_s7 + $0x34c] ss:$12 sps:$4 sm:$0xff]  }
  0x73   : > { %2228 = vmatprep.subr.bf16.mxu0 %v10577_v2  ;;  %v10739_v1 = vld [vmem:[%s11250_s7 + $0x338] ss:$12 sps:$4 sm:$0xff]   ;;  %v10741_v2 = vld [vmem:[%s11250_s7 + $0x410] ss:$12 sps:$4 sm:$0xff]  }
  0x76   : > { %2229 = vmatpush1.bf16.msra.mxu0 %v10575_v4  ;;  %v10660_v4 = vld [vmem:[%s11250_s7 + $0x364] ss:$12 sps:$4 sm:$0xff]  }
  0x77   : > { %2230 = vmatprep.subr.bf16.mxu0 %v10585_v6  ;;  %v10743_v6 = vld [vmem:[%s11250_s7 + $0x428] ss:$12 sps:$4 sm:$0xff]  }
  0x78   : > { %2525 = vmatmul.mubr.bf16.gmra.mrb[24].mxu1 %v10619_v38 }
  0x79   : > { %2168 = vmatmul.mubr.bf16.gmra.mrb[12].mxu0 %v10582_v7  ;;  %2532 = vmatprep.mubr.bf16.mxu1 %v10626_v40  ;;  %v10657_v7 = vld [vmem:[%s11268_s26 + $0x68] ss:$24 sps:$4 sm:$0xff]  }
  0x7a   : > { %2231 = vmatpush1.bf16.msra.mxu0 %v10583_v9  ;;  %2177 = vmatprep.mubr.bf16.mxu0 %v10592_v11  ;;  %v10667_v9 = vld [vmem:[%s11268_s26 + $0x9c] ss:$24 sps:$4 sm:$0xff]  }
  0x7b   : > { %2232 = vmatprep.subr.bf16.mxu0 %v10590_v12  ;;  %v10746_v11 = vld [vmem:[%s11250_s7 + $0x368] ss:$12 sps:$4 sm:$0xff]   ;;  %v10748_v12 = vld [vmem:[%s11250_s7 + $0x440] ss:$12 sps:$4 sm:$0xff]  }
  0x7e   : > { %2233 = vmatpush1.bf16.msra.mxu0 %v10588_v14  ;;  %v10673_v14 = vld [vmem:[%s11250_s7 + $0x394] ss:$12 sps:$4 sm:$0xff]  }
  0x7f   : > { %2234 = vmatprep.subr.bf16.mxu0 %v10598_v16  ;;  %v10750_v16 = vld [vmem:[%s11250_s7 + $0x458] ss:$12 sps:$4 sm:$0xff]  }
  0x80   : > { %2533 = vmatmul.mubr.bf16.gmra.mrb[28].mxu1 %v10628_v44 }
  0x81   : > { %2178 = vmatmul.mubr.bf16.gmra.mrb[16].mxu0 %v10595_v17  ;;  %2573 = vmatprep.mubr.bf16.mxu1 %v10637_v47  ;;  %v10670_v17 = vld [vmem:[%s11268_s26 + $0x98] ss:$24 sps:$4 sm:$0xff]  }
  0x82   : > { %2235 = vmatpush1.bf16.msra.mxu0 %v10596_v19  ;;  %2187 = vmatprep.mubr.bf16.mxu0 %v10605_v21  ;;  %v10680_v19 = vld [vmem:[%s11268_s26 + $0xcc] ss:$24 sps:$4 sm:$0xff]  }
  0x83   : > { %2236 = vmatprep.subr.bf16.mxu0 %v10603_v22  ;;  %v10753_v21 = vld [vmem:[%s11250_s7 + $0x398] ss:$12 sps:$4 sm:$0xff]   ;;  %v10755_v22 = vld [vmem:[%s11250_s7 + $0x470] ss:$12 sps:$4 sm:$0xff]  }
  0x86   : > { %2237 = vmatpush1.bf16.msra.mxu0 %v10601_v24  ;;  %v10686_v24 = vld [vmem:[%s11250_s7 + $0x3c4] ss:$12 sps:$4 sm:$0xff]  }
  0x87   : > { %2238 = vmatprep.subr.bf16.mxu0 %v10611_v26  ;;  %v10683_v26 = vld [vmem:[%s11268_s26 + $0xc8] ss:$24 sps:$4 sm:$0xff]  }
  0x88   : > { %2574 = vmatmul.mubr.bf16.vlgmr.msra.gmra.mrb[32].mxu1 %v10635_v51 }
  0x89   : > { %2188 = vmatmul.mubr.bf16.gmra.mrb[20].mxu0 %v10608_v27  ;;  %2581 = vmatprep.mubr.bf16.mxu1 %v10644_v53  ;;  %v10684_v27 = vld [vmem:[%s11250_s7 + $0x3c0] ss:$12 sps:$4 sm:$0xff]  }
  0x8a   : > { %2239 = vmatpush1.bf16.msra.mxu0 %v10609_v29  ;;  %2197 = vmatprep.mubr.bf16.mxu0 %v10617_v31  ;;  %v10691_v29 = vld [vmem:[%s11250_s7 + $0x3dc] ss:$12 sps:$4 sm:$0xff]   ;;  %v10699_v31 = vld [vmem:[%s11250_s7 + $0x3f4] ss:$12 sps:$4 sm:$0xff]  }
  0x8b   : > { %2240 = vmatprep.subr.bf16.mxu0 %v10616_v32  ;;  %9878 = vmatpush3.bf16.msra.mxu1 %v10732_v55  ;;  %v10696_v32 = vld [vmem:[%s11268_s26 + $0xf8] ss:$24 sps:$4 sm:$0xff]  }
  0x8c   : > { %9879 = vmatprep.subr.bf16.mxu1 %v10734_v56  ;;  %v10740_v55 = vld [vmem:[%s11268_s26 + $0xa0] ss:$24 sps:$4 sm:$0xff]   ;;  %v10744_v56 = vld [vmem:[%s11268_s26 + $0xd4] ss:$24 sps:$4 sm:$0xff]  }
  0x8e   : > { %2241 = vmatpush1.bf16.msra.mxu0 %v10614_v34  ;;  %v10705_v34 = vld [vmem:[%s11268_s26 + $0x12c] ss:$24 sps:$4 sm:$0xff]  }
  0x8f   : > { %2242 = vmatprep.subr.bf16.mxu0 %v10622_v36  ;;  %9880 = vmatpush3.bf16.msra.mxu1 %v10735_v60  ;;  %v10702_v36 = vld [vmem:[%s11250_s7 + $0x408] ss:$12 sps:$4 sm:$0xff]  }
  0x90   : > { %2582 = vmatmul.mubr.bf16.gmra.mrb[36].mxu1 %v10646_v59  ;;  %9881 = vmatprep.subr.bf16.mxu1 %v10736_v62  ;;  %v10757_v60 = vld [vmem:[%s11268_s26 + $0x134] ss:$24 sps:$4 sm:$0xff]   ;;  %v10760_v62 = vld [vmem:[%s11268_s26 + $0x164] ss:$24 sps:$4 sm:$0xff]  }
  0x91   : > { %2198 = vmatmul.mubr.bf16.gmra.mrb[24].mxu0 %v10619_v38  ;;  %2589 = vmatprep.mubr.bf16.mxu1 %v10654_v0  ;;  %v10707_v38 = vld [vmem:[%s11268_s26 + $0x128] ss:$24 sps:$4 sm:$0xff]  }
  0x92   : > { %2243 = vmatpush1.bf16.msra.mxu0 %v10620_v39  ;;  %2207 = vmatprep.mubr.bf16.mxu0 %v10626_v40  ;;  %v10708_v39 = vld [vmem:[%s11250_s7 + $0x420] ss:$12 sps:$4 sm:$0xff]   ;;  %v10714_v40 = vld [vmem:[%s11268_s26 + $0x15c] ss:$24 sps:$4 sm:$0xff]  }
  0x93   : > { %2244 = vmatprep.subr.bf16.mxu0 %v10625_v41  ;;  %9882 = vmatpush3.bf16.msra.mxu1 %v10739_v1  ;;  %v10713_v41 = vld [vmem:[%s11250_s7 + $0x43c] ss:$12 sps:$4 sm:$0xff]  }
  0x94   : > { %9883 = vmatprep.subr.bf16.mxu1 %v10741_v2 }
  0x96   : > { %2245 = vmatpush1.bf16.msra.mxu0 %v10623_v42  ;;  %v10711_v42 = vld [vmem:[%s11250_s7 + $0x438] ss:$12 sps:$4 sm:$0xff]  }
  0x97   : > { %2246 = vmatprep.subr.bf16.mxu0 %v10631_v43  ;;  %9884 = vmatpush3.bf16.msra.mxu1 %v10742_v5  ;;  %v10719_v43 = vld [vmem:[%s11250_s7 + $0x454] ss:$12 sps:$4 sm:$0xff]  }
  0x98   : > { %2590 = vmatmul.mubr.bf16.gmra.mrb[40].mxu1 %v10657_v7  ;;  %9885 = vmatprep.subr.bf16.mxu1 %v10743_v6 }
  0x99   : > { %2208 = vmatmul.mubr.bf16.gmra.mrb[28].mxu0 %v10628_v44  ;;  %2597 = vmatprep.mubr.bf16.mxu1 %v10667_v9  ;;  %v10716_v44 = vld [vmem:[%s11268_s26 + $0x158] ss:$24 sps:$4 sm:$0xff]  }
  0x9a   : > { %2247 = vmatpush1.bf16.msra.mxu0 %v10629_v45  ;;  %2250 = vmatprep.mubr.bf16.mxu0 %v10637_v47  ;;  %v10717_v45 = vld [vmem:[%s11250_s7 + $0x450] ss:$12 sps:$4 sm:$0xff]   ;;  %v10722_v47 = vld [vmem:[%s11250_s7 + $0x46c] ss:$12 sps:$4 sm:$0xff]  }
  0x9b   : > { %2248 = vmatprep.subr.bf16.mxu0 %v10634_v46  ;;  %9886 = vmatpush3.bf16.msra.mxu1 %v10746_v11  ;;  %v10725_v46 = vld [vmem:[%s11268_s26 + $0x14] ss:$24 sps:$4 sm:$0xff]  }
  0x9c   : > { %9887 = vmatprep.subr.bf16.mxu1 %v10748_v12 }
  0x9e   : > { %2249 = vmatpush1.bf16.msra.mxu0 %v10632_v49  ;;  %v10723_v49 = vld [vmem:[%s11268_s26 + $0x10] ss:$24 sps:$4 sm:$0xff]  }
  0x9f   : > { %2331 = vmatprep.subr.bf16.mxu0 %v10640_v50  ;;  %9888 = vmatpush3.bf16.msra.mxu1 %v10749_v15  ;;  %v10726_v50 = vld [vmem:[%s11268_s26 + $0x44] ss:$24 sps:$4 sm:$0xff]  }
  0xa0   : > { %2598 = vmatmul.mubr.bf16.gmra.mrb[44].mxu1 %v10670_v17  ;;  %9889 = vmatprep.subr.bf16.mxu1 %v10750_v16  ;;  %v865_v16 = vld [vmem:[%s17756_s20] sm:$0xff] }
  0xa1   : > { %2251 = vmatmul.mubr.bf16.vlgmr.msra.gmra.mrb[0].mxu0 %v10635_v51  ;;  %2605 = vmatprep.mubr.bf16.mxu1 %v10680_v19  ;;  %v10728_v51 = vld [vmem:[%s11268_s26 + $0x40] ss:$24 sps:$4 sm:$0xff]  }
  0xa2   : > { %2332 = vmatpush1.bf16.msra.mxu0 %v10638_v52  ;;  %2260 = vmatprep.mubr.bf16.mxu0 %v10644_v53  ;;  %v10730_v52 = vld [vmem:[%s11268_s26 + $0x74] ss:$24 sps:$4 sm:$0xff]   ;;  %v10733_v53 = vld [vmem:[%s11268_s26 + $0x70] ss:$24 sps:$4 sm:$0xff]  }
  0xa3   : > { %2333 = vmatprep.subr.bf16.mxu0 %v10643_v54  ;;  %9890 = vmatpush3.bf16.msra.mxu1 %v10753_v21  ;;  %v10737_v54 = vld [vmem:[%s11268_s26 + $0xa4] ss:$24 sps:$4 sm:$0xff]  }
  0xa4   : > { %9891 = vmatprep.subr.bf16.mxu1 %v10755_v22 }
  0xa6   : > { %2334 = vmatpush1.bf16.msra.mxu0 %v10641_v57  ;;  %v10747_v57 = vld [vmem:[%s11268_s26 + $0xd0] ss:$24 sps:$4 sm:$0xff]  }
  0xa7   : > { %2335 = vmatprep.subr.bf16.mxu0 %v10649_v58  ;;  %9892 = vmatpush3.bf16.msra.mxu1 %v10756_v25  ;;  %v10751_v58 = vld [vmem:[%s11268_s26 + $0x104] ss:$24 sps:$4 sm:$0xff]  }
  0xa8   : > { %2606 = vmatmul.mubr.bf16.gmra.mrb[48].mxu1 %v10683_v26  ;;  %v884_v25 = vld [vmem:[%s17756_s20 + $0x98] sm:$0xff] }
  0xa9   : > { %2261 = vmatmul.mubr.bf16.gmra.mrb[4].mxu0 %v10646_v59  ;;  %2613 = vmatprep.mubr.bf16.mxu1 %v10693_v28  ;;  %v10754_v59 = vld [vmem:[%s11268_s26 + $0x100] ss:$24 sps:$4 sm:$0xff]  }
  0xaa   : > { %2336 = vmatpush1.bf16.msra.mxu0 %v10647_v61  ;;  %2270 = vmatprep.mubr.bf16.mxu0 %v10654_v0  ;;  %v10759_v61 = vld [vmem:[%s11268_s26 + $0x130] ss:$24 sps:$4 sm:$0xff]  }
  0xab   : > { %2337 = vmatprep.subr.bf16.mxu0 %v10652_v63  ;;  %v10762_v63 = vld [vmem:[%s11268_s26 + $0x160] ss:$24 sps:$4 sm:$0xff]   ;;  %s9748_s26 = sshll.u32 %s11244_s1, 6  ;;  %s6074_s1 = scalar_lea.vmem %s17744_s8, %s12233_s25 }
  0xae   : > { %2338 = vmatpush1.bf16.msra.mxu0 %v10650_v3 }
  0xaf   : > { %2339 = vmatprep.subr.bf16.mxu0 %v10660_v4 }
  0xb0   : > { %2614 = vmatmul.mubr.bf16.gmra.mrb[52].mxu1 %v10696_v32 }
  0xb1   : > { %2271 = vmatmul.mubr.bf16.gmra.mrb[8].mxu0 %v10657_v7  ;;  %2621 = vmatprep.mubr.bf16.mxu1 %v10705_v34 }
  0xb2   : > { %2340 = vmatpush1.bf16.msra.mxu0 %v10658_v8  ;;  %2280 = vmatprep.mubr.bf16.mxu0 %v10667_v9  ;;  %v881_v8 = vld [vmem:[%s17756_s20 + $0x80] sm:$0xff]  ;;  %v882_v9 = vld [vmem:[%s17756_s20 + $0x88] sm:$0xff] }
  0xb3   : > { %2341 = vmatprep.subr.bf16.mxu0 %v10665_v10  ;;  %v11462_v11 = vpack.c.bf16 %v882_v9, %v881_v8  ;;  %v874_v8 = vld [vmem:[%s17756_s20 + $0x48] sm:$0xff] }
  0xb5   : > { %18154 = vst [vmem:[#allocation5_spill] sm:$0xff] %v11462_v11  ;;  %10158 = vmatprep.subr.bf16.mxu1 %v11462_v11 }
  0xb6   : > { %2342 = vmatpush1.bf16.msra.mxu0 %v10663_v13 }
  0xb7   : > { %2343 = vmatprep.subr.bf16.mxu0 %v10673_v14 }
  0xb8   : > { %2622 = vmatmul.mubr.bf16.gmra.mrb[56].mxu1 %v10707_v38 }
  0xb9   : > { %2281 = vmatmul.mubr.bf16.gmra.mrb[12].mxu0 %v10670_v17  ;;  %2629 = vmatprep.mubr.bf16.mxu1 %v10714_v40  ;;  %v866_v17 = vld [vmem:[%s17756_s20 + $0x8] sm:$0xff] }
  0xba   : > { %2344 = vmatpush1.bf16.msra.mxu0 %v10671_v18  ;;  %2290 = vmatprep.mubr.bf16.mxu0 %v10680_v19  ;;  %v11471_v19 = vpack.c.bf16 %v866_v17, %v865_v16 }
  0xbb   : > { %2345 = vmatprep.subr.bf16.mxu0 %v10678_v20 }
  0xbc   : > { %18155 = vst [vmem:[#allocation6_spill] sm:$0xff] %v11471_v19 }
  0xbe   : > { %2346 = vmatpush1.bf16.msra.mxu0 %v10676_v23 }
  0xbf   : > { %2347 = vmatprep.subr.bf16.mxu0 %v10686_v24  ;;  %v883_v24 = vld [vmem:[%s17756_s20 + $0x90] sm:$0xff] }
  0xc0   : > { %2630 = vmatmul.mubr.bf16.gmra.mrb[60].mxu1 %v10716_v44 }
  0xc1   : > { %2291 = vmatmul.mubr.bf16.gmra.mrb[16].mxu0 %v10683_v26  ;;  %2670 = vmatprep.mubr.bf16.mxu1 %v10725_v46 }
  0xc2   : > { %2348 = vmatpush1.bf16.msra.mxu0 %v10684_v27  ;;  %2300 = vmatprep.mubr.bf16.mxu0 %v10693_v28  ;;  %v11486_v27 = vpack.c.bf16 %v884_v25, %v883_v24  ;;  %v875_v25 = vld [vmem:[%s17756_s20 + $0x50] sm:$0xff] }
  0xc3   : > { %2349 = vmatprep.subr.bf16.mxu0 %v10691_v29 }
  0xc4   : > { %18156 = vst [vmem:[#allocation7_spill] sm:$0xff] %v11486_v27 }
  0xc6   : > { %2350 = vmatpush1.bf16.msra.mxu0 %v10689_v30 }
  0xc7   : > { %2351 = vmatprep.subr.bf16.mxu0 %v10699_v31 }
  0xc8   : > { %2671 = vmatmul.mubr.bf16.vlgmr.msra.gmra.mrb[64].mxu1 %v10723_v49 }
  0xc9   : > { %2301 = vmatmul.mubr.bf16.gmra.mrb[20].mxu0 %v10696_v32  ;;  %2678 = vmatprep.mubr.bf16.mxu1 %v10726_v50  ;;  %v867_v32 = vld [vmem:[%s17756_s20 + $0x10] sm:$0xff] }
  0xca   : > { %2352 = vmatpush1.bf16.msra.mxu0 %v10697_v33  ;;  %2310 = vmatprep.mubr.bf16.mxu0 %v10705_v34  ;;  %v868_v33 = vld [vmem:[%s17756_s20 + $0x18] sm:$0xff] }
  0xcb   : > { %2353 = vmatprep.subr.bf16.mxu0 %v10704_v35  ;;  %10160 = vmatpush3.bf16.msra.mxu1 %v11471_v19  ;;  %v11497_v34 = vpack.c.bf16 %v868_v33, %v867_v32 }
  0xcc   : > { %10162 = vmatprep.subr.bf16.mxu1 %v11486_v27 }
  0xcd   : > { %18157 = vst [vmem:[#allocation8_spill] sm:$0xff] %v11497_v34 }
  0xce   : > { %2354 = vmatpush1.bf16.msra.mxu0 %v10702_v36 }
  0xcf   : > { %2355 = vmatprep.subr.bf16.mxu0 %v10710_v37  ;;  %10164 = vmatpush3.bf16.msra.mxu1 %v11497_v34 }
  0xd0   : > { %2679 = vmatmul.mubr.bf16.gmra.mrb[68].mxu1 %v10728_v51 }
  0xd1   : > { %2311 = vmatmul.mubr.bf16.gmra.mrb[24].mxu0 %v10707_v38  ;;  %2686 = vmatprep.mubr.bf16.mxu1 %v10730_v52 }
  0xd2   : > { %2356 = vmatpush1.bf16.msra.mxu0 %v10708_v39  ;;  %2320 = vmatprep.mubr.bf16.mxu0 %v10714_v40 }
  0xd3   : > { %2357 = vmatprep.subr.bf16.mxu0 %v10713_v41 }
  0xd6   : > { %2358 = vmatpush1.bf16.msra.mxu0 %v10711_v42 }
  0xd7   : > { %2359 = vmatprep.subr.bf16.mxu0 %v10719_v43 }
  0xd8   : > { %2687 = vmatmul.mubr.bf16.gmra.mrb[72].mxu1 %v10733_v53 }
  0xd9   : > { %2321 = vmatmul.mubr.bf16.gmra.mrb[28].mxu0 %v10716_v44  ;;  %2694 = vmatprep.mubr.bf16.mxu1 %v10737_v54 }
  0xda   : > { %2360 = vmatpush1.bf16.msra.mxu0 %v10717_v45  ;;  %2363 = vmatprep.mubr.bf16.mxu0 %v10725_v46  ;;  %v885_v45 = vld [vmem:[%s17756_s20 + $0xa0] sm:$0xff]  ;;  %v886_v46 = vld [vmem:[%s17756_s20 + $0xa8] sm:$0xff] }
  0xdb   : > { %2361 = vmatprep.subr.bf16.mxu0 %v10722_v47 }
  0xde   : > { %2362 = vmatpush1.bf16.msra.mxu0 %v10720_v48  ;;  %v869_v48 = vld [vmem:[%s17756_s20 + $0x20] sm:$0xff] }
  0xe0   : > { %2695 = vmatmul.mubr.bf16.gmra.mrb[76].mxu1 %v10740_v55 }
  0xe1   : > { %2364 = vmatmul.mubr.bf16.vlgmr.msra.gmra.mrb[0].mxu0 %v10723_v49  ;;  %2702 = vmatprep.mubr.bf16.mxu1 %v10744_v56  ;;  %v11517_v49 = vpack.c.bf16 %v886_v46, %v885_v45  ;;  %v877_v46 = vld [vmem:[%s17756_s20 + $0x60] sm:$0xff] }
  0xe2   : > { %2373 = vmatprep.mubr.bf16.mxu0 %v10726_v50  ;;  %v870_v50 = vld [vmem:[%s17756_s20 + $0x28] sm:$0xff] }
  0xe3   : > { %18158 = vst [vmem:[#allocation9_spill] sm:$0xff] %v11517_v49  ;;  %10166 = vmatprep.subr.bf16.mxu1 %v11517_v49 }
  0xe8   : > { %2703 = vmatmul.mubr.bf16.gmra.mrb[80].mxu1 %v10747_v57 }
  0xe9   : > { %2374 = vmatmul.mubr.bf16.gmra.mrb[4].mxu0 %v10728_v51  ;;  %2710 = vmatprep.mubr.bf16.mxu1 %v10751_v58 }
  0xea   : > { %2383 = vmatprep.mubr.bf16.mxu0 %v10730_v52  ;;  %v887_v52 = vld [vmem:[%s17756_s20 + $0xb0] sm:$0xff] }
  0xf0   : > { %2711 = vmatmul.mubr.bf16.gmra.mrb[84].mxu1 %v10754_v59 }
  0xf1   : > { %2384 = vmatmul.mubr.bf16.gmra.mrb[8].mxu0 %v10733_v53  ;;  %2718 = vmatprep.mubr.bf16.mxu1 %v10757_v60  ;;  %v888_v53 = vld [vmem:[%s17756_s20 + $0xb8] sm:$0xff] }
  0xf2   : > { %2393 = vmatprep.mubr.bf16.mxu0 %v10737_v54  ;;  %v11528_v54 = vpack.c.bf16 %v870_v50, %v869_v48 }
  0xf4   : > { %18159 = vst [vmem:[#allocation10_spill] sm:$0xff] %v11528_v54  ;;  %10168 = vmatpush3.bf16.msra.mxu1 %v11528_v54 }
  0xf8   : > { %2719 = vmatmul.mubr.bf16.gmra.mrb[88].mxu1 %v10759_v61 }
  0xf9   : > { %2394 = vmatmul.mubr.bf16.gmra.mrb[12].mxu0 %v10740_v55  ;;  %2726 = vmatprep.mubr.bf16.mxu1 %v10760_v62 }
  0xfa   : > { %2403 = vmatprep.mubr.bf16.mxu0 %v10744_v56  ;;  %v11532_v56 = vpack.c.bf16 %v888_v53, %v887_v52 }
  0xfc   : > { %18160 = vst [vmem:[#allocation11_spill] sm:$0xff] %v11532_v56  ;;  %10170 = vmatprep.subr.bf16.mxu1 %v11532_v56 }
 0x100   : > { %2727 = vmatmul.mubr.bf16.gmra.mrb[92].mxu1 %v10762_v63 }
 0x101   : > { %2404 = vmatmul.mubr.bf16.gmra.mrb[16].mxu0 %v10747_v57  ;;  %v871_v57 = vld [vmem:[%s17756_s20 + $0x30] sm:$0xff] }
 0x102   : > { %2413 = vmatprep.mubr.bf16.mxu0 %v10751_v58  ;;  %v872_v58 = vld [vmem:[%s17756_s20 + $0x38] sm:$0xff] }
 0x109   : > { %2414 = vmatmul.mubr.bf16.gmra.mrb[20].mxu0 %v10754_v59  ;;  %v11542_v59 = vpack.c.bf16 %v872_v58, %v871_v57  ;;  %v879_v58 = vld [vmem:[%s17756_s20 + $0x70] sm:$0xff] }
 0x10a   : > { %2423 = vmatprep.mubr.bf16.mxu0 %v10757_v60  ;;  %v889_v60 = vld [vmem:[%s17756_s20 + $0xc0] sm:$0xff] }
 0x10b   : > { %18161 = vst [vmem:[#allocation12_spill] sm:$0xff] %v11542_v59  ;;  %10172 = vmatpush3.bf16.msra.mxu1 %v11542_v59 }
 0x111   : > { %2424 = vmatmul.mubr.bf16.gmra.mrb[24].mxu0 %v10759_v61  ;;  %v890_v61 = vld [vmem:[%s17756_s20 + $0xc8] sm:$0xff] }
 0x112   : > { %2433 = vmatprep.mubr.bf16.mxu0 %v10760_v62 }
 0x119   : > { %2434 = vmatmul.mubr.bf16.gmra.mrb[28].mxu0 %v10762_v63  ;;  %v11551_v63 = vpack.c.bf16 %v890_v61, %v889_v60  ;;  %v880_v60 = vld [vmem:[%s17756_s20 + $0x78] sm:$0xff] }
 0x11b   : > { %v9765_v0 = vpop.f32.mrb[0].mxu1  ;;  %18162 = vst [vmem:[#allocation13_spill] sm:$0xff] %v11551_v63  ;;  %10174 = vmatprep.subr.bf16.mxu1 %v11551_v63 }
 0x11c   : > { %v9766_v1 = vpop.f32.mrb[1].mxu1 }
 0x11d   : > { %v9768_v2 = vpop.f32.mrb[2].mxu1  ;;  %v11450_v5 = vadd.f32 %v9766_v1, %v9765_v0 }
 0x11e   : > { %v9769_v3 = vpop.f32.mrb[3].mxu1 }
 0x11f   : > { %v11452_v6 = vadd.f32 %v9769_v3, %v9768_v2 }
 0x123   : > { %v9771_v4 = vpop.f32.mrb[4].mxu1 }
 0x124   : > { %v9772_v7 = vpop.f32.mrb[5].mxu1 }
 0x125   : > { %v11460_v10 = vadd.f32 %v9772_v7, %v9771_v4  ;;  %v9774_v12 = vpop.f32.mrb[6].mxu1  ;;  %v873_v7 = vld [vmem:[%s17756_s20 + $0x40] sm:$0xff] }
 0x126   : > { %v9775_v13 = vpop.f32.mrb[7].mxu1  ;;  %v11565_v9 = vpack.c.bf16 %v874_v8, %v873_v7 }
 0x127   : > { %v11473_v20 = vadd.f32 %v9775_v13, %v9774_v12  ;;  %v891_v12 = vld [vmem:[%s17756_s20 + $0xd0] sm:$0xff]  ;;  %v892_v13 = vld [vmem:[%s17756_s20 + $0xd8] sm:$0xff] }
 0x128   : > { %18163 = vst [vmem:[#allocation14_spill] sm:$0xff] %v11565_v9  ;;  %10176 = vmatpush3.bf16.msra.mxu1 %v11565_v9 }
 0x12b   : > { %v9777_v14 = vpop.f32.mrb[8].mxu1 }
 0x12c   : > { %v9778_v15 = vpop.f32.mrb[9].mxu1 }
 0x12d   : > { %v9780_v18 = vpop.f32.mrb[10].mxu1  ;;  %v11476_v22 = vadd.f32 %v9778_v15, %v9777_v14  ;;  %v11574_v15 = vpack.c.bf16 %v892_v13, %v891_v12 }
 0x12e   : > { %v9781_v21 = vpop.f32.mrb[11].mxu1 }
 0x12f   : > { %v11478_v23 = vadd.f32 %v9781_v21, %v9780_v18  ;;  %18164 = vst [vmem:[#allocation15_spill] sm:$0xff] %v11574_v15  ;;  %10178 = vmatprep.subr.bf16.mxu1 %v11574_v15 }
 0x133   : > { %v9783_v26 = vpop.f32.mrb[12].mxu1 }
 0x134   : > { %v9784_v28 = vpop.f32.mrb[13].mxu1 }
 0x135   : > { %v11488_v29 = vadd.f32 %v9784_v28, %v9783_v26  ;;  %v9786_v30 = vpop.f32.mrb[14].mxu1  ;;  %v876_v26 = vld [vmem:[%s17756_s20 + $0x58] sm:$0xff] }
 0x136   : > { %v9787_v31 = vpop.f32.mrb[15].mxu1  ;;  %v11587_v28 = vpack.c.bf16 %v876_v26, %v875_v25 }
 0x137   : > { %v11499_v35 = vadd.f32 %v9787_v31, %v9786_v30 }
 0x138   : > { %18165 = vst [vmem:[#allocation16_spill] sm:$0xff] %v11587_v28  ;;  %10180 = vmatpush3.bf16.msra.mxu1 %v11587_v28 }
 0x13b   : > { %v9789_v36 = vpop.f32.mrb[16].mxu1 }
 0x13c   : > { %v9790_v37 = vpop.f32.mrb[17].mxu1 }
 0x13d   : > { %v9792_v38 = vpop.f32.mrb[18].mxu1  ;;  %v11502_v42 = vadd.f32 %v9790_v37, %v9789_v36 }
 0x13e   : > { %v9793_v39 = vpop.f32.mrb[19].mxu1 }
 0x13f   : > { %v11504_v43 = vadd.f32 %v9793_v39, %v9792_v38  ;;  %v893_v39 = vld [vmem:[%s17756_s20 + $0xe0] sm:$0xff] }
 0x143   : > { %v9795_v40 = vpop.f32.mrb[20].mxu1 }
 0x144   : > { %v9796_v41 = vpop.f32.mrb[21].mxu1 }
 0x145   : > { %v11506_v44 = vadd.f32 %v9796_v41, %v9795_v40  ;;  %v9798_v47 = vpop.f32.mrb[22].mxu1  ;;  %v894_v40 = vld [vmem:[%s17756_s20 + $0xe8] sm:$0xff] }
 0x146   : > { %v9799_v51 = vpop.f32.mrb[23].mxu1  ;;  %v11602_v45 = vpack.c.bf16 %v894_v40, %v893_v39 }
 0x147   : > { %v11530_v55 = vadd.f32 %v9799_v51, %v9798_v47  ;;  %v896_v51 = vld [vmem:[%s17756_s20 + $0xf8] sm:$0xff] }
 0x148   : > { %18166 = vst [vmem:[#allocation17_spill] sm:$0xff] %v11602_v45  ;;  %10182 = vmatprep.subr.bf16.mxu1 %v11602_v45 }
 0x14b   : > { %v9801_v62 = vpop.f32.mrb[24].mxu1 }
 0x14c   : > { %v9802_v0 = vpop.f32.mrb[25].mxu1 }
 0x14d   : > { %v11553_v1 = vadd.f32 %v9802_v0, %v9801_v62  ;;  %v9804_v2 = vpop.f32.mrb[26].mxu1  ;;  %v11628_v62 = vpack.c.bf16 %v880_v60, %v879_v58 }
 0x14e   : > { %v9805_v3 = vpop.f32.mrb[27].mxu1 }
 0x14f   : > { %v11557_v4 = vadd.f32 %v9805_v3, %v9804_v2  ;;  %18169 = vst [vmem:[#allocation20_spill] sm:$0xff] %v11628_v62 }
 0x153   : > { %v9807_v14 = vpop.f32.mrb[28].mxu1 }
 0x154   : > { %v9808_v16 = vpop.f32.mrb[29].mxu1 }
 0x155   : > { %v11576_v17 = vadd.f32 %v9808_v16, %v9807_v14  ;;  %v9810_v18 = vpop.f32.mrb[30].mxu1 }
 0x156   : > { %v9811_v21 = vpop.f32.mrb[31].mxu1 }
 0x157   : > { %v11579_v24 = vadd.f32 %v9811_v21, %v9810_v18 }
 0x15b   : > { %v9829_v30 = vpop.f32.mrb[32].mxu1 }
 0x15c   : > { %v9830_v31 = vpop.f32.mrb[33].mxu1 }
 0x15d   : > { %v9831_v32 = vadd.f32 %v9830_v31, %v9829_v30  ;;  %v9832_v33 = vpop.f32.mrb[34].mxu1 }
 0x15e   : > { %v9833_v36 = vpop.f32.mrb[35].mxu1 }
 0x15f   : > { %v11591_v37 = vadd.f32 %v9831_v32, %v11450_v5  ;;  %v9834_v38 = vadd.f32 %v9833_v36, %v9832_v33  ;;  %v878_v5 = vld [vmem:[%s17756_s20 + $0x68] sm:$0xff] }
 0x160   : > { %v11610_v47 = vpack.c.bf16 %v878_v5, %v877_v46 }
 0x161   : > { %v11600_v41 = vadd.f32 %v9834_v38, %v11452_v6  ;;  %v895_v6 = vld [vmem:[%s17756_s20 + $0xf0] sm:$0xff] }
 0x162   : > { %18167 = vst [vmem:[#allocation18_spill] sm:$0xff] %v11610_v47  ;;  %10184 = vmatpush3.bf16.msra.mxu1 %v11610_v47  ;;  %v11620_v57 = vpack.c.bf16 %v896_v51, %v895_v6 }
 0x163   : > { %v9835_v48 = vpop.f32.mrb[36].mxu1 }
 0x164   : > { %v9836_v50 = vpop.f32.mrb[37].mxu1  ;;  %18168 = vst [vmem:[#allocation19_spill] sm:$0xff] %v11620_v57  ;;  %10186 = vmatprep.subr.bf16.mxu1 %v11620_v57 }
 0x165   : > { %v9837_v52 = vadd.f32 %v9836_v50, %v9835_v48  ;;  %v9838_v53 = vpop.f32.mrb[38].mxu1 }
 0x166   : > { %v9839_v61 = vpop.f32.mrb[39].mxu1  ;;  %10188 = vmatpush3.bf16.msra.mxu1 %v11628_v62 }
 0x167   : > { %v11631_v0 = vadd.f32 %v9837_v52, %v11460_v10  ;;  %v9840_v2 = vadd.f32 %v9839_v61, %v9838_v53 }
 0x169   : > { %v11636_v3 = vadd.f32 %v9840_v2, %v11473_v20 }
 0x16b   : > { %v9841_v7 = vpop.f32.mrb[40].mxu1 }
 0x16c   : > { %v9842_v8 = vpop.f32.mrb[41].mxu1 }
 0x16d   : > { %v9843_v12 = vadd.f32 %v9842_v8, %v9841_v7  ;;  %v9844_v13 = vpop.f32.mrb[42].mxu1 }
 0x16e   : > { %v9845_v14 = vpop.f32.mrb[43].mxu1 }
 0x16f   : > { %v11639_v16 = vadd.f32 %v9843_v12, %v11476_v22  ;;  %v9846_v18 = vadd.f32 %v9845_v14, %v9844_v13 }
 0x171   : > { %v11642_v10 = vadd.f32 %v9846_v18, %v11478_v23 }
 0x173   : > { %v9847_v21 = vpop.f32.mrb[44].mxu1 }
 0x174   : > { %v9848_v25 = vpop.f32.mrb[45].mxu1 }
 0x175   : > { %v9849_v26 = vadd.f32 %v9848_v25, %v9847_v21  ;;  %v9850_v30 = vpop.f32.mrb[46].mxu1 }
 0x176   : > { %v9851_v31 = vpop.f32.mrb[47].mxu1 }
 0x177   : > { %v11645_v20 = vadd.f32 %v9849_v26, %v11488_v29  ;;  %v9852_v32 = vadd.f32 %v9851_v31, %v9850_v30 }
 0x179   : > { %v11648_v33 = vadd.f32 %v9852_v32, %v11499_v35 }
 0x17b   : > { %v9853_v36 = vpop.f32.mrb[48].mxu1 }
 0x17c   : > { %v9854_v38 = vpop.f32.mrb[49].mxu1 }
 0x17d   : > { %v9855_v22 = vadd.f32 %v9854_v38, %v9853_v36  ;;  %v9856_v39 = vpop.f32.mrb[50].mxu1 }
 0x17e   : > { %v9857_v40 = vpop.f32.mrb[51].mxu1 }
 0x17f   : > { %v11651_v23 = vadd.f32 %v9855_v22, %v11502_v42  ;;  %v9858_v46 = vadd.f32 %v9857_v40, %v9856_v39 }
 0x181   : > { %v11654_v5 = vadd.f32 %v9858_v46, %v11504_v43 }
 0x183   : > { %v9859_v48 = vpop.f32.mrb[52].mxu1 }
 0x184   : > { %v9860_v50 = vpop.f32.mrb[53].mxu1 }
 0x185   : > { %v9861_v29 = vadd.f32 %v9860_v50, %v9859_v48  ;;  %v9862_v6 = vpop.f32.mrb[54].mxu1 }
 0x186   : > { %v9863_v51 = vpop.f32.mrb[55].mxu1 }
 0x187   : > { %v11657_v35 = vadd.f32 %v9861_v29, %v11506_v44  ;;  %v9864_v52 = vadd.f32 %v9863_v51, %v9862_v6 }
 0x189   : > { %v11660_v53 = vadd.f32 %v9864_v52, %v11530_v55 }
 0x18b   : > { %v9865_v58 = vpop.f32.mrb[56].mxu1 }
 0x18c   : > { %v9866_v60 = vpop.f32.mrb[57].mxu1 }
 0x18d   : > { %v9867_v42 = vadd.f32 %v9866_v60, %v9865_v58  ;;  %v9868_v61 = vpop.f32.mrb[58].mxu1 }
 0x18e   : > { %v9869_v2 = vpop.f32.mrb[59].mxu1 }
 0x18f   : > { %v11663_v43 = vadd.f32 %v9867_v42, %v11553_v1  ;;  %v9870_v7 = vadd.f32 %v9869_v2, %v9868_v61 }
 0x191   : > { %v11666_v8 = vadd.f32 %v9870_v7, %v11557_v4 }
 0x193   : > { %v9871_v12 = vpop.f32.mrb[60].mxu1 }
 0x194   : > { %v9872_v13 = vpop.f32.mrb[61].mxu1 }
 0x195   : > { %v9873_v44 = vadd.f32 %v9872_v13, %v9871_v12  ;;  %v9874_v14 = vpop.f32.mrb[62].mxu1 }
 0x196   : > { %v9875_v18 = vpop.f32.mrb[63].mxu1 }
 0x197   : > { %v11669_v55 = vadd.f32 %v9873_v44, %v11576_v17  ;;  %v9876_v21 = vadd.f32 %v9875_v18, %v9874_v14 }
 0x199   : > { %v11672_v25 = vadd.f32 %v9876_v21, %v11579_v24 }
 0x19b   : > { %v9893_v26 = vpop.f32.mrb[64].mxu1 }
 0x19c   : > { %v9894_v1 = vpop.f32.mrb[65].mxu1 }
 0x19d   : > { %v9895_v4 = vadd.f32 %v9894_v1, %v9893_v26  ;;  %v9896_v32 = vpop.f32.mrb[66].mxu1 }
 0x19e   : > { %v9897_v22 = vpop.f32.mrb[67].mxu1 }
 0x19f   : > { %v11689_v40 = vadd.f32 %v9895_v4, %v11591_v37  ;;  %v9898_v46 = vadd.f32 %v9897_v22, %v9896_v32 }
 0x1a1   : > { %18170 = vst [vmem:[#allocation21_spill] sm:$0xff] %v11689_v40  ;;  %v11698_v51 = vadd.f32 %v9898_v46, %v11600_v41 }
 0x1a3   : > { %18171 = vst [vmem:[#allocation22_spill] sm:$0xff] %v11698_v51  ;;  %v9899_v58 = vpop.f32.mrb[68].mxu1 }
 0x1a4   : > { %v9900_v37 = vpop.f32.mrb[69].mxu1 }
 0x1a5   : > { %v9901_v7 = vadd.f32 %v9900_v37, %v9899_v58  ;;  %v9902_v12 = vpop.f32.mrb[70].mxu1 }
 0x1a6   : > { %v9903_v14 = vpop.f32.mrb[71].mxu1 }
 0x1a7   : > { %v11718_v4 = vadd.f32 %v9901_v7, %v11631_v0 }
 0x1a9   : > { %18172 = vst [vmem:[#allocation23_spill] sm:$0xff] %v11718_v4 }
 0x1b4   : > { %v11674_v30 = vpop.f32.mrb[0].mxu0 }
 0x1b5   : > { %v11676_v31 = vpop.f32.mrb[1].mxu0  ;;  %v2830_v36 = vmul.f32 %v11674_v30, %v11674_v30 }
 0x1b6   : > { %v11680_v38 = vpop.f32.mrb[2].mxu0  ;;  %v2831_v48 = vmul.f32 %v11676_v31, %v11676_v31 }
 0x1b7   : > { %v2735_v17 = vadd.f32 %v11680_v38, %v11674_v30  ;;  %v2833_v24 = vmul.f32 %v11680_v38, %v11680_v38  ;;  %v11686_v39 = vpop.f32.mrb[3].mxu0 }
 0x1b8   : > { %v2748_v50 = vadd.f32 %v11686_v39, %v11676_v31  ;;  %v2834_v29 = vmul.f32 %v11686_v39, %v11686_v39 }
 0x1b9   : > { %v2878_v6 = vadd.f32 %v2833_v24, %v2830_v36 }
 0x1ba   : > { %v2891_v52 = vadd.f32 %v2834_v29, %v2831_v48 }
 0x1bc   : > { %v11700_v60 = vpop.f32.mrb[4].mxu0 }
 0x1bd   : > { %v2736_v42 = vadd.f32 %v2735_v17, %v11700_v60  ;;  %v2836_v61 = vmul.f32 %v11700_v60, %v11700_v60  ;;  %v11705_v2 = vpop.f32.mrb[5].mxu0  ;;  %v9904_v17 = vadd.f32 %v9903_v14, %v9902_v12 }
 0x1be   : > { %v2749_v13 = vadd.f32 %v2748_v50, %v11705_v2  ;;  %v2837_v41 = vmul.f32 %v11705_v2, %v11705_v2  ;;  %v11710_v44 = vpop.f32.mrb[6].mxu0  ;;  %v9905_v50 = vpop.f32.mrb[72].mxu1 }
 0x1bf   : > { %v2879_v18 = vadd.f32 %v2878_v6, %v2836_v61  ;;  %v2737_v21 = vadd.f32 %v2736_v42, %v11710_v44  ;;  %v2839_v26 = vmul.f32 %v11710_v44, %v11710_v44  ;;  %v11715_v1 = vpop.f32.mrb[7].mxu0  ;;  %v11724_v48 = vadd.f32 %v9904_v17, %v11636_v3  ;;  %v9906_v6 = vpop.f32.mrb[73].mxu1 }
 0x1c0   : > { %v2892_v32 = vadd.f32 %v2891_v52, %v2837_v41  ;;  %v2750_v36 = vadd.f32 %v2749_v13, %v11715_v1  ;;  %v2840_v22 = vmul.f32 %v11715_v1, %v11715_v1  ;;  %v9907_v37 = vadd.f32 %v9906_v6, %v9905_v50  ;;  %v9908_v42 = vpop.f32.mrb[74].mxu1 }
 0x1c1   : > { %v2880_v24 = vadd.f32 %v2879_v18, %v2839_v26  ;;  %18173 = vst [vmem:[#allocation24_spill] sm:$0xff] %v11724_v48  ;;  %v9909_v12 = vpop.f32.mrb[75].mxu1 }
 0x1c2   : > { %v2893_v46 = vadd.f32 %v2892_v32, %v2840_v22  ;;  %v9910_v17 = vadd.f32 %v9909_v12, %v9908_v42  ;;  %v9911_v6 = vpop.f32.mrb[76].mxu1 }
 0x1c4   : > { %v11726_v29 = vpop.f32.mrb[8].mxu0 }
 0x1c5   : > { %v2738_v58 = vadd.f32 %v2737_v21, %v11726_v29  ;;  %v2842_v0 = vmul.f32 %v11726_v29, %v11726_v29  ;;  %v11731_v52 = vpop.f32.mrb[9].mxu0 }
 0x1c6   : > { %v2751_v61 = vadd.f32 %v2750_v36, %v11731_v52  ;;  %v2843_v7 = vmul.f32 %v11731_v52, %v11731_v52  ;;  %v11736_v3 = vpop.f32.mrb[10].mxu0  ;;  %v11747_v36 = vadd.f32 %v9907_v37, %v11639_v16 }
 0x1c7   : > { %v2881_v13 = vadd.f32 %v2880_v24, %v2842_v0  ;;  %v2739_v41 = vadd.f32 %v2738_v58, %v11736_v3  ;;  %v2845_v14 = vmul.f32 %v11736_v3, %v11736_v3  ;;  %v11741_v18 = vpop.f32.mrb[11].mxu0  ;;  %v11750_v24 = vadd.f32 %v9910_v17, %v11642_v10  ;;  %v9912_v0 = vpop.f32.mrb[77].mxu1 }
 0x1c8   : > { %v2894_v21 = vadd.f32 %v2893_v46, %v2843_v7  ;;  %v2752_v26 = vadd.f32 %v2751_v61, %v11741_v18  ;;  %v2846_v32 = vmul.f32 %v11741_v18, %v11741_v18  ;;  %18174 = vst [vmem:[#allocation25_spill] sm:$0xff] %v11747_v36  ;;  %v9914_v62 = vpop.f32.mrb[78].mxu1 }
 0x1c9   : > { %v2882_v22 = vadd.f32 %v2881_v13, %v2845_v14  ;;  %18175 = vst [vmem:[#allocation26_spill] sm:$0xff] %v11750_v24  ;;  %v9915_v10 = vpop.f32.mrb[79].mxu1 }
 0x1ca   : > { %v2895_v50 = vadd.f32 %v2894_v21, %v2846_v32  ;;  %v9913_v21 = vadd.f32 %v9912_v0, %v9911_v6  ;;  %v9917_v47 = vpop.f32.mrb[80].mxu1 }
 0x1cc   : > { %v11752_v58 = vpop.f32.mrb[12].mxu0 }
 0x1cd   : > { %18176 = vst [vmem:[#allocation27_spill] sm:$0xff] %v11752_v58  ;;  %v2740_v46 = vadd.f32 %v2739_v41, %v11752_v58  ;;  %v2848_v61 = vmul.f32 %v11752_v58, %v11752_v58  ;;  %v11757_v7 = vpop.f32.mrb[13].mxu0 }
 0x1ce   : > { %18177 = vst [vmem:[#allocation28_spill] sm:$0xff] %v11757_v7  ;;  %v2753_v16 = vadd.f32 %v2752_v26, %v11757_v7  ;;  %v2849_v37 = vmul.f32 %v11757_v7, %v11757_v7  ;;  %v11762_v42 = vpop.f32.mrb[14].mxu0 }
 0x1cf   : > { %18178 = vst [vmem:[#allocation29_spill] sm:$0xff] %v11762_v42  ;;  %v2883_v12 = vadd.f32 %v2882_v22, %v2848_v61  ;;  %v11765_v13 = vadd.f32 %v2740_v46, %v11762_v42  ;;  %v2851_v41 = vmul.f32 %v11762_v42, %v11762_v42  ;;  %v11769_v14 = vpop.f32.mrb[15].mxu0  ;;  %v11779_v22 = vadd.f32 %v9913_v21, %v11645_v20 }
 0x1d0   : > { %18179 = vst [vmem:[#allocation30_spill] sm:$0xff] %v11769_v14  ;;  %v2896_v32 = vadd.f32 %v2895_v50, %v2849_v37  ;;  %v11772_v17 = vadd.f32 %v2753_v16, %v11769_v14  ;;  %v2852_v26 = vmul.f32 %v11769_v14, %v11769_v14  ;;  %v9916_v61 = vadd.f32 %v9915_v10, %v9914_v62  ;;  %v9918_v50 = vpop.f32.mrb[81].mxu1 }
 0x1d1   : > { %v11776_v57 = vadd.f32 %v2883_v12, %v2851_v41  ;;  %18180 = vst [vmem:[#allocation31_spill] sm:$0xff] %v11779_v22  ;;  %v9920_v16 = vpop.f32.mrb[82].mxu1  ;;  %v9919_v28 = vadd.f32 %v9918_v50, %v9917_v47 }
 0x1d2   : > { %v11781_v46 = vadd.f32 %v2896_v32, %v2852_v26  ;;  %v11786_v6 = vadd.f32 %v9916_v61, %v11648_v33  ;;  %v9921_v12 = vpop.f32.mrb[83].mxu1 }
 0x1d3   : > { %v9923_v15 = vpop.f32.mrb[84].mxu1  ;;  %v9922_v63 = vadd.f32 %v9921_v12, %v9920_v16  ;;  %v11827_v11 = vadd.f32 %v9919_v28, %v11651_v23 }
 0x1d4   : > { %v11783_v45 = vpop.f32.mrb[16].mxu0  ;;  %18182 = vst [vmem:[#allocation33_spill] sm:$0xff] %v11786_v6  ;;  %v9924_v59 = vpop.f32.mrb[85].mxu1 }
 0x1d5   : > { %18181 = vst [vmem:[#allocation32_spill] sm:$0xff] %v11783_v45  ;;  %v11788_v0 = vpop.f32.mrb[17].mxu0  ;;  %v2854_v20 = vmul.f32 %v11783_v45, %v11783_v45  ;;  %v9926_v34 = vpop.f32.mrb[86].mxu1  ;;  %18190 = vst [vmem:[#allocation41_spill] sm:$0xff] %v11827_v11 }
 0x1d6   : > { %18183 = vst [vmem:[#allocation34_spill] sm:$0xff] %v11788_v0  ;;  %v11790_v37 = vpop.f32.mrb[18].mxu0  ;;  %v2855_v33 = vmul.f32 %v11788_v0, %v11788_v0  ;;  %v9927_v47 = vpop.f32.mrb[87].mxu1 }
 0x1d7   : > { %18184 = vst [vmem:[#allocation35_spill] sm:$0xff] %v11790_v37  ;;  %v2783_v41 = vadd.f32 %v11790_v37, %v11783_v45  ;;  %v2857_v62 = vmul.f32 %v11790_v37, %v11790_v37  ;;  %v11798_v10 = vpop.f32.mrb[19].mxu0 }
 0x1d8   : > { %18185 = vst [vmem:[#allocation36_spill] sm:$0xff] %v11798_v10  ;;  %v2796_v21 = vadd.f32 %v11798_v10, %v11788_v0  ;;  %v2858_v32 = vmul.f32 %v11798_v10, %v11798_v10 }
 0x1d9   : > { %v2925_v26 = vadd.f32 %v2857_v62, %v2854_v20 }
 0x1da   : > { %v2938_v61 = vadd.f32 %v2858_v32, %v2855_v33 }
 0x1dc   : > { %v11806_v9 = vpop.f32.mrb[20].mxu0 }
 0x1dd   : > { %18186 = vst [vmem:[#allocation37_spill] sm:$0xff] %v11806_v9  ;;  %v2784_v56 = vadd.f32 %v2783_v41, %v11806_v9  ;;  %v2860_v54 = vmul.f32 %v11806_v9, %v11806_v9  ;;  %v11811_v49 = vpop.f32.mrb[21].mxu0  ;;  %v9929_v9 = vpop.f32.mrb[88].mxu1 }
 0x1de   : > { %18187 = vst [vmem:[#allocation38_spill] sm:$0xff] %v11811_v49  ;;  %v2797_v27 = vadd.f32 %v2796_v21, %v11811_v49  ;;  %v2861_v20 = vmul.f32 %v11811_v49, %v11811_v49  ;;  %v11816_v62 = vpop.f32.mrb[22].mxu0  ;;  %v11830_v49 = vadd.f32 %v9922_v63, %v11654_v5 }
 0x1df   : > { %18188 = vst [vmem:[#allocation39_spill] sm:$0xff] %v11816_v62  ;;  %v2926_v50 = vadd.f32 %v2925_v26, %v2860_v54  ;;  %v2785_v16 = vadd.f32 %v2784_v56, %v11816_v62  ;;  %v2863_v12 = vmul.f32 %v11816_v62, %v11816_v62  ;;  %v11821_v41 = vpop.f32.mrb[23].mxu0  ;;  %v9925_v56 = vadd.f32 %v9924_v59, %v9923_v15 }
 0x1e0   : > { %18189 = vst [vmem:[#allocation40_spill] sm:$0xff] %v11821_v41  ;;  %v2939_v33 = vadd.f32 %v2938_v61, %v2861_v20  ;;  %v2798_v32 = vadd.f32 %v2797_v27, %v11821_v41  ;;  %v2864_v21 = vmul.f32 %v11821_v41, %v11821_v41  ;;  %18191 = vst [vmem:[#allocation42_spill] sm:$0xff] %v11830_v49  ;;  %v9930_v27 = vpop.f32.mrb[89].mxu1  ;;  %v2742_v20 = vrot.slane %v11765_v13, 4 }
 0x1e1   : > { %v2927_v19 = vadd.f32 %v2926_v50, %v2863_v12  ;;  %v9928_v26 = vadd.f32 %v9927_v47, %v9926_v34  ;;  %v11835_v61 = vadd.f32 %v9925_v56, %v11657_v35  ;;  %v9932_v63 = vpop.f32.mrb[90].mxu1  ;;  %v2755_v35 = vrot.slane %v11772_v17, 4 }
 0x1e2   : > { %v2940_v54 = vadd.f32 %v2939_v33, %v2864_v21  ;;  %v9933_v5 = vpop.f32.mrb[91].mxu1 }
 0x1e3   : > { %18193 = vst [vmem:[#allocation44_spill] sm:$0xff] %v11835_v61  ;;  %v9934_v10 = vadd.f32 %v9933_v5, %v9932_v63 }
 0x1e4   : > { %v11832_v62 = vpop.f32.mrb[24].mxu0 }
 0x1e5   : > { %18192 = vst [vmem:[#allocation43_spill] sm:$0xff] %v11832_v62  ;;  %v2786_v50 = vadd.f32 %v2785_v16, %v11832_v62  ;;  %v2866_v28 = vmul.f32 %v11832_v62, %v11832_v62  ;;  %v11841_v23 = vpop.f32.mrb[25].mxu0  ;;  %v2885_v62 = vrot.slane %v11776_v57, 4 }
 0x1e6   : > { %18194 = vst [vmem:[#allocation45_spill] sm:$0xff] %v11841_v23  ;;  %v2799_v59 = vadd.f32 %v2798_v32, %v11841_v23  ;;  %v2867_v34 = vmul.f32 %v11841_v23, %v11841_v23  ;;  %v11846_v15 = vpop.f32.mrb[26].mxu0  ;;  %v2743_v23 = vadd.f32 %v2742_v20, %v11765_v13  ;;  %v11870_v13 = vadd.f32 %v9934_v10, %v11666_v8 }
 0x1e7   : > { %18195 = vst [vmem:[#allocation46_spill] sm:$0xff] %v11846_v15  ;;  %v2928_v47 = vadd.f32 %v2927_v19, %v2866_v28  ;;  %v2787_v12 = vadd.f32 %v2786_v50, %v11846_v15  ;;  %v2869_v16 = vmul.f32 %v11846_v15, %v11846_v15  ;;  %v11852_v33 = vpop.f32.mrb[27].mxu0  ;;  %v11860_v19 = vadd.f32 %v9928_v26, %v11660_v53 }
 0x1e8   : > { %18196 = vst [vmem:[#allocation47_spill] sm:$0xff] %v11852_v33  ;;  %v2941_v21 = vadd.f32 %v2940_v54, %v2867_v34  ;;  %v2800_v56 = vadd.f32 %v2799_v59, %v11852_v33  ;;  %v2870_v32 = vmul.f32 %v11852_v33, %v11852_v33  ;;  %v2898_v50 = vrot.slane %v11781_v46, 4  ;;  %v9935_v34 = vpop.f32.mrb[92].mxu1  ;;  %18200 = vst [vmem:[#allocation51_spill] sm:$0xff] %v11870_v13 }
 0x1e9   : > { %v2929_v41 = vadd.f32 %v2928_v47, %v2869_v16  ;;  %18197 = vst [vmem:[#allocation48_spill] sm:$0xff] %v11860_v19  ;;  %v9931_v15 = vadd.f32 %v9930_v27, %v9929_v9  ;;  %v2756_v54 = vadd.f32 %v2755_v35, %v11772_v17  ;;  %v9936_v20 = vpop.f32.mrb[93].mxu1  ;;  %v2886_v53 = vadd.f32 %v2885_v62, %v11776_v57 }
 0x1ea   : > { %v2942_v28 = vadd.f32 %v2941_v21, %v2870_v32  ;;  %v9937_v17 = vadd.f32 %v9936_v20, %v9935_v34  ;;  %v9938_v63 = vpop.f32.mrb[94].mxu1  ;;  %v2744_v5 = vrot.slane %v2743_v23, 2  ;;  %v2899_v35 = vadd.f32 %v2898_v50, %v11781_v46 }
 0x1eb   : > { %v11867_v33 = vadd.f32 %v9931_v15, %v11663_v43  ;;  %v9939_v57 = vpop.f32.mrb[95].mxu1  ;;  %v2757_v62 = vrot.slane %v2756_v54, 2  ;;  %v2887_v32 = vrot.slane %v2886_v53, 2 }
 0x1ec   : > { %v11864_v59 = vpop.f32.mrb[28].mxu0  ;;  %v2900_v20 = vrot.slane %v2899_v35, 2  ;;  %v11893_v45 = vadd.f32 %v9937_v17, %v11669_v55 }
 0x1ed   : > { %18198 = vst [vmem:[#allocation49_spill] sm:$0xff] %v11864_v59  ;;  %18199 = vst [vmem:[#allocation50_spill] sm:$0xff] %v11867_v33  ;;  %v2788_v26 = vadd.f32 %v2787_v12, %v11864_v59  ;;  %v2872_v9 = vmul.f32 %v11864_v59, %v11864_v59  ;;  %v11876_v27 = vpop.f32.mrb[29].mxu0 }
 0x1ee   : > { %18201 = vst [vmem:[#allocation52_spill] sm:$0xff] %v11876_v27  ;;  %v2801_v43 = vadd.f32 %v2800_v56, %v11876_v27  ;;  %v2873_v8 = vmul.f32 %v11876_v27, %v11876_v27  ;;  %v11882_v10 = vpop.f32.mrb[30].mxu0  ;;  %18204 = vst [vmem:[#allocation55_spill] sm:$0xff] %v11893_v45 }
 0x1ef   : > { %18202 = vst [vmem:[#allocation53_spill] sm:$0xff] %v11882_v10  ;;  %v2930_v15 = vadd.f32 %v2929_v41, %v2872_v9  ;;  %v2789_v47 = vadd.f32 %v2788_v26, %v11882_v10  ;;  %v2875_v12 = vmul.f32 %v11882_v10, %v11882_v10  ;;  %v11887_v16 = vpop.f32.mrb[31].mxu0  ;;  %v2745_v41 = vadd.f32 %v2744_v5, %v2743_v23 }
 0x1f0   : > { %18203 = vst [vmem:[#allocation54_spill] sm:$0xff] %v11887_v16  ;;  %v2943_v21 = vadd.f32 %v2942_v28, %v2873_v8  ;;  %v2802_v46 = vadd.f32 %v2801_v43, %v11887_v16  ;;  %v2876_v56 = vmul.f32 %v11887_v16, %v11887_v16  ;;  %v2758_v9 = vadd.f32 %v2757_v62, %v2756_v54 }
 0x1f1   : > { %v2790_v50 = vrot.slane %v2789_v47, 4  ;;  %v2931_v34 = vadd.f32 %v2930_v15, %v2875_v12  ;;  %v9940_v28 = vadd.f32 %v9939_v57, %v9938_v63  ;;  %v2888_v43 = vadd.f32 %v2887_v32, %v2886_v53 }
 0x1f2   : > { %v2803_v27 = vrot.slane %v2802_v46, 4  ;;  %v2944_v59 = vadd.f32 %v2943_v21, %v2876_v56  ;;  %v2901_v16 = vadd.f32 %v2900_v20, %v2899_v35  ;;  %v2746_v15 = vrot.slane %v2745_v41, 1 }
 0x1f3   : > { %v2791_v26 = vadd.f32 %v2790_v50, %v2789_v47  ;;  %v2932_v37 = vrot.slane %v2931_v34, 4  ;;  %v11896_v23 = vadd.f32 %v9940_v28, %v11672_v25  ;;  %v2759_v54 = vrot.slane %v2758_v9, 1  ;;  %v902_v28 = vld [vmem:[%s17757_s21 + $0x28] sm:$0xff] }
 0x1f4   : > { %v2804_v0 = vadd.f32 %v2803_v27, %v2802_v46  ;;  %v2945_v10 = vrot.slane %v2944_v59, 4  ;;  %v2889_v62 = vrot.slane %v2888_v43, 1  ;;  %v2902_v53 = vrot.slane %v2901_v16, 1 }
 0x1f5   : > { %v2792_v8 = vrot.slane %v2791_v26, 2  ;;  %v2933_v14 = vadd.f32 %v2932_v37, %v2931_v34  ;;  %18205 = vst [vmem:[#allocation56_spill] sm:$0xff] %v11896_v23  ;;  %v2747_v37 = vadd.f32 %v2746_v15, %v2745_v41  ;;  %v898_v34 = vld [vmem:[%s17757_s21 + $0x8] sm:$0xff]  ;;  %v897_v41 = vld [vmem:[%s17757_s21] sm:$0xff] }
 0x1f6   : > { %v2805_v42 = vrot.slane %v2804_v0, 2  ;;  %v2946_v7 = vadd.f32 %v2945_v10, %v2944_v59  ;;  %v2760_v59 = vadd.f32 %v2759_v54, %v2758_v9  ;;  %v2890_v46 = vadd.f32 %v2889_v62, %v2888_v43  ;;  %v899_v9 = vld [vmem:[%s17757_s21 + $0x10] sm:$0xff]  ;;  %v904_v43 = vld [vmem:[%s17757_s21 + $0x38] sm:$0xff]  ;;  %v901_v15 = vld [vmem:[%s17757_s21 + $0x20] sm:$0xff] }
 0x1f7   : > { %v2793_v12 = vadd.f32 %v2792_v8, %v2791_v26  ;;  %v2934_v58 = vrot.slane %v2933_v14, 2  ;;  %v11918_v26 = vpack.c.bf16 %v899_v9, %v897_v41  ;;  %v11928_v8 = vpack.c.bf16 %v904_v43, %v902_v28  ;;  %v861_v62 = vld [vmem:[%s17755_s19] sm:$0xff] }
 0x1f8   : > { %v2806_v5 = vadd.f32 %v2805_v42, %v2804_v0  ;;  %v2947_v27 = vrot.slane %v2946_v7, 2  ;;  %v2903_v0 = vadd.f32 %v2902_v53, %v2901_v16  ;;  %v900_v16 = vld [vmem:[%s17757_s21 + $0x18] sm:$0xff]  ;;  %v2856_v53 = vmul.f32 %v11827_v11, %v11827_v11 }
 0x1f9   : > { %v2794_v47 = vrot.slane %v2793_v12, 1  ;;  %v2935_v55 = vadd.f32 %v2934_v58, %v2933_v14  ;;  %v11910_v20 = vpack.c.bf16 %v900_v16, %v898_v34  ;;  %18207 = vst [vmem:[#allocation58_spill] sm:$0xff] %v11918_v26  ;;  %18208 = vst [vmem:[#allocation59_spill] sm:$0xff] %v11928_v8  ;;  %v2812_v41 = vsel %vm2761_vm4, %v11835_v61, 0.0 }
 0x1fa   : > { %v2807_v17 = vrot.slane %v2806_v5, 1  ;;  %v2948_v63 = vadd.f32 %v2947_v27, %v2946_v7  ;;  %v17798_v27 = vmov 0.0|0.0   ;;  %v2865_v28 = vmul.f32 %v11860_v19, %v11860_v19 }
 0x1fb   : > { %v2795_v35 = vadd.f32 %v2794_v47, %v2793_v12  ;;  %v2936_v57 = vrot.slane %v2935_v55, 1  ;;  %18206 = vst [vmem:[#allocation57_spill] sm:$0xff] %v11910_v20  ;;  %10190 = vmatprep.subr.bf16.mxu1 %v11910_v20  ;;  %v903_v12 = vld [vmem:[%s17757_s21 + $0x30] sm:$0xff]  ;;  %10209 = vmatprep.subr.bf16.mxu0 %v17798_v27  ;;  %v862_v47 = vld [vmem:[%s17755_s19 + $0x8] sm:$0xff] }
 0x1fc   : > { %v2808_v10 = vadd.f32 %v2807_v17, %v2806_v5  ;;  %v2949_v21 = vrot.slane %v2948_v63, 1  ;;  %v11936_v54 = vpack.c.bf16 %v903_v12, %v901_v15  ;;  %v17796_v5 = vmov 0.0  }
 0x1fd   : > { %v2937_v25 = vadd.f32 %v2936_v57, %v2935_v55  ;;  %v2982_v42 = vsel %vm2981_vm0, %v2795_v35, %v2747_v37  ;;  %10100 = vmatprep.mubr.msk.f32.mxu0 %vm11085_vm3, %v17796_v5  ;;  %v11951_v55 = vpack.c.bf16 %v862_v47, %v861_v62  ;;  %v2832_v17 = vmul.f32 %v11689_v40, %v11689_v40 }
 0x1fe   : > { %v2950_v56 = vadd.f32 %v2949_v21, %v2948_v63  ;;  %v2983_v58 = vsel %vm2981_vm0, %v2808_v10, %v2760_v59  ;;  %18209 = vst [vmem:[#allocation60_spill] sm:$0xff] %v11936_v54  ;;  %v2835_v63 = vmul.f32 %v11698_v51, %v11698_v51  ;;  %v2859_v37 = vmul.f32 %v11830_v49, %v11830_v49 }
 0x1ff   : > { %v2991_v7 = vsel %vm2990_vm1, %v2937_v25, %v2890_v46  ;;  %18210 = vst [vmem:[#allocation61_spill] sm:$0xff] %v11951_v55  ;;  %10211 = vmatpush3.bf16.msra.mxu0 %v11951_v55  ;;  %v2762_v35 = vsel %vm2761_vm4, %v11689_v40, 0.0  ;;  %v2904_v57 = vsel %vm2761_vm4, %v2832_v17, 0.0  ;;  %v2763_v59 = vsel %vm2761_vm4, %v11698_v51, 0.0 }
 0x200   : > { %v2992_v14 = vsel %vm2990_vm1, %v2950_v56, %v2903_v0  ;;  %v2996_v32 = vsel %vm2995_vm2, %v2982_v42, %v2991_v7  ;;  %10212 = vmatprep.subr.bf16.mxu0 %v17798_v27  ;;  %v2905_v10 = vsel %vm2761_vm4, %v2835_v63, 0.0  ;;  %v2838_v21 = vmul.f32 %v11718_v4, %v11718_v4 }
 0x201   : > { %v2997_v50 = vsel %vm2995_vm2, %v2983_v58, %v2992_v14  ;;  %v2809_v46 = vsel %vm2761_vm4, %v11827_v11, 0.0  ;;  %v2951_v25 = vsel %vm2761_vm4, %v2856_v53, 0.0  ;;  %v2810_v42 = vsel %vm2761_vm4, %v11830_v49, 0.0 }
 0x202   : > { %3062 = vmatprep.mubr.f32.mxu1 %v2997_v50  ;;  %v2952_v0 = vsel %vm2761_vm4, %v2859_v37, 0.0  ;;  %v2862_v56 = vmul.f32 %v11835_v61, %v11835_v61  ;;  %v2764_v58 = vadd.f32 %v2763_v59, %v2762_v35  ;;  %v2906_v7 = vadd.f32 %v2905_v10, %v2904_v57 }
 0x203   : > { %3063 = vmatmul.mubr.f32.vlgmr.msra.gmra.mrb[96].mxu1 %v2996_v32  ;;  %v2765_v14 = vsel %vm2761_vm4, %v11718_v4, 0.0  ;;  %v2907_v32 = vsel %vm2761_vm4, %v2838_v21, 0.0  ;;  %v2841_v50 = vmul.f32 %v11724_v48, %v11724_v48  ;;  %v2811_v34 = vadd.f32 %v2810_v42, %v2809_v46 }
 0x204   : > { %10192 = vmatpush1.bf16.msra.mxu1 %v11918_v26  ;;  %3146 = vmatprep.mubr.f32.mxu1 %v17796_v5  ;;  %v2953_v16 = vadd.f32 %v2952_v0, %v2951_v25  ;;  %v2954_v9 = vsel %vm2761_vm4, %v2862_v56, 0.0  ;;  %v2766_v43 = vadd.f32 %v2765_v14, %v2764_v58  ;;  %v2908_v15 = vadd.f32 %v2907_v32, %v2906_v7 }
 0x205   : > { %10194 = vmatprep.subr.bf16.mxu1 %v11928_v8  ;;  %v2767_v12 = vsel %vm2761_vm4, %v11724_v48, 0.0  ;;  %v2909_v62 = vsel %vm2761_vm4, %v2841_v50, 0.0  ;;  %v2844_v47 = vmul.f32 %v11747_v36, %v11747_v36  ;;  %v2813_v17 = vadd.f32 %v2812_v41, %v2811_v34  ;;  %v18242_v48 = vld [vmem:[#allocation53_spill] sm:$0xff] }
 0x206   : > { %v2955_v63 = vadd.f32 %v2954_v9, %v2953_v16  ;;  %v2814_v53 = vsel %vm2761_vm4, %v11860_v19, 0.0  ;;  %v2956_v37 = vsel %vm2761_vm4, %v2865_v28, 0.0  ;;  %v2868_v35 = vmul.f32 %v11867_v33, %v11867_v33  ;;  %v18232_v19 = vld [vmem:[#allocation37_spill] sm:$0xff] }
 0x207   : > { %v2768_v57 = vadd.f32 %v2767_v12, %v2766_v43  ;;  %v2910_v59 = vadd.f32 %v2909_v62, %v2908_v15  ;;  %v2769_v10 = vsel %vm2761_vm4, %v11747_v36, 0.0  ;;  %v2911_v21 = vsel %vm2761_vm4, %v2844_v47, 0.0 }
 0x208   : > { %10196 = vmatpush1.bf16.msra.mxu1 %v11936_v54  ;;  %v2847_v46 = vmul.f32 %v11750_v24, %v11750_v24  ;;  %v2815_v25 = vadd.f32 %v2814_v53, %v2813_v17  ;;  %v2957_v42 = vadd.f32 %v2956_v37, %v2955_v63  ;;  %v2816_v0 = vsel %vm2761_vm4, %v11867_v33, 0.0  ;;  %v18230_v33 = vld [vmem:[#allocation35_spill] sm:$0xff] }
 0x209   : > { %10197 = vmatprep.subr.bf16.mxu1 %v17798_v27  ;;  %v2958_v56 = vsel %vm2761_vm4, %v2868_v35, 0.0  ;;  %v2871_v58 = vmul.f32 %v11870_v13, %v11870_v13  ;;  %v2770_v7 = vadd.f32 %v2769_v10, %v2768_v57  ;;  %v2912_v14 = vadd.f32 %v2911_v21, %v2910_v59 }
 0x20a   : > { %v2771_v32 = vsel %vm2761_vm4, %v11750_v24, 0.0  ;;  %v2913_v50 = vsel %vm2761_vm4, %v2847_v46, 0.0  ;;  %v2850_v34 = vmul.f32 %v11779_v22, %v11779_v22  ;;  %v2817_v16 = vadd.f32 %v2816_v0, %v2815_v25  ;;  %v18240_v24 = vld [vmem:[#allocation49_spill] sm:$0xff] }
 0x20b   : > { %v2959_v41 = vadd.f32 %v2958_v56, %v2957_v42  ;;  %v2818_v28 = vsel %vm2761_vm4, %v11870_v13, 0.0  ;;  %v2960_v43 = vsel %vm2761_vm4, %v2871_v58, 0.0  ;;  %v2874_v15 = vmul.f32 %v11893_v45, %v11893_v45 }
 0x20c   : > { %v2772_v47 = vadd.f32 %v2771_v32, %v2770_v7  ;;  %v2914_v17 = vadd.f32 %v2913_v50, %v2912_v14  ;;  %v2773_v63 = vsel %vm2761_vm4, %v11779_v22, 0.0  ;;  %v2915_v53 = vsel %vm2761_vm4, %v2850_v34, 0.0  ;;  %v18239_v22 = vld [vmem:[#allocation47_spill] sm:$0xff] }
 0x20d   : > { %v2819_v37 = vadd.f32 %v2818_v28, %v2817_v16  ;;  %v2961_v35 = vadd.f32 %v2960_v43, %v2959_v41  ;;  %v2853_v59 = vmul.f32 %v11786_v6, %v11786_v6  ;;  %v2820_v10 = vsel %vm2761_vm4, %v11893_v45, 0.0 }
 0x20e   : > { %v2962_v21 = vsel %vm2761_vm4, %v2874_v15, 0.0  ;;  %v2877_v46 = vmul.f32 %v11896_v23, %v11896_v23  ;;  %v2774_v42 = vadd.f32 %v2773_v63, %v2772_v47  ;;  %v2916_v0 = vadd.f32 %v2915_v53, %v2914_v17 }
 0x20f   : > { %v2775_v56 = vsel %vm2761_vm4, %v11786_v6, 0.0  ;;  %v2821_v58 = vadd.f32 %v2820_v10, %v2819_v37  ;;  %v2963_v7 = vadd.f32 %v2962_v21, %v2961_v35  ;;  %v2917_v32 = vsel %vm2761_vm4, %v2853_v59, 0.0  ;;  %v853_v10 = vld [vmem:[%s17754_s18] sm:$0xff]  ;;  %v854_v21 = vld [vmem:[%s17754_s18 + $0x8] sm:$0xff] }
 0x210   : > { %v2822_v50 = vsel %vm2761_vm4, %v11896_v23, 0.0  ;;  %v2964_v34 = vsel %vm2761_vm4, %v2877_v46, 0.0  ;;  %v2776_v41 = vadd.f32 %v2775_v56, %v2774_v42  ;;  %v12041_v56 = vpack.c.bf16 %v854_v21, %v853_v10 }
 0x211   : > { %v2823_v28 = vadd.f32 %v2822_v50, %v2821_v58  ;;  %v2965_v43 = vadd.f32 %v2964_v34, %v2963_v7  ;;  %v855_v7 = vld [vmem:[%s17754_s18 + $0x10] sm:$0xff]  ;;  %v18244_v40 = vmov 2  }
 0x212   : > { %18211 = vst [vmem:[#allocation62_spill] sm:$0xff] %v12041_v56 }
 0x213   : > { %v2824_v17 = vrot.slane %v2823_v28, 4  ;;  %v2966_v63 = vrot.slane %v2965_v43, 4 }
 0x215   : > { %v2825_v35 = vadd.f32 %v2824_v17, %v2823_v28  ;;  %v2967_v59 = vadd.f32 %v2966_v63, %v2965_v43  ;;  %v857_v28 = vld [vmem:[%s17754_s18 + $0x20] sm:$0xff]  ;;  %v859_v17 = vld [vmem:[%s17754_s18 + $0x30] sm:$0xff]  ;;  %v860_v63 = vld [vmem:[%s17754_s18 + $0x38] sm:$0xff] }
 0x216   : > { %v12074_v10 = vpack.c.bf16 %v860_v63, %v859_v17  ;;  %v12171_v17 = vld [vmem:[%s17758_s22 + $0x70] sm:$0xff]  ;;  %v17802_v63 = vmov 3  }
 0x217   : > { %v2826_v42 = vrot.slane %v2825_v35, 2 }
 0x218   : > { %18214 = vst [vmem:[#allocation65_spill] sm:$0xff] %v12074_v10 }
 0x2d6   : > { %v9973_v9 = vpop.f32.mrb[96].mxu1 }
 0x2d7   : > { %v9974_v12 = vpop.f32.mrb[97].mxu1 }
 0x2d8   : > { %v9975_v62 = vadd.f32 %v9974_v12, %v9973_v9  ;;  %v2918_v9 = vadd.f32 %v2917_v32, %v2916_v0  ;;  %v2968_v0 = vrot.slane %v2967_v59, 2 }
 0x2da   : > { %v3068_v57 = vmul.f32 0.001953125, %v9975_v62  ;;  %v2777_v62 = vrot.slane %v2776_v41, 4  ;;  %v2919_v47 = vrot.slane %v2918_v9, 4 }
 0x2dc   : > { %v3069_v25 = vmul.f32 %v3068_v57, %v3068_v57  ;;  %v2778_v53 = vadd.f32 %v2777_v62, %v2776_v41  ;;  %v2920_v37 = vadd.f32 %v2919_v47, %v2918_v9  ;;  %v2969_v41 = vadd.f32 %v2968_v0, %v2967_v59  ;;  %v12086_v0 = vld [vmem:[%s17758_s22 + $0x40] sm:$0xff] }
 0x2dd   : > { %18215 = vst [vmem:[#allocation66_spill] sm:$0xff] %v12086_v0 }
 0x2de   : > { %v3071_v14 = vrot.slane %v3069_v25, 6  ;;  %v2779_v46 = vrot.slane %v2778_v53, 2  ;;  %v2921_v25 = vrot.slane %v2920_v37, 2  ;;  %v2970_v62 = vrot.slane %v2969_v41, 1 }
 0x2e0   : > { %v3073_v16 = vsub.f32 %v3068_v57, %v3071_v14  ;;  %v856_v14 = vld [vmem:[%s17754_s18 + $0x18] sm:$0xff]  ;;  %v2780_v50 = vadd.f32 %v2779_v46, %v2778_v53  ;;  %v2922_v34 = vadd.f32 %v2921_v25, %v2920_v37  ;;  %v2971_v59 = vadd.f32 %v2970_v62, %v2969_v41  ;;  %v12126_v41 = vld [vmem:[%s17758_s22 + $0x50] sm:$0xff]  ;;  %v12164_v62 = vld [vmem:[%s17758_s22 + $0x28] sm:$0xff] }
 0x2e1   : > { %v12052_v9 = vpack.c.bf16 %v856_v14, %v855_v7  ;;  %v864_v7 = vld [vmem:[%s17755_s19 + $0x18] sm:$0xff]  ;;  %v12100_v14 = vld [vmem:[%s17758_s22 + $0x48] sm:$0xff]  ;;  %18217 = vst [vmem:[#allocation68_spill] sm:$0xff] %v12126_v41 }
 0x2e2   : > { %v3074_v15 = vmax.f32 %v3073_v16, 0.0  ;;  %v2827_v16 = vadd.f32 %v2826_v42, %v2825_v35  ;;  %v2781_v43 = vrot.slane %v2780_v50, 1  ;;  %v17804_v42 = vmov 0  }
 0x2e3   : > { %18212 = vst [vmem:[#allocation63_spill] sm:$0xff] %v12052_v9  ;;  %10429 = vset.pattern.permute.xlu1 %v17804_v42  ;;  %10428 = vset.pattern.permute.xlu0 %v17804_v42 }
 0x2e4   : > { %v3075_v12 = vadd.f32 1e-05, %v3074_v15  ;;  %v2828_v15 = vrot.slane %v2827_v16, 1  ;;  %v2782_v53 = vadd.f32 %v2781_v43, %v2780_v50  ;;  %4236 = vperm.xlu1 %10429, %v12086_v0   ;;  %v17800_v50 = vmov 1   ;;  %v12143_v43 = vld [vmem:[%s17758_s22 + $0x18] sm:$0xff] }
 0x2e6   : > { %10803 = vrsqrt.f32 %v3075_v12  ;;  %v2923_v12 = vrot.slane %v2922_v34, 1  ;;  %v2829_v37 = vadd.f32 %v2828_v15, %v2827_v16  ;;  %v12118_v16 = vld [vmem:[%s17758_s22 + $0x10] sm:$0xff]  ;;  %v12148_v15 = vld [vmem:[%s17758_s22 + $0x58] sm:$0xff] }
 0x2e8   : > { %v2924_v35 = vadd.f32 %v2923_v12, %v2922_v34  ;;  %v3376_v21 = vsel %vm2981_vm0, %v2829_v37, %v2782_v53  ;;  %4241 = vperm.xlu1 %10429, %v12100_v14   ;;  %v12110_v34 = vld [vmem:[%s17758_s22 + $0x8] sm:$0xff]  ;;  %v12156_v12 = vld [vmem:[%s17758_s22 + $0x20] sm:$0xff]  ;;  %v12192_v37 = vld [vmem:[%s17758_s22 + $0x38] sm:$0xff] }
 0x2e9   : > { %v12183_v53 = vld [vmem:[%s17758_s22 + $0x60] sm:$0xff]  ;;  %18218 = vst [vmem:[#allocation69_spill] sm:$0xff] %v12192_v37 }
 0x2ea   : > { %v3380_v46 = vsel %vm2990_vm1, %v2971_v59, %v2924_v35  ;;  %v11090_v35 = vmov 1966171168  }
 0x2eb   : > { %v3382_v25 = vsel %vm2995_vm2, %v3376_v21, %v3380_v46  ;;  %v3157_v59 = vunpack.c.l.s4 %v11090_v35  ;;  %v3159_v21 = vlaneseq }
 0x2ec   : > { %10430 = vset.pattern.permute.xlu1 %v17800_v50 }
 0x2ed   : > { %4359 = vperm.xlu1 %10430, %v12110_v34   ;;  %v3158_v46 = vunpack.c.0.s8 %v3157_v59 }
 0x2f0   : > { %v10804_v58 = vpop.eup %10803 }
 0x2f1   : > { %v3077_v32 = vsel %vm2995_vm2, %v3068_v57, %v10804_v58  ;;  %v858_v57 = vld [vmem:[%s17754_s18 + $0x28] sm:$0xff]  ;;  %v863_v58 = vld [vmem:[%s17755_s19 + $0x10] sm:$0xff]  ;;  %4387 = vperm.xlu1 %10430, %v12086_v0  }
 0x2f2   : > { %9612 = vmatmul.mubr.msk.f32.vlgmr.msra.gmra.mrb[98].mxu1 %vm3078_vm5, %v3077_v32  ;;  %v12064_v47 = vpack.c.bf16 %v858_v57, %v857_v28  ;;  %v12102_v32 = vpack.c.bf16 %v864_v7, %v863_v58  ;;  %v12132_v28 = vld [vmem:[%s17758_s22] sm:$0xff]  ;;  %v17806_v57 = vmov 2  }
 0x2f3   : > { %10199 = vmatpush3.bf16.msra.mxu1 %v12041_v56  ;;  %10089 = vmatprep.mubr.msk.f32.mxu1 %vm11085_vm3, %v17796_v5 }
 0x2f4   : > { %10200 = vmatprep.subr.bf16.mxu1 %v17798_v27  ;;  %18213 = vst [vmem:[#allocation64_spill] sm:$0xff] %v12064_v47  ;;  %18216 = vst [vmem:[#allocation67_spill] sm:$0xff] %v12102_v32  ;;  %10214 = vmatpush3.bf16.msra.mxu0 %v12102_v32 }
 0x2f5   : > { %10431 = vset.pattern.permute.xlu1 %v17804_v42  ;;  %4196 = vperm.xlu0 %10428, %v12132_v28  }
 0x2f6   : > { %4206 = vperm.xlu1 %10431, %v12118_v16  }
 0x2f7   : > { %10202 = vmatpush3.bf16.msra.mxu1 %v12052_v9  ;;  %v18235_v9 = vld [vmem:[#allocation40_spill] sm:$0xff] }
 0x2f8   : > { %10203 = vmatprep.subr.bf16.mxu1 %v17798_v27 }
 0x2f9   : > { %4201 = vperm.xlu0 %10428, %v12110_v34  }
 0x2fa   : > { %10432 = vset.pattern.permute.xlu1 %v17800_v50 }
 0x2fb   : > { %10205 = vmatpush3.bf16.msra.mxu1 %v12064_v47  ;;  %4363 = vperm.xlu1 %10432, %v12118_v16   ;;  %v18231_v47 = vld [vmem:[#allocation36_spill] sm:$0xff] }
 0x2fc   : > { %10206 = vmatprep.subr.bf16.mxu1 %v17798_v27 }
 0x2fd   : > { %4246 = vperm.xlu0 %10428, %v12126_v41  }
 0x2ff   : > { %10208 = vmatpush3.bf16.msra.mxu1 %v12074_v10  ;;  %4395 = vperm.xlu1 %10432, %v12126_v41  }
 0x301   : > { %4251 = vperm.xlu0 %10428, %v12148_v15  }
 0x302   : > { %10090 = vmatmul.mubr.msk.f32.vlgmr.msra.gmra.mrb[100].mxu1 %vm2761_vm4, %v3382_v25  ;;  %v12197_v25 = vshrl.u32 %v3159_v21, 7 }
 0x303   : > { %3868 = vmatprep.mubr.bf16.mxu1 %v17804_v42  ;;  %10433 = vset.pattern.permute.xlu1 %v17806_v57 }
 0x304   : > { %4488 = vperm.xlu1 %10433, %v12110_v34   ;;  %18219 = vst [vmem:[#allocation70_spill] sm:$0xff] %v12197_v25  ;;  %v12203_v7 = vsub.s32 %v3158_v46, %v12197_v25  ;;  %v12209_v21 = vsub.s32 0, %v12197_v25  ;;  %v12212_v27 = vsub.s32 1, %v12197_v25 }
 0x305   : > { %4216 = vperm.xlu0 %10428, %v12156_v12  }
 0x306   : > { %18220 = vst [vmem:[#allocation71_spill] sm:$0xff] %v12203_v7  ;;  %18221 = vst [vmem:[#allocation72_spill] sm:$0xff] %v12209_v21 }
 0x307   : > { %18222 = vst [vmem:[#allocation73_spill] sm:$0xff] %v12212_v27 }
 0x308   : > { %4516 = vperm.xlu1 %10433, %v12086_v0  }
 0x309   : > { %4221 = vperm.xlu0 %10428, %v12164_v62  }
 0x30c   : > { %10434 = vset.pattern.permute.xlu1 %v17804_v42 }
 0x30d   : > { %4211 = vperm.xlu1 %10434, %v12143_v43   ;;  %4266 = vperm.xlu0 %10428, %v12171_v17  }
 0x311   : > { %10435 = vset.pattern.permute.xlu1 %v17800_v50  ;;  %4231 = vperm.xlu0 %10428, %v12192_v37  }
 0x312   : > { %4367 = vperm.xlu1 %10435, %v12143_v43  }
 0x315   : > { %10456 = vset.pattern.permute.xlu0 %v17800_v50 }
 0x316   : > { %4399 = vperm.xlu1 %10435, %v12148_v15   ;;  %4355 = vperm.xlu0 %10456, %v12132_v28  }
 0x31a   : > { %10436 = vset.pattern.permute.xlu1 %v17806_v57  ;;  %4391 = vperm.xlu0 %10456, %v12100_v14  }
 0x31b   : > { %4524 = vperm.xlu1 %10436, %v12126_v41  }
 0x31e   : > { %4403 = vperm.xlu0 %10456, %v12183_v53  }
 0x31f   : > { %10437 = vset.pattern.permute.xlu1 %v17802_v63 }
 0x320   : > { %4676 = vperm.xlu1 %10437, %v12132_v28  }
 0x324   : > { %4708 = vperm.xlu1 %10437, %v12086_v0  }
 0x328   : > { %4712 = vperm.xlu1 %10437, %v12100_v14  }
 0x32c   : > { %10438 = vset.pattern.permute.xlu1 %v17804_v42  ;;  %v12228_v42 = vld [vmem:[%s17758_s22 + $0x68] sm:$0xff] }
 0x32d   : > { %4256 = vperm.xlu1 %10438, %v12183_v53   ;;  %4407 = vperm.xlu0 %10456, %v12228_v42  }
 0x331   : > { %10439 = vset.pattern.permute.xlu1 %v17800_v50 }
 0x332   : > { %4371 = vperm.xlu1 %10439, %v12156_v12  }
 0x336   : > { %10440 = vset.pattern.permute.xlu1 %v17806_v57 }
 0x337   : > { %4496 = vperm.xlu1 %10440, %v12143_v43  }
 0x33b   : > { %4528 = vperm.xlu1 %10440, %v12148_v15  }
 0x33f   : > { %10441 = vset.pattern.permute.xlu1 %v17802_v63  ;;  %v17809_v63 = vmov 4  }
 0x340   : > { %4716 = vperm.xlu1 %10441, %v12126_v41   ;;  %v18249_v41 = vmov 0  }
 0x344   : > { %10442 = vset.pattern.permute.xlu1 %v17809_v63 }
 0x345   : > { %4772 = vperm.xlu1 %10442, %v12132_v28  }
 0x349   : > { %4804 = vperm.xlu1 %10442, %v12086_v0  }
 0x34d   : > { %4808 = vperm.xlu1 %10442, %v12100_v14  }
 0x351   : > { %10443 = vset.pattern.permute.xlu1 %v18249_v41 }
 0x352   : > { %4261 = vperm.xlu1 %10443, %v12228_v42  }
 0x3c5   : > { %v3148_v58 = vpop.f32.mrb[98].mxu1 }
 0x3c6   : > { %v3150_v35 = vpop.f32.mrb[99].mxu1 }
 0x3c7   : > { %v3155_v5 = vcombine.low %v3148_v58, %v3150_v35 }
 0x3c9   : > { %v3162_v59 = vrot.slane %v3155_v5, %v12203_v7 }
 0x3cb   : > { %v3163_v46 = vcombine.high %v3162_v59, %v3162_v59  ;;  %v3170_v50 = vrot.slane %v3162_v59, %v12203_v7 }
 0x3cd   : > { %v3177_v58 = vrot.slane %v3163_v46, %v12203_v7  ;;  %v12219_v35 = vrot.slane %v3170_v50, %v12209_v21  ;;  %v12222_v5 = vrot.slane %v3170_v50, %v12212_v27  ;;  %v3178_v57 = vcombine.high %v3170_v50, %v3170_v50 }
 0x3cf   : > { %v3179_v59 = vcombine.high %v3177_v58, %v3177_v58  ;;  %v12236_v46 = vrot.slane %v3177_v58, %v12209_v21  ;;  %v12239_v54 = vrot.slane %v3177_v58, %v12212_v27  ;;  %v3200_v63 = vsub.f32 %v11674_v30, %v12219_v35 }
 0x3d0   : > { %v3201_v50 = vsub.f32 %v11676_v31, %v12222_v5  ;;  %v3202_v8 = vsub.f32 %v11680_v38, %v12219_v35  ;;  %v3203_v26 = vsub.f32 %v11686_v39, %v12222_v5  ;;  %v3204_v32 = vsub.f32 %v11700_v60, %v12219_v35 }
 0x3d1   : > { %v3205_v55 = vsub.f32 %v11705_v2, %v12222_v5  ;;  %v3206_v58 = vsub.f32 %v11710_v44, %v12219_v35  ;;  %v3207_v30 = vsub.f32 %v11715_v1, %v12222_v5  ;;  %v3208_v31 = vsub.f32 %v11726_v29, %v12219_v35  ;;  %v18224_v2 = vld [vmem:[#allocation27_spill] sm:$0xff]  ;;  %v12277_v1 = vld [vmem:[%s17758_s22 + $0x78] sm:$0xff] }
 0x3d2   : > { %v3209_v38 = vsub.f32 %v11731_v52, %v12222_v5  ;;  %v3210_v39 = vsub.f32 %v11736_v3, %v12219_v35  ;;  %v3211_v60 = vsub.f32 %v11741_v18, %v12222_v5  ;;  %v3212_v44 = vsub.f32 %v18224_v2, %v12219_v35  ;;  %v18225_v29 = vld [vmem:[#allocation28_spill] sm:$0xff]  ;;  %v18226_v52 = vld [vmem:[#allocation29_spill] sm:$0xff]  ;;  %v18227_v3 = vld [vmem:[#allocation30_spill] sm:$0xff]  ;;  %4415 = vperm.xlu0 %10456, %v12277_v1  }
 0x3d3   : > { %v3213_v25 = vsub.f32 %v18225_v29, %v12222_v5  ;;  %v3214_v20 = vsub.f32 %v18226_v52, %v12219_v35  ;;  %v3215_v23 = vsub.f32 %v18227_v3, %v12222_v5  ;;  %v18228_v18 = vld [vmem:[#allocation32_spill] sm:$0xff]  ;;  %v18229_v2 = vld [vmem:[#allocation34_spill] sm:$0xff]  ;;  %v3218_v10 = vsub.f32 %v18230_v33, %v12236_v46  ;;  %v2974_v52 = vld [vmem:[%s12263_s3] sm:$0x3] }
 0x3d4   : > { %v3216_v45 = vsub.f32 %v18228_v18, %v12236_v46  ;;  %v3217_v13 = vsub.f32 %v18229_v2, %v12239_v54  ;;  %v3219_v29 = vsub.f32 %v18231_v47, %v12239_v54  ;;  %v3220_v35 = vsub.f32 %v18232_v19, %v12236_v46  ;;  %v18233_v5 = vld [vmem:[#allocation38_spill] sm:$0xff]  ;;  %v18234_v18 = vld [vmem:[#allocation39_spill] sm:$0xff]  ;;  %v18237_v47 = vld [vmem:[#allocation45_spill] sm:$0xff] }
 0x3d5   : > { %v3221_v3 = vsub.f32 %v18233_v5, %v12239_v54  ;;  %v3222_v61 = vsub.f32 %v18234_v18, %v12236_v46  ;;  %v3223_v49 = vsub.f32 %v18235_v9, %v12239_v54  ;;  %v18236_v2 = vld [vmem:[#allocation43_spill] sm:$0xff]  ;;  %v12305_v33 = vpop.f32.mrb[100].mxu1  ;;  %v3225_v56 = vsub.f32 %v18237_v47, %v12239_v54  ;;  %v18238_v19 = vld [vmem:[#allocation46_spill] sm:$0xff]  ;;  %v18241_v9 = vld [vmem:[#allocation52_spill] sm:$0xff] }
 0x3d6   : > { %v3224_v11 = vsub.f32 %v18236_v2, %v12236_v46  ;;  %v3226_v6 = vsub.f32 %v18238_v19, %v12236_v46  ;;  %v3227_v5 = vsub.f32 %v18239_v22, %v12239_v54  ;;  %v3228_v18 = vsub.f32 %v18240_v24, %v12236_v46  ;;  %v10091_v36 = vpop.f32.mrb[101].mxu1  ;;  %v18243_v47 = vld [vmem:[#allocation54_spill] sm:$0xff]  ;;  %10459 = vset.pattern.permute.xlu0 %v18244_v40 }
 0x3d7   : > { %v3229_v2 = vsub.f32 %v18241_v9, %v12239_v54  ;;  %v3230_v4 = vsub.f32 %v18242_v48, %v12236_v46  ;;  %v3231_v51 = vsub.f32 %v18243_v47, %v12239_v54  ;;  %v3235_v19 = vrot.slane %v3178_v57, %v12209_v21  ;;  %4484 = vperm.xlu0 %10459, %v12132_v28  }
 0x3d8   : > { %v3239_v22 = vrot.slane %v3178_v57, %v12212_v27  ;;  %v3243_v24 = vrot.slane %v3179_v59, %v12209_v21  ;;  %v3247_v36 = vrot.slane %v3179_v59, %v12212_v27  ;;  %v3292_v7 = vrot.slane %v2974_v52, %v12212_v27 }
 0x3d9   : > { %v12329_v9 = vmul.f32 %v3235_v19, %v3200_v63  ;;  %v12331_v48 = vmul.f32 %v3235_v19, %v3202_v8  ;;  %v12333_v46 = vmul.f32 %v3235_v19, %v3204_v32  ;;  %v12335_v54 = vmul.f32 %v3235_v19, %v3206_v58 }
 0x3da   : > { %v3253_v47 = vmul.f32 %v3239_v22, %v3201_v50  ;;  %v3255_v37 = vmul.f32 %v3239_v22, %v3203_v26  ;;  %v3257_v0 = vmul.f32 %v3239_v22, %v3205_v55  ;;  %v3259_v57 = vmul.f32 %v3239_v22, %v3207_v30 }
 0x3db   : > { %18245 = vst [vmem:[#allocation27_spill] sm:$0xff] %v12329_v9  ;;  %18246 = vst [vmem:[#allocation28_spill] sm:$0xff] %v12331_v48  ;;  %v12338_v21 = vmul.f32 %v3235_v19, %v3208_v31  ;;  %v3261_v59 = vmul.f32 %v3239_v22, %v3209_v38  ;;  %v12340_v52 = vmul.f32 %v3235_v19, %v3210_v39  ;;  %4520 = vperm.xlu0 %10459, %v12100_v14  }
 0x3dc   : > { %18247 = vst [vmem:[#allocation29_spill] sm:$0xff] %v12333_v46  ;;  %18248 = vst [vmem:[#allocation30_spill] sm:$0xff] %v12335_v54  ;;  %v3263_v63 = vmul.f32 %v3239_v22, %v3211_v60  ;;  %v12343_v8 = vmul.f32 %v3235_v19, %v3212_v44  ;;  %v3265_v32 = vmul.f32 %v3239_v22, %v3213_v25  ;;  %v18329_v46 = vld [vmem:[#allocation71_spill] sm:$0xff] }
 0x3dd   : > { %18250 = vst [vmem:[#allocation32_spill] sm:$0xff] %v12338_v21  ;;  %18251 = vst [vmem:[#allocation34_spill] sm:$0xff] %v12340_v52  ;;  %v12345_v58 = vmul.f32 %v3235_v19, %v3214_v20  ;;  %v3267_v50 = vmul.f32 %v3239_v22, %v3215_v23  ;;  %v12348_v26 = vmul.f32 %v3243_v24, %v3216_v45 }
 0x3de   : > { %18252 = vst [vmem:[#allocation35_spill] sm:$0xff] %v12343_v8  ;;  %v3269_v55 = vmul.f32 %v3247_v36, %v3217_v13  ;;  %v12350_v30 = vmul.f32 %v3243_v24, %v3218_v10  ;;  %v3271_v31 = vmul.f32 %v3247_v36, %v3219_v29  ;;  %v12352_v38 = vmul.f32 %v3243_v24, %v3220_v35 }
 0x3df   : > { %18253 = vst [vmem:[#allocation36_spill] sm:$0xff] %v12345_v58  ;;  %18254 = vst [vmem:[#allocation37_spill] sm:$0xff] %v12348_v26  ;;  %v3273_v39 = vmul.f32 %v3247_v36, %v3221_v3  ;;  %v12354_v60 = vmul.f32 %v3243_v24, %v3222_v61  ;;  %v3275_v52 = vmul.f32 %v3247_v36, %v3223_v49  ;;  %v18261_v10 = vmov 1   ;;  %4492 = vperm.xlu0 %10459, %v12118_v16  }
 0x3e0   : > { %18255 = vst [vmem:[#allocation38_spill] sm:$0xff] %v12350_v30  ;;  %18256 = vst [vmem:[#allocation39_spill] sm:$0xff] %v12352_v38  ;;  %v12362_v23 = vmul.f32 %v3243_v24, %v3224_v11  ;;  %v3277_v45 = vmul.f32 %v3247_v36, %v3225_v56  ;;  %v12364_v20 = vmul.f32 %v3243_v24, %v3226_v6  ;;  %10444 = vset.pattern.permute.xlu1 %v18261_v10  ;;  %v2976_v11 = vld [vmem:[%s12360_s27] sm:$0x3]  ;;  %v18318_v38 = vmov 8  }
 0x3e1   : > { %18257 = vst [vmem:[#allocation40_spill] sm:$0xff] %v12354_v60  ;;  %v3279_v13 = vmul.f32 %v3247_v36, %v3227_v5  ;;  %v12367_v25 = vmul.f32 %v3243_v24, %v3228_v18  ;;  %v3281_v44 = vmul.f32 %v3247_v36, %v3229_v2  ;;  %v12369_v61 = vmul.f32 %v3243_v24, %v3230_v4 }
 0x3e2   : > { %18259 = vst [vmem:[#allocation43_spill] sm:$0xff] %v12362_v23  ;;  %18260 = vst [vmem:[#allocation45_spill] sm:$0xff] %v12364_v20  ;;  %v3283_v49 = vmul.f32 %v3247_v36, %v3231_v51  ;;  %4375 = vperm.xlu1 %10444, %v12164_v62   ;;  %v3296_v29 = vmul.f32 %v3292_v7, %v3253_v47  ;;  %v3298_v35 = vmul.f32 %v3292_v7, %v3255_v37 }
 0x3e3   : > { %18262 = vst [vmem:[#allocation46_spill] sm:$0xff] %v12367_v25  ;;  %18263 = vst [vmem:[#allocation47_spill] sm:$0xff] %v12369_v61  ;;  %v3300_v3 = vmul.f32 %v3292_v7, %v3257_v0  ;;  %v3302_v56 = vmul.f32 %v3292_v7, %v3259_v57  ;;  %v3304_v6 = vmul.f32 %v3292_v7, %v3261_v59  ;;  %4504 = vperm.xlu0 %10459, %v12164_v62   ;;  %v17857_v25 = vmov 8  }
 0x3e4   : > { %v3306_v19 = vmul.f32 %v3292_v7, %v3263_v63  ;;  %v3308_v5 = vmul.f32 %v3292_v7, %v3265_v32  ;;  %v3310_v22 = vmul.f32 %v3292_v7, %v3267_v50  ;;  %v3312_v18 = vmul.f32 %v3292_v7, %v3269_v55 }
 0x3e5   : > { %v3314_v2 = vmul.f32 %v3292_v7, %v3271_v31  ;;  %v3335_v4 = vrot.slane %v2976_v11, %v12212_v27  ;;  %v3316_v51 = vmul.f32 %v3292_v7, %v3273_v39  ;;  %v3318_v24 = vmul.f32 %v3292_v7, %v3275_v52 }
 0x3e6   : > { %10445 = vset.pattern.permute.xlu1 %v18244_v40  ;;  %v3320_v37 = vmul.f32 %v3292_v7, %v3277_v45  ;;  %v3322_v36 = vmul.f32 %v3292_v7, %v3279_v13  ;;  %v3324_v0 = vmul.f32 %v3292_v7, %v3281_v44  ;;  %v3326_v47 = vmul.f32 %v3292_v7, %v3283_v49 }
 0x3e7   : > { %4500 = vperm.xlu1 %10445, %v12156_v12   ;;  %v12378_v57 = vadd.f32 %v3335_v4, %v3296_v29  ;;  %v12380_v59 = vadd.f32 %v3335_v4, %v3298_v35  ;;  %v12383_v63 = vadd.f32 %v3335_v4, %v3300_v3  ;;  %v12385_v32 = vadd.f32 %v3335_v4, %v3302_v56 }
 0x3e8   : > { %4544 = vperm.xlu0 %10459, %v12277_v1   ;;  %v12388_v50 = vadd.f32 %v3335_v4, %v3304_v6  ;;  %v12390_v52 = vadd.f32 %v3335_v4, %v3306_v19  ;;  %v12392_v55 = vadd.f32 %v3335_v4, %v3308_v5  ;;  %v12394_v31 = vadd.f32 %v3335_v4, %v3310_v22 }
 0x3e9   : > { %18264 = vst [vmem:[#allocation49_spill] sm:$0xff] %v12378_v57  ;;  %18265 = vst [vmem:[#allocation52_spill] sm:$0xff] %v12380_v59  ;;  %v12396_v7 = vadd.f32 %v3335_v4, %v3312_v18  ;;  %v12398_v39 = vadd.f32 %v3335_v4, %v3314_v2  ;;  %v3456_v45 = vmul.f32 0.0078125, %v12305_v33  ;;  %v18274_v13 = vmov 3   ;;  %v12430_v2 = vld [vmem:[%s17758_s22 + $0x30] sm:$0xff] }
 0x3ea   : > { %18266 = vst [vmem:[#allocation53_spill] sm:$0xff] %v12383_v63  ;;  %18267 = vst [vmem:[#allocation54_spill] sm:$0xff] %v12385_v32  ;;  %v12402_v44 = vadd.f32 %v3335_v4, %v3316_v51  ;;  %v12404_v49 = vadd.f32 %v3335_v4, %v3318_v24  ;;  %v12407_v29 = vadd.f32 %v3335_v4, %v3320_v37  ;;  %v18281_v56 = vmov 4   ;;  %v18282_v24 = vld [vmem:[#allocation68_spill] sm:$0xff]  ;;  %v12454_v37 = vpop.permute.xlu1 %4236 }
 0x3eb   : > { %4532 = vperm.xlu1 %10445, %v12183_v53   ;;  %18268 = vst [vmem:[#allocation74_spill] sm:$0xff] %v12388_v50  ;;  %18269 = vst [vmem:[#allocation75_spill] sm:$0xff] %v12390_v52  ;;  %v12409_v35 = vadd.f32 %v3335_v4, %v3322_v36  ;;  %v12412_v11 = vadd.f32 %v3335_v4, %v3324_v0  ;;  %v12414_v3 = vadd.f32 %v3335_v4, %v3326_v47  ;;  %v17851_v22 = vmov 5   ;;  %v18284_v36 = vld [vmem:[#allocation66_spill] sm:$0xff]  ;;  %v12549_v52 = vld [vmem:[%s12517_s6 + $0x5c] ss:$20 sps:$4 sm:$0xff]  }
 0x3ec   : > { %18270 = vst [vmem:[#allocation76_spill] sm:$0xff] %v12392_v55  ;;  %18271 = vst [vmem:[#allocation77_spill] sm:$0xff] %v12394_v31  ;;  %10467 = vset.pattern.permute.xlu0 %v18274_v13  ;;  %v3457_v33 = vmul.f32 %v3456_v45, %v3456_v45  ;;  %v17853_v47 = vmov 6   ;;  %v10777_v31 = vld [vmem:[%s12517_s6 + $0x54] ss:$20 sps:$4 sm:$0xff]   ;;  %v18306_v59 = vmov 6  }
 0x3ed   : > { %18272 = vst [vmem:[#allocation78_spill] sm:$0xff] %v12396_v7  ;;  %18273 = vst [vmem:[#allocation79_spill] sm:$0xff] %v12398_v39  ;;  %4680 = vperm.xlu0 %10467, %v12110_v34   ;;  %v10775_v7 = vld [vmem:[%s12517_s6 + $0x50] ss:$20 sps:$4 sm:$0xff]   ;;  %v12546_v55 = vld [vmem:[%s12517_s6 + $0x58] ss:$20 sps:$4 sm:$0xff]  }
 0x3ee   : > { %18275 = vst [vmem:[#allocation80_spill] sm:$0xff] %v12402_v44  ;;  %18276 = vst [vmem:[#allocation81_spill] sm:$0xff] %v12404_v49  ;;  %v3459_v6 = vrot.slane %v3457_v33, 6  ;;  %v12460_v0 = vpop.permute.xlu1 %4241  ;;  %v10771_v49 = vld [vmem:[%s12517_s6 + $0x2c] ss:$20 sps:$4 sm:$0xff]  }
 0x3ef   : > { %10446 = vset.pattern.permute.xlu1 %v18274_v13  ;;  %18277 = vst [vmem:[#allocation82_spill] sm:$0xff] %v12407_v29  ;;  %18278 = vst [vmem:[#allocation83_spill] sm:$0xff] %v12409_v35  ;;  %v10768_v35 = vld [vmem:[%s12517_s6 + $0xc] ss:$20 sps:$4 sm:$0xff]   ;;  %v17855_v29 = vmov 7  }
 0x3f0   : > { %4720 = vperm.xlu1 %10446, %v12148_v15   ;;  %18279 = vst [vmem:[#allocation84_spill] sm:$0xff] %v12412_v11  ;;  %18280 = vst [vmem:[#allocation85_spill] sm:$0xff] %v12414_v3  ;;  %v3461_v19 = vsub.f32 %v3456_v45, %v3459_v6  ;;  %v10763_v11 = vld [vmem:[%s12517_s6] ss:$20 sps:$4 sm:$0xff]   ;;  %3949 = vmatprep.subr.bf16.mxu0 %v10768_v35  ;;  %v10783_v50 = vld [vmem:[%s12517_s6 + $0x7c] ss:$20 sps:$4 sm:$0xff]  }
 0x3f1   : > { %4684 = vperm.xlu0 %10467, %v12118_v16   ;;  %18283 = vst [vmem:[#allocation68_spill] sm:$0xff] %v12454_v37  ;;  %18285 = vst [vmem:[#allocation66_spill] sm:$0xff] %v12460_v0  ;;  %v12529_v44 = vld [vmem:[%s12517_s6 + $0x34] ss:$20 sps:$4 sm:$0xff]   ;;  %v10781_v32 = vld [vmem:[%s12517_s6 + $0x78] ss:$20 sps:$4 sm:$0xff]  }
 0x3f2   : > { %v3462_v5 = vmax.f32 %v3461_v19, 0.0 }
 0x3f4   : > { %10447 = vset.pattern.permute.xlu1 %v18281_v56  ;;  %v3463_v18 = vadd.f32 1e-05, %v3462_v5  ;;  %v18290_v5 = vld [vmem:[#allocation69_spill] sm:$0xff] }
 0x3f5   : > { %4780 = vperm.xlu1 %10447, %v12118_v16   ;;  %4688 = vperm.xlu0 %10467, %v12143_v43  }
 0x3f6   : > { %10805 = vrsqrt.f32 %v3463_v18 }
 0x3f9   : > { %10448 = vset.pattern.permute.xlu1 %v17851_v22  ;;  %4724 = vperm.xlu0 %10467, %v12183_v53  }
 0x3fa   : > { %4964 = vperm.xlu1 %10448, %v12132_v28  }
 0x3fd   : > { %4696 = vperm.xlu0 %10467, %v12164_v62  }
 0x3fe   : > { %4968 = vperm.xlu1 %10448, %v12110_v34  }
 0x400   : > { %v10806_v4 = vpop.eup %10805 }
 0x401   : > { %4700 = vperm.xlu0 %10467, %v12430_v2   ;;  %v3465_v51 = vsel %vm2995_vm2, %v3456_v45, %v10806_v4  ;;  %v12467_v45 = vpop.permute.xlu1 %4359 }
 0x402   : > { %5000 = vperm.xlu1 %10448, %v12100_v14   ;;  %10101 = vmatmul.mubr.msk.f32.vlgmr.msra.gmra.mrb[32].mxu0 %vm3078_vm5, %v3465_v51  ;;  %18286 = vst [vmem:[#allocation86_spill] sm:$0xff] %v12467_v45 }
 0x403   : > { %3981 = vmatprep.mubr.bf16.mxu0 %v18249_v41 }
 0x405   : > { %4736 = vperm.xlu0 %10467, %v12277_v1   ;;  %v12471_v33 = vpop.permute.xlu1 %4387 }
 0x406   : > { %10449 = vset.pattern.permute.xlu1 %v18249_v41  ;;  %18287 = vst [vmem:[#allocation87_spill] sm:$0xff] %v12471_v33 }
 0x407   : > { %4226 = vperm.xlu1 %10449, %v12430_v2  }
 0x409   : > { %10475 = vset.pattern.permute.xlu0 %v18281_v56  ;;  %v12475_v6 = vpop.permute.xlu1 %4206 }
 0x40a   : > { %4776 = vperm.xlu0 %10475, %v12110_v34   ;;  %18288 = vst [vmem:[#allocation88_spill] sm:$0xff] %v12475_v6 }
 0x40b   : > { %10450 = vset.pattern.permute.xlu1 %v18261_v10 }
 0x40c   : > { %4379 = vperm.xlu1 %10450, %v12430_v2  }
 0x40d   : > { %v12481_v19 = vpop.permute.xlu1 %4363 }
 0x40e   : > { %4812 = vperm.xlu0 %10475, %v18282_v24   ;;  %18289 = vst [vmem:[#allocation89_spill] sm:$0xff] %v12481_v19 }
 0x410   : > { %4411 = vperm.xlu1 %10450, %v12171_v17  }
 0x411   : > { %v12488_v18 = vpop.permute.xlu1 %4395 }
 0x412   : > { %4820 = vperm.xlu0 %10475, %v12183_v53   ;;  %18291 = vst [vmem:[#allocation69_spill] sm:$0xff] %v12488_v18 }
 0x414   : > { %10451 = vset.pattern.permute.xlu1 %v18244_v40 }
 0x415   : > { %4536 = vperm.xlu1 %10451, %v12228_v42  }
 0x416   : > { %4824 = vperm.xlu0 %10475, %v12228_v42  }
 0x419   : > { %10452 = vset.pattern.permute.xlu1 %v18274_v13 }
 0x41a   : > { %4692 = vperm.xlu1 %10452, %v12156_v12   ;;  %4832 = vperm.xlu0 %10475, %v12277_v1  }
 0x41e   : > { %10453 = vset.pattern.permute.xlu1 %v18281_v56  ;;  %10482 = vset.pattern.permute.xlu0 %v17851_v22 }
 0x41f   : > { %4784 = vperm.xlu1 %10453, %v12143_v43   ;;  %4996 = vperm.xlu0 %10482, %v18284_v36  }
 0x423   : > { %4816 = vperm.xlu1 %10453, %v12148_v15   ;;  %4972 = vperm.xlu0 %10482, %v12118_v16  }
 0x427   : > { %10454 = vset.pattern.permute.xlu1 %v17851_v22  ;;  %4976 = vperm.xlu0 %10482, %v12143_v43  }
 0x428   : > { %5004 = vperm.xlu1 %10454, %v18282_v24  }
 0x42b   : > { %4980 = vperm.xlu0 %10482, %v12156_v12  }
 0x42c   : > { %10455 = vset.pattern.permute.xlu1 %v17853_v47 }
 0x42d   : > { %5092 = vperm.xlu1 %10455, %v12132_v28  }
 0x42f   : > { %4984 = vperm.xlu0 %10482, %v12164_v62  }
 0x431   : > { %5124 = vperm.xlu1 %10455, %v18284_v36  }
 0x433   : > { %4988 = vperm.xlu0 %10482, %v12430_v2  }
 0x435   : > { %5128 = vperm.xlu1 %10455, %v12100_v14  }
 0x437   : > { %5024 = vperm.xlu0 %10482, %v12277_v1  }
 0x439   : > { %10457 = vset.pattern.permute.xlu1 %v18249_v41 }
 0x43a   : > { %4271 = vperm.xlu1 %10457, %v12277_v1  }
 0x43b   : > { %10488 = vset.pattern.permute.xlu0 %v17853_v47 }
 0x43c   : > { %5096 = vperm.xlu0 %10488, %v12110_v34  }
 0x43e   : > { %10458 = vset.pattern.permute.xlu1 %v18261_v10  ;;  %v12494_v10 = vpop.permute.xlu1 %4488 }
 0x43f   : > { %4383 = vperm.xlu1 %10458, %v18290_v5   ;;  %18292 = vst [vmem:[#allocation90_spill] sm:$0xff] %v12494_v10 }
 0x440   : > { %5132 = vperm.xlu0 %10488, %v18282_v24  }
 0x442   : > { %v12499_v4 = vpop.permute.xlu1 %4516 }
 0x443   : > { %10460 = vset.pattern.permute.xlu1 %v18244_v40  ;;  %18293 = vst [vmem:[#allocation91_spill] sm:$0xff] %v12499_v4  ;;  %v18339_v4 = vld [vmem:[#allocation25_spill] sm:$0xff] }
 0x444   : > { %4508 = vperm.xlu1 %10460, %v12430_v2   ;;  %5136 = vperm.xlu0 %10488, %v12148_v15  }
 0x446   : > { %v12505_v51 = vpop.permute.xlu1 %4211 }
 0x447   : > { %18294 = vst [vmem:[#allocation92_spill] sm:$0xff] %v12505_v51 }
 0x448   : > { %4540 = vperm.xlu1 %10460, %v12171_v17   ;;  %5140 = vperm.xlu0 %10488, %v12183_v53  }
 0x44a   : > { %v12511_v3 = vpop.permute.xlu1 %4367 }
 0x44b   : > { %18295 = vst [vmem:[#allocation93_spill] sm:$0xff] %v12511_v3 }
 0x44c   : > { %10461 = vset.pattern.permute.xlu1 %v18274_v13  ;;  %5144 = vperm.xlu0 %10488, %v12228_v42  }
 0x44d   : > { %4728 = vperm.xlu1 %10461, %v12228_v42  }
 0x44e   : > { %v12531_v39 = vpop.permute.xlu1 %4399 }
 0x44f   : > { %18297 = vst [vmem:[#allocation94_spill] sm:$0xff] %v12531_v39 }
 0x450   : > { %5120 = vperm.xlu0 %10488, %v18290_v5  }
 0x451   : > { %10462 = vset.pattern.permute.xlu1 %v18281_v56 }
 0x452   : > { %4788 = vperm.xlu1 %10462, %v12156_v12   ;;  %v12556_v63 = vpop.permute.xlu1 %4524 }
 0x453   : > { %18299 = vst [vmem:[#allocation95_spill] sm:$0xff] %v12556_v63 }
 0x456   : > { %10463 = vset.pattern.permute.xlu1 %v17851_v22  ;;  %v10765_v22 = vld [vmem:[%s12517_s6 + $0x4] ss:$20 sps:$4 sm:$0xff]  }
 0x457   : > { %5008 = vperm.xlu1 %10463, %v12148_v15   ;;  %3836 = vmatprep.subr.bf16.mxu1 %v10765_v22  ;;  %v10769_v22 = vld [vmem:[%s12517_s6 + $0x28] ss:$20 sps:$4 sm:$0xff]  }
 0x458   : > { %3837 = vmatpush1.bf16.msra.mxu1 %v10763_v11  ;;  %v18298_v11 = vmov 7  }
 0x459   : > { %10492 = vset.pattern.permute.xlu0 %v18298_v11  ;;  %3838 = vmatprep.subr.bf16.mxu1 %v10771_v49  ;;  %v12554_v49 = vld [vmem:[%s12517_s6 + $0x84] ss:$20 sps:$4 sm:$0xff]  }
 0x45a   : > { %5284 = vperm.xlu0 %10492, %v18284_v36  }
 0x45b   : > { %10464 = vset.pattern.permute.xlu1 %v17853_v47  ;;  %v12522_v47 = vld [vmem:[%s12517_s6 + $0x8] ss:$20 sps:$4 sm:$0xff]  }
 0x45c   : > { %5100 = vperm.xlu1 %10464, %v12118_v16   ;;  %3950 = vmatpush1.bf16.msra.mxu0 %v12522_v47 }
 0x45d   : > { %3951 = vmatprep.subr.bf16.mxu0 %v12529_v44  ;;  %3839 = vmatpush1.bf16.msra.mxu1 %v10769_v22  ;;  %v12560_v22 = vld [vmem:[%s12517_s6 + $0x80] ss:$20 sps:$4 sm:$0xff]  }
 0x45e   : > { %3840 = vmatprep.subr.bf16.mxu1 %v10777_v31  ;;  %5272 = vperm.xlu0 %10492, %v12164_v62   ;;  %v12567_v31 = vpop.permute.xlu1 %4676 }
 0x45f   : > { %18300 = vst [vmem:[#allocation96_spill] sm:$0xff] %v12567_v31 }
 0x460   : > { %10465 = vset.pattern.permute.xlu1 %v17855_v29  ;;  %v12536_v29 = vld [vmem:[%s12517_s6 + $0x30] ss:$20 sps:$4 sm:$0xff]  }
 0x461   : > { %5252 = vperm.xlu1 %10465, %v12132_v28   ;;  %3952 = vmatpush1.bf16.msra.mxu0 %v12536_v29 }
 0x462   : > { %3953 = vmatprep.subr.bf16.mxu0 %v12549_v52  ;;  %3841 = vmatpush1.bf16.msra.mxu1 %v10775_v7  ;;  %v18301_v7 = vmov 0.0|0.0  }
 0x463   : > { %3842 = vmatprep.subr.bf16.mxu1 %v10783_v50  ;;  %5308 = vperm.xlu0 %10492, %v12171_v17   ;;  %v18304_v50 = vmov 5  }
 0x465   : > { %5256 = vperm.xlu1 %10465, %v12110_v34   ;;  %3954 = vmatpush1.bf16.msra.mxu0 %v12546_v55 }
 0x466   : > { %3955 = vmatprep.subr.bf16.mxu0 %v12554_v49  ;;  %3843 = vmatpush1.bf16.msra.mxu1 %v10781_v32  ;;  %v12576_v32 = vpop.permute.xlu1 %4708 }
 0x467   : > { %10273 = vmatprep.subr.bf16.mxu1 %v10768_v35  ;;  %5280 = vperm.xlu0 %10492, %v18290_v5   ;;  %18302 = vst [vmem:[#allocation97_spill] sm:$0xff] %v12576_v32 }
 0x469   : > { %5288 = vperm.xlu1 %10465, %v12100_v14   ;;  %3956 = vmatpush1.bf16.msra.mxu0 %v12560_v22 }
 0x46a   : > { %10215 = vmatprep.subr.bf16.mxu0 %v18301_v7 }
 0x46b   : > { %10496 = vset.pattern.permute.xlu0 %v17857_v25 }
 0x46c   : > { %5380 = vperm.xlu0 %10496, %v12132_v28  }
 0x46d   : > { %10466 = vset.pattern.permute.xlu1 %v18244_v40  ;;  %v12580_v40 = vpop.permute.xlu1 %4712 }
 0x46e   : > { %4512 = vperm.xlu1 %10466, %v18290_v5   ;;  %18303 = vst [vmem:[#allocation98_spill] sm:$0xff] %v12580_v40 }
 0x470   : > { %5416 = vperm.xlu0 %10496, %v12100_v14  }
 0x471   : > { %v12584_v35 = vpop.permute.xlu1 %4256 }
 0x472   : > { %10468 = vset.pattern.permute.xlu1 %v18274_v13  ;;  %18305 = vst [vmem:[#allocation99_spill] sm:$0xff] %v12584_v35 }
 0x473   : > { %4732 = vperm.xlu1 %10468, %v12171_v17  }
 0x475   : > { %v12588_v57 = vpop.permute.xlu1 %4371 }
 0x476   : > { %18307 = vst [vmem:[#allocation100_spill] sm:$0xff] %v12588_v57 }
 0x477   : > { %10469 = vset.pattern.permute.xlu1 %v18281_v56 }
 0x478   : > { %4792 = vperm.xlu1 %10469, %v12164_v62  }
 0x479   : > { %v12592_v61 = vpop.permute.xlu1 %4496 }
 0x47a   : > { %18308 = vst [vmem:[#allocation101_spill] sm:$0xff] %v12592_v61 }
 0x47c   : > { %10470 = vset.pattern.permute.xlu1 %v18304_v50 }
 0x47d   : > { %5012 = vperm.xlu1 %10470, %v12183_v53   ;;  %v12599_v20 = vpop.permute.xlu1 %4528 }
 0x47e   : > { %18309 = vst [vmem:[#allocation102_spill] sm:$0xff] %v12599_v20 }
 0x481   : > { %10471 = vset.pattern.permute.xlu1 %v18306_v59  ;;  %v12603_v23 = vpop.permute.xlu1 %4716 }
 0x482   : > { %5104 = vperm.xlu1 %10471, %v12143_v43   ;;  %18310 = vst [vmem:[#allocation103_spill] sm:$0xff] %v12603_v23 }
 0x485   : > { %v12607_v60 = vpop.permute.xlu1 %4772 }
 0x486   : > { %10472 = vset.pattern.permute.xlu1 %v18298_v11  ;;  %18311 = vst [vmem:[#allocation104_spill] sm:$0xff] %v12607_v60  ;;  %v18331_v60 = vld [vmem:[#allocation72_spill] sm:$0xff] }
 0x487   : > { %5260 = vperm.xlu1 %10472, %v12118_v16  }
 0x489   : > { %v12611_v28 = vpop.permute.xlu1 %4804 }
 0x48a   : > { %18312 = vst [vmem:[#allocation105_spill] sm:$0xff] %v12611_v28 }
 0x48b   : > { %5292 = vperm.xlu1 %10472, %v18282_v24  }
 0x48d   : > { %v12616_v14 = vpop.permute.xlu1 %4808 }
 0x48e   : > { %18313 = vst [vmem:[#allocation106_spill] sm:$0xff] %v12616_v14 }
 0x48f   : > { %10473 = vset.pattern.permute.xlu1 %v17857_v25  ;;  %v12629_v25 = vpop.permute.xlu0 %4196  ;;  %5388 = vperm.xlu0 %10496, %v12118_v16  }
 0x490   : > { %5384 = vperm.xlu1 %10473, %v12110_v34   ;;  %18317 = vst [vmem:[#allocation110_spill] sm:$0xff] %v12629_v25  ;;  %v18336_v25 = vld [vmem:[#allocation23_spill] sm:$0xff] }
 0x491   : > { %v12619_v34 = vpop.permute.xlu1 %4261 }
 0x492   : > { %18314 = vst [vmem:[#allocation107_spill] sm:$0xff] %v12619_v34 }
 0x493   : > { %v12634_v30 = vpop.permute.xlu0 %4201  ;;  %5392 = vperm.xlu0 %10496, %v12143_v43  }
 0x494   : > { %5412 = vperm.xlu1 %10473, %v18284_v36   ;;  %18319 = vst [vmem:[#allocation111_spill] sm:$0xff] %v12634_v30 }
 0x497   : > { %v12641_v58 = vpop.permute.xlu0 %4246  ;;  %5428 = vperm.xlu0 %10496, %v12183_v53  }
 0x498   : > { %10474 = vset.pattern.permute.xlu1 %v18274_v13  ;;  %v12624_v13 = vpop.permute.xlu1 %4375  ;;  %18321 = vst [vmem:[#allocation113_spill] sm:$0xff] %v12641_v58 }
 0x499   : > { %4704 = vperm.xlu1 %10474, %v18290_v5   ;;  %18315 = vst [vmem:[#allocation108_spill] sm:$0xff] %v12624_v13 }
 0x49c   : > { %v12627_v36 = vpop.permute.xlu1 %4500 }
 0x49d   : > { %10476 = vset.pattern.permute.xlu1 %v18281_v56  ;;  %18316 = vst [vmem:[#allocation109_spill] sm:$0xff] %v12627_v36 }
 0x49e   : > { %4796 = vperm.xlu1 %10476, %v12430_v2  }
 0x4a0   : > { %v12637_v26 = vpop.permute.xlu1 %4532 }
 0x4a1   : > { %18320 = vst [vmem:[#allocation112_spill] sm:$0xff] %v12637_v26 }
 0x4a2   : > { %4828 = vperm.xlu1 %10476, %v12171_v17  }
 0x4a4   : > { %v12645_v16 = vpop.permute.xlu1 %4720 }
 0x4a5   : > { %18322 = vst [vmem:[#allocation114_spill] sm:$0xff] %v12645_v16  ;;  %v18337_v16 = vld [vmem:[#allocation24_spill] sm:$0xff] }
 0x4a6   : > { %10477 = vset.pattern.permute.xlu1 %v18304_v50 }
 0x4a7   : > { %5016 = vperm.xlu1 %10477, %v12228_v42  }
 0x4ab   : > { %10478 = vset.pattern.permute.xlu1 %v18306_v59 }
 0x4ac   : > { %5108 = vperm.xlu1 %10478, %v12156_v12  }
 0x4b0   : > { %10479 = vset.pattern.permute.xlu1 %v18298_v11 }
 0x4b1   : > { %5264 = vperm.xlu1 %10479, %v12143_v43  }
 0x4b5   : > { %5296 = vperm.xlu1 %10479, %v12148_v15  }
 0x4b9   : > { %10480 = vset.pattern.permute.xlu1 %v18318_v38 }
 0x4ba   : > { %5420 = vperm.xlu1 %10480, %v18282_v24   ;;  %v12648_v24 = vpop.permute.xlu0 %4251  ;;  %5404 = vperm.xlu0 %10496, %v12430_v2  }
 0x4bb   : > { %18323 = vst [vmem:[#allocation115_spill] sm:$0xff] %v12648_v24  ;;  %v12694_v24 = vld [vmem:[%s3372_s11] ss:$0 sm:$0xff]  ;;  %s18719_s11 = sld [smem:[#allocation331_spill]] }
 0x4be   : > { %10481 = vset.pattern.permute.xlu1 %v18281_v56  ;;  %v12653_v43 = vpop.permute.xlu0 %4216  ;;  %5440 = vperm.xlu0 %10496, %v12277_v1   ;;  %v12656_v56 = vpop.permute.xlu1 %4780 }
 0x4bf   : > { %4800 = vperm.xlu1 %10481, %v18290_v5   ;;  %18324 = vst [vmem:[#allocation116_spill] sm:$0xff] %v12653_v43  ;;  %18325 = vst [vmem:[#allocation117_spill] sm:$0xff] %v12656_v56 }
 0x4c1   : > { %s787_s7 = scalar_lea.vmem %s18719_s11, %s9748_s26 }
 0x4c2   : > { %v12660_v8 = vpop.permute.xlu1 %4964 }
 0x4c3   : > { %10483 = vset.pattern.permute.xlu1 %v18304_v50  ;;  %18326 = vst [vmem:[#allocation118_spill] sm:$0xff] %v12660_v8 }
 0x4c4   : > { %5020 = vperm.xlu1 %10483, %v12171_v17  }
 0x4c6   : > { %v12663_v21 = vpop.permute.xlu1 %4968 }
 0x4c7   : > { %18327 = vst [vmem:[#allocation119_spill] sm:$0xff] %v12663_v21 }
 0x4c8   : > { %10484 = vset.pattern.permute.xlu1 %v18306_v59 }
 0x4c9   : > { %5112 = vperm.xlu1 %10484, %v12164_v62  }
 0x4ca   : > { %v12668_v54 = vpop.permute.xlu1 %5000 }
 0x4cb   : > { %18328 = vst [vmem:[#allocation120_spill] sm:$0xff] %v12668_v54 }
 0x4cd   : > { %10485 = vset.pattern.permute.xlu1 %v18298_v11 }
 0x4ce   : > { %5268 = vperm.xlu1 %10485, %v12156_v12  }
 0x4d2   : > { %5300 = vperm.xlu1 %10485, %v12183_v53   ;;  %v12673_v53 = vpop.permute.xlu1 %4226 }
 0x4d3   : > { %18330 = vst [vmem:[#allocation121_spill] sm:$0xff] %v12673_v53 }
 0x4d5   : > { %v3535_v62 = vpop.f32.mrb[32].mxu0 }
 0x4d6   : > { %10486 = vset.pattern.permute.xlu1 %v18318_v38  ;;  %v3546_v48 = vrot.slane %v3535_v62, %v18329_v46  ;;  %v10102_v9 = vpop.f32.mrb[33].mxu0  ;;  %v18335_v62 = vld [vmem:[#allocation22_spill] sm:$0xff]  ;;  %v12696_v40 = vpop.permute.xlu1 %4379 }
 0x4d7   : > { %5424 = vperm.xlu1 %10486, %v12148_v15   ;;  %v18334_v9 = vld [vmem:[#allocation21_spill] sm:$0xff] }
 0x4d8   : > { %v3554_v27 = vrot.slane %v3546_v48, %v18329_v46  ;;  %18338 = vst [vmem:[#allocation21_spill] sm:$0xff] %v12696_v40 }
 0x4da   : > { %v3562_v8 = vcombine.high %v3554_v27, %v3554_v27  ;;  %v3567_v31 = vrot.slane %v3554_v27, %v18331_v60 }
 0x4db   : > { %10487 = vset.pattern.permute.xlu1 %v18304_v50  ;;  %v12688_v50 = vld [vmem:[%s3370_s0] ss:$0 sm:$0xff]  ;;  %s5475_s0 = scalar_lea.vmem %s18722_s29, %s11073_s4 }
 0x4dc   : > { %4992 = vperm.xlu1 %10487, %v18290_v5   ;;  %v3593_v15 = vrot.slane %v3562_v8, %v18331_v60  ;;  %v3574_v5 = vsub.f32 %v18334_v9, %v3567_v31  ;;  %v3575_v54 = vsub.f32 %v18335_v62, %v3567_v31  ;;  %v3576_v27 = vsub.f32 %v18336_v25, %v3567_v31 }
 0x4dd   : > { %v3577_v20 = vsub.f32 %v18337_v16, %v3567_v31  ;;  %v3578_v25 = vsub.f32 %v18339_v4, %v3567_v31 }
 0x4de   : > { %v3600_v39 = vmul.f32 %v3593_v15, %v3574_v5  ;;  %v3601_v8 = vmul.f32 %v3593_v15, %v3575_v54  ;;  %v3602_v14 = vmul.f32 %v3593_v15, %v3576_v27  ;;  %v18340_v5 = vld [vmem:[#allocation26_spill] sm:$0xff] }
 0x4df   : > { %v3603_v28 = vmul.f32 %v3593_v15, %v3577_v20  ;;  %v3579_v20 = vsub.f32 %v18340_v5, %v3567_v31 }
 0x4e0   : > { %10489 = vset.pattern.permute.xlu1 %v18306_v59  ;;  %v3622_v9 = vmul.f32 %v12688_v50, %v3600_v39  ;;  %v3623_v32 = vmul.f32 %v12688_v50, %v3601_v8  ;;  %v3547_v39 = vcombine.high %v3546_v48, %v3546_v48  ;;  %v12708_v8 = vpop.permute.xlu1 %4411  ;;  %v18342_v48 = vld [vmem:[#allocation31_spill] sm:$0xff] }
 0x4e1   : > { %5116 = vperm.xlu1 %10489, %v12430_v2   ;;  %v3625_v54 = vmul.f32 %v12688_v50, %v3603_v28  ;;  %18341 = vst [vmem:[#allocation22_spill] sm:$0xff] %v12708_v8  ;;  %v3605_v34 = vmul.f32 %v3593_v15, %v3579_v20 }
 0x4e2   : > { %v3644_v62 = vadd.f32 %v12694_v24, %v3622_v9  ;;  %v3645_v16 = vadd.f32 %v12694_v24, %v3623_v32  ;;  %v3604_v9 = vmul.f32 %v3593_v15, %v3578_v25  ;;  %v3561_v28 = vrot.slane %v3547_v39, %v18329_v46  ;;  %v18345_v39 = vld [vmem:[#allocation62_spill] sm:$0xff] }
 0x4e3   : > { %v3647_v32 = vadd.f32 %v12694_v24, %v3625_v54 }
 0x4e4   : > { %v3660_v27 = vmax.f32 %v3644_v62, 0.0  ;;  %v3661_v33 = vmax.f32 %v3645_v16, 0.0  ;;  %v12728_v54 = vpop.permute.xlu1 %4536  ;;  %v3563_v5 = vcombine.high %v3561_v28, %v3561_v28  ;;  %v12733_v20 = vrot.slane %v3561_v28, %v18331_v60  ;;  %v18348_v28 = vld [vmem:[#allocation41_spill] sm:$0xff] }
 0x4e5   : > { %5148 = vperm.xlu1 %10489, %v12171_v17   ;;  %v3624_v17 = vmul.f32 %v12688_v50, %v3602_v14  ;;  %v18343_v14 = vld [vmem:[#allocation33_spill] sm:$0xff]  ;;  %v3663_v16 = vmax.f32 %v3647_v32, 0.0  ;;  %18344 = vst [vmem:[#allocation23_spill] sm:$0xff] %v12728_v54 }
 0x4e6   : > { %v12710_v37 = vpack.c.bf16 %v3661_v33, %v3660_v27  ;;  %v3580_v33 = vsub.f32 %v18342_v48, %v3567_v31  ;;  %v3581_v62 = vsub.f32 %v18343_v14, %v3567_v31  ;;  %v3582_v48 = vsub.f32 %v18348_v28, %v12733_v20 }
 0x4e7   : > { %v3646_v4 = vadd.f32 %v12694_v24, %v3624_v17  ;;  %v3627_v17 = vmul.f32 %v12688_v50, %v3605_v34 }
 0x4e8   : > { %9637 = vmatmul.mubr.msk.bf16.vlgmr.msra.gmra.mrb[104].mxu1 %vm2761_vm4, %v12710_v37  ;;  %9645 = vmatmul.mubr.msk.bf16.vlgmr.msra.gmra.mrb[36].mxu0 %vm2761_vm4, %v12710_v37  ;;  %v3606_v27 = vmul.f32 %v3593_v15, %v3580_v33  ;;  %v3607_v31 = vmul.f32 %v3593_v15, %v3581_v62  ;;  %v12753_v15 = vrot.slane %v3563_v5, %v18331_v60  ;;  %v18349_v33 = vld [vmem:[#allocation42_spill] sm:$0xff]  ;;  %v12767_v62 = vld [vmem:[%s12517_s6 + $0x10] ss:$20 sps:$4 sm:$0xff]  }
 0x4e9   : > { %10490 = vset.pattern.permute.xlu1 %v18298_v11  ;;  %3878 = vmatprep.mubr.bf16.mxu1 %v18249_v41  ;;  %v3662_v25 = vmax.f32 %v3646_v4, 0.0  ;;  %v3649_v34 = vadd.f32 %v12694_v24, %v3627_v17  ;;  %v3583_v14 = vsub.f32 %v18349_v33, %v12733_v20 }
 0x4ea   : > { %5304 = vperm.xlu1 %10490, %v12228_v42   ;;  %3991 = vmatprep.mubr.bf16.mxu0 %v18249_v41 }
 0x4eb   : > { %10277 = vmatpush1.bf16.msra.mxu1 %v12522_v47  ;;  %10217 = vmatpush3.bf16.msra.mxu0 %v18345_v39  ;;  %v3665_v32 = vmax.f32 %v3649_v34, 0.0  ;;  %v3609_v5 = vmul.f32 %v12753_v15, %v3583_v14 }
 0x4ec   : > { %10274 = vmatprep.subr.bf16.mxu1 %v12529_v44  ;;  %10218 = vmatprep.subr.bf16.mxu0 %v18301_v7  ;;  %v12750_v44 = vpop.permute.xlu0 %4221 }
 0x4ed   : > { %18347 = vst [vmem:[#allocation25_spill] sm:$0xff] %v12750_v44  ;;  %v3631_v34 = vmul.f32 %v12688_v50, %v3609_v5 }
 0x4ee   : > { %10491 = vset.pattern.permute.xlu1 %v18318_v38 }
 0x4ef   : > { %5396 = vperm.xlu1 %10491, %v12156_v12   ;;  %v3626_v12 = vmul.f32 %v12688_v50, %v3604_v9  ;;  %v12737_v9 = vpack.c.bf16 %v3663_v16, %v3662_v25  ;;  %10278 = vmatpush1.bf16.msra.mxu1 %v12536_v29  ;;  %v3629_v29 = vmul.f32 %v12688_v50, %v3607_v31  ;;  %v18350_v25 = vld [vmem:[#allocation63_spill] sm:$0xff]  ;;  %v18353_v31 = vld [vmem:[#allocation44_spill] sm:$0xff] }
 0x4f0   : > { %10275 = vmatprep.subr.bf16.mxu1 %v12549_v52  ;;  %v3628_v52 = vmul.f32 %v12688_v50, %v3606_v27  ;;  %10220 = vmatpush3.bf16.msra.mxu0 %v18350_v25  ;;  %v12781_v27 = vpop.permute.xlu0 %4266  ;;  %v3584_v39 = vsub.f32 %v18353_v31, %v12733_v20 }
 0x4f1   : > { %v3648_v47 = vadd.f32 %v12694_v24, %v3626_v12  ;;  %9638 = vmatmul.mubr.msk.bf16.gmra.mrb[108].mxu1 %vm2761_vm4, %v12737_v9  ;;  %9646 = vmatmul.mubr.msk.bf16.gmra.mrb[40].mxu0 %vm2761_vm4, %v12737_v9  ;;  %v3651_v12 = vadd.f32 %v12694_v24, %v3629_v29  ;;  %18352 = vst [vmem:[#allocation31_spill] sm:$0xff] %v12781_v27 }
 0x4f2   : > { %3888 = vmatprep.mubr.bf16.mxu1 %v18249_v41  ;;  %4001 = vmatprep.mubr.bf16.mxu0 %v18249_v41  ;;  %v3650_v16 = vadd.f32 %v12694_v24, %v3628_v52  ;;  %v18354_v52 = vld [vmem:[#allocation48_spill] sm:$0xff]  ;;  %v3610_v14 = vmul.f32 %v12753_v15, %v3584_v39 }
 0x4f3   : > { %10493 = vset.pattern.permute.xlu1 %v18306_v59  ;;  %v12748_v59 = vpop.permute.xlu1 %4692  ;;  %v3664_v4 = vmax.f32 %v3648_v47, 0.0  ;;  %10279 = vmatpush1.bf16.msra.mxu1 %v12546_v55  ;;  %v3608_v55 = vmul.f32 %v12753_v15, %v3582_v48  ;;  %v3585_v29 = vsub.f32 %v18354_v52, %v12733_v20 }
 0x4f4   : > { %5152 = vperm.xlu1 %10493, %v12277_v1   ;;  %18346 = vst [vmem:[#allocation24_spill] sm:$0xff] %v12748_v59  ;;  %10276 = vmatprep.subr.bf16.mxu1 %v12554_v49  ;;  %v12804_v48 = vpop.permute.xlu0 %4231  ;;  %v3632_v5 = vmul.f32 %v12688_v50, %v3610_v14 }
 0x4f5   : > { %10221 = vmatprep.subr.bf16.mxu0 %v18301_v7  ;;  %v12774_v17 = vpack.c.bf16 %v3665_v32, %v3664_v4  ;;  %v3630_v47 = vmul.f32 %v12688_v50, %v3608_v55  ;;  %v10811_v4 = vld [vmem:[%s17758_s22 + $0x28] sm:$0xff]  ;;  %v18355_v32 = vld [vmem:[#allocation64_spill] sm:$0xff]  ;;  %18357 = vst [vmem:[#allocation62_spill] sm:$0xff] %v12804_v48  ;;  %v18358_v55 = vld [vmem:[#allocation65_spill] sm:$0xff] }
 0x4f6   : > { %10223 = vmatpush3.bf16.msra.mxu0 %v18355_v32  ;;  %v3654_v14 = vadd.f32 %v12694_v24, %v3632_v5  ;;  %v18366_v5 = vld [vmem:[#allocation56_spill] sm:$0xff] }
 0x4f7   : > { %10280 = vmatpush1.bf16.msra.mxu1 %v12560_v22  ;;  %v12779_v49 = vpop.permute.xlu1 %4784  ;;  %v3667_v22 = vmax.f32 %v3651_v12, 0.0  ;;  %10224 = vmatprep.subr.bf16.mxu0 %v18301_v7  ;;  %v3652_v25 = vadd.f32 %v12694_v24, %v3630_v47  ;;  %v3611_v12 = vmul.f32 %v12753_v15, %v3585_v29  ;;  %v18360_v47 = vld [vmem:[#allocation51_spill] sm:$0xff] }
 0x4f8   : > { %10494 = vset.pattern.permute.xlu1 %v18298_v11  ;;  %18351 = vst [vmem:[#allocation26_spill] sm:$0xff] %v12779_v49  ;;  %10103 = vmatprep.subr.bf16.mxu1 %v12767_v62  ;;  %v12829_v29 = vpop.permute.xlu0 %4355 }
 0x4f9   : > { %5276 = vperm.xlu1 %10494, %v12430_v2   ;;  %9639 = vmatmul.mubr.msk.bf16.gmra.mrb[112].mxu1 %vm2761_vm4, %v12774_v17  ;;  %v3666_v2 = vmax.f32 %v3650_v16, 0.0  ;;  %v3653_v16 = vadd.f32 %v12694_v24, %v3631_v34  ;;  %v3633_v39 = vmul.f32 %v12688_v50, %v3611_v12  ;;  %v3587_v34 = vsub.f32 %v18360_v47, %v12733_v20  ;;  %v18365_v12 = vld [vmem:[#allocation55_spill] sm:$0xff] }
 0x4fa   : > { %9647 = vmatmul.mubr.msk.bf16.gmra.mrb[44].mxu0 %vm2761_vm4, %v12774_v17  ;;  %3898 = vmatprep.mubr.bf16.mxu1 %v18249_v41  ;;  %18362 = vst [vmem:[#allocation42_spill] sm:$0xff] %v12829_v29  ;;  %v18367_v47 = vmov 0.0  }
 0x4fb   : > { %4011 = vmatprep.mubr.bf16.mxu0 %v18249_v41  ;;  %v12802_v28 = vpop.permute.xlu1 %4816  ;;  %v12806_v33 = vpack.c.bf16 %v3667_v22, %v3666_v2  ;;  %10226 = vmatpush3.bf16.msra.mxu0 %v18358_v55  ;;  %v18359_v2 = vld [vmem:[#allocation50_spill] sm:$0xff]  ;;  %v3669_v31 = vmax.f32 %v3653_v16, 0.0  ;;  %v3613_v16 = vmul.f32 %v12753_v15, %v3587_v34  ;;  %v3588_v55 = vsub.f32 %v18365_v12, %v12733_v20 }
 0x4fc   : > { %18356 = vst [vmem:[#allocation33_spill] sm:$0xff] %v12802_v28  ;;  %10227 = vmatprep.subr.bf16.mxu0 %v18301_v7  ;;  %v3586_v22 = vsub.f32 %v18359_v2, %v12733_v20  ;;  %v3589_v2 = vsub.f32 %v18366_v5, %v12733_v20  ;;  %v10813_v20 = vld [vmem:[%s17758_s22 + $0x38] sm:$0xff]  ;;  %v18383_v7 = vld [vmem:[#allocation5_spill] sm:$0xff] }
 0x4fd   : > { %10495 = vset.pattern.permute.xlu1 %v18318_v38  ;;  %v3614_v34 = vmul.f32 %v12753_v15, %v3588_v55 }
 0x4fe   : > { %5400 = vperm.xlu1 %10495, %v10811_v4   ;;  %v3612_v4 = vmul.f32 %v12753_v15, %v3586_v22  ;;  %v3670_v22 = vmax.f32 %v3654_v14, 0.0 }
 0x4ff   : > { %v12827_v52 = vpop.permute.xlu1 %5004 }
 0x500   : > { %18361 = vst [vmem:[#allocation41_spill] sm:$0xff] %v12827_v52 }
 0x501   : > { %9640 = vmatmul.mubr.msk.bf16.gmra.mrb[116].mxu1 %vm2761_vm4, %v12806_v33 }
 0x502   : > { %5432 = vperm.xlu1 %10495, %v12228_v42   ;;  %9648 = vmatmul.mubr.msk.bf16.gmra.mrb[48].mxu0 %vm2761_vm4, %v12806_v33  ;;  %v3668_v42 = vmax.f32 %v3652_v25, 0.0  ;;  %v3655_v25 = vadd.f32 %v12694_v24, %v3633_v39  ;;  %v3635_v39 = vmul.f32 %v12688_v50, %v3613_v16 }
 0x503   : > { %3908 = vmatprep.mubr.bf16.mxu1 %v18249_v41  ;;  %4021 = vmatprep.mubr.bf16.mxu0 %v18249_v41 }
 0x504   : > { %v12834_v32 = vpack.c.bf16 %v3669_v31, %v3668_v42  ;;  %v3671_v42 = vmax.f32 %v3655_v25, 0.0  ;;  %v3634_v31 = vmul.f32 %v12688_v50, %v3612_v4  ;;  %v3657_v14 = vadd.f32 %v12694_v24, %v3635_v39 }
 0x505   : > { %v3615_v4 = vmul.f32 %v12753_v15, %v3589_v2 }
 0x506   : > { %10497 = vset.pattern.permute.xlu1 %v18298_v11  ;;  %v12844_v11 = vpop.permute.xlu1 %5092  ;;  %v12864_v12 = vpack.c.bf16 %v3671_v42, %v3670_v22  ;;  %v3656_v5 = vadd.f32 %v12694_v24, %v3634_v31  ;;  %v3636_v22 = vmul.f32 %v12688_v50, %v3614_v34 }
 0x507   : > { %5312 = vperm.xlu1 %10497, %v12277_v1   ;;  %18363 = vst [vmem:[#allocation63_spill] sm:$0xff] %v12844_v11  ;;  %v12846_v1 = vpop.permute.xlu0 %4391  ;;  %v3637_v42 = vmul.f32 %v12688_v50, %v3615_v4 }
 0x508   : > { %18364 = vst [vmem:[#allocation44_spill] sm:$0xff] %v12846_v1  ;;  %v3672_v55 = vmax.f32 %v3656_v5, 0.0  ;;  %v3658_v2 = vadd.f32 %v12694_v24, %v3636_v22 }
 0x509   : > { %9641 = vmatmul.mubr.msk.bf16.gmra.mrb[120].mxu1 %vm2761_vm4, %v12834_v32 }
 0x50a   : > { %9649 = vmatmul.mubr.msk.bf16.gmra.mrb[52].mxu0 %vm2761_vm4, %v12834_v32  ;;  %3918 = vmatprep.mubr.bf16.mxu1 %v18249_v41  ;;  %v12869_v25 = vpop.permute.xlu1 %5124  ;;  %v3674_v34 = vmax.f32 %v3658_v2, 0.0 }
 0x50b   : > { %10498 = vset.pattern.permute.xlu1 %v18318_v38  ;;  %v10812_v38 = vld [vmem:[%s17758_s22 + $0x70] sm:$0xff]  ;;  %10143 = vmatprep.mubr.msk.f32.mxu0 %vm11085_vm3, %v18367_v47  ;;  %18368 = vst [vmem:[#allocation48_spill] sm:$0xff] %v12869_v25  ;;  %v12871_v16 = vpop.permute.xlu0 %4403 }
 0x50c   : > { %5436 = vperm.xlu1 %10498, %v10812_v38   ;;  %18369 = vst [vmem:[#allocation64_spill] sm:$0xff] %v12871_v16  ;;  %v3673_v38 = vmax.f32 %v3657_v14, 0.0 }
 0x50e   : > { %v12878_v31 = vpop.permute.xlu1 %5128  ;;  %v3682_v15 = vpack.c.bf16 %v3673_v38, %v3672_v55  ;;  %v10788_v38 = vld [vmem:[%s12517_s6 + $0x38] ss:$20 sps:$4 sm:$0xff]  }
 0x50f   : > { %18370 = vst [vmem:[#allocation65_spill] sm:$0xff] %v12878_v31  ;;  %v12880_v39 = vpop.permute.xlu0 %4407  ;;  %v18391_v31 = vld [vmem:[#allocation8_spill] sm:$0xff] }
 0x510   : > { %5408 = vperm.xlu1 %10498, %v10813_v20   ;;  %18371 = vst [vmem:[#allocation50_spill] sm:$0xff] %v12880_v39  ;;  %v3659_v20 = vadd.f32 %v12694_v24, %v3637_v42  ;;  %v10789_v42 = vld [vmem:[%s12517_s6 + $0x60] ss:$20 sps:$4 sm:$0xff]  }
 0x511   : > { %9642 = vmatmul.mubr.msk.bf16.gmra.mrb[124].mxu1 %vm2761_vm4, %v12864_v12 }
 0x512   : > { %3928 = vmatprep.mubr.bf16.mxu1 %v18249_v41  ;;  %v12885_v60 = vpop.permute.xlu1 %4271  ;;  %v3675_v5 = vmax.f32 %v3659_v20, 0.0 }
 0x513   : > { %18372 = vst [vmem:[#allocation51_spill] sm:$0xff] %v12885_v60  ;;  %v12888_v50 = vpop.permute.xlu0 %4415 }
 0x514   : > { %18373 = vst [vmem:[#allocation55_spill] sm:$0xff] %v12888_v50  ;;  %v3683_v14 = vpack.c.bf16 %v3675_v5, %v3674_v34  ;;  %v10790_v34 = vld [vmem:[%s12517_s6 + $0x88] ss:$20 sps:$4 sm:$0xff]   ;;  %s11096_s6 = smov 64  }
 0x516   : > { %v12890_v4 = vpop.permute.xlu1 %4383 }
 0x517   : > { %18374 = vst [vmem:[#allocation56_spill] sm:$0xff] %v12890_v4  ;;  %v12893_v55 = vpop.permute.xlu0 %4484 }
 0x518   : > { %18375 = vst [vmem:[#allocation122_spill] sm:$0xff] %v12893_v55  ;;  %v18409_v55 = vld [vmem:[#allocation19_spill] sm:$0xff] }
 0x519   : > { %9643 = vmatmul.mubr.msk.bf16.gmra.mrb[128].mxu1 %vm2761_vm4, %v3682_v15 }
 0x51a   : > { %3938 = vmatprep.mubr.bf16.mxu1 %v18249_v41  ;;  %v12896_v24 = vpop.permute.xlu1 %4508 }
 0x51b   : > { %18376 = vst [vmem:[#allocation123_spill] sm:$0xff] %v12896_v24  ;;  %v12899_v22 = vpop.permute.xlu0 %4520 }
 0x51c   : > { %18377 = vst [vmem:[#allocation124_spill] sm:$0xff] %v12899_v22 }
 0x51e   : > { %v12906_v2 = vpop.permute.xlu1 %4540 }
 0x51f   : > { %18378 = vst [vmem:[#allocation125_spill] sm:$0xff] %v12906_v2  ;;  %v12908_v20 = vpop.permute.xlu0 %4492 }
 0x520   : > { %18379 = vst [vmem:[#allocation126_spill] sm:$0xff] %v12908_v20 }
 0x521   : > { %9644 = vmatmul.mubr.msk.bf16.gmra.mrb[132].mxu1 %vm2761_vm4, %v3683_v14 }
 0x522   : > { %4031 = vmatprep.mubr.bf16.mxu1 %v18249_v41  ;;  %v12912_v5 = vpop.permute.xlu1 %4728 }
 0x523   : > { %18380 = vst [vmem:[#allocation127_spill] sm:$0xff] %v12912_v5  ;;  %v12915_v46 = vpop.permute.xlu0 %4504 }
 0x524   : > { %18381 = vst [vmem:[#allocation128_spill] sm:$0xff] %v12915_v46 }
 0x529   : > { %9650 = vmatmul.mubr.msk.bf16.vlgmr.msra.gmra.mrb[136].mxu1 %vm2761_vm4, %v12864_v12 }
 0x52a   : > { %4041 = vmatprep.mubr.bf16.mxu1 %v18249_v41  ;;  %10104 = vmatpush3.bf16.msra.mxu1 %v12767_v62  ;;  %v12917_v62 = vpop.permute.xlu1 %4788 }
 0x52b   : > { %10105 = vmatprep.subr.bf16.mxu1 %v10788_v38  ;;  %18382 = vst [vmem:[#allocation129_spill] sm:$0xff] %v12917_v62 }
 0x52e   : > { %10106 = vmatpush3.bf16.msra.mxu1 %v10788_v38  ;;  %v12921_v38 = vpop.permute.xlu0 %4544  ;;  %v12925_v47 = vpop.permute.xlu1 %5008 }
 0x52f   : > { %10107 = vmatprep.subr.bf16.mxu1 %v10789_v42  ;;  %18384 = vst [vmem:[#allocation5_spill] sm:$0xff] %v12921_v38  ;;  %18385 = vst [vmem:[#allocation130_spill] sm:$0xff] %v12925_v47 }
 0x531   : > { %9651 = vmatmul.mubr.msk.bf16.gmra.mrb[140].mxu1 %vm2761_vm4, %v3682_v15 }
 0x532   : > { %4051 = vmatprep.mubr.bf16.mxu1 %v18249_v41  ;;  %10108 = vmatpush3.bf16.msra.mxu1 %v10789_v42  ;;  %v12927_v52 = vpop.permute.xlu0 %4680  ;;  %v18387_v42 = vld [vmem:[#allocation6_spill] sm:$0xff] }
 0x533   : > { %10109 = vmatprep.subr.bf16.mxu1 %v10790_v34  ;;  %18386 = vst [vmem:[#allocation131_spill] sm:$0xff] %v12927_v52 }
 0x536   : > { %10110 = vmatpush3.bf16.msra.mxu1 %v10790_v34  ;;  %v18389_v34 = vld [vmem:[#allocation7_spill] sm:$0xff]  ;;  %v12937_v41 = vpop.permute.xlu0 %4684 }
 0x537   : > { %10234 = vmatprep.subr.bf16.mxu1 %v18383_v7  ;;  %v12934_v7 = vpop.permute.xlu1 %5100  ;;  %18390 = vst [vmem:[#allocation7_spill] sm:$0xff] %v12937_v41 }
 0x538   : > { %18388 = vst [vmem:[#allocation6_spill] sm:$0xff] %v12934_v7 }
 0x539   : > { %9652 = vmatmul.mubr.msk.bf16.gmra.mrb[144].mxu1 %vm2761_vm4, %v3683_v14 }
 0x53a   : > { %10111 = vmatprep.mubr.msk.bf16.mxu1 %vm2761_vm4, %v12710_v37  ;;  %v18392_v37 = vld [vmem:[#allocation9_spill] sm:$0xff] }
 0x53b   : > { %v12943_v47 = vpop.permute.xlu1 %5252 }
 0x53c   : > { %18393 = vst [vmem:[#allocation8_spill] sm:$0xff] %v12943_v47  ;;  %v18406_v47 = vld [vmem:[#allocation17_spill] sm:$0xff] }
 0x53f   : > { %v12952_v11 = vpop.permute.xlu1 %5256 }
 0x541   : > { %10112 = vmatmul.mubr.msk.bf16.vlgmr.msra.gmra.mrb[148].mxu1 %vm2761_vm4, %v12737_v9  ;;  %v18394_v9 = vld [vmem:[#allocation10_spill] sm:$0xff] }
 0x542   : > { %10115 = vmatprep.mubr.msk.bf16.mxu1 %vm2761_vm4, %v12774_v17  ;;  %10236 = vmatpush3.bf16.msra.mxu1 %v18387_v42  ;;  %v12948_v17 = vpop.permute.xlu0 %4688  ;;  %v18396_v42 = vld [vmem:[#allocation11_spill] sm:$0xff]  ;;  %18398 = vst [vmem:[#allocation10_spill] sm:$0xff] %v12952_v11 }
 0x543   : > { %10238 = vmatprep.subr.bf16.mxu1 %v18389_v34  ;;  %18395 = vst [vmem:[#allocation9_spill] sm:$0xff] %v12948_v17  ;;  %v18397_v34 = vld [vmem:[#allocation12_spill] sm:$0xff] }
 0x546   : > { %10240 = vmatpush3.bf16.msra.mxu1 %v18391_v31  ;;  %v18399_v31 = vld [vmem:[#allocation13_spill] sm:$0xff] }
 0x547   : > { %10242 = vmatprep.subr.bf16.mxu1 %v18392_v37  ;;  %v18402_v37 = vld [vmem:[#allocation15_spill] sm:$0xff] }
 0x549   : > { %10116 = vmatmul.mubr.msk.bf16.gmra.mrb[152].mxu1 %vm2761_vm4, %v12806_v33  ;;  %v12957_v33 = vpop.permute.xlu0 %4724 }
 0x54a   : > { %10119 = vmatprep.mubr.msk.bf16.mxu1 %vm2761_vm4, %v12834_v32  ;;  %10244 = vmatpush3.bf16.msra.mxu1 %v18394_v9  ;;  %18400 = vst [vmem:[#allocation11_spill] sm:$0xff] %v12957_v33  ;;  %v18401_v32 = vld [vmem:[#allocation14_spill] sm:$0xff]  ;;  %v12962_v9 = vpop.permute.xlu1 %5288 }
 0x54b   : > { %10246 = vmatprep.subr.bf16.mxu1 %v18396_v42  ;;  %18403 = vst [vmem:[#allocation12_spill] sm:$0xff] %v12962_v9  ;;  %v18404_v42 = vld [vmem:[#allocation16_spill] sm:$0xff] }
 0x54e   : > { %10248 = vmatpush3.bf16.msra.mxu1 %v18397_v34  ;;  %v12965_v34 = vpop.permute.xlu0 %4696 }
 0x54f   : > { %10250 = vmatprep.subr.bf16.mxu1 %v18399_v31  ;;  %18405 = vst [vmem:[#allocation13_spill] sm:$0xff] %v12965_v34  ;;  %v18407_v31 = vld [vmem:[#allocation18_spill] sm:$0xff] }
 0x551   : > { %10120 = vmatmul.mubr.msk.bf16.gmra.mrb[156].mxu1 %vm2761_vm4, %v12864_v12  ;;  %v12970_v12 = vpop.permute.xlu1 %4512 }
 0x552   : > { %10123 = vmatprep.mubr.msk.bf16.mxu1 %vm2761_vm4, %v3682_v15  ;;  %10252 = vmatpush3.bf16.msra.mxu1 %v18401_v32  ;;  %18408 = vst [vmem:[#allocation14_spill] sm:$0xff] %v12970_v12  ;;  %v12973_v15 = vpop.permute.xlu0 %4700  ;;  %v18411_v32 = vld [vmem:[#allocation20_spill] sm:$0xff] }
 0x553   : > { %10254 = vmatprep.subr.bf16.mxu1 %v18402_v37  ;;  %18410 = vst [vmem:[#allocation15_spill] sm:$0xff] %v12973_v15  ;;  %v18412_v37 = vld [vmem:[#allocation57_spill] sm:$0xff] }
 0x555   : > { %v12977_v9 = vpop.permute.xlu1 %4732 }
 0x556   : > { %10256 = vmatpush3.bf16.msra.mxu1 %v18404_v42  ;;  %18413 = vst [vmem:[#allocation16_spill] sm:$0xff] %v12977_v9  ;;  %v12979_v42 = vpop.permute.xlu0 %4736 }
 0x557   : > { %10258 = vmatprep.subr.bf16.mxu1 %v18406_v47  ;;  %18414 = vst [vmem:[#allocation17_spill] sm:$0xff] %v12979_v42 }
 0x559   : > { %10124 = vmatmul.mubr.msk.bf16.gmra.mrb[160].mxu1 %vm2761_vm4, %v3683_v14  ;;  %v12981_v29 = vpop.permute.xlu1 %4792 }
 0x55a   : > { %10260 = vmatpush3.bf16.msra.mxu1 %v18407_v31  ;;  %18415 = vst [vmem:[#allocation18_spill] sm:$0xff] %v12981_v29  ;;  %v12983_v47 = vpop.permute.xlu0 %4776 }
 0x55b   : > { %10262 = vmatprep.subr.bf16.mxu1 %v18409_v55  ;;  %18416 = vst [vmem:[#allocation19_spill] sm:$0xff] %v12983_v47 }
 0x55d   : > { %v12985_v14 = vpop.permute.xlu1 %5012 }
 0x55e   : > { %10264 = vmatpush3.bf16.msra.mxu1 %v18411_v32  ;;  %18417 = vst [vmem:[#allocation20_spill] sm:$0xff] %v12985_v14  ;;  %v12987_v31 = vpop.permute.xlu0 %4812 }
 0x55f   : > { %10266 = vmatprep.subr.bf16.mxu1 %v18412_v37  ;;  %18418 = vst [vmem:[#allocation57_spill] sm:$0xff] %v12987_v31 }
 0x561   : > { %v12989_v5 = vpop.permute.xlu1 %5104 }
 0x562   : > { %18419 = vst [vmem:[#allocation132_spill] sm:$0xff] %v12989_v5  ;;  %v12991_v55 = vpop.permute.xlu0 %4820 }
 0x563   : > { %18420 = vst [vmem:[#allocation133_spill] sm:$0xff] %v12991_v55 }
 0x565   : > { %v12993_v33 = vpop.permute.xlu1 %5260 }
 0x566   : > { %18421 = vst [vmem:[#allocation134_spill] sm:$0xff] %v12993_v33  ;;  %v12995_v32 = vpop.permute.xlu0 %4824 }
 0x567   : > { %18422 = vst [vmem:[#allocation135_spill] sm:$0xff] %v12995_v32 }
 0x569   : > { %v12997_v37 = vpop.permute.xlu1 %5292 }
 0x56a   : > { %18423 = vst [vmem:[#allocation136_spill] sm:$0xff] %v12997_v37  ;;  %v12999_v28 = vpop.permute.xlu0 %4832 }
 0x56b   : > { %18424 = vst [vmem:[#allocation137_spill] sm:$0xff] %v12999_v28 }
 0x56d   : > { %v13001_v42 = vpop.permute.xlu1 %5384 }
 0x56e   : > { %18425 = vst [vmem:[#allocation138_spill] sm:$0xff] %v13001_v42  ;;  %v13003_v25 = vpop.permute.xlu0 %4996 }
 0x56f   : > { %18426 = vst [vmem:[#allocation139_spill] sm:$0xff] %v13003_v25 }
 0x571   : > { %v13005_v9 = vpop.permute.xlu1 %5412 }
 0x572   : > { %18427 = vst [vmem:[#allocation140_spill] sm:$0xff] %v13005_v9  ;;  %v13007_v14 = vpop.permute.xlu0 %4972 }
 0x573   : > { %18428 = vst [vmem:[#allocation141_spill] sm:$0xff] %v13007_v14 }
 0x575   : > { %v13009_v38 = vpop.permute.xlu1 %4704 }
 0x576   : > { %18429 = vst [vmem:[#allocation142_spill] sm:$0xff] %v13009_v38  ;;  %v13011_v50 = vpop.permute.xlu0 %4976 }
 0x577   : > { %18430 = vst [vmem:[#allocation143_spill] sm:$0xff] %v13011_v50 }
 0x579   : > { %v13013_v55 = vpop.permute.xlu1 %4796 }
 0x57a   : > { %18431 = vst [vmem:[#allocation144_spill] sm:$0xff] %v13013_v55  ;;  %v13015_v60 = vpop.permute.xlu0 %4980 }
 0x57b   : > { %18432 = vst [vmem:[#allocation145_spill] sm:$0xff] %v13015_v60 }
 0x57d   : > { %v13017_v32 = vpop.permute.xlu1 %4828 }
 0x57e   : > { %18433 = vst [vmem:[#allocation146_spill] sm:$0xff] %v13017_v32  ;;  %v13019_v37 = vpop.permute.xlu0 %4984 }
 0x57f   : > { %18434 = vst [vmem:[#allocation147_spill] sm:$0xff] %v13019_v37 }
 0x581   : > { %v13021_v28 = vpop.permute.xlu1 %5016 }
 0x582   : > { %18435 = vst [vmem:[#allocation148_spill] sm:$0xff] %v13021_v28  ;;  %v13023_v15 = vpop.permute.xlu0 %4988 }
 0x583   : > { %18436 = vst [vmem:[#allocation149_spill] sm:$0xff] %v13023_v15 }
 0x585   : > { %v13025_v25 = vpop.permute.xlu1 %5108 }
 0x586   : > { %18437 = vst [vmem:[#allocation150_spill] sm:$0xff] %v13025_v25  ;;  %v13027_v9 = vpop.permute.xlu0 %5024 }
 0x587   : > { %18438 = vst [vmem:[#allocation151_spill] sm:$0xff] %v13027_v9 }
 0x589   : > { %v13029_v2 = vpop.permute.xlu1 %5264 }
 0x58a   : > { %18439 = vst [vmem:[#allocation152_spill] sm:$0xff] %v13029_v2  ;;  %v13031_v38 = vpop.permute.xlu0 %5096 }
 0x58b   : > { %18440 = vst [vmem:[#allocation153_spill] sm:$0xff] %v13031_v38 }
 0x58d   : > { %v13033_v8 = vpop.permute.xlu1 %5296 }
 0x58e   : > { %18441 = vst [vmem:[#allocation154_spill] sm:$0xff] %v13033_v8  ;;  %v13035_v55 = vpop.permute.xlu0 %5132 }
 0x58f   : > { %18442 = vst [vmem:[#allocation155_spill] sm:$0xff] %v13035_v55  ;;  %v18446_v55 = vld [vmem:[#allocation70_spill] sm:$0xff] }
 0x590   : > { %vm4177_vm6 = vcmp.lt.s32.totalorder %v18446_v55, 1  ;;  %vm4466_vm7 = vcmp.lt.s32.totalorder %v18446_v55, 7 }
 0x591   : > { %v13037_v27 = vpop.permute.xlu1 %5420 }
 0x592   : > { %18443 = vst [vmem:[#allocation156_spill] sm:$0xff] %v13037_v27  ;;  %v13039_v32 = vpop.permute.xlu0 %5136 }
 0x593   : > { %18444 = vst [vmem:[#allocation157_spill] sm:$0xff] %v13039_v32 }
 0x595   : > { %v13081_v23 = vpop.permute.xlu1 %4800 }
 0x596   : > { %18449 = vst [vmem:[#allocation160_spill] sm:$0xff] %v13081_v23 }
 0x599   : > { %v13122_v59 = vpop.permute.xlu1 %5020 }
 0x59a   : > { %18453 = vst [vmem:[#allocation164_spill] sm:$0xff] %v13122_v59 }
 0x5bb   : > { %v13041_v54 = vpop.f32.mrb[104].mxu1  ;;  %v13043_v28 = vpop.f32.mrb[36].mxu0 }
 0x5bc   : > { %18445 = vst [vmem:[#allocation158_spill] sm:$0xff] %v13043_v28  ;;  %4883 = vrot.lane.b32.xlu1 %v13043_v28, %s11096_s6  ;;  %v13047_v9 = vpop.f32.mrb[37].mxu0  ;;  %4306 = vrot.lane.b32.xlu0 %v13041_v54, %s11096_s6  ;;  %v13051_v8 = vpop.f32.mrb[105].mxu1  ;;  %v17935_v32 = vrot.slane %v13041_v54, 7 }
 0x5bd   : > { %v3874_v27 = vpop.f32.mrb[106].mxu1  ;;  %v13054_v15 = vpop.f32.mrb[38].mxu0  ;;  %v17937_v12 = vrot.slane %v13051_v8, 1  ;;  %v18447_v4 = vrot.slane %v13047_v9, 7 }
 0x5be   : > { %v4160_v37 = vrot.slane %v3874_v27, 7  ;;  %v3876_v39 = vpop.f32.mrb[107].mxu1  ;;  %v3989_v26 = vpop.f32.mrb[39].mxu0 }
 0x5bf   : > { %v4451_v31 = vrot.slane %v3876_v39, 1  ;;  %v5060_v16 = vrot.slane %v3989_v26, 7 }
 0x5c0   : > { %4595 = vrot.lane.b32.xlu0 %v13051_v8, %s11096_s6  ;;  %4308 = vrot.lane.b32.xlu1 %v3874_v27, %s11096_s6  ;;  %v13067_v35 = vsel %vm4177_vm6, %v17935_v32, %v4160_v37  ;;  %v13083_v27 = vpop.permute.xlu0 %5140 }
 0x5c1   : > { %v13073_v28 = vsel %vm4466_vm7, %v17937_v12, %v4451_v31  ;;  %v13079_v48 = vsel %vm4177_vm6, %v18447_v4, %v5060_v16  ;;  %18450 = vst [vmem:[#allocation161_spill] sm:$0xff] %v13083_v27 }
 0x5c2   : > { %18448 = vst [vmem:[#allocation159_spill] sm:$0xff] %v13079_v48 }
 0x5c4   : > { %v3880_v29 = vpop.f32.mrb[108].mxu1  ;;  %v13085_v34 = vpop.f32.mrb[40].mxu0  ;;  %4885 = vrot.lane.b32.xlu1 %v13054_v15, %s11096_s6 }
 0x5c5   : > { %v4161_v32 = vrot.slane %v3880_v29, 7  ;;  %v3995_v25 = vpop.f32.mrb[41].mxu0  ;;  %4310 = vrot.lane.b32.xlu0 %v3880_v29, %s11096_s6  ;;  %v3882_v12 = vpop.f32.mrb[109].mxu1 }
 0x5c6   : > { %v5061_v60 = vrot.slane %v3995_v25, 7  ;;  %v4452_v63 = vrot.slane %v3882_v12, 1  ;;  %v3884_v24 = vpop.f32.mrb[110].mxu1  ;;  %v13090_v4 = vpop.f32.mrb[42].mxu0 }
 0x5c7   : > { %v4162_v48 = vrot.slane %v3884_v24, 7  ;;  %v3886_v23 = vpop.f32.mrb[111].mxu1  ;;  %v13092_v62 = vpop.f32.mrb[43].mxu0  ;;  %v13096_v27 = vsel %vm4177_vm6, %v4160_v37, %v4161_v32 }
 0x5c8   : > { %v13100_v18 = vsel %vm4466_vm7, %v4451_v31, %v4452_v63  ;;  %v4453_v58 = vrot.slane %v3886_v23, 1  ;;  %v5062_v29 = vrot.slane %v13092_v62, 7  ;;  %v13105_v40 = vsel %vm4177_vm6, %v5060_v16, %v5061_v60  ;;  %4597 = vrot.lane.b32.xlu1 %v3876_v39, %s11096_s6  ;;  %v13124_v16 = vpop.permute.xlu0 %5144 }
 0x5c9   : > { %4887 = vrot.lane.b32.xlu0 %v13085_v34, %s11096_s6  ;;  %v13120_v53 = vsel %vm4177_vm6, %v4161_v32, %v4162_v48  ;;  %18454 = vst [vmem:[#allocation165_spill] sm:$0xff] %v13124_v16 }
 0x5ca   : > { %v13112_v37 = vsel %vm4466_vm7, %v4452_v63, %v4453_v58  ;;  %v13116_v31 = vsel %vm4177_vm6, %v5061_v60, %v5062_v29  ;;  %18452 = vst [vmem:[#allocation163_spill] sm:$0xff] %v13120_v53 }
 0x5cb   : > { %18451 = vst [vmem:[#allocation162_spill] sm:$0xff] %v13116_v31 }
 0x5cc   : > { %v13126_v39 = vpop.f32.mrb[112].mxu1  ;;  %5205 = vrot.lane.b32.xlu1 %v3989_v26, %s11096_s6  ;;  %v13175_v31 = vpop.permute.xlu0 %5120 }
 0x5cd   : > { %v13128_v22 = vpop.f32.mrb[44].mxu0  ;;  %v4163_v1 = vrot.slane %v13126_v39, 7  ;;  %5207 = vrot.lane.b32.xlu0 %v3995_v25, %s11096_s6  ;;  %v13133_v60 = vpop.f32.mrb[113].mxu1  ;;  %18464 = vst [vmem:[#allocation175_spill] sm:$0xff] %v13175_v31 }
 0x5ce   : > { %18455 = vst [vmem:[#allocation166_spill] sm:$0xff] %v13128_v22  ;;  %v4005_v63 = vpop.f32.mrb[45].mxu0  ;;  %v4454_v32 = vrot.slane %v13133_v60, 1  ;;  %v13136_v46 = vpop.f32.mrb[114].mxu1 }
 0x5cf   : > { %v5063_v0 = vrot.slane %v4005_v63, 7  ;;  %v13138_v59 = vpop.f32.mrb[46].mxu0  ;;  %v4164_v16 = vrot.slane %v13136_v46, 7  ;;  %v13141_v13 = vpop.f32.mrb[115].mxu1  ;;  %v13147_v26 = vsel %vm4177_vm6, %v4162_v48, %v4163_v1 }
 0x5d0   : > { %18456 = vst [vmem:[#allocation167_spill] sm:$0xff] %v13138_v59  ;;  %v13143_v44 = vpop.f32.mrb[47].mxu0  ;;  %18457 = vst [vmem:[#allocation168_spill] sm:$0xff] %v13147_v26  ;;  %v13155_v33 = vsel %vm4466_vm7, %v4453_v58, %v4454_v32  ;;  %v4455_v2 = vrot.slane %v13141_v13, 1  ;;  %4599 = vrot.lane.b32.xlu1 %v3882_v12, %s11096_s6  ;;  %v13173_v26 = vpop.permute.xlu1 %5112 }
 0x5d1   : > { %v13151_v25 = vsel %vm4177_vm6, %v5062_v29, %v5063_v0  ;;  %18459 = vst [vmem:[#allocation170_spill] sm:$0xff] %v13155_v33  ;;  %v5064_v7 = vrot.slane %v13143_v44, 7  ;;  %4601 = vrot.lane.b32.xlu0 %v3886_v23, %s11096_s6  ;;  %v13171_v58 = vsel %vm4177_vm6, %v4163_v1, %v4164_v16  ;;  %18463 = vst [vmem:[#allocation174_spill] sm:$0xff] %v13173_v26 }
 0x5d2   : > { %18458 = vst [vmem:[#allocation169_spill] sm:$0xff] %v13151_v25  ;;  %v13163_v48 = vsel %vm4466_vm7, %v4454_v32, %v4455_v2  ;;  %18462 = vst [vmem:[#allocation173_spill] sm:$0xff] %v13171_v58 }
 0x5d3   : > { %18460 = vst [vmem:[#allocation171_spill] sm:$0xff] %v13163_v48  ;;  %v13167_v29 = vsel %vm4177_vm6, %v5063_v0, %v5064_v7 }
 0x5d4   : > { %18461 = vst [vmem:[#allocation172_spill] sm:$0xff] %v13167_v29  ;;  %v13177_v5 = vpop.f32.mrb[116].mxu1  ;;  %4312 = vrot.lane.b32.xlu1 %v3884_v24, %s11096_s6 }
 0x5d5   : > { %v13179_v12 = vpop.f32.mrb[48].mxu0  ;;  %v4165_v23 = vrot.slane %v13177_v5, 7  ;;  %4891 = vrot.lane.b32.xlu0 %v13128_v22, %s11096_s6  ;;  %v13187_v0 = vpop.f32.mrb[117].mxu1 }
 0x5d6   : > { %18465 = vst [vmem:[#allocation176_spill] sm:$0xff] %v13179_v12  ;;  %v13182_v32 = vpop.f32.mrb[49].mxu0  ;;  %v4456_v26 = vrot.slane %v13187_v0, 1  ;;  %v13191_v31 = vpop.f32.mrb[118].mxu1 }
 0x5d7   : > { %v5065_v1 = vrot.slane %v13182_v32, 7  ;;  %v13193_v29 = vpop.f32.mrb[50].mxu0  ;;  %v4166_v58 = vrot.slane %v13191_v31, 7  ;;  %v3906_v48 = vpop.f32.mrb[119].mxu1  ;;  %v13200_v24 = vsel %vm4177_vm6, %v4164_v16, %v4165_v23 }
 0x5d8   : > { %18466 = vst [vmem:[#allocation177_spill] sm:$0xff] %v13193_v29  ;;  %v13196_v25 = vpop.f32.mrb[51].mxu0  ;;  %18468 = vst [vmem:[#allocation179_spill] sm:$0xff] %v13200_v24  ;;  %v13208_v50 = vsel %vm4466_vm7, %v4455_v2, %v4456_v26  ;;  %v4457_v14 = vrot.slane %v3906_v48, 1  ;;  %4889 = vrot.lane.b32.xlu1 %v13090_v4, %s11096_s6  ;;  %v13228_v24 = vpop.permute.xlu0 %5284 }
 0x5d9   : > { %18467 = vst [vmem:[#allocation178_spill] sm:$0xff] %v13196_v25  ;;  %v13204_v22 = vsel %vm4177_vm6, %v5064_v7, %v5065_v1  ;;  %18470 = vst [vmem:[#allocation181_spill] sm:$0xff] %v13208_v50  ;;  %v5066_v36 = vrot.slane %v13196_v25, 7  ;;  %5211 = vrot.lane.b32.xlu0 %v4005_v63, %s11096_s6  ;;  %v13216_v16 = vsel %vm4177_vm6, %v4165_v23, %v4166_v58 }
 0x5da   : > { %18469 = vst [vmem:[#allocation180_spill] sm:$0xff] %v13204_v22  ;;  %18471 = vst [vmem:[#allocation182_spill] sm:$0xff] %v13216_v16  ;;  %v13220_v7 = vsel %vm4466_vm7, %v4456_v26, %v4457_v14  ;;  %v13226_v22 = vpop.permute.xlu1 %5268 }
 0x5db   : > { %18472 = vst [vmem:[#allocation183_spill] sm:$0xff] %v13220_v7  ;;  %v13224_v2 = vsel %vm4177_vm6, %v5065_v1, %v5066_v36  ;;  %18474 = vst [vmem:[#allocation185_spill] sm:$0xff] %v13226_v22 }
 0x5dc   : > { %18473 = vst [vmem:[#allocation184_spill] sm:$0xff] %v13224_v2  ;;  %18475 = vst [vmem:[#allocation186_spill] sm:$0xff] %v13228_v24  ;;  %v3910_v50 = vpop.f32.mrb[120].mxu1  ;;  %5209 = vrot.lane.b32.xlu1 %v13092_v62, %s11096_s6 }
 0x5dd   : > { %v13230_v33 = vpop.f32.mrb[52].mxu0  ;;  %v4167_v63 = vrot.slane %v3910_v50, 7  ;;  %4897 = vrot.lane.b32.xlu0 %v13193_v29, %s11096_s6  ;;  %v13238_v26 = vpop.f32.mrb[121].mxu1 }
 0x5de   : > { %18476 = vst [vmem:[#allocation187_spill] sm:$0xff] %v13230_v33  ;;  %v13232_v25 = vpop.f32.mrb[53].mxu0  ;;  %v4458_v1 = vrot.slane %v13238_v26, 1  ;;  %v3914_v2 = vpop.f32.mrb[122].mxu1 }
 0x5df   : > { %v5067_v23 = vrot.slane %v13232_v25, 7  ;;  %v13242_v24 = vpop.f32.mrb[54].mxu0  ;;  %v4168_v16 = vrot.slane %v3914_v2, 7  ;;  %v3916_v7 = vpop.f32.mrb[123].mxu1  ;;  %v13248_v42 = vsel %vm4177_vm6, %v4166_v58, %v4167_v63 }
 0x5e0   : > { %18477 = vst [vmem:[#allocation188_spill] sm:$0xff] %v13242_v24  ;;  %v13244_v22 = vpop.f32.mrb[55].mxu0  ;;  %v13252_v62 = vsel %vm4466_vm7, %v4457_v14, %v4458_v1  ;;  %v4459_v29 = vrot.slane %v3916_v7, 1  ;;  %v13259_v53 = vpop.permute.xlu1 %5300  ;;  %4314 = vrot.lane.b32.xlu1 %v13126_v39, %s11096_s6 }
 0x5e1   : > { %18478 = vst [vmem:[#allocation189_spill] sm:$0xff] %v13252_v62  ;;  %v17975_v57 = vrot.slane %v13244_v22, 7  ;;  %v13257_v43 = vsel %vm4177_vm6, %v5066_v36, %v5067_v23  ;;  %18480 = vst [vmem:[#allocation191_spill] sm:$0xff] %v13259_v53  ;;  %4609 = vrot.lane.b32.xlu0 %v3906_v48, %s11096_s6  ;;  %v13266_v58 = vsel %vm4177_vm6, %v4167_v63, %v4168_v16  ;;  %v13278_v53 = vpop.permute.xlu0 %5272 }
 0x5e2   : > { %18479 = vst [vmem:[#allocation190_spill] sm:$0xff] %v13257_v43  ;;  %18481 = vst [vmem:[#allocation192_spill] sm:$0xff] %v13266_v58  ;;  %v13270_v14 = vsel %vm4466_vm7, %v4458_v1, %v4459_v29 }
 0x5e3   : > { %18482 = vst [vmem:[#allocation193_spill] sm:$0xff] %v13270_v14  ;;  %v13276_v36 = vsel %vm4177_vm6, %v5067_v23, %v17975_v57  ;;  %18484 = vst [vmem:[#allocation195_spill] sm:$0xff] %v13278_v53 }
 0x5e4   : > { %18483 = vst [vmem:[#allocation194_spill] sm:$0xff] %v13276_v36  ;;  %v13280_v43 = vpop.f32.mrb[124].mxu1  ;;  %4603 = vrot.lane.b32.xlu1 %v13133_v60, %s11096_s6  ;;  %v13286_v62 = vpop.permute.xlu1 %5424 }
 0x5e5   : > { %v4169_v39 = vrot.slane %v13280_v43, 7  ;;  %4322 = vrot.lane.b32.xlu0 %v3910_v50, %s11096_s6  ;;  %v3922_v48 = vpop.f32.mrb[125].mxu1  ;;  %18485 = vst [vmem:[#allocation196_spill] sm:$0xff] %v13286_v62  ;;  %v13299_v53 = vpop.permute.xlu0 %5308 }
 0x5e6   : > { %v4460_v63 = vrot.slane %v3922_v48, 1  ;;  %v3924_v1 = vpop.f32.mrb[126].mxu1  ;;  %18487 = vst [vmem:[#allocation198_spill] sm:$0xff] %v13299_v53 }
 0x5e7   : > { %v4170_v58 = vrot.slane %v3924_v1, 7  ;;  %v13288_v14 = vpop.f32.mrb[127].mxu1  ;;  %v13292_v23 = vsel %vm4177_vm6, %v4168_v16, %v4169_v39 }
 0x5e8   : > { %18486 = vst [vmem:[#allocation197_spill] sm:$0xff] %v13292_v23  ;;  %v13296_v57 = vsel %vm4466_vm7, %v4459_v29, %v4460_v63  ;;  %v4461_v60 = vrot.slane %v13288_v14, 1  ;;  %4316 = vrot.lane.b32.xlu1 %v13136_v46, %s11096_s6  ;;  %v13312_v29 = vpop.permute.xlu1 %4992 }
 0x5e9   : > { %4324 = vrot.lane.b32.xlu0 %v3914_v2, %s11096_s6  ;;  %v13306_v50 = vsel %vm4177_vm6, %v4169_v39, %v4170_v58  ;;  %18490 = vst [vmem:[#allocation201_spill] sm:$0xff] %v13312_v29  ;;  %v13321_v53 = vpop.permute.xlu0 %5280 }
 0x5ea   : > { %18488 = vst [vmem:[#allocation199_spill] sm:$0xff] %v13306_v50  ;;  %v13310_v16 = vsel %vm4466_vm7, %v4460_v63, %v4461_v60  ;;  %18491 = vst [vmem:[#allocation202_spill] sm:$0xff] %v13321_v53  ;;  %v18710_v55 = vld [vmem:[#allocation195_spill] sm:$0xff] }
 0x5eb   : > { %18489 = vst [vmem:[#allocation200_spill] sm:$0xff] %v13310_v16 }
 0x5ec   : > { %v3930_v62 = vpop.f32.mrb[128].mxu1  ;;  %4893 = vrot.lane.b32.xlu1 %v13138_v59, %s11096_s6 }
 0x5ed   : > { %v4171_v36 = vrot.slane %v3930_v62, 7  ;;  %4901 = vrot.lane.b32.xlu0 %v13242_v24, %s11096_s6  ;;  %v13318_v46 = vpop.f32.mrb[129].mxu1  ;;  %v13344_v59 = vpop.permute.xlu0 %5380 }
 0x5ee   : > { %v4462_v2 = vrot.slane %v13318_v46, 1  ;;  %v3934_v39 = vpop.f32.mrb[130].mxu1  ;;  %18497 = vst [vmem:[#allocation208_spill] sm:$0xff] %v13344_v59 }
 0x5ef   : > { %v4172_v23 = vrot.slane %v3934_v39, 7  ;;  %v3936_v63 = vpop.f32.mrb[131].mxu1  ;;  %v13325_v16 = vsel %vm4177_vm6, %v4170_v58, %v4171_v36  ;;  %v13342_v58 = vpop.permute.xlu1 %5116 }
 0x5f0   : > { %18492 = vst [vmem:[#allocation203_spill] sm:$0xff] %v13325_v16  ;;  %v13329_v29 = vsel %vm4466_vm7, %v4461_v60, %v4462_v2  ;;  %v4463_v50 = vrot.slane %v3936_v63, 1  ;;  %4605 = vrot.lane.b32.xlu1 %v13141_v13, %s11096_s6  ;;  %18496 = vst [vmem:[#allocation207_spill] sm:$0xff] %v13342_v58 }
 0x5f1   : > { %18493 = vst [vmem:[#allocation204_spill] sm:$0xff] %v13329_v29  ;;  %4613 = vrot.lane.b32.xlu0 %v3916_v7, %s11096_s6  ;;  %v13336_v24 = vsel %vm4177_vm6, %v4171_v36, %v4172_v23 }
 0x5f2   : > { %18494 = vst [vmem:[#allocation205_spill] sm:$0xff] %v13336_v24  ;;  %v13340_v53 = vsel %vm4466_vm7, %v4462_v2, %v4463_v50 }
 0x5f3   : > { %18495 = vst [vmem:[#allocation206_spill] sm:$0xff] %v13340_v53  ;;  %v13363_v58 = vpop.permute.xlu1 %5148 }
 0x5f4   : > { %v3940_v16 = vpop.f32.mrb[132].mxu1  ;;  %5213 = vrot.lane.b32.xlu1 %v13143_v44, %s11096_s6  ;;  %18500 = vst [vmem:[#allocation211_spill] sm:$0xff] %v13363_v58  ;;  %v18504_v58 = vrot.slane %v13051_v8, 1 }
 0x5f5   : > { %v4173_v60 = vrot.slane %v3940_v16, 7  ;;  %4615 = vrot.lane.b32.xlu0 %v3922_v48, %s11096_s6  ;;  %v3942_v13 = vpop.f32.mrb[133].mxu1  ;;  %v18501_v48 = vrot.slane %v13041_v54, 7 }
 0x5f6   : > { %v4464_v7 = vrot.slane %v3942_v13, 1  ;;  %v13349_v29 = vpop.f32.mrb[134].mxu1 }
 0x5f7   : > { %v4174_v36 = vrot.slane %v13349_v29, 7  ;;  %v13352_v24 = vpop.f32.mrb[135].mxu1  ;;  %v13356_v2 = vsel %vm4177_vm6, %v4172_v23, %v4173_v60 }
 0x5f8   : > { %18498 = vst [vmem:[#allocation209_spill] sm:$0xff] %v13356_v2  ;;  %v13360_v59 = vsel %vm4466_vm7, %v4463_v50, %v4464_v7  ;;  %v4465_v44 = vrot.slane %v13352_v24, 1  ;;  %4318 = vrot.lane.b32.xlu1 %v13177_v5, %s11096_s6 }
 0x5f9   : > { %18499 = vst [vmem:[#allocation210_spill] sm:$0xff] %v13360_v59  ;;  %4328 = vrot.lane.b32.xlu0 %v3924_v1, %s11096_s6  ;;  %v13372_v53 = vsel %vm4177_vm6, %v4174_v36, %v18501_v48  ;;  %v13376_v23 = vsel %vm4177_vm6, %v4173_v60, %v4174_v36  ;;  %v13388_v1 = vpop.permute.xlu0 %5416  ;;  %v13392_v48 = vpop.permute.xlu1 %5304 }
 0x5fa   : > { %18502 = vst [vmem:[#allocation212_spill] sm:$0xff] %v13376_v23  ;;  %v13380_v50 = vsel %vm4466_vm7, %v4464_v7, %v4465_v44  ;;  %v13386_v5 = vsel %vm4466_vm7, %v4465_v44, %v18504_v58  ;;  %18506 = vst [vmem:[#allocation215_spill] sm:$0xff] %v13388_v1  ;;  %v18508_v58 = vrot.slane %v13244_v22, 7 }
 0x5fb   : > { %18503 = vst [vmem:[#allocation213_spill] sm:$0xff] %v13380_v50  ;;  %18505 = vst [vmem:[#allocation214_spill] sm:$0xff] %v13386_v5 }
 0x5fc   : > { %v13390_v54 = vpop.f32.mrb[136].mxu1  ;;  %18507 = vst [vmem:[#allocation216_spill] sm:$0xff] %v13392_v48  ;;  %4895 = vrot.lane.b32.xlu1 %v13179_v12, %s11096_s6 }
 0x5fd   : > { %4330 = vrot.lane.b32.xlu0 %v3930_v62, %s11096_s6  ;;  %v4035_v60 = vpop.f32.mrb[137].mxu1  ;;  %v13408_v48 = vpop.permute.xlu0 %5388 }
 0x5fe   : > { %v5069_v7 = vrot.slane %v4035_v60, 7  ;;  %v13397_v36 = vpop.f32.mrb[138].mxu1  ;;  %18510 = vst [vmem:[#allocation218_spill] sm:$0xff] %v13408_v48  ;;  %v13417_v5 = vpop.permute.xlu1 %5396 }
 0x5ff   : > { %v13399_v8 = vpop.f32.mrb[139].mxu1  ;;  %18512 = vst [vmem:[#allocation220_spill] sm:$0xff] %v13417_v5 }
 0x600   : > { %v13405_v44 = vsel %vm4177_vm6, %v18508_v58, %v5069_v7  ;;  %v5070_v1 = vrot.slane %v13399_v8, 7  ;;  %4607 = vrot.lane.b32.xlu1 %v13187_v0, %s11096_s6 }
 0x601   : > { %18509 = vst [vmem:[#allocation217_spill] sm:$0xff] %v13405_v44  ;;  %4332 = vrot.lane.b32.xlu0 %v3934_v39, %s11096_s6  ;;  %v13429_v39 = vpop.permute.xlu0 %5392 }
 0x602   : > { %v13415_v62 = vsel %vm4177_vm6, %v5069_v7, %v5070_v1  ;;  %18513 = vst [vmem:[#allocation221_spill] sm:$0xff] %v13429_v39  ;;  %v13435_v2 = vpop.permute.xlu1 %5152 }
 0x603   : > { %18511 = vst [vmem:[#allocation219_spill] sm:$0xff] %v13415_v62  ;;  %18515 = vst [vmem:[#allocation223_spill] sm:$0xff] %v13435_v2 }
 0x604   : > { %v13419_v23 = vpop.f32.mrb[140].mxu1  ;;  %4320 = vrot.lane.b32.xlu1 %v13191_v31, %s11096_s6 }
 0x605   : > { %4621 = vrot.lane.b32.xlu0 %v3936_v63, %s11096_s6  ;;  %v13424_v58 = vpop.f32.mrb[141].mxu1  ;;  %v13446_v12 = vpop.permute.xlu0 %5428 }
 0x606   : > { %v5071_v44 = vrot.slane %v13424_v58, 7  ;;  %v13427_v0 = vpop.f32.mrb[142].mxu1  ;;  %18517 = vst [vmem:[#allocation225_spill] sm:$0xff] %v13446_v12 }
 0x607   : > { %v4049_v50 = vpop.f32.mrb[143].mxu1 }
 0x608   : > { %v13433_v7 = vsel %vm4177_vm6, %v5070_v1, %v5071_v44  ;;  %v5072_v62 = vrot.slane %v4049_v50, 7  ;;  %4899 = vrot.lane.b32.xlu1 %v13230_v33, %s11096_s6  ;;  %v13453_v33 = vpop.permute.xlu1 %5276 }
 0x609   : > { %18514 = vst [vmem:[#allocation222_spill] sm:$0xff] %v13433_v7  ;;  %4334 = vrot.lane.b32.xlu0 %v3940_v16, %s11096_s6  ;;  %18518 = vst [vmem:[#allocation226_spill] sm:$0xff] %v13453_v33  ;;  %v13472_v12 = vpop.permute.xlu0 %5404 }
 0x60a   : > { %v13442_v31 = vsel %vm4177_vm6, %v5071_v44, %v5072_v62  ;;  %18523 = vst [vmem:[#allocation230_spill] sm:$0xff] %v13472_v12 }
 0x60b   : > { %18516 = vst [vmem:[#allocation224_spill] sm:$0xff] %v13442_v31 }
 0x60c   : > { %v13444_v63 = vpop.f32.mrb[144].mxu1  ;;  %4611 = vrot.lane.b32.xlu1 %v13238_v26, %s11096_s6 }
 0x60d   : > { %4623 = vrot.lane.b32.xlu0 %v3942_v13, %s11096_s6  ;;  %v4055_v1 = vpop.f32.mrb[145].mxu1  ;;  %v18521_v13 = vrot.slane %v13047_v9, 7 }
 0x60e   : > { %v5073_v2 = vrot.slane %v4055_v1, 7  ;;  %v13451_v7 = vpop.f32.mrb[146].mxu1 }
 0x60f   : > { %v4059_v16 = vpop.f32.mrb[147].mxu1 }
 0x610   : > { %v13457_v44 = vsel %vm4177_vm6, %v5072_v62, %v5073_v2  ;;  %v5074_v31 = vrot.slane %v4059_v16, 7  ;;  %5221 = vrot.lane.b32.xlu1 %v13244_v22, %s11096_s6 }
 0x611   : > { %18519 = vst [vmem:[#allocation227_spill] sm:$0xff] %v13457_v44  ;;  %5223 = vrot.lane.b32.xlu0 %v4035_v60, %s11096_s6  ;;  %v13474_v44 = vpop.permute.xlu1 %5400 }
 0x612   : > { %v13464_v26 = vsel %vm4177_vm6, %v5073_v2, %v5074_v31  ;;  %v13470_v33 = vsel %vm4177_vm6, %v5074_v31, %v18521_v13  ;;  %18524 = vst [vmem:[#allocation231_spill] sm:$0xff] %v13474_v44  ;;  %v13482_v13 = vpop.permute.xlu0 %5440 }
 0x613   : > { %18520 = vst [vmem:[#allocation228_spill] sm:$0xff] %v13464_v26  ;;  %18522 = vst [vmem:[#allocation229_spill] sm:$0xff] %v13470_v33 }
 0x614   : > { %v10113_v62 = vpop.f32.mrb[148].mxu1  ;;  %4326 = vrot.lane.b32.xlu1 %v13280_v43, %s11096_s6  ;;  %18525 = vst [vmem:[#allocation232_spill] sm:$0xff] %v13482_v13 }
 0x615   : > { %5229 = vrot.lane.b32.xlu0 %v4049_v50, %s11096_s6  ;;  %v13479_v22 = vpop.f32.mrb[149].mxu1  ;;  %v5349_v60 = vrot.slane %v10113_v62, 1  ;;  %v13496_v50 = vpop.permute.xlu1 %5432 }
 0x616   : > { %v10114_v2 = vpop.f32.mrb[150].mxu1  ;;  %v5347_v5 = vrot.slane %v13479_v22, 1  ;;  %18527 = vst [vmem:[#allocation234_spill] sm:$0xff] %v13496_v50 }
 0x617   : > { %v5350_v26 = vrot.slane %v10114_v2, 1  ;;  %v4099_v59 = vpop.f32.mrb[151].mxu1 }
 0x618   : > { %v5348_v31 = vrot.slane %v4099_v59, 1  ;;  %4617 = vrot.lane.b32.xlu1 %v13288_v14, %s11096_s6 }
 0x619   : > { %v13486_v33 = vsel %vm4466_vm7, %v5349_v60, %v5350_v26  ;;  %4911 = vrot.lane.b32.xlu0 %v13444_v63, %s11096_s6  ;;  %v13506_v44 = vpop.permute.xlu1 %5312 }
 0x61a   : > { %v13494_v43 = vsel %vm4466_vm7, %v5348_v31, %v5349_v60  ;;  %v5377_v59 = vsel %vm4466_vm7, %v5347_v5, %v5348_v31  ;;  %18529 = vst [vmem:[#allocation236_spill] sm:$0xff] %v13506_v44 }
 0x61b   : > { %18526 = vst [vmem:[#allocation233_spill] sm:$0xff] %v13494_v43  ;;  %v13501_v62 = vmul.f32 %v13482_v13, %v5377_v59 }
 0x61c   : > { %v10117_v22 = vpop.f32.mrb[152].mxu1  ;;  %4619 = vrot.lane.b32.xlu1 %v13318_v46, %s11096_s6 }
 0x61d   : > { %18528 = vst [vmem:[#allocation235_spill] sm:$0xff] %v13501_v62  ;;  %5231 = vrot.lane.b32.xlu0 %v4055_v1, %s11096_s6  ;;  %v4112_v14 = vpop.f32.mrb[153].mxu1  ;;  %v5353_v60 = vrot.slane %v10117_v22, 1  ;;  %v13527_v1 = vpop.permute.xlu1 %5436 }
 0x61e   : > { %v5351_v2 = vrot.slane %v4112_v14, 1  ;;  %v10118_v12 = vpop.f32.mrb[154].mxu1  ;;  %18531 = vst [vmem:[#allocation238_spill] sm:$0xff] %v13527_v1 }
 0x61f   : > { %v5354_v43 = vrot.slane %v10118_v12, 1  ;;  %v4115_v50 = vpop.f32.mrb[155].mxu1 }
 0x620   : > { %v13510_v31 = vsel %vm4466_vm7, %v5350_v26, %v5351_v2  ;;  %v5352_v59 = vrot.slane %v4115_v50, 1  ;;  %4336 = vrot.lane.b32.xlu1 %v13349_v29, %s11096_s6 }
 0x621   : > { %v13514_v13 = vsel %vm4466_vm7, %v5353_v60, %v5354_v43  ;;  %5233 = vrot.lane.b32.xlu0 %v4059_v16, %s11096_s6 }
 0x622   : > { %18530 = vst [vmem:[#allocation237_spill] sm:$0xff] %v13514_v13  ;;  %v13521_v46 = vsel %vm4466_vm7, %v5352_v59, %v5353_v60  ;;  %v13525_v12 = vsel %vm4466_vm7, %v5351_v2, %v5352_v59 }
 0x624   : > { %v10121_v26 = vpop.f32.mrb[156].mxu1  ;;  %4625 = vrot.lane.b32.xlu1 %v13352_v24, %s11096_s6  ;;  %v13547_v24 = vpop.permute.xlu1 %5408 }
 0x625   : > { %5219 = vrot.lane.b32.xlu0 %v13232_v25, %s11096_s6  ;;  %v4128_v29 = vpop.f32.mrb[157].mxu1  ;;  %v5357_v22 = vrot.slane %v10121_v26, 1  ;;  %18534 = vst [vmem:[#allocation241_spill] sm:$0xff] %v13547_v24 }
 0x626   : > { %v5355_v50 = vrot.slane %v4128_v29, 1  ;;  %v10122_v16 = vpop.f32.mrb[158].mxu1 }
 0x627   : > { %v5358_v14 = vrot.slane %v10122_v16, 1  ;;  %v4131_v60 = vpop.f32.mrb[159].mxu1 }
 0x628   : > { %v13535_v62 = vsel %vm4466_vm7, %v5354_v43, %v5355_v50  ;;  %v5356_v2 = vrot.slane %v4131_v60, 1  ;;  %4903 = vrot.lane.b32.xlu1 %v13390_v54, %s11096_s6 }
 0x629   : > { %18532 = vst [vmem:[#allocation239_spill] sm:$0xff] %v13535_v62  ;;  %v13539_v59 = vsel %vm4466_vm7, %v5357_v22, %v5358_v14 }
 0x62a   : > { %18533 = vst [vmem:[#allocation240_spill] sm:$0xff] %v13539_v59  ;;  %v13545_v25 = vsel %vm4466_vm7, %v5356_v2, %v5357_v22  ;;  %v5369_v26 = vsel %vm4466_vm7, %v5355_v50, %v5356_v2  ;;  %v4275_v50 = vmul.f32 %v12634_v30, %v13372_v53 }
 0x62b   : > { %v13552_v43 = vmul.f32 %v13547_v24, %v5369_v26 }
 0x62c   : > { %v10125_v29 = vpop.f32.mrb[160].mxu1  ;;  %4905 = vrot.lane.b32.xlu1 %v13397_v36, %s11096_s6 }
 0x62d   : > { %v4144_v16 = vpop.f32.mrb[161].mxu1  ;;  %v5361_v1 = vrot.slane %v10125_v29, 1 }
 0x62e   : > { %v5359_v60 = vrot.slane %v4144_v16, 1  ;;  %v10126_v44 = vpop.f32.mrb[162].mxu1  ;;  %v13556_v13 = vpop.permute.xlu1 %4883  ;;  %v4548_v16 = vmul.f32 %v12494_v10, %v13073_v28 }
 0x62f   : > { %v5362_v62 = vrot.slane %v10126_v44, 1  ;;  %v4307_v22 = vpop.permute.xlu0 %4306  ;;  %v4147_v26 = vpop.f32.mrb[163].mxu1 }
 0x630   : > { %v13560_v59 = vsel %vm4466_vm7, %v5358_v14, %v5359_v60  ;;  %v4419_v2 = vmul.f32 %v12467_v45, %v4307_v22  ;;  %v5360_v29 = vrot.slane %v4147_v26, 1  ;;  %5225 = vrot.lane.b32.xlu1 %v13399_v8, %s11096_s6  ;;  %v4276_v26 = vmul.f32 %v12475_v6, %v13067_v35  ;;  %v18617_v6 = vld [vmem:[#allocation209_spill] sm:$0xff] }
 0x631   : > { %v13567_v24 = vsel %vm4466_vm7, %v5361_v1, %v5362_v62  ;;  %v13571_v44 = vsel %vm4466_vm7, %v5362_v62, %v5347_v5 }
 0x632   : > { %v4435_v14 = vadd.f32 %v4419_v2, %v4275_v50  ;;  %v13579_v53 = vsel %vm4466_vm7, %v5360_v29, %v5361_v1  ;;  %v13583_v22 = vsel %vm4466_vm7, %v5359_v60, %v5360_v29  ;;  %v4309_v5 = vpop.permute.xlu1 %4308  ;;  %v4549_v1 = vmul.f32 %v12908_v20, %v13100_v18 }
 0x633   : > { %v13585_v30 = vpop.permute.xlu0 %4595  ;;  %v4420_v8 = vmul.f32 %v12481_v19, %v4309_v5  ;;  %v18007_v60 = vrot.slane %v13556_v13, 1  ;;  %v18619_v19 = vld [vmem:[#allocation55_spill] sm:$0xff] }
 0x634   : > { %v4564_v62 = vadd.f32 %v4548_v16, %v4435_v14  ;;  %4907 = vrot.lane.b32.xlu1 %v13419_v23, %s11096_s6  ;;  %v4277_v14 = vmul.f32 %v12505_v51, %v13096_v27  ;;  %v18008_v27 = vrot.slane %v13585_v30, 7 }
 0x635   : > { %v4436_v28 = vadd.f32 %v4420_v8, %v4276_v26  ;;  %v4550_v26 = vmul.f32 %v12592_v61, %v13112_v37 }
 0x636   : > { %v4886_v50 = vpop.permute.xlu1 %4885 }
 0x637   : > { %v4311_v2 = vpop.permute.xlu0 %4310  ;;  %v4932_v29 = vrot.slane %v4886_v50, 1  ;;  %v4565_v35 = vadd.f32 %v4549_v1, %v4436_v28 }
 0x638   : > { %v4421_v16 = vmul.f32 %v12511_v3, %v4311_v2  ;;  %5227 = vrot.lane.b32.xlu1 %v13424_v58, %s11096_s6 }
 0x639   : > { %v13604_v5 = vsel %vm4466_vm7, %v18007_v60, %v4932_v29 }
 0x63a   : > { %v4437_v18 = vadd.f32 %v4421_v16, %v4277_v14  ;;  %v4598_v8 = vpop.permute.xlu1 %4597 }
 0x63b   : > { %v4888_v50 = vpop.permute.xlu0 %4887  ;;  %v4644_v2 = vrot.slane %v4598_v8, 7 }
 0x63c   : > { %v4566_v51 = vadd.f32 %v4550_v26, %v4437_v18  ;;  %v4933_v28 = vrot.slane %v4888_v50, 1  ;;  %4909 = vrot.lane.b32.xlu1 %v13427_v0, %s11096_s6  ;;  %v4836_v18 = vmul.f32 %v12983_v47, %v13054_v15  ;;  %v18615_v47 = vld [vmem:[#allocation91_spill] sm:$0xff] }
 0x63d   : > { %v4673_v58 = vsel %vm4177_vm6, %v18008_v27, %v4644_v2 }
 0x63e   : > { %v4960_v1 = vsel %vm4466_vm7, %v4932_v29, %v4933_v28  ;;  %v4740_v37 = vmul.f32 %v12927_v52, %v4673_v58  ;;  %v13618_v14 = vpop.permute.xlu1 %5205  ;;  %v5156_v58 = vmul.f32 %v13031_v38, %v13105_v40 }
 0x63f   : > { %v5208_v16 = vpop.permute.xlu0 %5207  ;;  %v5028_v8 = vmul.f32 %v12663_v21, %v4960_v1  ;;  %v18540_v21 = vld [vmem:[#allocation170_spill] sm:$0xff] }
 0x640   : > { %v4756_v26 = vadd.f32 %v4740_v37, %v4564_v62  ;;  %4913 = vrot.lane.b32.xlu1 %v13451_v7, %s11096_s6 }
 0x642   : > { %v4852_v50 = vadd.f32 %v4836_v18, %v4756_v26  ;;  %v4600_v60 = vpop.permute.xlu1 %4599 }
 0x643   : > { %v13625_v27 = vpop.permute.xlu0 %4601  ;;  %v4645_v61 = vrot.slane %v4600_v60, 7  ;;  %v5316_v60 = vmul.f32 %v12952_v11, %v5208_v16  ;;  %v18538_v16 = vld [vmem:[#allocation138_spill] sm:$0xff] }
 0x644   : > { %v18015_v29 = vrot.slane %v13625_v27, 7  ;;  %v5044_v3 = vadd.f32 %v5028_v8, %v4852_v50  ;;  %5215 = vrot.lane.b32.xlu1 %v13182_v32, %s11096_s6  ;;  %v4837_v32 = vmul.f32 %v12656_v56, %v13085_v34  ;;  %v18535_v8 = vld [vmem:[#allocation163_spill] sm:$0xff]  ;;  %v18536_v50 = vld [vmem:[#allocation116_spill] sm:$0xff]  ;;  %v18541_v34 = vld [vmem:[#allocation109_spill] sm:$0xff] }
 0x645   : > { %v4672_v15 = vsel %vm4177_vm6, %v4644_v2, %v4645_v61  ;;  %v4838_v2 = vmul.f32 %v12779_v49, %v13090_v4  ;;  %v4278_v38 = vmul.f32 %v18536_v50, %v18535_v8  ;;  %v4551_v56 = vmul.f32 %v18541_v34, %v18540_v21  ;;  %v18542_v21 = vld [vmem:[#allocation141_spill] sm:$0xff] }
 0x646   : > { %v4671_v62 = vsel %vm4177_vm6, %v4645_v61, %v18015_v29  ;;  %v5172_v1 = vadd.f32 %v5156_v58, %v5044_v3  ;;  %v4741_v37 = vmul.f32 %v12937_v41, %v4672_v15  ;;  %v4313_v40 = vpop.permute.xlu1 %4312  ;;  %v18537_v61 = vld [vmem:[#allocation100_spill] sm:$0xff]  ;;  %v5444_v58 = vmul.f32 %v18538_v16, %v13486_v33 }
 0x647   : > { %v4742_v18 = vmul.f32 %v12948_v17, %v4671_v62  ;;  %v13641_v26 = vpop.permute.xlu0 %4891  ;;  %v4422_v3 = vmul.f32 %v18537_v61, %v4313_v40  ;;  %v18539_v17 = vld [vmem:[#allocation178_spill] sm:$0xff]  ;;  %v18548_v16 = vld [vmem:[#allocation152_spill] sm:$0xff] }
 0x648   : > { %v5332_v15 = vadd.f32 %v5316_v60, %v5172_v1  ;;  %v4757_v29 = vadd.f32 %v4741_v37, %v4565_v35  ;;  %5217 = vrot.lane.b32.xlu1 %v18539_v17, %s11096_s6  ;;  %v4935_v61 = vrot.slane %v13641_v26, 1  ;;  %v18543_v35 = vld [vmem:[#allocation143_spill] sm:$0xff] }
 0x649   : > { %v4758_v62 = vadd.f32 %v4742_v18, %v4566_v51  ;;  %v4438_v11 = vadd.f32 %v4422_v3, %v4278_v38 }
 0x64a   : > { %v13656_v41 = vadd.f32 %v5444_v58, %v5332_v15  ;;  %v4890_v4 = vpop.permute.xlu1 %4889  ;;  %v4853_v50 = vadd.f32 %v4837_v32, %v4757_v29  ;;  %v18546_v32 = vld [vmem:[#allocation162_spill] sm:$0xff] }
 0x64b   : > { %v5212_v49 = vpop.permute.xlu0 %5211  ;;  %v4854_v8 = vadd.f32 %v4838_v2, %v4758_v62  ;;  %v4567_v40 = vadd.f32 %v4551_v56, %v4438_v11  ;;  %v4934_v33 = vrot.slane %v4890_v4, 1  ;;  %v18544_v56 = vld [vmem:[#allocation169_spill] sm:$0xff]  ;;  %v18545_v11 = vld [vmem:[#allocation132_spill] sm:$0xff] }
 0x64c   : > { %5203 = vrot.lane.b32.xlu1 %v13047_v9, %s11096_s6  ;;  %v5158_v29 = vmul.f32 %v18545_v11, %v18544_v56  ;;  %v18547_v9 = vld [vmem:[#allocation6_spill] sm:$0xff]  ;;  %v5318_v58 = vmul.f32 %v18548_v16, %v5212_v49  ;;  %v18553_v56 = vld [vmem:[#allocation171_spill] sm:$0xff]  ;;  %v18554_v11 = vld [vmem:[#allocation128_spill] sm:$0xff] }
 0x64d   : > { %v4958_v51 = vsel %vm4466_vm7, %v4934_v33, %v4935_v61  ;;  %v4959_v38 = vsel %vm4466_vm7, %v4933_v28, %v4934_v33  ;;  %v5157_v2 = vmul.f32 %v18547_v9, %v18546_v32  ;;  %v18549_v28 = vld [vmem:[#allocation134_spill] sm:$0xff]  ;;  %v18550_v33 = vld [vmem:[#allocation168_spill] sm:$0xff] }
 0x64e   : > { %v5029_v17 = vmul.f32 %v18542_v21, %v4959_v38  ;;  %v5030_v1 = vmul.f32 %v18543_v35, %v4958_v51  ;;  %v5210_v60 = vpop.permute.xlu1 %5209  ;;  %v18551_v51 = vld [vmem:[#allocation25_spill] sm:$0xff]  ;;  %v18552_v21 = vld [vmem:[#allocation108_spill] sm:$0xff]  ;;  %v18555_v16 = vld [vmem:[#allocation66_spill] sm:$0xff] }
 0x64f   : > { %v13667_v37 = vpop.permute.xlu0 %4897  ;;  %v5317_v62 = vmul.f32 %v18549_v28, %v5210_v60  ;;  %v4279_v38 = vmul.f32 %v18551_v51, %v18550_v33  ;;  %v4552_v60 = vmul.f32 %v18554_v11, %v18553_v56  ;;  %v18556_v28 = vld [vmem:[#allocation44_spill] sm:$0xff] }
 0x650   : > { %v5046_v18 = vadd.f32 %v5030_v1, %v4854_v8  ;;  %v5045_v26 = vadd.f32 %v5029_v17, %v4853_v50  ;;  %v5445_v8 = vmul.f32 %v13408_v48, %v13510_v31  ;;  %v5446_v50 = vmul.f32 %v13429_v39, %v13525_v12  ;;  %v18560_v51 = vld [vmem:[#allocation24_spill] sm:$0xff]  ;;  %v18589_v39 = vld [vmem:[#allocation14_spill] sm:$0xff] }
 0x651   : > { %v4283_v31 = vmul.f32 %v18555_v16, %v13248_v42  ;;  %v18557_v12 = vrot.slane %v13625_v27, 7  ;;  %v18563_v42 = vld [vmem:[#allocation21_spill] sm:$0xff]  ;;  %v18564_v56 = vld [vmem:[#allocation192_spill] sm:$0xff] }
 0x652   : > { %v5174_v3 = vadd.f32 %v5158_v29, %v5046_v18  ;;  %v5173_v15 = vadd.f32 %v5157_v2, %v5045_v26  ;;  %v4315_v34 = vpop.permute.xlu1 %4314  ;;  %v18565_v27 = vld [vmem:[#allocation113_spill] sm:$0xff] }
 0x653   : > { %v13675_v4 = vpop.permute.xlu0 %4609  ;;  %v4423_v35 = vmul.f32 %v18552_v21, %v4315_v34  ;;  %v4284_v11 = vmul.f32 %v18565_v27, %v18564_v56  ;;  %v18568_v16 = vld [vmem:[#allocation129_spill] sm:$0xff] }
 0x654   : > { %v5334_v17 = vadd.f32 %v5318_v58, %v5174_v3  ;;  %v5333_v1 = vadd.f32 %v5317_v62, %v5173_v15  ;;  %v18558_v15 = vld [vmem:[#allocation193_spill] sm:$0xff]  ;;  %v18559_v62 = vld [vmem:[#allocation124_spill] sm:$0xff] }
 0x655   : > { %v4439_v49 = vadd.f32 %v4423_v35, %v4279_v38  ;;  %v4556_v33 = vmul.f32 %v18559_v62, %v18558_v15  ;;  %v18561_v35 = vld [vmem:[#allocation173_spill] sm:$0xff] }
 0x656   : > { %v13686_v29 = vadd.f32 %v5446_v50, %v5334_v17  ;;  %v13688_v18 = vadd.f32 %v5445_v8, %v5333_v1  ;;  %v4604_v26 = vpop.permute.xlu1 %4603  ;;  %v18562_v8 = vld [vmem:[#allocation121_spill] sm:$0xff] }
 0x657   : > { %v4323_v32 = vpop.permute.xlu0 %4322  ;;  %v4568_v9 = vadd.f32 %v4552_v60, %v4439_v49  ;;  %v4647_v2 = vrot.slane %v4604_v26, 7  ;;  %v4280_v50 = vmul.f32 %v18562_v8, %v18561_v35  ;;  %v18566_v60 = vld [vmem:[#allocation69_spill] sm:$0xff] }
 0x658   : > { %v4427_v34 = vmul.f32 %v18556_v28, %v4323_v32  ;;  %v18567_v32 = vld [vmem:[#allocation166_spill] sm:$0xff] }
 0x659   : > { %v4670_v3 = vsel %vm4177_vm6, %v18557_v12, %v4647_v2  ;;  %v18569_v12 = vld [vmem:[#allocation181_spill] sm:$0xff] }
 0x65a   : > { %v4443_v58 = vadd.f32 %v4427_v34, %v4283_v31  ;;  %v4743_v38 = vmul.f32 %v18560_v51, %v4670_v3  ;;  %v4317_v21 = vpop.permute.xlu1 %4316  ;;  %v4839_v31 = vmul.f32 %v18568_v16, %v18567_v32  ;;  %v18570_v3 = vld [vmem:[#allocation123_spill] sm:$0xff]  ;;  %v18575_v16 = vld [vmem:[#allocation13_spill] sm:$0xff] }
 0x65b   : > { %v4325_v17 = vpop.permute.xlu0 %4324  ;;  %v4424_v49 = vmul.f32 %v18563_v42, %v4317_v21  ;;  %v4553_v15 = vmul.f32 %v18570_v3, %v18569_v12  ;;  %v18571_v51 = vld [vmem:[#allocation95_spill] sm:$0xff]  ;;  %v18576_v3 = vld [vmem:[#allocation185_spill] sm:$0xff] }
 0x65c   : > { %v13702_v1 = vadd.f32 %v4556_v33, %v4443_v58  ;;  %v4428_v26 = vmul.f32 %v18566_v60, %v4325_v17  ;;  %v4759_v28 = vadd.f32 %v4743_v38, %v4567_v40  ;;  %v4557_v58 = vmul.f32 %v18571_v51, %v13296_v57  ;;  %v18572_v40 = vld [vmem:[#allocation145_spill] sm:$0xff]  ;;  %v18573_v60 = vld [vmem:[#allocation172_spill] sm:$0xff]  ;;  %v18574_v57 = vld [vmem:[#allocation150_spill] sm:$0xff] }
 0x65d   : > { %v4440_v34 = vadd.f32 %v4424_v49, %v4280_v50  ;;  %v18577_v51 = vld [vmem:[#allocation167_spill] sm:$0xff] }
 0x65e   : > { %v4444_v62 = vadd.f32 %v4428_v26, %v4284_v11  ;;  %v4894_v33 = vpop.permute.xlu1 %4893  ;;  %v4855_v21 = vadd.f32 %v4839_v31, %v4759_v28  ;;  %v5159_v26 = vmul.f32 %v18574_v57, %v18573_v60  ;;  %v18581_v57 = vld [vmem:[#allocation179_spill] sm:$0xff] }
 0x65f   : > { %v13714_v35 = vpop.permute.xlu0 %4901  ;;  %v13716_v8 = vadd.f32 %v4553_v15, %v4440_v34  ;;  %v4936_v17 = vrot.slane %v4894_v33, 1 }
 0x660   : > { %v4573_v42 = vadd.f32 %v4557_v58, %v4444_v62  ;;  %v18578_v58 = vld [vmem:[#allocation18_spill] sm:$0xff] }
 0x661   : > { %v4957_v56 = vsel %vm4466_vm7, %v4935_v61, %v4936_v17  ;;  %v4840_v33 = vmul.f32 %v18578_v58, %v18577_v51  ;;  %v18586_v51 = vld [vmem:[#allocation64_spill] sm:$0xff] }
 0x662   : > { %v5031_v38 = vmul.f32 %v18572_v40, %v4957_v56  ;;  %v4606_v50 = vpop.permute.xlu1 %4605  ;;  %v18579_v56 = vld [vmem:[#allocation220_spill] sm:$0xff] }
 0x663   : > { %v13721_v49 = vpop.permute.xlu0 %4613  ;;  %v4648_v27 = vrot.slane %v4606_v50, 7  ;;  %v5447_v40 = vmul.f32 %v18579_v56, %v13521_v46  ;;  %v18580_v50 = vld [vmem:[#allocation103_spill] sm:$0xff]  ;;  %v18587_v56 = vld [vmem:[#allocation57_spill] sm:$0xff] }
 0x664   : > { %v5047_v11 = vadd.f32 %v5031_v38, %v4855_v21  ;;  %v18029_v61 = vrot.slane %v13721_v49, 7 }
 0x665   : > { %v4669_v32 = vsel %vm4177_vm6, %v4647_v2, %v4648_v27 }
 0x666   : > { %v4744_v31 = vmul.f32 %v18575_v16, %v4669_v32  ;;  %v5175_v28 = vadd.f32 %v5159_v26, %v5047_v11  ;;  %v5214_v34 = vpop.permute.xlu1 %5213  ;;  %v18582_v26 = vld [vmem:[#allocation62_spill] sm:$0xff] }
 0x667   : > { %v13728_v12 = vpop.permute.xlu0 %4615  ;;  %v5319_v15 = vmul.f32 %v18576_v3, %v5214_v34  ;;  %v4281_v32 = vmul.f32 %v18582_v26, %v18581_v57  ;;  %v18585_v3 = vld [vmem:[#allocation99_spill] sm:$0xff]  ;;  %v18590_v26 = vld [vmem:[#allocation204_spill] sm:$0xff] }
 0x668   : > { %v18028_v62 = vrot.slane %v13728_v12, 7  ;;  %v4760_v21 = vadd.f32 %v4744_v31, %v4568_v9  ;;  %v18583_v31 = vld [vmem:[#allocation56_spill] sm:$0xff] }
 0x669   : > { %v5335_v2 = vadd.f32 %v5319_v15, %v5175_v28  ;;  %v18584_v28 = vld [vmem:[#allocation199_spill] sm:$0xff] }
 0x66a   : > { %v4664_v38 = vsel %vm4177_vm6, %v18029_v61, %v18028_v62  ;;  %v4319_v60 = vpop.permute.xlu1 %4318  ;;  %v4856_v34 = vadd.f32 %v4840_v33, %v4760_v21  ;;  %v4286_v15 = vmul.f32 %v18585_v3, %v18584_v28  ;;  %v4845_v62 = vmul.f32 %v18587_v56, %v13390_v54  ;;  %v18591_v33 = vld [vmem:[#allocation112_spill] sm:$0xff]  ;;  %v18592_v54 = vld [vmem:[#allocation203_spill] sm:$0xff] }
 0x66b   : > { %v4749_v11 = vmul.f32 %v18580_v50, %v4664_v38  ;;  %v4329_v16 = vpop.permute.xlu0 %4328  ;;  %v13746_v9 = vadd.f32 %v5447_v40, %v5335_v2  ;;  %v4425_v46 = vmul.f32 %v18583_v31, %v4319_v60  ;;  %v18588_v50 = vld [vmem:[#allocation183_spill] sm:$0xff]  ;;  %v4559_v21 = vmul.f32 %v18591_v33, %v18590_v26  ;;  %v18598_v26 = vld [vmem:[#allocation205_spill] sm:$0xff] }
 0x66c   : > { %v4430_v58 = vmul.f32 %v18586_v51, %v4329_v16  ;;  %v4554_v48 = vmul.f32 %v18589_v39, %v18588_v50  ;;  %v4938_v31 = vrot.slane %v13667_v37, 1  ;;  %v18595_v51 = vld [vmem:[#allocation147_spill] sm:$0xff]  ;;  %v4650_v50 = vrot.slane %v13675_v4, 7  ;;  %v18603_v4 = vld [vmem:[#allocation210_spill] sm:$0xff] }
 0x66d   : > { %v4765_v61 = vadd.f32 %v4749_v11, %v4573_v42  ;;  %v4441_v38 = vadd.f32 %v4425_v46, %v4281_v32  ;;  %v18593_v42 = vld [vmem:[#allocation107_spill] sm:$0xff]  ;;  %v18594_v32 = vld [vmem:[#allocation50_spill] sm:$0xff] }
 0x66e   : > { %v4446_v57 = vadd.f32 %v4430_v58, %v4286_v15  ;;  %v4896_v40 = vpop.permute.xlu1 %4895  ;;  %v4287_v11 = vmul.f32 %v18593_v42, %v18592_v54  ;;  %v18596_v58 = vld [vmem:[#allocation206_spill] sm:$0xff]  ;;  %v18597_v37 = vld [vmem:[#allocation23_spill] sm:$0xff] }
 0x66f   : > { %v4331_v2 = vpop.permute.xlu0 %4330  ;;  %v13758_v60 = vadd.f32 %v4845_v62, %v4765_v61  ;;  %v4570_v28 = vadd.f32 %v4554_v48, %v4441_v38  ;;  %v4937_v3 = vrot.slane %v4896_v40, 1  ;;  %v4560_v48 = vmul.f32 %v18597_v37, %v18596_v58  ;;  %v18599_v33 = vld [vmem:[#allocation31_spill] sm:$0xff]  ;;  %v18600_v40 = vld [vmem:[#allocation22_spill] sm:$0xff] }
 0x670   : > { %v13761_v16 = vadd.f32 %v4559_v21, %v4446_v57  ;;  %v4431_v46 = vmul.f32 %v18594_v32, %v4331_v2  ;;  %v4288_v21 = vmul.f32 %v18599_v33, %v18598_v26  ;;  %v18605_v37 = vld [vmem:[#allocation15_spill] sm:$0xff]  ;;  %v18606_v26 = vld [vmem:[#allocation142_spill] sm:$0xff] }
 0x671   : > { %v4955_v39 = vsel %vm4466_vm7, %v4937_v3, %v4938_v31  ;;  %v4956_v15 = vsel %vm4466_vm7, %v4936_v17, %v4937_v3  ;;  %v18601_v17 = vld [vmem:[#allocation180_spill] sm:$0xff]  ;;  %v18602_v3 = vld [vmem:[#allocation174_spill] sm:$0xff] }
 0x672   : > { %v5032_v61 = vmul.f32 %v18595_v51, %v4956_v15  ;;  %v4447_v62 = vadd.f32 %v4431_v46, %v4287_v11  ;;  %v4608_v56 = vpop.permute.xlu1 %4607  ;;  %v5160_v32 = vmul.f32 %v18602_v3, %v18601_v17  ;;  %v18604_v51 = vld [vmem:[#allocation125_spill] sm:$0xff]  ;;  %v18607_v33 = vld [vmem:[#allocation182_spill] sm:$0xff]  ;;  %v18609_v3 = vld [vmem:[#allocation87_spill] sm:$0xff] }
 0x673   : > { %v4333_v38 = vpop.permute.xlu0 %4332  ;;  %v4649_v57 = vrot.slane %v4608_v56, 7  ;;  %v4561_v58 = vmul.f32 %v18604_v51, %v18603_v4  ;;  %v18613_v4 = vld [vmem:[#allocation160_spill] sm:$0xff] }
 0x674   : > { %v4432_v2 = vmul.f32 %v18600_v40, %v4333_v38  ;;  %v13777_v54 = vadd.f32 %v4560_v48, %v4447_v62  ;;  %v5048_v42 = vadd.f32 %v5032_v61, %v4856_v34  ;;  %v18608_v40 = vld [vmem:[#allocation68_spill] sm:$0xff] }
 0x675   : > { %v4667_v11 = vsel %vm4177_vm6, %v4649_v57, %v4650_v50  ;;  %v4668_v46 = vsel %vm4177_vm6, %v4648_v27, %v4649_v57  ;;  %v4282_v17 = vmul.f32 %v18608_v40, %v18607_v33  ;;  %v18610_v27 = vld [vmem:[#allocation176_spill] sm:$0xff] }
 0x676   : > { %v4448_v15 = vadd.f32 %v4432_v2, %v4288_v21  ;;  %v4745_v56 = vmul.f32 %v18605_v37, %v4668_v46  ;;  %v4746_v38 = vmul.f32 %v18606_v26, %v4667_v11  ;;  %v4321_v62 = vpop.permute.xlu1 %4320  ;;  %v13791_v34 = vadd.f32 %v5160_v32, %v5048_v42  ;;  %v18611_v57 = vld [vmem:[#allocation144_spill] sm:$0xff]  ;;  %v18612_v2 = vld [vmem:[#allocation177_spill] sm:$0xff] }
 0x677   : > { %v13789_v48 = vpop.permute.xlu0 %4621  ;;  %v4426_v20 = vmul.f32 %v18609_v3, %v4321_v62  ;;  %v4841_v21 = vmul.f32 %v18611_v57, %v18610_v27  ;;  %v4842_v51 = vmul.f32 %v18613_v4, %v18612_v2  ;;  %v18614_v26 = vld [vmem:[#allocation189_spill] sm:$0xff]  ;;  %v18618_v27 = vld [vmem:[#allocation51_spill] sm:$0xff]  ;;  %v18620_v4 = vld [vmem:[#allocation184_spill] sm:$0xff] }
 0x678   : > { %v4577_v61 = vadd.f32 %v4561_v58, %v4448_v15  ;;  %v4761_v46 = vadd.f32 %v4745_v56, %v13716_v8  ;;  %v4762_v11 = vadd.f32 %v4746_v38, %v4570_v28  ;;  %v4555_v42 = vmul.f32 %v18615_v47, %v18614_v26  ;;  %v18616_v32 = vld [vmem:[#allocation149_spill] sm:$0xff]  ;;  %v18621_v8 = vld [vmem:[#allocation207_spill] sm:$0xff] }
 0x679   : > { %v4442_v37 = vadd.f32 %v4426_v20, %v4282_v17  ;;  %v5033_v15 = vmul.f32 %v18616_v32, %v4955_v39  ;;  %v4289_v57 = vmul.f32 %v18618_v27, %v18617_v6  ;;  %v5161_v28 = vmul.f32 %v18621_v8, %v18620_v4  ;;  %v18622_v39 = vld [vmem:[#allocation213_spill] sm:$0xff]  ;;  %v18629_v8 = vld [vmem:[#allocation98_spill] sm:$0xff] }
 0x67a   : > { %v4900_v58 = vpop.permute.xlu1 %4899  ;;  %v4858_v33 = vadd.f32 %v4842_v51, %v4762_v11  ;;  %v4857_v40 = vadd.f32 %v4841_v21, %v4761_v46  ;;  %v18623_v38 = vld [vmem:[#allocation5_spill] sm:$0xff]  ;;  %v4656_v6 = vrot.slane %v13789_v48, 7 }
 0x67b   : > { %v4335_v52 = vpop.permute.xlu0 %4334  ;;  %v4571_v62 = vadd.f32 %v4555_v42, %v4442_v37  ;;  %v4939_v3 = vrot.slane %v4900_v58, 1  ;;  %v4562_v17 = vmul.f32 %v18623_v38, %v18622_v39  ;;  %v18624_v51 = vld [vmem:[#allocation201_spill] sm:$0xff]  ;;  %v18625_v42 = vld [vmem:[#allocation190_spill] sm:$0xff]  ;;  %v4940_v58 = vrot.slane %v13714_v35, 1  ;;  %v18631_v39 = vld [vmem:[#allocation187_spill] sm:$0xff] }
 0x67c   : > { %v4433_v2 = vmul.f32 %v18619_v19, %v4335_v52  ;;  %v5049_v20 = vadd.f32 %v5033_v15, %v4857_v40  ;;  %v18627_v40 = vrot.slane %v13721_v49, 7  ;;  %v18632_v38 = vld [vmem:[#allocation105_spill] sm:$0xff] }
 0x67d   : > { %v4954_v47 = vsel %vm4466_vm7, %v4938_v31, %v4939_v3  ;;  %v18626_v31 = vld [vmem:[#allocation175_spill] sm:$0xff] }
 0x67e   : > { %v4449_v56 = vadd.f32 %v4433_v2, %v4289_v57  ;;  %v5034_v21 = vmul.f32 %v18624_v51, %v4954_v47  ;;  %v4612_v46 = vpop.permute.xlu1 %4611  ;;  %v13816_v37 = vadd.f32 %v5161_v28, %v5049_v20  ;;  %v5162_v32 = vmul.f32 %v18626_v31, %v18625_v42  ;;  %v18628_v2 = vld [vmem:[#allocation97_spill] sm:$0xff]  ;;  %v18633_v51 = vld [vmem:[#allocation188_spill] sm:$0xff] }
 0x67f   : > { %v13814_v11 = vpop.permute.xlu0 %4623  ;;  %v4651_v52 = vrot.slane %v4612_v46, 7  ;;  %v4953_v46 = vsel %vm4466_vm7, %v4939_v3, %v4940_v58 }
 0x680   : > { %v13819_v19 = vadd.f32 %v4562_v17, %v4449_v56  ;;  %v4657_v26 = vrot.slane %v13814_v11, 7  ;;  %v5050_v15 = vadd.f32 %v5034_v21, %v4858_v33  ;;  %v18630_v33 = vld [vmem:[#allocation16_spill] sm:$0xff]  ;;  %v4843_v17 = vmul.f32 %v18632_v38, %v18631_v39  ;;  %v18637_v39 = vld [vmem:[#allocation197_spill] sm:$0xff]  ;;  %v18638_v38 = vld [vmem:[#allocation115_spill] sm:$0xff] }
 0x681   : > { %v4665_v27 = vsel %vm4177_vm6, %v4651_v52, %v18627_v40  ;;  %v4666_v57 = vsel %vm4177_vm6, %v4650_v50, %v4651_v52  ;;  %v18634_v50 = vld [vmem:[#allocation106_spill] sm:$0xff]  ;;  %v4285_v3 = vmul.f32 %v18638_v38, %v18637_v39  ;;  %v18646_v38 = vrot.slane %v13728_v12, 7  ;;  %v18663_v11 = vld [vmem:[#allocation104_spill] sm:$0xff] }
 0x682   : > { %v4660_v48 = vsel %vm4177_vm6, %v4656_v6, %v4657_v26  ;;  %v4747_v4 = vmul.f32 %v18628_v2, %v4666_v57  ;;  %v4748_v28 = vmul.f32 %v18629_v8, %v4665_v27  ;;  %v5222_v47 = vpop.permute.xlu1 %5221  ;;  %v5178_v49 = vadd.f32 %v5162_v32, %v5050_v15  ;;  %v18635_v52 = vld [vmem:[#allocation146_spill] sm:$0xff]  ;;  %v18636_v57 = vld [vmem:[#allocation139_spill] sm:$0xff] }
 0x683   : > { %v4753_v20 = vmul.f32 %v18630_v33, %v4660_v48  ;;  %v13838_v56 = vpop.permute.xlu0 %5223  ;;  %v4844_v21 = vmul.f32 %v18634_v50, %v18633_v51  ;;  %v4849_v42 = vmul.f32 %v18635_v52, %v13444_v63  ;;  %v5035_v32 = vmul.f32 %v18636_v57, %v4953_v46  ;;  %v18639_v51 = vld [vmem:[#allocation94_spill] sm:$0xff]  ;;  %v18645_v57 = vld [vmem:[#allocation140_spill] sm:$0xff] }
 0x684   : > { %v4763_v31 = vadd.f32 %v4747_v4, %v4571_v62  ;;  %v4764_v40 = vadd.f32 %v4748_v28, %v13702_v1  ;;  %v18640_v63 = vld [vmem:[#allocation194_spill] sm:$0xff]  ;;  %v18641_v62 = vld [vmem:[#allocation48_spill] sm:$0xff]  ;;  %v5451_v39 = vmul.f32 %v18645_v57, %v13545_v25 }
 0x685   : > { %v4769_v27 = vadd.f32 %v4753_v20, %v4577_v61  ;;  %v5163_v4 = vmul.f32 %v18641_v62, %v18640_v63  ;;  %v18642_v28 = vld [vmem:[#allocation200_spill] sm:$0xff]  ;;  %v18643_v20 = vld [vmem:[#allocation102_spill] sm:$0xff]  ;;  %v18648_v62 = vld [vmem:[#allocation33_spill] sm:$0xff] }
 0x686   : > { %v4859_v15 = vadd.f32 %v4843_v17, %v4763_v31  ;;  %v4327_v48 = vpop.permute.xlu1 %4326  ;;  %v13854_v8 = vadd.f32 %v4844_v21, %v4764_v40  ;;  %v4558_v17 = vmul.f32 %v18643_v20, %v18642_v28  ;;  %v18644_v52 = vld [vmem:[#allocation186_spill] sm:$0xff]  ;;  %v18650_v20 = vld [vmem:[#allocation127_spill] sm:$0xff] }
 0x687   : > { %v13852_v2 = vpop.permute.xlu0 %5229  ;;  %v13856_v33 = vadd.f32 %v4849_v42, %v4769_v27  ;;  %v4429_v50 = vmul.f32 %v18639_v51, %v4327_v48  ;;  %v5323_v31 = vmul.f32 %v18644_v52, %v5222_v47  ;;  %v18652_v57 = vld [vmem:[#allocation110_spill] sm:$0xff] }
 0x688   : > { %v5051_v1 = vadd.f32 %v5035_v32, %v4859_v15 }
 0x689   : > { %v4445_v61 = vadd.f32 %v4429_v50, %v4285_v3  ;;  %v18647_v3 = vld [vmem:[#allocation114_spill] sm:$0xff] }
 0x68a   : > { %v5179_v46 = vadd.f32 %v5163_v4, %v5051_v1  ;;  %v4618_v21 = vpop.permute.xlu1 %4617  ;;  %v4846_v4 = vmul.f32 %v18648_v62, %v13397_v36  ;;  %v18653_v36 = vld [vmem:[#allocation42_spill] sm:$0xff] }
 0x68b   : > { %v13866_v40 = vpop.permute.xlu0 %4911  ;;  %v4574_v42 = vadd.f32 %v4558_v17, %v4445_v61  ;;  %v4654_v27 = vrot.slane %v4618_v21, 7  ;;  %v18649_v61 = vld [vmem:[#allocation11_spill] sm:$0xff]  ;;  %v18651_v21 = vld [vmem:[#allocation212_spill] sm:$0xff] }
 0x68c   : > { %v5339_v48 = vadd.f32 %v5323_v31, %v5179_v46 }
 0x68d   : > { %v4663_v32 = vsel %vm4177_vm6, %v18646_v38, %v4654_v27  ;;  %v18655_v38 = vld [vmem:[#allocation135_spill] sm:$0xff] }
 0x68e   : > { %v13874_v15 = vadd.f32 %v5451_v39, %v5339_v48  ;;  %v4750_v51 = vmul.f32 %v18647_v3, %v4663_v32  ;;  %v4620_v50 = vpop.permute.xlu1 %4619  ;;  %v4274_v39 = vmul.f32 %v18652_v57, %v18651_v21  ;;  %v18654_v48 = vld [vmem:[#allocation133_spill] sm:$0xff] }
 0x68f   : > { %v13877_v47 = vpop.permute.xlu0 %5231  ;;  %v4655_v63 = vrot.slane %v4620_v50, 7  ;;  %v18656_v50 = vld [vmem:[#allocation214_spill] sm:$0xff]  ;;  %v18661_v57 = vld [vmem:[#allocation17_spill] sm:$0xff] }
 0x690   : > { %v4766_v1 = vadd.f32 %v4750_v51, %v4574_v42 }
 0x691   : > { %v4661_v25 = vsel %vm4177_vm6, %v4655_v63, %v4656_v6  ;;  %v4662_v12 = vsel %vm4177_vm6, %v4654_v27, %v4655_v63  ;;  %v4847_v6 = vmul.f32 %v18654_v48, %v13419_v23  ;;  %v4848_v27 = vmul.f32 %v18655_v38, %v13427_v0  ;;  %v18657_v63 = vld [vmem:[#allocation122_spill] sm:$0xff] }
 0x692   : > { %v4751_v28 = vmul.f32 %v18649_v61, %v4662_v12  ;;  %v4752_v17 = vmul.f32 %v18650_v20, %v4661_v25  ;;  %v4337_v46 = vpop.permute.xlu1 %4336  ;;  %v13889_v31 = vadd.f32 %v4846_v4, %v4766_v1  ;;  %v4547_v62 = vmul.f32 %v18657_v63, %v18656_v50  ;;  %v18658_v23 = vld [vmem:[#allocation202_spill] sm:$0xff]  ;;  %v18666_v50 = vld [vmem:[#allocation120_spill] sm:$0xff] }
 0x693   : > { %v13887_v52 = vpop.permute.xlu0 %5233  ;;  %v4418_v42 = vmul.f32 %v18653_v36, %v4337_v46 }
 0x694   : > { %v4767_v32 = vadd.f32 %v4751_v28, %v13761_v16  ;;  %v4768_v3 = vadd.f32 %v4752_v17, %v13777_v54  ;;  %v18659_v16 = vrot.slane %v13585_v30, 7  ;;  %v18660_v17 = vld [vmem:[#allocation96_spill] sm:$0xff] }
 0x695   : > { %v4434_v51 = vadd.f32 %v4418_v42, %v4274_v39 }
 0x696   : > { %v4626_v4 = vpop.permute.xlu1 %4625  ;;  %v13902_v25 = vadd.f32 %v4847_v6, %v4767_v32  ;;  %v13904_v12 = vadd.f32 %v4848_v27, %v4768_v3  ;;  %v18662_v6 = vld [vmem:[#allocation158_spill] sm:$0xff] }
 0x697   : > { %v5220_v1 = vpop.permute.xlu0 %5219  ;;  %v4563_v61 = vadd.f32 %v4547_v62, %v4434_v51  ;;  %v4658_v20 = vrot.slane %v4626_v4, 7  ;;  %v4835_v38 = vmul.f32 %v18663_v11, %v18662_v6  ;;  %v18665_v3 = vld [vmem:[#allocation118_spill] sm:$0xff] }
 0x698   : > { %v5322_v46 = vmul.f32 %v18658_v23, %v5220_v1  ;;  %v5027_v51 = vmul.f32 %v18665_v3, %v13604_v5  ;;  %v18669_v23 = vld [vmem:[#allocation217_spill] sm:$0xff] }
 0x699   : > { %v4659_v0 = vsel %vm4177_vm6, %v4657_v26, %v4658_v20  ;;  %v4674_v54 = vsel %vm4177_vm6, %v4658_v20, %v18659_v16  ;;  %v18664_v26 = vld [vmem:[#allocation137_spill] sm:$0xff]  ;;  %v18667_v20 = vld [vmem:[#allocation159_spill] sm:$0xff] }
 0x69a   : > { %v5338_v28 = vadd.f32 %v5322_v46, %v5178_v49  ;;  %v4739_v21 = vmul.f32 %v18660_v17, %v4674_v54  ;;  %v4754_v39 = vmul.f32 %v18661_v57, %v4659_v0  ;;  %v4904_v36 = vpop.permute.xlu1 %4903  ;;  %v4850_v27 = vmul.f32 %v18664_v26, %v13451_v7  ;;  %v18668_v7 = vld [vmem:[#allocation63_spill] sm:$0xff]  ;;  %v18675_v57 = vld [vmem:[#allocation157_spill] sm:$0xff] }
 0x69b   : > { %v4941_v48 = vrot.slane %v4904_v36, 1  ;;  %v18672_v54 = vld [vmem:[#allocation219_spill] sm:$0xff]  ;;  %v18676_v36 = vld [vmem:[#allocation12_spill] sm:$0xff]  ;;  %v18677_v26 = vld [vmem:[#allocation41_spill] sm:$0xff] }
 0x69c   : > { %v13918_v42 = vadd.f32 %v13552_v43, %v5338_v28  ;;  %v4755_v30 = vadd.f32 %v4739_v21, %v4563_v61  ;;  %v4770_v32 = vadd.f32 %v4754_v39, %v13819_v19  ;;  %v5155_v61 = vmul.f32 %v18668_v7, %v18667_v20  ;;  %v18670_v19 = vld [vmem:[#allocation65_spill] sm:$0xff]  ;;  %v18673_v28 = vld [vmem:[#allocation155_spill] sm:$0xff]  ;;  %v18674_v21 = vld [vmem:[#allocation222_spill] sm:$0xff] }
 0x69d   : > { %v4952_v49 = vsel %vm4466_vm7, %v4940_v58, %v4941_v48  ;;  %v5164_v46 = vmul.f32 %v18670_v19, %v18669_v23  ;;  %v18671_v58 = vld [vmem:[#allocation8_spill] sm:$0xff]  ;;  %v5165_v17 = vmul.f32 %v18673_v28, %v18672_v54  ;;  %v5166_v39 = vmul.f32 %v18675_v57, %v18674_v21  ;;  %v18687_v7 = vld [vmem:[#allocation215_spill] sm:$0xff]  ;;  %v18691_v54 = vld [vmem:[#allocation230_spill] sm:$0xff] }
 0x69e   : > { %v4851_v43 = vadd.f32 %v4835_v38, %v4755_v30  ;;  %v5036_v63 = vmul.f32 %v18666_v50, %v4952_v49  ;;  %v4906_v62 = vpop.permute.xlu1 %4905  ;;  %v13932_v4 = vadd.f32 %v4850_v27, %v4770_v32  ;;  %v5315_v16 = vmul.f32 %v18671_v58, %v13618_v14  ;;  %v18678_v30 = vld [vmem:[#allocation224_spill] sm:$0xff]  ;;  %v18679_v32 = vld [vmem:[#allocation161_spill] sm:$0xff]  ;;  %v18680_v49 = vld [vmem:[#allocation227_spill] sm:$0xff] }
 0x69f   : > { %v4942_v1 = vrot.slane %v4906_v62, 1  ;;  %v5324_v6 = vmul.f32 %v18676_v36, %v13838_v56  ;;  %v13952_v14 = vmul.f32 %v18679_v32, %v18678_v30  ;;  %v18685_v62 = vld [vmem:[#allocation208_spill] sm:$0xff]  ;;  %v18693_v36 = vld [vmem:[#allocation229_spill] sm:$0xff] }
 0x6a0   : > { %v5043_v35 = vadd.f32 %v5027_v51, %v4851_v43  ;;  %v5052_v0 = vadd.f32 %v5036_v63, %v13854_v8  ;;  %v18682_v51 = vld [vmem:[#allocation228_spill] sm:$0xff]  ;;  %v18683_v43 = vld [vmem:[#allocation211_spill] sm:$0xff]  ;;  %v18684_v63 = vld [vmem:[#allocation233_spill] sm:$0xff] }
 0x6a1   : > { %v4951_v5 = vsel %vm4466_vm7, %v4941_v48, %v4942_v1  ;;  %v18681_v48 = vld [vmem:[#allocation165_spill] sm:$0xff]  ;;  %v13960_v50 = vmul.f32 %v18683_v43, %v18682_v51  ;;  %v5443_v56 = vmul.f32 %v18685_v62, %v18684_v63  ;;  %v18686_v20 = vld [vmem:[#allocation240_spill] sm:$0xff] }
 0x6a2   : > { %v5171_v11 = vadd.f32 %v5155_v61, %v5043_v35  ;;  %v5180_v38 = vadd.f32 %v5164_v46, %v5052_v0  ;;  %v5037_v27 = vmul.f32 %v18677_v26, %v4951_v5  ;;  %v5226_v8 = vpop.permute.xlu1 %5225  ;;  %v13956_v3 = vmul.f32 %v18681_v48, %v18680_v49  ;;  %v18688_v35 = vld [vmem:[#allocation237_spill] sm:$0xff]  ;;  %v18689_v0 = vld [vmem:[#allocation231_spill] sm:$0xff]  ;;  %v18692_v21 = vld [vmem:[#allocation156_spill] sm:$0xff] }
 0x6a3   : > { %v5452_v61 = vmul.f32 %v18687_v7, %v18686_v20  ;;  %v13969_v58 = vmul.f32 %v18689_v0, %v18688_v35  ;;  %v18690_v5 = vld [vmem:[#allocation239_spill] sm:$0xff]  ;;  %v5453_v57 = vmul.f32 %v18692_v21, %v13560_v59  ;;  %v18697_v48 = vld [vmem:[#allocation238_spill] sm:$0xff]  ;;  %v5522_v59 = vmul.f32 %v13656_v41, %v13656_v41  ;;  %v18698_v63 = vld [vmem:[#allocation196_spill] sm:$0xff] }
 0x6a4   : > { %v5331_v23 = vadd.f32 %v5315_v16, %v5171_v11  ;;  %v5340_v19 = vadd.f32 %v5324_v6, %v5180_v38  ;;  %v5053_v46 = vadd.f32 %v5037_v27, %v13758_v60  ;;  %v13973_v28 = vmul.f32 %v18691_v54, %v18690_v5  ;;  %v18694_v26 = vld [vmem:[#allocation223_spill] sm:$0xff]  ;;  %v18695_v6 = vld [vmem:[#allocation136_spill] sm:$0xff]  ;;  %v18696_v27 = vld [vmem:[#allocation234_spill] sm:$0xff] }
 0x6a5   : > { %v13979_v30 = vmul.f32 %v18694_v26, %v18693_v36  ;;  %v5325_v11 = vmul.f32 %v18695_v6, %v5226_v8  ;;  %v13988_v49 = vmul.f32 %v18696_v27, %v13567_v24  ;;  %v13992_v51 = vmul.f32 %v18697_v48, %v13571_v44  ;;  %v18699_v24 = vld [vmem:[#allocation225_spill] sm:$0xff]  ;;  %v18701_v27 = vld [vmem:[#allocation191_spill] sm:$0xff] }
 0x6a6   : > { %v13981_v32 = vadd.f32 %v5443_v56, %v5331_v23  ;;  %v13983_v16 = vadd.f32 %v5452_v61, %v5340_v19  ;;  %v5181_v60 = vadd.f32 %v5165_v17, %v5053_v46  ;;  %v4908_v38 = vpop.permute.xlu1 %4907  ;;  %v5454_v62 = vmul.f32 %v18698_v63, %v13583_v22  ;;  %v18700_v19 = vld [vmem:[#allocation130_spill] sm:$0xff] }
 0x6a7   : > { %v4943_v43 = vrot.slane %v4908_v38, 1  ;;  %v5524_v17 = vmul.f32 %v13686_v29, %v13686_v29  ;;  %v5523_v8 = vmul.f32 %v13688_v18, %v13688_v18  ;;  %v14004_v20 = vmul.f32 %v18699_v24, %v13579_v53 }
 0x6a8   : > { %v5341_v56 = vadd.f32 %v5325_v11, %v5181_v60  ;;  %v5525_v44 = vmul.f32 %v13746_v9, %v13746_v9  ;;  %v5521_v7 = vmul.f32 %v13981_v32, %v13981_v32  ;;  %v5480_v61 = vsel %vm2761_vm4, %v13656_v41, 0.0 }
 0x6a9   : > { %v4950_v22 = vsel %vm4466_vm7, %v4942_v1, %v4943_v43  ;;  %v5479_v53 = vsel %vm2761_vm4, %v13981_v32, 0.0  ;;  %v5538_v0 = vsel %vm2761_vm4, %v5522_v59, 0.0  ;;  %v5484_v5 = vsel %vm2761_vm4, %v13686_v29, 0.0 }
 0x6aa   : > { %v14014_v23 = vadd.f32 %v5453_v57, %v5341_v56  ;;  %v5038_v46 = vmul.f32 %v18700_v19, %v4950_v22  ;;  %v5228_v35 = vpop.permute.xlu1 %5227  ;;  %v5482_v54 = vsel %vm2761_vm4, %v13688_v18, 0.0  ;;  %v5529_v1 = vmul.f32 %v13874_v15, %v13874_v15 }
 0x6ab   : > { %v5542_v21 = vsel %vm2761_vm4, %v5524_v17, 0.0  ;;  %v5540_v57 = vsel %vm2761_vm4, %v5523_v8, 0.0  ;;  %v5530_v36 = vmul.f32 %v13983_v16, %v13983_v16  ;;  %v5486_v60 = vsel %vm2761_vm4, %v13746_v9, 0.0  ;;  %v18702_v17 = vld [vmem:[#allocation154_spill] sm:$0xff] }
 0x6ac   : > { %v5054_v26 = vadd.f32 %v5038_v46, %v13889_v31  ;;  %v14034_v6 = vsel %vm2761_vm4, %v5525_v44, 0.0  ;;  %v5481_v11 = vadd.f32 %v5480_v61, %v5479_v53  ;;  %v5537_v38 = vsel %vm2761_vm4, %v5521_v7, 0.0  ;;  %v18703_v44 = vld [vmem:[#allocation216_spill] sm:$0xff] }
 0x6ad   : > { %v5327_v48 = vmul.f32 %v18701_v27, %v13852_v2  ;;  %v4945_v59 = vrot.slane %v13866_v40, 1  ;;  %v5326_v8 = vmul.f32 %v18702_v17, %v5228_v35  ;;  %v5500_v31 = vsel %vm2761_vm4, %v13874_v15, 0.0 }
 0x6ae   : > { %v5182_v63 = vadd.f32 %v5166_v39, %v5054_v26  ;;  %v4910_v56 = vpop.permute.xlu1 %4909  ;;  %v5558_v24 = vsel %vm2761_vm4, %v5529_v1, 0.0  ;;  %v5328_v22 = vmul.f32 %v18703_v44, %v13877_v47  ;;  %v5501_v7 = vsel %vm2761_vm4, %v13983_v16, 0.0  ;;  %v18704_v26 = vld [vmem:[#allocation20_spill] sm:$0xff] }
 0x6af   : > { %v4944_v61 = vrot.slane %v4910_v56, 1  ;;  %v5559_v2 = vsel %vm2761_vm4, %v5530_v36, 0.0  ;;  %v5539_v40 = vadd.f32 %v5538_v0, %v5537_v38  ;;  %v5503_v39 = vsel %vm2761_vm4, %v14014_v23, 0.0  ;;  %v18705_v36 = vld [vmem:[#allocation148_spill] sm:$0xff]  ;;  %v18706_v38 = vld [vmem:[#allocation198_spill] sm:$0xff] }
 0x6b0   : > { %v5342_v19 = vadd.f32 %v5326_v8, %v5182_v63  ;;  %v5483_v53 = vadd.f32 %v5482_v54, %v5481_v11  ;;  %v5531_v47 = vmul.f32 %v14014_v23, %v14014_v23  ;;  %v5329_v17 = vmul.f32 %v18706_v38, %v13887_v52 }
 0x6b1   : > { %v4948_v46 = vsel %vm4466_vm7, %v4944_v61, %v4945_v59  ;;  %v4949_v35 = vsel %vm4466_vm7, %v4943_v43, %v4944_v61  ;;  %v14065_v8 = vmul.f32 %v13918_v42, %v13918_v42  ;;  %v5502_v56 = vadd.f32 %v5501_v7, %v5500_v31 }
 0x6b2   : > { %v14057_v1 = vadd.f32 %v5454_v62, %v5342_v19  ;;  %v5039_v27 = vmul.f32 %v18704_v26, %v4949_v35  ;;  %v5040_v63 = vmul.f32 %v18705_v36, %v4948_v46  ;;  %v4914_v0 = vpop.permute.xlu1 %4913  ;;  %v5560_v54 = vadd.f32 %v5559_v2, %v5558_v24 }
 0x6b3   : > { %v4946_v43 = vrot.slane %v4914_v0, 1  ;;  %v5541_v44 = vadd.f32 %v5540_v57, %v5539_v40  ;;  %v5504_v61 = vadd.f32 %v5503_v39, %v5502_v56  ;;  %v18707_v46 = vrot.slane %v13556_v13, 1  ;;  %v18709_v13 = vld [vmem:[#allocation151_spill] sm:$0xff] }
 0x6b4   : > { %v5055_v11 = vadd.f32 %v5039_v27, %v13902_v25  ;;  %v5056_v62 = vadd.f32 %v5040_v63, %v13904_v12  ;;  %v5485_v35 = vadd.f32 %v5484_v5, %v5483_v53  ;;  %v5561_v26 = vsel %vm2761_vm4, %v5531_v47, 0.0  ;;  %v18708_v25 = vld [vmem:[#allocation164_spill] sm:$0xff] }
 0x6b5   : > { %v4947_v19 = vsel %vm4466_vm7, %v4945_v59, %v4946_v43  ;;  %v4962_v52 = vsel %vm4466_vm7, %v4946_v43, %v18707_v46  ;;  %v5505_v57 = vsel %vm2761_vm4, %v14057_v1, 0.0  ;;  %v5532_v59 = vmul.f32 %v14057_v1, %v14057_v1  ;;  %v18712_v46 = vld [vmem:[#allocation236_spill] sm:$0xff] }
 0x6b6   : > { %v5183_v31 = vadd.f32 %v13952_v14, %v5055_v11  ;;  %v5184_v24 = vadd.f32 %v13956_v3, %v5056_v62  ;;  %v5041_v7 = vmul.f32 %v18708_v25, %v4947_v19  ;;  %v5216_v12 = vpop.permute.xlu1 %5215  ;;  %v5042_v2 = vmul.f32 %v18709_v13, %v4962_v52 }
 0x6b7   : > { %v5320_v40 = vmul.f32 %v18710_v55, %v5216_v12  ;;  %v5543_v14 = vadd.f32 %v5542_v21, %v5541_v44  ;;  %v5562_v47 = vadd.f32 %v5561_v26, %v5560_v54  ;;  %v5487_v27 = vadd.f32 %v5486_v60, %v5485_v35  ;;  %v18711_v21 = vld [vmem:[#allocation226_spill] sm:$0xff]  ;;  %v18713_v55 = vld [vmem:[#allocation235_spill] sm:$0xff] }
 0x6b8   : > { %v5343_v5 = vadd.f32 %v5327_v48, %v5183_v31  ;;  %v5344_v39 = vadd.f32 %v5328_v22, %v5184_v24  ;;  %v5057_v53 = vadd.f32 %v5041_v7, %v13856_v33  ;;  %v5058_v36 = vadd.f32 %v5042_v2, %v13932_v4 }
 0x6b9   : > { %v5336_v3 = vadd.f32 %v5320_v40, %v13791_v34  ;;  %v5506_v63 = vadd.f32 %v5505_v57, %v5504_v61  ;;  %v5563_v22 = vsel %vm2761_vm4, %v5532_v59, 0.0  ;;  %v5545_v43 = vadd.f32 %v14034_v6, %v5543_v14 }
 0x6ba   : > { %v14089_v0 = vadd.f32 %v14004_v20, %v5343_v5  ;;  %v14092_v38 = vadd.f32 %v13988_v49, %v5344_v39  ;;  %v5185_v56 = vadd.f32 %v13960_v50, %v5057_v53  ;;  %v5218_v48 = vpop.permute.xlu1 %5217  ;;  %v5186_v60 = vadd.f32 %v13979_v30, %v5058_v36 }
 0x6bb   : > { %v14097_v33 = vadd.f32 %v13969_v58, %v5336_v3  ;;  %v5321_v34 = vmul.f32 %v18711_v21, %v5218_v48  ;;  %v5564_v62 = vadd.f32 %v5563_v22, %v5562_v47  ;;  %v5492_v12 = vsel %vm2761_vm4, %v13918_v42, 0.0 }
 0x6bc   : > { %v5533_v4 = vmul.f32 %v14089_v0, %v14089_v0  ;;  %v5345_v20 = vadd.f32 %v5329_v17, %v5185_v56  ;;  %v5507_v49 = vsel %vm2761_vm4, %v14089_v0, 0.0  ;;  %v5534_v30 = vmul.f32 %v14092_v38, %v14092_v38 }
 0x6bd   : > { %v5488_v50 = vsel %vm2761_vm4, %v14097_v33, 0.0  ;;  %v5526_v58 = vmul.f32 %v14097_v33, %v14097_v33  ;;  %v5337_v54 = vadd.f32 %v5321_v34, %v13816_v37  ;;  %v5508_v11 = vadd.f32 %v5507_v49, %v5506_v63 }
 0x6be   : > { %v14114_v17 = vadd.f32 %v13992_v51, %v5345_v20  ;;  %v5204_v6 = vpop.permute.xlu1 %5203  ;;  %v5565_v44 = vsel %vm2761_vm4, %v5533_v4, 0.0  ;;  %v5509_v37 = vsel %vm2761_vm4, %v14092_v38, 0.0  ;;  %v5489_v35 = vadd.f32 %v5488_v50, %v5487_v27 }
 0x6bf   : > { %v5546_v61 = vsel %vm2761_vm4, %v5526_v58, 0.0  ;;  %v14119_v19 = vadd.f32 %v13973_v28, %v5337_v54  ;;  %v5330_v52 = vmul.f32 %v18712_v46, %v5204_v6  ;;  %v5510_v26 = vadd.f32 %v5509_v37, %v5508_v11 }
 0x6c0   : > { %v5535_v31 = vmul.f32 %v14114_v17, %v14114_v17  ;;  %v5566_v51 = vadd.f32 %v5565_v44, %v5564_v62  ;;  %v5511_v28 = vsel %vm2761_vm4, %v14114_v17, 0.0  ;;  %v5547_v57 = vadd.f32 %v5546_v61, %v5545_v43 }
 0x6c1   : > { %v5490_v24 = vsel %vm2761_vm4, %v14119_v19, 0.0  ;;  %v5527_v25 = vmul.f32 %v14119_v19, %v14119_v19  ;;  %v5346_v7 = vadd.f32 %v5330_v52, %v5186_v60  ;;  %v5567_v13 = vsel %vm2761_vm4, %v5534_v30, 0.0 }
 0x6c2   : > { %v5491_v59 = vadd.f32 %v5490_v24, %v5489_v35  ;;  %v5568_v5 = vadd.f32 %v5567_v13, %v5566_v51  ;;  %v5569_v39 = vsel %vm2761_vm4, %v5535_v31, 0.0  ;;  %v5512_v47 = vadd.f32 %v5511_v28, %v5510_v26  ;;  %v18717_v13 = vld [vmem:[#allocation67_spill] sm:$0xff] }
 0x6c3   : > { %v5548_v2 = vsel %vm2761_vm4, %v5527_v25, 0.0  ;;  %v14137_v40 = vadd.f32 %v18713_v55, %v5346_v7  ;;  %v5550_v3 = vsel %vm2761_vm4, %v14065_v8, 0.0 }
 0x6c4   : > { %v5493_v53 = vadd.f32 %v5492_v12, %v5491_v59  ;;  %v5549_v14 = vadd.f32 %v5548_v2, %v5547_v57  ;;  %v5570_v22 = vadd.f32 %v5569_v39, %v5568_v5  ;;  %v18714_v12 = vld [vmem:[#allocation61_spill] sm:$0xff]  ;;  %v18715_v57 = vmov 0.0  }
 0x6c5   : > { %v5513_v27 = vsel %vm2761_vm4, %v14137_v40, 0.0  ;;  %v5536_v36 = vmul.f32 %v14137_v40, %v14137_v40  ;;  %v18716_v59 = vmov 0.0|0.0  }
 0x6c6   : > { %v5494_v63 = vrot.slane %v5493_v53, 4  ;;  %v5551_v56 = vadd.f32 %v5550_v3, %v5549_v14  ;;  %v5514_v48 = vadd.f32 %v5513_v27, %v5512_v47 }
 0x6c7   : > { %v5571_v21 = vsel %vm2761_vm4, %v5536_v36, 0.0 }
 0x6c8   : > { %v5495_v34 = vadd.f32 %v5494_v63, %v5493_v53  ;;  %v5552_v60 = vrot.slane %v5551_v56, 4  ;;  %v5515_v4 = vrot.slane %v5514_v48, 4  ;;  %v5572_v20 = vadd.f32 %v5571_v21, %v5570_v22  ;;  %v10796_v22 = vld [vmem:[%s787_s7 + $0x14] ss:$8 sps:$4 sm:$0xff]   ;;  %v10794_v21 = vld [vmem:[%s787_s7 + $0x10] ss:$8 sps:$4 sm:$0xff]  }
 0x6c9   : > { %v18718_v63 = vmov 0  }
 0x6ca   : > { %v5496_v43 = vrot.slane %v5495_v34, 2  ;;  %v5553_v49 = vadd.f32 %v5552_v60, %v5551_v56  ;;  %v5516_v50 = vadd.f32 %v5515_v4, %v5514_v48  ;;  %v5573_v8 = vrot.slane %v5572_v20, 4  ;;  %v10791_v56 = vld [vmem:[%s787_s7] ss:$8 sps:$4 sm:$0xff]   ;;  %v10793_v48 = vld [vmem:[%s787_s7 + $0x4] ss:$8 sps:$4 sm:$0xff]  }
 0x6cb   : > { %v10797_v60 = vld [vmem:[%s787_s7 + $0x20] ss:$8 sps:$4 sm:$0xff]   ;;  %v10802_v4 = vld [vmem:[%s787_s7 + $0x34] ss:$8 sps:$4 sm:$0xff]  }
 0x6cc   : > { %v5497_v58 = vadd.f32 %v5496_v43, %v5495_v34  ;;  %v5554_v54 = vrot.slane %v5553_v49, 2  ;;  %v5517_v11 = vrot.slane %v5516_v50, 2  ;;  %v5574_v62 = vadd.f32 %v5573_v8, %v5572_v20  ;;  %v10799_v34 = vld [vmem:[%s787_s7 + $0x24] ss:$8 sps:$4 sm:$0xff]   ;;  %v10800_v20 = vld [vmem:[%s787_s7 + $0x30] ss:$8 sps:$4 sm:$0xff]  }
 0x6ce   : > { %v5518_v30 = vadd.f32 %v5517_v11, %v5516_v50  ;;  %v5575_v6 = vrot.slane %v5574_v62, 2  ;;  %v5555_v44 = vadd.f32 %v5554_v54, %v5553_v49  ;;  %v5498_v52 = vrot.slane %v5497_v58, 1  ;;  %v18720_v49 = vld [vmem:[#allocation71_spill] sm:$0xff]  ;;  %v18721_v11 = vld [vmem:[#allocation72_spill] sm:$0xff] }
 0x6d0   : > { %v5519_v61 = vrot.slane %v5518_v30, 1  ;;  %v5576_v46 = vadd.f32 %v5575_v6, %v5574_v62  ;;  %v5556_v37 = vrot.slane %v5555_v44, 1  ;;  %v5499_v31 = vadd.f32 %v5498_v52, %v5497_v58 }
 0x6d2   : > { %v5520_v35 = vadd.f32 %v5519_v61, %v5518_v30  ;;  %v5577_v26 = vrot.slane %v5576_v46, 1  ;;  %v5557_v51 = vadd.f32 %v5556_v37, %v5555_v44  ;;  %v14176_v44 = vld [vmem:[%s5475_s0] ss:$0 sm:$0xff]  ;;  %s6076_s0 = scalar_lea.vmem %s17745_s9, %s12233_s25 }
 0x6d4   : > { %v5578_v24 = vadd.f32 %v5577_v26, %v5576_v46  ;;  %v5581_v25 = vsel %vm2981_vm0, %v5520_v35, %v5499_v31  ;;  %v14181_v35 = vld [vmem:[%s5477_s10] ss:$0 sm:$0xff] }
 0x6d6   : > { %v5585_v7 = vsel %vm2990_vm1, %v5578_v24, %v5557_v51 }
 0x6d7   : > { %v5587_v28 = vsel %vm2995_vm2, %v5581_v25, %v5585_v7 }
 0x6d8   : > { %10144 = vmatmul.mubr.msk.f32.vlgmr.msra.gmra.mrb[34].mxu0 %vm2761_vm4, %v5587_v28 }
 0x6d9   : > { %10229 = vmatpush3.bf16.msra.mxu0 %v18714_v12  ;;  %10154 = vmatprep.mubr.msk.f32.mxu0 %vm11085_vm3, %v18715_v57 }
 0x6da   : > { %10230 = vmatprep.subr.bf16.mxu0 %v18716_v59 }
 0x6dd   : > { %10232 = vmatpush3.bf16.msra.mxu0 %v18717_v13 }
 0x6de   : > { %5961 = vmatprep.subr.bf16.mxu0 %v10793_v48 }
 0x7ab   : > { %v5657_v2 = vpop.f32.mrb[34].mxu0 }
 0x7ac   : > { %v5661_v55 = vmul.f32 0.0078125, %v5657_v2  ;;  %v10145_v5 = vpop.f32.mrb[35].mxu0 }
 0x7ae   : > { %v5662_v39 = vmul.f32 %v5661_v55, %v5661_v55 }
 0x7b0   : > { %v5664_v53 = vrot.slane %v5662_v39, 6 }
 0x7b2   : > { %v5666_v14 = vsub.f32 %v5661_v55, %v5664_v53 }
 0x7b4   : > { %v5667_v47 = vmax.f32 %v5666_v14, 0.0 }
 0x7b6   : > { %v5668_v3 = vadd.f32 1e-05, %v5667_v47 }
 0x7b8   : > { %10807 = vrsqrt.f32 %v5668_v3 }
 0x7c2   : > { %v10808_v27 = vpop.eup %10807 }
 0x7c3   : > { %v5670_v36 = vsel %vm2995_vm2, %v5661_v55, %v10808_v27 }
 0x7c4   : > { %10155 = vmatmul.mubr.msk.f32.vlgmr.msra.gmra.mrb[56].mxu0 %vm3078_vm5, %v5670_v36 }
 0x7c5   : > { %5993 = vmatprep.mubr.bf16.mxu0 %v18718_v63  ;;  %5962 = vmatpush1.bf16.msra.mxu0 %v10791_v56 }
 0x7c6   : > { %5963 = vmatprep.subr.bf16.mxu0 %v10796_v22 }
 0x7c9   : > { %5964 = vmatpush1.bf16.msra.mxu0 %v10794_v21 }
 0x7ca   : > { %5965 = vmatprep.subr.bf16.mxu0 %v10799_v34 }
 0x7cd   : > { %5966 = vmatpush1.bf16.msra.mxu0 %v10797_v60 }
 0x7ce   : > { %5967 = vmatprep.subr.bf16.mxu0 %v10802_v4 }
 0x7d1   : > { %5968 = vmatpush1.bf16.msra.mxu0 %v10800_v20 }
 0x897   : > { %v5740_v43 = vpop.f32.mrb[56].mxu0 }
 0x898   : > { %v5751_v50 = vrot.slane %v5740_v43, %v18720_v49  ;;  %v10156_v8 = vpop.f32.mrb[57].mxu0 }
 0x89a   : > { %v5759_v58 = vrot.slane %v5751_v50, %v18720_v49  ;;  %v5752_v13 = vcombine.high %v5751_v50, %v5751_v50 }
 0x89c   : > { %v5767_v54 = vcombine.high %v5759_v58, %v5759_v58  ;;  %v5772_v62 = vrot.slane %v5759_v58, %v18721_v11 }
 0x89e   : > { %v5798_v30 = vrot.slane %v5767_v54, %v18721_v11  ;;  %v5779_v6 = vsub.f32 %v13981_v32, %v5772_v62  ;;  %v5780_v61 = vsub.f32 %v13656_v41, %v5772_v62  ;;  %v5781_v46 = vsub.f32 %v13688_v18, %v5772_v62 }
 0x89f   : > { %v5782_v52 = vsub.f32 %v13686_v29, %v5772_v62  ;;  %v5783_v7 = vsub.f32 %v13746_v9, %v5772_v62  ;;  %v5784_v28 = vsub.f32 %v14097_v33, %v5772_v62  ;;  %v5766_v9 = vrot.slane %v5752_v13, %v18720_v49 }
 0x8a0   : > { %v5805_v37 = vmul.f32 %v5798_v30, %v5779_v6  ;;  %v5806_v26 = vmul.f32 %v5798_v30, %v5780_v61  ;;  %v5807_v31 = vmul.f32 %v5798_v30, %v5781_v46  ;;  %v5785_v14 = vsub.f32 %v14119_v19, %v5772_v62 }
 0x8a1   : > { %v5808_v51 = vmul.f32 %v5798_v30, %v5782_v52  ;;  %v5809_v2 = vmul.f32 %v5798_v30, %v5783_v7  ;;  %v5810_v53 = vmul.f32 %v5798_v30, %v5784_v28  ;;  %v5786_v33 = vsub.f32 %v13918_v42, %v5772_v62 }
 0x8a2   : > { %v5827_v24 = vmul.f32 %v14176_v44, %v5805_v37  ;;  %v5828_v25 = vmul.f32 %v14176_v44, %v5806_v26  ;;  %v5829_v18 = vmul.f32 %v14176_v44, %v5807_v31  ;;  %v5768_v56 = vcombine.high %v5766_v9, %v5766_v9 }
 0x8a3   : > { %v5830_v29 = vmul.f32 %v14176_v44, %v5808_v51  ;;  %v5831_v27 = vmul.f32 %v14176_v44, %v5809_v2  ;;  %v5832_v36 = vmul.f32 %v14176_v44, %v5810_v53  ;;  %v5811_v48 = vmul.f32 %v5798_v30, %v5785_v14 }
 0x8a4   : > { %v5849_v32 = vadd.f32 %v14181_v35, %v5827_v24  ;;  %v5850_v41 = vadd.f32 %v14181_v35, %v5828_v25  ;;  %v5851_v5 = vadd.f32 %v14181_v35, %v5829_v18  ;;  %v5812_v22 = vmul.f32 %v5798_v30, %v5786_v33 }
 0x8a5   : > { %v5852_v39 = vadd.f32 %v14181_v35, %v5830_v29  ;;  %v5776_v21 = vrot.slane %v5766_v9, %v18721_v11  ;;  %v5853_v60 = vadd.f32 %v14181_v35, %v5831_v27  ;;  %v5854_v4 = vadd.f32 %v14181_v35, %v5832_v36 }
 0x8a6   : > { %v5865_v12 = vmax.f32 %v5849_v32, 0.0  ;;  %v5866_v59 = vmax.f32 %v5850_v41, 0.0  ;;  %v5867_v47 = vmax.f32 %v5851_v5, 0.0  ;;  %v5802_v42 = vrot.slane %v5768_v56, %v18721_v11 }
 0x8a7   : > { %v5868_v3 = vmax.f32 %v5852_v39, 0.0  ;;  %v5833_v19 = vmul.f32 %v14176_v44, %v5811_v48  ;;  %v5834_v20 = vmul.f32 %v14176_v44, %v5812_v22  ;;  %v5869_v43 = vmax.f32 %v5853_v60, 0.0 }
 0x8a8   : > { %v5881_v55 = vpack.c.bf16 %v5866_v59, %v5865_v12  ;;  %v5870_v50 = vmax.f32 %v5854_v4, 0.0  ;;  %v5787_v8 = vsub.f32 %v13874_v15, %v5776_v21  ;;  %v5788_v58 = vsub.f32 %v13983_v16, %v5776_v21 }
 0x8a9   : > { %v5882_v34 = vpack.c.bf16 %v5868_v3, %v5867_v47  ;;  %v5855_v54 = vadd.f32 %v14181_v35, %v5833_v19  ;;  %v5856_v30 = vadd.f32 %v14181_v35, %v5834_v20  ;;  %v5789_v52 = vsub.f32 %v14014_v23, %v5776_v21 }
 0x8aa   : > { %9673 = vmatmul.mubr.msk.bf16.vlgmr.msra.gmra.mrb[60].mxu0 %vm2761_vm4, %v5881_v55  ;;  %v5883_v62 = vpack.c.bf16 %v5870_v50, %v5869_v43  ;;  %v5813_v6 = vmul.f32 %v5802_v42, %v5787_v8  ;;  %v5814_v61 = vmul.f32 %v5802_v42, %v5788_v58  ;;  %v5790_v16 = vsub.f32 %v14057_v1, %v5776_v21 }
 0x8ab   : > { %6003 = vmatprep.mubr.bf16.mxu0 %v18718_v63  ;;  %v5871_v46 = vmax.f32 %v5855_v54, 0.0  ;;  %v5872_v37 = vmax.f32 %v5856_v30, 0.0  ;;  %v5815_v31 = vmul.f32 %v5802_v42, %v5789_v52  ;;  %v5791_v23 = vsub.f32 %v14089_v0, %v5776_v21 }
 0x8ac   : > { %v5835_v26 = vmul.f32 %v14176_v44, %v5813_v6  ;;  %v5836_v15 = vmul.f32 %v14176_v44, %v5814_v61  ;;  %v5816_v32 = vmul.f32 %v5802_v42, %v5790_v16  ;;  %v5792_v7 = vsub.f32 %v14092_v38, %v5776_v21 }
 0x8ad   : > { %v5884_v51 = vpack.c.bf16 %v5872_v37, %v5871_v46  ;;  %v5837_v29 = vmul.f32 %v14176_v44, %v5815_v31  ;;  %v5817_v28 = vmul.f32 %v5802_v42, %v5791_v23  ;;  %v5793_v0 = vsub.f32 %v14114_v17, %v5776_v21 }
 0x8ae   : > { %v5857_v24 = vadd.f32 %v14181_v35, %v5835_v26  ;;  %v5858_v25 = vadd.f32 %v14181_v35, %v5836_v15  ;;  %v5838_v1 = vmul.f32 %v14176_v44, %v5816_v32  ;;  %v5818_v2 = vmul.f32 %v5802_v42, %v5792_v7 }
 0x8af   : > { %v5859_v59 = vadd.f32 %v14181_v35, %v5837_v29  ;;  %v5794_v38 = vsub.f32 %v14137_v40, %v5776_v21  ;;  %v5839_v39 = vmul.f32 %v14176_v44, %v5817_v28  ;;  %v5819_v9 = vmul.f32 %v5802_v42, %v5793_v0 }
 0x8b0   : > { %v5873_v41 = vmax.f32 %v5857_v24, 0.0  ;;  %v5874_v18 = vmax.f32 %v5858_v25, 0.0  ;;  %v5860_v13 = vadd.f32 %v14181_v35, %v5838_v1  ;;  %v5840_v53 = vmul.f32 %v14176_v44, %v5818_v2 }
 0x8b1   : > { %v5875_v55 = vmax.f32 %v5859_v59, 0.0  ;;  %v5861_v33 = vadd.f32 %v14181_v35, %v5839_v39  ;;  %v5820_v3 = vmul.f32 %v5802_v42, %v5794_v38  ;;  %v5841_v40 = vmul.f32 %v14176_v44, %v5819_v9 }
 0x8b2   : > { %9674 = vmatmul.mubr.msk.bf16.gmra.mrb[64].mxu0 %vm2761_vm4, %v5882_v34  ;;  %v5885_v12 = vpack.c.bf16 %v5874_v18, %v5873_v41  ;;  %v5876_v5 = vmax.f32 %v5860_v13, 0.0  ;;  %v5862_v47 = vadd.f32 %v14181_v35, %v5840_v53 }
 0x8b3   : > { %6013 = vmatprep.mubr.bf16.mxu0 %v18718_v63  ;;  %v5877_v17 = vmax.f32 %v5861_v33, 0.0  ;;  %v5842_v36 = vmul.f32 %v14176_v44, %v5820_v3  ;;  %v5863_v48 = vadd.f32 %v14181_v35, %v5841_v40 }
 0x8b4   : > { %v5886_v14 = vpack.c.bf16 %v5876_v5, %v5875_v55  ;;  %v5878_v27 = vmax.f32 %v5862_v47, 0.0 }
 0x8b5   : > { %v5864_v22 = vadd.f32 %v14181_v35, %v5842_v36  ;;  %v5879_v21 = vmax.f32 %v5863_v48, 0.0 }
 0x8b6   : > { %v5887_v56 = vpack.c.bf16 %v5878_v27, %v5877_v17 }
 0x8b7   : > { %v5880_v34 = vmax.f32 %v5864_v22, 0.0 }
 0x8b9   : > { %v5888_v60 = vpack.c.bf16 %v5880_v34, %v5879_v21 }
 0x8ba   : > { %9675 = vmatmul.mubr.msk.bf16.gmra.mrb[68].mxu0 %vm2761_vm4, %v5883_v62 }
 0x8bb   : > { %6023 = vmatprep.mubr.bf16.mxu0 %v18718_v63 }
 0x8c2   : > { %9676 = vmatmul.mubr.msk.bf16.gmra.mrb[72].mxu0 %vm2761_vm4, %v5884_v51 }
 0x8c3   : > { %6033 = vmatprep.mubr.bf16.mxu0 %v18718_v63 }
 0x8ca   : > { %9677 = vmatmul.mubr.msk.bf16.gmra.mrb[76].mxu0 %vm2761_vm4, %v5885_v12 }
 0x8cb   : > { %6043 = vmatprep.mubr.bf16.mxu0 %v18718_v63 }
 0x8d2   : > { %9678 = vmatmul.mubr.msk.bf16.gmra.mrb[80].mxu0 %vm2761_vm4, %v5886_v14 }
 0x8d3   : > { %6053 = vmatprep.mubr.bf16.mxu0 %v18718_v63 }
 0x8da   : > { %9679 = vmatmul.mubr.msk.bf16.gmra.mrb[84].mxu0 %vm2761_vm4, %v5887_v56 }
 0x8db   : > { %6063 = vmatprep.mubr.bf16.mxu0 %v18718_v63 }
 0x8e2   : > { %9680 = vmatmul.mubr.msk.bf16.gmra.mrb[88].mxu0 %vm2761_vm4, %v5888_v60 }
 0x97d   : > { %v14245_v4 = vpop.f32.mrb[60].mxu0 }
 0x97e   : > { %v14247_v42 = vpop.f32.mrb[61].mxu0  ;;  %v6130_v44 = vmul.f32 %v14245_v4, %v14245_v4 }
 0x97f   : > { %v14249_v19 = vpop.f32.mrb[62].mxu0  ;;  %v6131_v43 = vmul.f32 %v14247_v42, %v14247_v42 }
 0x980   : > { %v6078_v35 = vadd.f32 %v14249_v19, %v14245_v4  ;;  %v6132_v63 = vmul.f32 %v14249_v19, %v14249_v19  ;;  %v14257_v20 = vpop.f32.mrb[63].mxu0 }
 0x981   : > { %v6091_v50 = vadd.f32 %v14257_v20, %v14247_v42  ;;  %v6133_v8 = vmul.f32 %v14257_v20, %v14257_v20 }
 0x982   : > { %v6162_v58 = vadd.f32 %v6132_v63, %v6130_v44 }
 0x983   : > { %v6175_v54 = vadd.f32 %v6133_v8, %v6131_v43 }
 0x985   : > { %v14265_v62 = vpop.f32.mrb[64].mxu0 }
 0x986   : > { %v6079_v30 = vadd.f32 %v6078_v35, %v14265_v62  ;;  %v6134_v6 = vmul.f32 %v14265_v62, %v14265_v62  ;;  %v14270_v61 = vpop.f32.mrb[65].mxu0 }
 0x987   : > { %v6092_v46 = vadd.f32 %v6091_v50, %v14270_v61  ;;  %v6135_v52 = vmul.f32 %v14270_v61, %v14270_v61  ;;  %v14275_v37 = vpop.f32.mrb[66].mxu0 }
 0x988   : > { %v6163_v26 = vadd.f32 %v6162_v58, %v6134_v6  ;;  %v6080_v15 = vadd.f32 %v6079_v30, %v14275_v37  ;;  %v6136_v16 = vmul.f32 %v14275_v37, %v14275_v37  ;;  %v14280_v31 = vpop.f32.mrb[67].mxu0 }
 0x989   : > { %v6176_v51 = vadd.f32 %v6175_v54, %v6135_v52  ;;  %v6093_v24 = vadd.f32 %v6092_v46, %v14280_v31  ;;  %v6137_v25 = vmul.f32 %v14280_v31, %v14280_v31 }
 0x98a   : > { %v6164_v32 = vadd.f32 %v6163_v26, %v6136_v16 }
 0x98b   : > { %v6177_v23 = vadd.f32 %v6176_v51, %v6137_v25 }
 0x98d   : > { %v14285_v7 = vpop.f32.mrb[68].mxu0 }
 0x98e   : > { %v6081_v41 = vadd.f32 %v6080_v15, %v14285_v7  ;;  %v6138_v18 = vmul.f32 %v14285_v7, %v14285_v7  ;;  %v14290_v29 = vpop.f32.mrb[69].mxu0 }
 0x98f   : > { %v6094_v1 = vadd.f32 %v6093_v24, %v14290_v29  ;;  %v6139_v28 = vmul.f32 %v14290_v29, %v14290_v29  ;;  %v14295_v12 = vpop.f32.mrb[70].mxu0 }
 0x990   : > { %v6165_v59 = vadd.f32 %v6164_v32, %v6138_v18  ;;  %v6082_v13 = vadd.f32 %v6081_v41, %v14295_v12  ;;  %v6140_v2 = vmul.f32 %v14295_v12, %v14295_v12  ;;  %v14300_v0 = vpop.f32.mrb[71].mxu0 }
 0x991   : > { %v6178_v38 = vadd.f32 %v6177_v23, %v6139_v28  ;;  %v6095_v55 = vadd.f32 %v6094_v1, %v14300_v0  ;;  %v6141_v5 = vmul.f32 %v14300_v0, %v14300_v0 }
 0x992   : > { %v6166_v39 = vadd.f32 %v6165_v59, %v6140_v2 }
 0x993   : > { %v6179_v53 = vadd.f32 %v6178_v38, %v6141_v5 }
 0x995   : > { %v14305_v9 = vpop.f32.mrb[72].mxu0 }
 0x996   : > { %v6083_v14 = vadd.f32 %v6082_v13, %v14305_v9  ;;  %v6142_v33 = vmul.f32 %v14305_v9, %v14305_v9  ;;  %v14310_v47 = vpop.f32.mrb[73].mxu0 }
 0x997   : > { %v6096_v3 = vadd.f32 %v6095_v55, %v14310_v47  ;;  %v6143_v17 = vmul.f32 %v14310_v47, %v14310_v47  ;;  %v14315_v27 = vpop.f32.mrb[74].mxu0 }
 0x998   : > { %v6167_v40 = vadd.f32 %v6166_v39, %v6142_v33  ;;  %v6084_v36 = vadd.f32 %v6083_v14, %v14315_v27  ;;  %v6144_v56 = vmul.f32 %v14315_v27, %v14315_v27  ;;  %v14320_v48 = vpop.f32.mrb[75].mxu0 }
 0x999   : > { %v6180_v22 = vadd.f32 %v6179_v53, %v6143_v17  ;;  %v6097_v21 = vadd.f32 %v6096_v3, %v14320_v48  ;;  %v6145_v34 = vmul.f32 %v14320_v48, %v14320_v48 }
 0x99a   : > { %v6168_v60 = vadd.f32 %v6167_v40, %v6144_v56  ;;  %v6085_v40 = vrot.slane %v6084_v36, 4 }
 0x99b   : > { %v6181_v44 = vadd.f32 %v6180_v22, %v6145_v34 }
 0x99d   : > { %v14325_v35 = vpop.f32.mrb[76].mxu0 }
 0x99e   : > { %v14327_v63 = vpop.f32.mrb[77].mxu0  ;;  %v6146_v50 = vmul.f32 %v14325_v35, %v14325_v35 }
 0x99f   : > { %v14329_v43 = vpop.f32.mrb[78].mxu0  ;;  %v6147_v30 = vmul.f32 %v14327_v63, %v14327_v63 }
 0x9a0   : > { %v6104_v8 = vadd.f32 %v14329_v43, %v14325_v35  ;;  %v6148_v58 = vmul.f32 %v14329_v43, %v14329_v43  ;;  %v14337_v54 = vpop.f32.mrb[79].mxu0 }
 0x9a1   : > { %v6117_v6 = vadd.f32 %v14337_v54, %v14327_v63  ;;  %v6149_v46 = vmul.f32 %v14337_v54, %v14337_v54 }
 0x9a2   : > { %v6188_v52 = vadd.f32 %v6148_v58, %v6146_v50 }
 0x9a3   : > { %v6201_v26 = vadd.f32 %v6149_v46, %v6147_v30  ;;  %v6169_v46 = vrot.slane %v6168_v60, 4 }
 0x9a5   : > { %v14345_v15 = vpop.f32.mrb[80].mxu0 }
 0x9a6   : > { %v6105_v16 = vadd.f32 %v6104_v8, %v14345_v15  ;;  %v6150_v51 = vmul.f32 %v14345_v15, %v14345_v15  ;;  %v14350_v24 = vpop.f32.mrb[81].mxu0  ;;  %v6098_v8 = vrot.slane %v6097_v21, 4 }
 0x9a7   : > { %v6118_v25 = vadd.f32 %v6117_v6, %v14350_v24  ;;  %v6151_v32 = vmul.f32 %v14350_v24, %v14350_v24  ;;  %v14355_v23 = vpop.f32.mrb[82].mxu0 }
 0x9a8   : > { %v6189_v41 = vadd.f32 %v6188_v52, %v6150_v51  ;;  %v6106_v18 = vadd.f32 %v6105_v16, %v14355_v23  ;;  %v6152_v1 = vmul.f32 %v14355_v23, %v14355_v23  ;;  %v14360_v28 = vpop.f32.mrb[83].mxu0  ;;  %v6086_v51 = vadd.f32 %v6085_v40, %v6084_v36 }
 0x9a9   : > { %v6202_v59 = vadd.f32 %v6201_v26, %v6151_v32  ;;  %v6119_v13 = vadd.f32 %v6118_v25, %v14360_v28  ;;  %v6153_v2 = vmul.f32 %v14360_v28, %v14360_v28  ;;  %v6182_v26 = vrot.slane %v6181_v44, 4 }
 0x9aa   : > { %v6190_v38 = vadd.f32 %v6189_v41, %v6152_v1  ;;  %v6099_v25 = vadd.f32 %v6098_v8, %v6097_v21  ;;  %v6170_v41 = vadd.f32 %v6169_v46, %v6168_v60  ;;  %v6087_v36 = vrot.slane %v6086_v51, 2 }
 0x9ab   : > { %v6203_v55 = vadd.f32 %v6202_v59, %v6153_v2 }
 0x9ad   : > { %v14365_v5 = vpop.f32.mrb[84].mxu0 }
 0x9ae   : > { %v6107_v39 = vadd.f32 %v6106_v18, %v14365_v5  ;;  %v6154_v53 = vmul.f32 %v14365_v5, %v14365_v5  ;;  %v14370_v14 = vpop.f32.mrb[85].mxu0 }
 0x9af   : > { %v6120_v33 = vadd.f32 %v6119_v13, %v14370_v14  ;;  %v6155_v3 = vmul.f32 %v14370_v14, %v14370_v14  ;;  %v14375_v17 = vpop.f32.mrb[86].mxu0  ;;  %v6183_v13 = vadd.f32 %v6182_v26, %v6181_v44 }
 0x9b0   : > { %18724 = vst [vmem:[#allocation163_spill] sm:$0xff] %v14375_v17  ;;  %v6191_v56 = vadd.f32 %v6190_v38, %v6154_v53  ;;  %v6108_v22 = vadd.f32 %v6107_v39, %v14375_v17  ;;  %v6156_v34 = vmul.f32 %v14375_v17, %v14375_v17  ;;  %v14380_v50 = vpop.f32.mrb[87].mxu0 }
 0x9b1   : > { %18725 = vst [vmem:[#allocation178_spill] sm:$0xff] %v14380_v50  ;;  %v6204_v58 = vadd.f32 %v6203_v55, %v6155_v3  ;;  %v6121_v30 = vadd.f32 %v6120_v33, %v14380_v50  ;;  %v6157_v6 = vmul.f32 %v14380_v50, %v14380_v50  ;;  %v6100_v33 = vrot.slane %v6099_v25, 2 }
 0x9b2   : > { %v6192_v52 = vadd.f32 %v6191_v56, %v6156_v34  ;;  %v6171_v56 = vrot.slane %v6170_v41, 2  ;;  %v6184_v8 = vrot.slane %v6183_v13, 2 }
 0x9b3   : > { %v6205_v16 = vadd.f32 %v6204_v58, %v6157_v6  ;;  %v6088_v6 = vadd.f32 %v6087_v36, %v6086_v51  ;;  %v6101_v26 = vadd.f32 %v6100_v33, %v6099_v25 }
 0x9b4   : > { %v6172_v10 = vadd.f32 %v6171_v56, %v6170_v41 }
 0x9b5   : > { %v14385_v32 = vpop.f32.mrb[88].mxu0  ;;  %v6102_v50 = vrot.slane %v6101_v26, 1 }
 0x9b6   : > { %18726 = vst [vmem:[#allocation170_spill] sm:$0xff] %v14385_v32  ;;  %v6109_v18 = vadd.f32 %v6108_v22, %v14385_v32  ;;  %v6158_v1 = vmul.f32 %v14385_v32, %v14385_v32  ;;  %v14390_v59 = vpop.f32.mrb[89].mxu0  ;;  %v6173_v17 = vrot.slane %v6172_v10, 1 }
 0x9b7   : > { %18727 = vst [vmem:[#allocation169_spill] sm:$0xff] %v14390_v59  ;;  %v6122_v2 = vadd.f32 %v6121_v30, %v14390_v59  ;;  %v6159_v38 = vmul.f32 %v14390_v59, %v14390_v59  ;;  %v14395_v55 = vpop.f32.mrb[90].mxu0  ;;  %v6089_v59 = vrot.slane %v6088_v6, 1 }
 0x9b8   : > { %18728 = vst [vmem:[#allocation162_spill] sm:$0xff] %v14395_v55  ;;  %v6193_v21 = vadd.f32 %v6192_v52, %v6158_v1  ;;  %v6110_v39 = vadd.f32 %v6109_v18, %v14395_v55  ;;  %v6160_v60 = vmul.f32 %v14395_v55, %v14395_v55  ;;  %v14400_v53 = vpop.f32.mrb[91].mxu0 }
 0x9b9   : > { %18729 = vst [vmem:[#allocation168_spill] sm:$0xff] %v14400_v53  ;;  %v6206_v3 = vadd.f32 %v6205_v16, %v6159_v38  ;;  %v6123_v44 = vadd.f32 %v6122_v2, %v14400_v53  ;;  %v6161_v40 = vmul.f32 %v14400_v53, %v14400_v53  ;;  %v6185_v38 = vadd.f32 %v6184_v8, %v6183_v13 }
 0x9ba   : > { %v6111_v22 = vrot.slane %v6110_v39, 4  ;;  %v6194_v34 = vadd.f32 %v6193_v21, %v6160_v60  ;;  %v6090_v33 = vadd.f32 %v6089_v59, %v6088_v6  ;;  %v6103_v13 = vadd.f32 %v6102_v50, %v6101_v26 }
 0x9bb   : > { %v6124_v58 = vrot.slane %v6123_v44, 4  ;;  %v6207_v30 = vadd.f32 %v6206_v3, %v6161_v40  ;;  %v6186_v25 = vrot.slane %v6185_v38, 1 }
 0x9bc   : > { %v6112_v46 = vadd.f32 %v6111_v22, %v6110_v39  ;;  %v6195_v52 = vrot.slane %v6194_v34, 4  ;;  %v6174_v22 = vadd.f32 %v6173_v17, %v6172_v10  ;;  %v18731_v10 = vld [vmem:[#allocation59_spill] sm:$0xff]  ;;  %v18732_v17 = vld [vmem:[#allocation60_spill] sm:$0xff] }
 0x9bd   : > { %v6125_v18 = vadd.f32 %v6124_v58, %v6123_v44  ;;  %v6208_v1 = vrot.slane %v6207_v30, 4  ;;  %v6187_v8 = vadd.f32 %v6186_v25, %v6185_v38 }
 0x9be   : > { %v6113_v45 = vrot.slane %v6112_v46, 2  ;;  %v6196_v16 = vadd.f32 %v6195_v52, %v6194_v34 }
 0x9bf   : > { %v6126_v2 = vrot.slane %v6125_v18, 2  ;;  %v6209_v55 = vadd.f32 %v6208_v1, %v6207_v30 }
 0x9c0   : > { %v6114_v53 = vadd.f32 %v6113_v45, %v6112_v46  ;;  %v6197_v32 = vrot.slane %v6196_v16, 2 }
 0x9c1   : > { %v6127_v21 = vadd.f32 %v6126_v2, %v6125_v18  ;;  %v6210_v60 = vrot.slane %v6209_v55, 2 }
 0x9c2   : > { %v6115_v3 = vrot.slane %v6114_v53, 1  ;;  %v6198_v51 = vadd.f32 %v6197_v32, %v6196_v16 }
 0x9c3   : > { %v6128_v36 = vrot.slane %v6127_v21, 1  ;;  %v6211_v39 = vadd.f32 %v6210_v60, %v6209_v55  ;;  %v10814_v60 = vld [vmem:[%s12263_s3] sm:$0x3] }
 0x9c4   : > { %v6116_v44 = vadd.f32 %v6115_v3, %v6114_v53  ;;  %v6199_v41 = vrot.slane %v6198_v51, 1  ;;  %v18730_v53 = vld [vmem:[#allocation58_spill] sm:$0xff]  ;;  %v3288_v3 = vrot.slane %v10814_v60, %v18721_v11  ;;  %v18745_v60 = vld [vmem:[#allocation40_spill] sm:$0xff] }
 0x9c5   : > { %v6129_v40 = vadd.f32 %v6128_v36, %v6127_v21  ;;  %v6212_v56 = vrot.slane %v6211_v39, 1  ;;  %v6077_v36 = vld [vmem:[%s6076_s0] sm:$0x3] }
 0x9c6   : > { %v6200_v34 = vadd.f32 %v6199_v41, %v6198_v51  ;;  %v6218_v45 = vsel %vm2981_vm0, %v6116_v44, %v6090_v33  ;;  %v6075_v51 = vld [vmem:[%s6074_s1] sm:$0x3] }
 0x9c7   : > { %v6213_v58 = vadd.f32 %v6212_v56, %v6211_v39  ;;  %v6219_v30 = vsel %vm2981_vm0, %v6129_v40, %v6103_v13  ;;  %v10815_v39 = vld [vmem:[%s12360_s27] sm:$0x3]  ;;  %v14432_v33 = vrot.slane %v6075_v51, %v18721_v11  ;;  %v14438_v40 = vrot.slane %v6077_v36, %v18721_v11  ;;  %v18734_v56 = vld [vmem:[#allocation27_spill] sm:$0xff] }
 0x9c8   : > { %v6226_v46 = vsel %vm2990_vm1, %v6200_v34, %v6174_v22  ;;  %v14429_v25 = vrot.slane %v10815_v39, %v18721_v11  ;;  %v18733_v44 = vld [vmem:[#allocation73_spill] sm:$0xff]  ;;  %v3295_v13 = vmul.f32 %v3288_v3, %v18734_v56  ;;  %v18735_v22 = vld [vmem:[#allocation28_spill] sm:$0xff] }
 0x9c9   : > { %v6227_v32 = vsel %vm2990_vm1, %v6213_v58, %v6187_v8  ;;  %v6230_v55 = vsel %vm2995_vm2, %v6218_v45, %v6226_v46  ;;  %v14435_v41 = vrot.slane %v6075_v51, %v18733_v44  ;;  %v3297_v34 = vmul.f32 %v3288_v3, %v18735_v22  ;;  %v18736_v45 = vld [vmem:[#allocation29_spill] sm:$0xff]  ;;  %v18737_v46 = vld [vmem:[#allocation30_spill] sm:$0xff] }
 0x9ca   : > { %v6231_v59 = vsel %vm2995_vm2, %v6219_v30, %v6227_v32  ;;  %v3299_v8 = vmul.f32 %v3288_v3, %v18736_v45  ;;  %v14444_v58 = vrot.slane %v6077_v36, %v18733_v44  ;;  %v3301_v32 = vmul.f32 %v3288_v3, %v18737_v46  ;;  %v18746_v36 = vld [vmem:[#allocation43_spill] sm:$0xff]  ;;  %v18747_v56 = vld [vmem:[#allocation45_spill] sm:$0xff]  ;;  %v18748_v45 = vld [vmem:[#allocation46_spill] sm:$0xff] }
 0x9cb   : > { %6296 = vmatprep.mubr.f32.mxu1 %v6231_v59  ;;  %v3317_v51 = vmul.f32 %v3288_v3, %v18745_v60  ;;  %v3319_v39 = vmul.f32 %v3288_v3, %v18746_v36  ;;  %v3321_v22 = vmul.f32 %v3288_v3, %v18747_v56  ;;  %v3323_v46 = vmul.f32 %v3288_v3, %v18748_v45 }
 0x9cc   : > { %6297 = vmatmul.mubr.f32.vlgmr.msra.gmra.mrb[102].mxu1 %v6230_v55  ;;  %v18738_v55 = vld [vmem:[#allocation32_spill] sm:$0xff] }
 0x9cd   : > { %10268 = vmatpush1.bf16.msra.mxu1 %v18730_v53  ;;  %6379 = vmatprep.mubr.f32.mxu1 %v18715_v57  ;;  %v3303_v59 = vmul.f32 %v3288_v3, %v18738_v55  ;;  %v18739_v53 = vld [vmem:[#allocation34_spill] sm:$0xff]  ;;  %v18749_v55 = vld [vmem:[#allocation47_spill] sm:$0xff] }
 0x9ce   : > { %10270 = vmatprep.subr.bf16.mxu1 %v18731_v10  ;;  %v3305_v10 = vmul.f32 %v3288_v3, %v18739_v53  ;;  %v3325_v53 = vmul.f32 %v3288_v3, %v18749_v55 }
 0x9d1   : > { %10272 = vmatpush1.bf16.msra.mxu1 %v18732_v17  ;;  %v18740_v17 = vld [vmem:[#allocation35_spill] sm:$0xff] }
 0xa9f   : > { %v10048_v50 = vpop.f32.mrb[102].mxu1 }
 0xaa0   : > { %v10049_v6 = vpop.f32.mrb[103].mxu1 }
 0xaa1   : > { %v10050_v52 = vadd.f32 %v10049_v6, %v10048_v50  ;;  %v3307_v50 = vmul.f32 %v3288_v3, %v18740_v17  ;;  %v14460_v17 = vadd.f32 %v14429_v25, %v3295_v13 }
 0xaa3   : > { %v6302_v26 = vmul.f32 0.001953125, %v10050_v52  ;;  %v18741_v52 = vld [vmem:[#allocation36_spill] sm:$0xff] }
 0xaa5   : > { %v6303_v18 = vmul.f32 %v6302_v26, %v6302_v26 }
 0xaa7   : > { %v6305_v1 = vrot.slane %v6303_v18, 6  ;;  %v18742_v18 = vld [vmem:[#allocation37_spill] sm:$0xff] }
 0xaa9   : > { %v6307_v16 = vsub.f32 %v6302_v26, %v6305_v1  ;;  %v3311_v1 = vmul.f32 %v3288_v3, %v18742_v18  ;;  %v14464_v18 = vadd.f32 %v14429_v25, %v3297_v34 }
 0xaab   : > { %v6308_v38 = vmax.f32 %v6307_v16, 0.0  ;;  %v18743_v16 = vld [vmem:[#allocation38_spill] sm:$0xff] }
 0xaad   : > { %v6309_v2 = vadd.f32 1e-05, %v6308_v38  ;;  %v3313_v38 = vmul.f32 %v3288_v3, %v18743_v16  ;;  %v14473_v16 = vadd.f32 %v14429_v25, %v3303_v59 }
 0xaaf   : > { %10809 = vrsqrt.f32 %v6309_v2  ;;  %18751 = vst [vmem:[#allocation193_spill] sm:$0xff] %v14473_v16 }
 0xab9   : > { %v10810_v21 = vpop.eup %10809 }
 0xaba   : > { %v6311_v57 = vsel %vm2995_vm2, %v6302_v26, %v10810_v21  ;;  %v3309_v26 = vmul.f32 %v3288_v3, %v18741_v52  ;;  %v18744_v21 = vld [vmem:[#allocation39_spill] sm:$0xff] }
 0xabb   : > { %9681 = vmatmul.mubr.msk.f32.vlgmr.msra.gmra.mrb[164].mxu1 %vm3078_vm5, %v6311_v57  ;;  %v3315_v57 = vmul.f32 %v3288_v3, %v18744_v21  ;;  %v14476_v21 = vadd.f32 %v14429_v25, %v3305_v10  ;;  %v14479_v3 = vadd.f32 %v14429_v25, %v3307_v50  ;;  %v14495_v10 = vadd.f32 %v14429_v25, %v3317_v51 }
 0xabc   : > { %v14483_v34 = vadd.f32 %v14429_v25, %v3309_v26  ;;  %v14501_v26 = vadd.f32 %v14429_v25, %v3319_v39 }
 0xabd   : > { %18752 = vst [vmem:[#allocation173_spill] sm:$0xff] %v14476_v21  ;;  %18753 = vst [vmem:[#allocation192_spill] sm:$0xff] %v14479_v3  ;;  %v14492_v59 = vadd.f32 %v14429_v25, %v3315_v57 }
 0xabe   : > { %18754 = vst [vmem:[#allocation166_spill] sm:$0xff] %v14483_v34  ;;  %18758 = vst [vmem:[#allocation179_spill] sm:$0xff] %v14495_v10 }
 0xabf   : > { %18757 = vst [vmem:[#allocation167_spill] sm:$0xff] %v14492_v59  ;;  %18759 = vst [vmem:[#allocation199_spill] sm:$0xff] %v14501_v26  ;;  %v14565_v26 = vadd.f32 %v14429_v25, %v3325_v53 }
 0xac1   : > { %18768 = vst [vmem:[#allocation203_spill] sm:$0xff] %v14565_v26 }
 0xb8e   : > { %v6381_v30 = vpop.f32.mrb[164].mxu1 }
 0xb8f   : > { %v6383_v6 = vpop.f32.mrb[165].mxu1 }
 0xb90   : > { %v6388_v2 = vcombine.low %v6381_v30, %v6383_v6  ;;  %v14467_v30 = vadd.f32 %v14429_v25, %v3299_v8  ;;  %v14470_v6 = vadd.f32 %v14429_v25, %v3301_v32  ;;  %v14486_v8 = vadd.f32 %v14429_v25, %v3311_v1 }
 0xb91   : > { %v14489_v32 = vadd.f32 %v14429_v25, %v3313_v38  ;;  %v14504_v1 = vadd.f32 %v14429_v25, %v3321_v22  ;;  %v14507_v38 = vadd.f32 %v14429_v25, %v3323_v46 }
 0xb92   : > { %v6395_v52 = vrot.slane %v6388_v2, %v18720_v49  ;;  %18750 = vst [vmem:[#allocation171_spill] sm:$0xff] %v14470_v6  ;;  %18755 = vst [vmem:[#allocation181_spill] sm:$0xff] %v14486_v8 }
 0xb93   : > { %18756 = vst [vmem:[#allocation172_spill] sm:$0xff] %v14489_v32  ;;  %18760 = vst [vmem:[#allocation183_spill] sm:$0xff] %v14504_v1 }
 0xb94   : > { %v6396_v13 = vcombine.high %v6395_v52, %v6395_v52  ;;  %v6403_v2 = vrot.slane %v6395_v52, %v18720_v49  ;;  %18761 = vst [vmem:[#allocation204_spill] sm:$0xff] %v14507_v38 }
 0xb96   : > { %v6410_v50 = vrot.slane %v6396_v13, %v18720_v49  ;;  %v6416_v60 = vrot.slane %v6403_v2, %v18721_v11  ;;  %v6420_v36 = vrot.slane %v6403_v2, %v18733_v44  ;;  %v6411_v57 = vcombine.high %v6403_v2, %v6403_v2 }
 0xb98   : > { %v6412_v56 = vcombine.high %v6410_v50, %v6410_v50  ;;  %v14510_v51 = vrot.slane %v6410_v50, %v18721_v11  ;;  %v14513_v49 = vrot.slane %v6410_v50, %v18733_v44  ;;  %v6433_v45 = vsub.f32 %v14245_v4, %v6416_v60 }
 0xb99   : > { %v6434_v55 = vsub.f32 %v14247_v42, %v6420_v36  ;;  %v6435_v39 = vsub.f32 %v14249_v19, %v6416_v60  ;;  %v6436_v22 = vsub.f32 %v14257_v20, %v6420_v36  ;;  %v6437_v52 = vsub.f32 %v14265_v62, %v6416_v60 }
 0xb9a   : > { %v6438_v46 = vsub.f32 %v14270_v61, %v6420_v36  ;;  %v6439_v13 = vsub.f32 %v14275_v37, %v6416_v60  ;;  %v6440_v2 = vsub.f32 %v14280_v31, %v6420_v36  ;;  %v6441_v38 = vsub.f32 %v14285_v7, %v6416_v60 }
 0xb9b   : > { %v6442_v50 = vsub.f32 %v14290_v29, %v6420_v36  ;;  %v6443_v4 = vsub.f32 %v14295_v12, %v6416_v60  ;;  %v6444_v42 = vsub.f32 %v14300_v0, %v6420_v36  ;;  %v6445_v19 = vsub.f32 %v14305_v9, %v6416_v60 }
 0xb9c   : > { %v6446_v20 = vsub.f32 %v14310_v47, %v6420_v36  ;;  %v6447_v62 = vsub.f32 %v14315_v27, %v6416_v60  ;;  %v6448_v61 = vsub.f32 %v14320_v48, %v6420_v36  ;;  %v6449_v37 = vsub.f32 %v14325_v35, %v14510_v51  ;;  %v18762_v35 = vld [vmem:[#allocation163_spill] sm:$0xff] }
 0xb9d   : > { %v6450_v31 = vsub.f32 %v14327_v63, %v14513_v49  ;;  %v6451_v7 = vsub.f32 %v14329_v43, %v14510_v51  ;;  %v6452_v29 = vsub.f32 %v14337_v54, %v14513_v49  ;;  %v6453_v12 = vsub.f32 %v14345_v15, %v14510_v51  ;;  %v18763_v43 = vld [vmem:[#allocation178_spill] sm:$0xff] }
 0xb9e   : > { %v6454_v0 = vsub.f32 %v14350_v24, %v14513_v49  ;;  %v6455_v9 = vsub.f32 %v14355_v23, %v14510_v51  ;;  %v6456_v47 = vsub.f32 %v14360_v28, %v14513_v49  ;;  %v6457_v27 = vsub.f32 %v14365_v5, %v14510_v51  ;;  %v18764_v15 = vld [vmem:[#allocation170_spill] sm:$0xff]  ;;  %v18765_v23 = vld [vmem:[#allocation169_spill] sm:$0xff]  ;;  %v18767_v5 = vld [vmem:[#allocation168_spill] sm:$0xff] }
 0xb9f   : > { %v6458_v48 = vsub.f32 %v14370_v14, %v14513_v49  ;;  %v6459_v63 = vsub.f32 %v18762_v35, %v14510_v51  ;;  %v6460_v54 = vsub.f32 %v18763_v43, %v14513_v49  ;;  %v6461_v24 = vsub.f32 %v18764_v15, %v14510_v51  ;;  %v18766_v28 = vld [vmem:[#allocation162_spill] sm:$0xff] }
 0xba0   : > { %v6462_v60 = vsub.f32 %v18765_v23, %v14513_v49  ;;  %v6463_v36 = vsub.f32 %v18766_v28, %v14510_v51  ;;  %v6464_v1 = vsub.f32 %v18767_v5, %v14513_v49  ;;  %v6468_v14 = vrot.slane %v6411_v57, %v18721_v11 }
 0xba1   : > { %v6472_v35 = vrot.slane %v6411_v57, %v18733_v44  ;;  %v6476_v43 = vrot.slane %v6412_v56, %v18721_v11  ;;  %v6480_v15 = vrot.slane %v6412_v56, %v18733_v44 }
 0xba2   : > { %v6485_v10 = vmul.f32 %v6468_v14, %v6433_v45  ;;  %v6487_v59 = vmul.f32 %v6468_v14, %v6435_v39  ;;  %v6489_v23 = vmul.f32 %v6468_v14, %v6437_v52  ;;  %v6491_v32 = vmul.f32 %v6468_v14, %v6439_v13 }
 0xba3   : > { %v6486_v8 = vmul.f32 %v6472_v35, %v6434_v55  ;;  %v6488_v51 = vmul.f32 %v6472_v35, %v6436_v22  ;;  %v6490_v28 = vmul.f32 %v6472_v35, %v6438_v46  ;;  %v6492_v34 = vmul.f32 %v6472_v35, %v6440_v2 }
 0xba4   : > { %v6493_v49 = vmul.f32 %v6468_v14, %v6441_v38  ;;  %v6494_v5 = vmul.f32 %v6472_v35, %v6442_v50  ;;  %v6495_v3 = vmul.f32 %v6468_v14, %v6443_v4  ;;  %v6496_v21 = vmul.f32 %v6472_v35, %v6444_v42 }
 0xba5   : > { %v6497_v25 = vmul.f32 %v6468_v14, %v6445_v19  ;;  %v6498_v53 = vmul.f32 %v6472_v35, %v6446_v20  ;;  %v6499_v26 = vmul.f32 %v6468_v14, %v6447_v62  ;;  %v6500_v57 = vmul.f32 %v6472_v35, %v6448_v61 }
 0xba6   : > { %v6501_v16 = vmul.f32 %v6476_v43, %v6449_v37  ;;  %v6502_v11 = vmul.f32 %v6480_v15, %v6450_v31  ;;  %v6503_v6 = vmul.f32 %v6476_v43, %v6451_v7  ;;  %v6504_v44 = vmul.f32 %v6480_v15, %v6452_v29 }
 0xba7   : > { %v6505_v56 = vmul.f32 %v6476_v43, %v6453_v12  ;;  %v6506_v45 = vmul.f32 %v6480_v15, %v6454_v0  ;;  %v6507_v39 = vmul.f32 %v6476_v43, %v6455_v9  ;;  %v6508_v52 = vmul.f32 %v6480_v15, %v6456_v47 }
 0xba8   : > { %v6509_v55 = vmul.f32 %v6476_v43, %v6457_v27  ;;  %v6510_v22 = vmul.f32 %v6480_v15, %v6458_v48  ;;  %v6511_v46 = vmul.f32 %v6476_v43, %v6459_v63  ;;  %v6512_v13 = vmul.f32 %v6480_v15, %v6460_v54 }
 0xba9   : > { %v6513_v38 = vmul.f32 %v6476_v43, %v6461_v24  ;;  %v6514_v2 = vmul.f32 %v6480_v15, %v6462_v60  ;;  %v6515_v50 = vmul.f32 %v6476_v43, %v6463_v36  ;;  %v6516_v4 = vmul.f32 %v6480_v15, %v6464_v1 }
 0xbaa   : > { %v6528_v42 = vmul.f32 %v14432_v33, %v6485_v10  ;;  %v6529_v19 = vmul.f32 %v14435_v41, %v6486_v8  ;;  %v6530_v20 = vmul.f32 %v14432_v33, %v6487_v59  ;;  %v6531_v62 = vmul.f32 %v14435_v41, %v6488_v51 }
 0xbab   : > { %v6532_v61 = vmul.f32 %v14432_v33, %v6489_v23  ;;  %v6533_v37 = vmul.f32 %v14435_v41, %v6490_v28  ;;  %v6534_v31 = vmul.f32 %v14432_v33, %v6491_v32  ;;  %v6535_v7 = vmul.f32 %v14435_v41, %v6492_v34 }
 0xbac   : > { %v6536_v29 = vmul.f32 %v14432_v33, %v6493_v49  ;;  %v6537_v1 = vmul.f32 %v14435_v41, %v6494_v5  ;;  %v6538_v10 = vmul.f32 %v14432_v33, %v6495_v3  ;;  %v6539_v8 = vmul.f32 %v14435_v41, %v6496_v21 }
 0xbad   : > { %v6540_v59 = vmul.f32 %v14432_v33, %v6497_v25  ;;  %v6541_v12 = vmul.f32 %v14435_v41, %v6498_v53  ;;  %v6542_v0 = vmul.f32 %v14432_v33, %v6499_v26  ;;  %v6543_v9 = vmul.f32 %v14435_v41, %v6500_v57 }
 0xbae   : > { %v6544_v32 = vmul.f32 %v14432_v33, %v6501_v16  ;;  %v6545_v34 = vmul.f32 %v14435_v41, %v6502_v11  ;;  %v6546_v47 = vmul.f32 %v14432_v33, %v6503_v6  ;;  %v6547_v27 = vmul.f32 %v14435_v41, %v6504_v44 }
 0xbaf   : > { %v6548_v3 = vmul.f32 %v14432_v33, %v6505_v56  ;;  %v6549_v21 = vmul.f32 %v14435_v41, %v6506_v45  ;;  %v6550_v48 = vmul.f32 %v14432_v33, %v6507_v39  ;;  %v6551_v63 = vmul.f32 %v14435_v41, %v6508_v52 }
 0xbb0   : > { %v6552_v26 = vmul.f32 %v14432_v33, %v6509_v55  ;;  %v6553_v54 = vmul.f32 %v14435_v41, %v6510_v22  ;;  %v6554_v16 = vmul.f32 %v14432_v33, %v6511_v46  ;;  %v6555_v24 = vmul.f32 %v14435_v41, %v6512_v13 }
 0xbb1   : > { %v6556_v6 = vmul.f32 %v14432_v33, %v6513_v38  ;;  %v6557_v60 = vmul.f32 %v14435_v41, %v6514_v2  ;;  %v6558_v36 = vmul.f32 %v14432_v33, %v6515_v50  ;;  %v6559_v14 = vmul.f32 %v14435_v41, %v6516_v4 }
 0xbb2   : > { %v6571_v35 = vadd.f32 %v14438_v40, %v6528_v42  ;;  %v6572_v43 = vadd.f32 %v14444_v58, %v6529_v19  ;;  %v6573_v15 = vadd.f32 %v14438_v40, %v6530_v20  ;;  %v6574_v23 = vadd.f32 %v14444_v58, %v6531_v62 }
 0xbb3   : > { %v6575_v51 = vadd.f32 %v14438_v40, %v6532_v61  ;;  %v6576_v28 = vadd.f32 %v14444_v58, %v6533_v37  ;;  %v6577_v49 = vadd.f32 %v14438_v40, %v6534_v31  ;;  %v6578_v5 = vadd.f32 %v14444_v58, %v6535_v7  ;;  %v18769_v31 = vld [vmem:[#allocation49_spill] sm:$0xff] }
 0xbb4   : > { %v6579_v33 = vadd.f32 %v14438_v40, %v6536_v29  ;;  %v6580_v41 = vadd.f32 %v14444_v58, %v6537_v1  ;;  %v6581_v25 = vadd.f32 %v14438_v40, %v6538_v10  ;;  %v6582_v53 = vadd.f32 %v14444_v58, %v6539_v8  ;;  %v18770_v1 = vld [vmem:[#allocation52_spill] sm:$0xff] }
 0xbb5   : > { %v6583_v57 = vadd.f32 %v14438_v40, %v6540_v59  ;;  %v6584_v11 = vadd.f32 %v14444_v58, %v6541_v12  ;;  %v6585_v44 = vadd.f32 %v14438_v40, %v6542_v0  ;;  %v6586_v56 = vadd.f32 %v14444_v58, %v6543_v9  ;;  %v18771_v59 = vld [vmem:[#allocation53_spill] sm:$0xff] }
 0xbb6   : > { %v6587_v45 = vadd.f32 %v14438_v40, %v6544_v32  ;;  %v6588_v39 = vadd.f32 %v14444_v58, %v6545_v34  ;;  %v6589_v52 = vadd.f32 %v14438_v40, %v6546_v47  ;;  %v6590_v55 = vadd.f32 %v14444_v58, %v6547_v27  ;;  %v18774_v9 = vld [vmem:[#allocation193_spill] sm:$0xff] }
 0xbb7   : > { %v6591_v22 = vadd.f32 %v14438_v40, %v6548_v3  ;;  %v6592_v46 = vadd.f32 %v14444_v58, %v6549_v21  ;;  %v6593_v13 = vadd.f32 %v14438_v40, %v6550_v48  ;;  %v6594_v38 = vadd.f32 %v14444_v58, %v6551_v63  ;;  %v18776_v47 = vld [vmem:[#allocation173_spill] sm:$0xff]  ;;  %v18778_v21 = vld [vmem:[#allocation192_spill] sm:$0xff] }
 0xbb8   : > { %v6595_v2 = vadd.f32 %v14438_v40, %v6552_v26  ;;  %v6596_v50 = vadd.f32 %v14444_v58, %v6553_v54  ;;  %v6597_v4 = vadd.f32 %v14438_v40, %v6554_v16  ;;  %v6598_v42 = vadd.f32 %v14444_v58, %v6555_v24  ;;  %v18779_v63 = vld [vmem:[#allocation76_spill] sm:$0xff]  ;;  %v18780_v54 = vld [vmem:[#allocation166_spill] sm:$0xff]  ;;  %v18781_v24 = vld [vmem:[#allocation77_spill] sm:$0xff] }
 0xbb9   : > { %v6599_v19 = vadd.f32 %v14438_v40, %v6556_v6  ;;  %v6600_v20 = vadd.f32 %v14444_v58, %v6557_v60  ;;  %v6601_v62 = vadd.f32 %v14438_v40, %v6558_v36  ;;  %v6602_v61 = vadd.f32 %v14444_v58, %v6559_v14  ;;  %v18772_v40 = vld [vmem:[#allocation171_spill] sm:$0xff]  ;;  %v18782_v60 = vld [vmem:[#allocation181_spill] sm:$0xff]  ;;  %v18783_v14 = vld [vmem:[#allocation78_spill] sm:$0xff] }
 0xbba   : > { %v14635_v37 = vadd.f32 %v6571_v35, %v14460_v17  ;;  %v14638_v7 = vadd.f32 %v6572_v43, %v18769_v31  ;;  %v14641_v29 = vadd.f32 %v6573_v15, %v14464_v18  ;;  %v14644_v10 = vadd.f32 %v6574_v23, %v18770_v1  ;;  %v18773_v17 = vld [vmem:[#allocation54_spill] sm:$0xff]  ;;  %v18784_v43 = vld [vmem:[#allocation172_spill] sm:$0xff]  ;;  %v18785_v23 = vld [vmem:[#allocation79_spill] sm:$0xff] }
 0xbbb   : > { %v14647_v8 = vadd.f32 %v6575_v51, %v14467_v30  ;;  %v14650_v12 = vadd.f32 %v6576_v28, %v18771_v59  ;;  %v14653_v58 = vadd.f32 %v6577_v49, %v18772_v40  ;;  %v14656_v0 = vadd.f32 %v6578_v5, %v18773_v17  ;;  %v18775_v18 = vld [vmem:[#allocation74_spill] sm:$0xff]  ;;  %v18777_v30 = vld [vmem:[#allocation75_spill] sm:$0xff]  ;;  %v18787_v5 = vld [vmem:[#allocation80_spill] sm:$0xff] }
 0xbbc   : > { %v14659_v32 = vadd.f32 %v6579_v33, %v18774_v9  ;;  %v14662_v34 = vadd.f32 %v6580_v41, %v18775_v18  ;;  %v14665_v27 = vadd.f32 %v6581_v25, %v18776_v47  ;;  %v14668_v3 = vadd.f32 %v6582_v53, %v18777_v30  ;;  %v18786_v28 = vld [vmem:[#allocation167_spill] sm:$0xff]  ;;  %v18789_v53 = vld [vmem:[#allocation81_spill] sm:$0xff] }
 0xbbd   : > { %v14671_v48 = vadd.f32 %v6583_v57, %v18778_v21  ;;  %v14674_v26 = vadd.f32 %v6584_v11, %v18779_v63  ;;  %v14677_v16 = vadd.f32 %v6585_v44, %v18780_v54  ;;  %v14680_v6 = vadd.f32 %v6586_v56, %v18781_v24  ;;  %v18788_v41 = vld [vmem:[#allocation179_spill] sm:$0xff]  ;;  %v18791_v56 = vld [vmem:[#allocation82_spill] sm:$0xff] }
 0xbbe   : > { %v14683_v36 = vadd.f32 %v6587_v45, %v18782_v60  ;;  %v14686_v35 = vadd.f32 %v6588_v39, %v18783_v14  ;;  %v14689_v15 = vadd.f32 %v6589_v52, %v18784_v43  ;;  %v14692_v51 = vadd.f32 %v6590_v55, %v18785_v23  ;;  %v18790_v11 = vld [vmem:[#allocation199_spill] sm:$0xff] }
 0xbbf   : > { %v14695_v49 = vadd.f32 %v6591_v22, %v18786_v28  ;;  %v14698_v33 = vadd.f32 %v6592_v46, %v18787_v5  ;;  %v14701_v25 = vadd.f32 %v6593_v13, %v18788_v41  ;;  %v14704_v57 = vadd.f32 %v6594_v38, %v18789_v53  ;;  %v18792_v39 = vld [vmem:[#allocation183_spill] sm:$0xff]  ;;  %v18794_v46 = vld [vmem:[#allocation204_spill] sm:$0xff] }
 0xbc0   : > { %v14707_v44 = vadd.f32 %v6595_v2, %v18790_v11  ;;  %v14710_v45 = vadd.f32 %v6596_v50, %v18791_v56  ;;  %v14713_v52 = vadd.f32 %v6597_v4, %v18792_v39  ;;  %v18793_v55 = vld [vmem:[#allocation83_spill] sm:$0xff]  ;;  %v14719_v31 = vadd.f32 %v6599_v19, %v18794_v46  ;;  %v18795_v13 = vld [vmem:[#allocation84_spill] sm:$0xff]  ;;  %v18797_v2 = vld [vmem:[#allocation85_spill] sm:$0xff] }
 0xbc1   : > { %v14716_v22 = vadd.f32 %v6598_v42, %v18793_v55  ;;  %v14722_v1 = vadd.f32 %v6600_v20, %v18795_v13  ;;  %v18796_v38 = vld [vmem:[#allocation203_spill] sm:$0xff]  ;;  %v14728_v40 = vadd.f32 %v6602_v61, %v18797_v2  ;;  %v6635_v50 = vmax.f32 %v14635_v37, 0.0 }
 0xbc2   : > { %v14725_v59 = vadd.f32 %v6601_v62, %v18796_v38  ;;  %v6636_v4 = vmax.f32 %v14638_v7, 0.0  ;;  %v6637_v17 = vmax.f32 %v14641_v29, 0.0  ;;  %v6638_v42 = vmax.f32 %v14644_v10, 0.0 }
 0xbc3   : > { %v6639_v19 = vmax.f32 %v14647_v8, 0.0  ;;  %v6640_v9 = vmax.f32 %v14650_v12, 0.0  ;;  %v6641_v20 = vmax.f32 %v14653_v58, 0.0  ;;  %v6642_v62 = vmax.f32 %v14656_v0, 0.0  ;;  %6670 = sbr.rel (%p9682_p5) target bundleno = 3028 (0xbd4), region = 116  ;;  %6671 = vst [vmem:[#allocation2] sm:$0xff] (!%p9682_p5), %v6635_v50 }
 0xbc4   : > { %v6643_v18 = vmax.f32 %v14659_v32, 0.0  ;;  %v6644_v61 = vmax.f32 %v14662_v34, 0.0  ;;  %v6645_v47 = vmax.f32 %v14665_v27, 0.0  ;;  %v6646_v30 = vmax.f32 %v14668_v3, 0.0  ;;  %6672 = vst [vmem:[#allocation2 + $0x8] sm:$0xff] (!%p9682_p5), %v6636_v4  ;;  %6673 = vst [vmem:[#allocation2 + $0x10] sm:$0xff] (!%p9682_p5), %v6637_v17 }
 0xbc5   : > { %v6647_v21 = vmax.f32 %v14671_v48, 0.0  ;;  %v6648_v63 = vmax.f32 %v14674_v26, 0.0  ;;  %v6649_v54 = vmax.f32 %v14677_v16, 0.0  ;;  %v6650_v24 = vmax.f32 %v14680_v6, 0.0  ;;  %6674 = vst [vmem:[#allocation2 + $0x18] sm:$0xff] (!%p9682_p5), %v6638_v42  ;;  %6675 = vst [vmem:[#allocation2 + $0x20] sm:$0xff] (!%p9682_p5), %v6639_v19 }
 0xbc6   : > { %v6651_v60 = vmax.f32 %v14683_v36, 0.0  ;;  %v6652_v14 = vmax.f32 %v14686_v35, 0.0  ;;  %v6653_v43 = vmax.f32 %v14689_v15, 0.0  ;;  %v6654_v23 = vmax.f32 %v14692_v51, 0.0  ;;  %6676 = vst [vmem:[#allocation2 + $0x28] sm:$0xff] (!%p9682_p5), %v6640_v9  ;;  %6677 = vst [vmem:[#allocation2 + $0x30] sm:$0xff] (!%p9682_p5), %v6641_v20 }
 0xbc7   : > { %v18065_v28 = vmax.f32 %v14695_v49, 0.0  ;;  %v18064_v5 = vmax.f32 %v14698_v33, 0.0  ;;  %v18062_v41 = vmax.f32 %v14701_v25, 0.0  ;;  %v18061_v53 = vmax.f32 %v14704_v57, 0.0  ;;  %6678 = vst [vmem:[#allocation2 + $0x38] sm:$0xff] (!%p9682_p5), %v6642_v62  ;;  %6679 = vst [vmem:[#allocation2 + $0x40] sm:$0xff] (!%p9682_p5), %v6643_v18 }
 0xbc8   : > { %v18056_v11 = vmax.f32 %v14707_v44, 0.0  ;;  %v18055_v56 = vmax.f32 %v14710_v45, 0.0  ;;  %v18054_v39 = vmax.f32 %v14713_v52, 0.0  ;;  %v18057_v55 = vmax.f32 %v14716_v22, 0.0  ;;  %6680 = vst [vmem:[#allocation2 + $0x48] sm:$0xff] (!%p9682_p5), %v6644_v61  ;;  %6681 = vst [vmem:[#allocation2 + $0x50] sm:$0xff] (!%p9682_p5), %v6645_v47 }
 0xbc9   : > { %v18058_v46 = vmax.f32 %v14719_v31, 0.0  ;;  %v18059_v13 = vmax.f32 %v14722_v1, 0.0  ;;  %v18060_v38 = vmax.f32 %v14725_v59, 0.0  ;;  %v18063_v2 = vmax.f32 %v14728_v40, 0.0  ;;  %6682 = vst [vmem:[#allocation2 + $0x58] sm:$0xff] (!%p9682_p5), %v6646_v30  ;;  %6683 = vst [vmem:[#allocation2 + $0x60] sm:$0xff] (!%p9682_p5), %v6647_v21 }
 0xbca   : > { %6684 = vst [vmem:[#allocation2 + $0x68] sm:$0xff] %v6648_v63  ;;  %6685 = vst [vmem:[#allocation2 + $0x70] sm:$0xff] %v6649_v54 }
 0xbcb   : > { %6686 = vst [vmem:[#allocation2 + $0x78] sm:$0xff] %v6650_v24  ;;  %6687 = vst [vmem:[#allocation2 + $0x80] sm:$0xff] %v6651_v60 }
 0xbcc   : > { %6688 = vst [vmem:[#allocation2 + $0x88] sm:$0xff] %v6652_v14  ;;  %6689 = vst [vmem:[#allocation2 + $0x90] sm:$0xff] %v6653_v43 }
 0xbcd   : > { %6690 = vst [vmem:[#allocation2 + $0x98] sm:$0xff] %v6654_v23  ;;  %6691 = vst [vmem:[#allocation2 + $0xa0] sm:$0xff] %v18065_v28 }
 0xbce   : > { %6692 = vst [vmem:[#allocation2 + $0xa8] sm:$0xff] %v18064_v5  ;;  %6693 = vst [vmem:[#allocation2 + $0xb0] sm:$0xff] %v18062_v41 }
 0xbcf   : > { %6694 = vst [vmem:[#allocation2 + $0xb8] sm:$0xff] %v18061_v53  ;;  %6695 = vst [vmem:[#allocation2 + $0xc0] sm:$0xff] %v18056_v11 }
 0xbd0   : > { %6696 = vst [vmem:[#allocation2 + $0xc8] sm:$0xff] %v18055_v56  ;;  %6697 = vst [vmem:[#allocation2 + $0xd0] sm:$0xff] %v18054_v39 }
 0xbd1   : > { %6698 = vst [vmem:[#allocation2 + $0xd8] sm:$0xff] %v18057_v55  ;;  %6699 = vst [vmem:[#allocation2 + $0xe0] sm:$0xff] %v18058_v46 }
 0xbd2   : > { %6700 = vst [vmem:[#allocation2 + $0xe8] sm:$0xff] %v18059_v13  ;;  %6701 = vst [vmem:[#allocation2 + $0xf0] sm:$0xff] %v18060_v38 }
 0xbd3   : > { %6702 = vst [vmem:[#allocation2 + $0xf8] sm:$0xff] %v18063_v2 }
 0xbd4 PF: > { %p9683_p6 = scmp.eq.s32.totalorder %s11073_s4, 0 }
 0xbd5   : > { %v6707_v39 = vld [vmem:[#allocation2] sm:$0xff] (!%p9683_p6)  ;;  %v6708_v56 = vld [vmem:[#allocation2 + $0x8] sm:$0xff] (!%p9683_p6)  ;;  %v6709_v11 = vld [vmem:[#allocation2 + $0x10] sm:$0xff] (!%p9683_p6)  ;;  %v18798_v6 = vmax.f32 (!%p9683_p6), %v14695_v49, 0.0  ;;  %v18799_v35 = vmax.f32 (!%p9683_p6), %v14698_v33, 0.0  ;;  %v18801_v15 = vmax.f32 (!%p9683_p6), %v14704_v57, 0.0 }
 0xbd6   : > { %6706 = sbr.rel (%p9683_p6) target bundleno = 3048 (0xbe8), region = 120  ;;  %v6739_v55 = vadd.f32 (!%p9683_p6), %v6707_v39, %v6635_v50  ;;  %v6740_v46 = vadd.f32 (!%p9683_p6), %v6708_v56, %v6636_v4  ;;  %v6741_v13 = vadd.f32 (!%p9683_p6), %v6709_v11, %v6637_v17  ;;  %v6710_v38 = vld [vmem:[#allocation2 + $0x18] sm:$0xff] (!%p9683_p6)  ;;  %v6711_v53 = vld [vmem:[#allocation2 + $0x20] sm:$0xff] (!%p9683_p6)  ;;  %v6725_v26 = vld [vmem:[#allocation2 + $0x90] sm:$0xff] (!%p9683_p6)  ;;  %v18802_v49 = vmax.f32 (!%p9683_p6), %v14707_v44, 0.0 }
 0xbd7   : > { %v6712_v41 = vld [vmem:[#allocation2 + $0x28] sm:$0xff] (!%p9683_p6)  ;;  %v6742_v2 = vadd.f32 (!%p9683_p6), %v6710_v38, %v6638_v42  ;;  %v6743_v5 = vadd.f32 (!%p9683_p6), %v6711_v53, %v6639_v19  ;;  %v6713_v37 = vld [vmem:[#allocation2 + $0x30] sm:$0xff] (!%p9683_p6)  ;;  %v6722_v27 = vld [vmem:[#allocation2 + $0x78] sm:$0xff] (!%p9683_p6)  ;;  %v6757_v16 = vadd.f32 (!%p9683_p6), %v6725_v26, %v6653_v43  ;;  %v18803_v53 = vmax.f32 (!%p9683_p6), %v14710_v45, 0.0 }
 0xbd8   : > { %v6744_v28 = vadd.f32 (!%p9683_p6), %v6712_v41, %v6640_v9  ;;  %v6714_v50 = vld [vmem:[#allocation2 + $0x38] sm:$0xff] (!%p9683_p6)  ;;  %v6715_v39 = vld [vmem:[#allocation2 + $0x40] sm:$0xff] (!%p9683_p6)  ;;  %6771 = vst [vmem:[#allocation2] sm:$0xff] (!%p9683_p6), %v6739_v55  ;;  %6772 = vst [vmem:[#allocation2 + $0x8] sm:$0xff] (!%p9683_p6), %v6740_v46  ;;  %v6745_v7 = vadd.f32 (!%p9683_p6), %v6713_v37, %v6641_v20  ;;  %v6754_v3 = vadd.f32 (!%p9683_p6), %v6722_v27, %v6650_v24  ;;  %v18804_v33 = vmax.f32 (!%p9683_p6), %v14713_v52, 0.0 }
 0xbd9   : > { %6773 = vst [vmem:[#allocation2 + $0x10] sm:$0xff] (!%p9683_p6), %v6741_v13  ;;  %v6746_v29 = vadd.f32 (!%p9683_p6), %v6714_v50, %v6642_v62  ;;  %v6747_v10 = vadd.f32 (!%p9683_p6), %v6715_v39, %v6643_v18  ;;  %v6716_v8 = vld [vmem:[#allocation2 + $0x48] sm:$0xff] (!%p9683_p6)  ;;  %v6717_v4 = vld [vmem:[#allocation2 + $0x50] sm:$0xff] (!%p9683_p6)  ;;  %6774 = vst [vmem:[#allocation2 + $0x18] sm:$0xff] (!%p9683_p6), %v6742_v2  ;;  %v18805_v57 = vmax.f32 (!%p9683_p6), %v14716_v22, 0.0  ;;  %v18806_v38 = vmax.f32 (!%p9683_p6), %v14719_v31, 0.0 }
 0xbda   : > { %v6718_v17 = vld [vmem:[#allocation2 + $0x58] sm:$0xff] (!%p9683_p6)  ;;  %6775 = vst [vmem:[#allocation2 + $0x20] sm:$0xff] (!%p9683_p6), %v6743_v5  ;;  %6776 = vst [vmem:[#allocation2 + $0x28] sm:$0xff] (!%p9683_p6), %v6744_v28  ;;  %v6748_v12 = vadd.f32 (!%p9683_p6), %v6716_v8, %v6644_v61  ;;  %v6749_v42 = vadd.f32 (!%p9683_p6), %v6717_v4, %v6645_v47  ;;  %v6719_v0 = vld [vmem:[#allocation2 + $0x60] sm:$0xff] (!%p9683_p6)  ;;  %v18807_v44 = vmax.f32 (!%p9683_p6), %v14722_v1, 0.0  ;;  %v18808_v52 = vmax.f32 (!%p9683_p6), %v14725_v59, 0.0 }
 0xbdb   : > { %v6750_v58 = vadd.f32 (!%p9683_p6), %v6718_v17, %v6646_v30  ;;  %v6720_v19 = vld [vmem:[#allocation2 + $0x68] sm:$0xff] (!%p9683_p6)  ;;  %v6721_v9 = vld [vmem:[#allocation2 + $0x70] sm:$0xff] (!%p9683_p6)  ;;  %6777 = vst [vmem:[#allocation2 + $0x30] sm:$0xff] (!%p9683_p6), %v6745_v7  ;;  %6778 = vst [vmem:[#allocation2 + $0x38] sm:$0xff] (!%p9683_p6), %v6746_v29  ;;  %v6751_v32 = vadd.f32 (!%p9683_p6), %v6719_v0, %v6647_v21  ;;  %v18809_v7 = vmax.f32 (!%p9683_p6), %v14728_v40, 0.0 }
 0xbdc   : > { %6779 = vst [vmem:[#allocation2 + $0x40] sm:$0xff] (!%p9683_p6), %v6747_v10  ;;  %v6752_v20 = vadd.f32 (!%p9683_p6), %v6720_v19, %v6648_v63  ;;  %v6753_v34 = vadd.f32 (!%p9683_p6), %v6721_v9, %v6649_v54  ;;  %v6723_v62 = vld [vmem:[#allocation2 + $0x80] sm:$0xff] (!%p9683_p6)  ;;  %v6724_v18 = vld [vmem:[#allocation2 + $0x88] sm:$0xff] (!%p9683_p6)  ;;  %6780 = vst [vmem:[#allocation2 + $0x48] sm:$0xff] (!%p9683_p6), %v6748_v12 }
 0xbdd   : > { %6781 = vst [vmem:[#allocation2 + $0x50] sm:$0xff] %v6749_v42  ;;  %6782 = vst [vmem:[#allocation2 + $0x58] sm:$0xff] %v6750_v58  ;;  %v6755_v61 = vadd.f32 %v6723_v62, %v6651_v60  ;;  %v6756_v48 = vadd.f32 %v6724_v18, %v6652_v14  ;;  %v6726_v47 = vld [vmem:[#allocation2 + $0x98] sm:$0xff]  ;;  %v6727_v30 = vld [vmem:[#allocation2 + $0xa0] sm:$0xff]  ;;  %v18800_v14 = vmax.f32 %v14701_v25, 0.0 }
 0xbde   : > { %6783 = vst [vmem:[#allocation2 + $0x60] sm:$0xff] %v6751_v32  ;;  %6784 = vst [vmem:[#allocation2 + $0x68] sm:$0xff] %v6752_v20  ;;  %v6758_v21 = vadd.f32 %v6726_v47, %v6654_v23  ;;  %v6759_v63 = vadd.f32 %v6727_v30, %v18798_v6  ;;  %v6728_v36 = vld [vmem:[#allocation2 + $0xa8] sm:$0xff]  ;;  %v6729_v54 = vld [vmem:[#allocation2 + $0xb0] sm:$0xff] }
 0xbdf   : > { %6785 = vst [vmem:[#allocation2 + $0x70] sm:$0xff] %v6753_v34  ;;  %v6730_v24 = vld [vmem:[#allocation2 + $0xb8] sm:$0xff]  ;;  %6786 = vst [vmem:[#allocation2 + $0x78] sm:$0xff] %v6754_v3  ;;  %v6760_v60 = vadd.f32 %v6728_v36, %v18799_v35  ;;  %v6761_v28 = vadd.f32 %v6729_v54, %v18800_v14  ;;  %v6731_v51 = vld [vmem:[#allocation2 + $0xc0] sm:$0xff] }
 0xbe0   : > { %6787 = vst [vmem:[#allocation2 + $0x80] sm:$0xff] %v6755_v61  ;;  %6788 = vst [vmem:[#allocation2 + $0x88] sm:$0xff] %v6756_v48  ;;  %v6762_v43 = vadd.f32 %v6730_v24, %v18801_v15  ;;  %v6732_v23 = vld [vmem:[#allocation2 + $0xc8] sm:$0xff]  ;;  %v6733_v5 = vld [vmem:[#allocation2 + $0xd0] sm:$0xff]  ;;  %v6763_v41 = vadd.f32 %v6731_v51, %v18802_v49 }
 0xbe1   : > { %6789 = vst [vmem:[#allocation2 + $0x90] sm:$0xff] %v6757_v16  ;;  %6790 = vst [vmem:[#allocation2 + $0x98] sm:$0xff] %v6758_v21  ;;  %v6764_v11 = vadd.f32 %v6732_v23, %v18803_v53  ;;  %v6765_v56 = vadd.f32 %v6733_v5, %v18804_v33  ;;  %v6734_v25 = vld [vmem:[#allocation2 + $0xd8] sm:$0xff]  ;;  %v6735_v55 = vld [vmem:[#allocation2 + $0xe0] sm:$0xff] }
 0xbe2   : > { %6791 = vst [vmem:[#allocation2 + $0xa0] sm:$0xff] %v6759_v63  ;;  %v6736_v46 = vld [vmem:[#allocation2 + $0xe8] sm:$0xff]  ;;  %6792 = vst [vmem:[#allocation2 + $0xa8] sm:$0xff] %v6760_v60  ;;  %v6766_v13 = vadd.f32 %v6734_v25, %v18805_v57  ;;  %v6767_v2 = vadd.f32 %v6735_v55, %v18806_v38  ;;  %v6737_v45 = vld [vmem:[#allocation2 + $0xf0] sm:$0xff] }
 0xbe3   : > { %6793 = vst [vmem:[#allocation2 + $0xb0] sm:$0xff] %v6761_v28  ;;  %6794 = vst [vmem:[#allocation2 + $0xb8] sm:$0xff] %v6762_v43  ;;  %v6768_v37 = vadd.f32 %v6736_v46, %v18807_v44  ;;  %v6738_v50 = vld [vmem:[#allocation2 + $0xf8] sm:$0xff]  ;;  %v6769_v39 = vadd.f32 %v6737_v45, %v18808_v52 }
 0xbe4   : > { %6795 = vst [vmem:[#allocation2 + $0xc0] sm:$0xff] %v6763_v41  ;;  %6796 = vst [vmem:[#allocation2 + $0xc8] sm:$0xff] %v6764_v11  ;;  %v6770_v29 = vadd.f32 %v6738_v50, %v18809_v7 }
 0xbe5   : > { %6797 = vst [vmem:[#allocation2 + $0xd0] sm:$0xff] %v6765_v56  ;;  %6798 = vst [vmem:[#allocation2 + $0xd8] sm:$0xff] %v6766_v13 }
 0xbe6   : > { %6799 = vst [vmem:[#allocation2 + $0xe0] sm:$0xff] %v6767_v2  ;;  %6800 = vst [vmem:[#allocation2 + $0xe8] sm:$0xff] %v6768_v37 }
 0xbe7   : > { %6801 = vst [vmem:[#allocation2 + $0xf0] sm:$0xff] %v6769_v39  ;;  %6802 = vst [vmem:[#allocation2 + $0xf8] sm:$0xff] %v6770_v29 }
 0xbe8 PF: > { %p9684_p7 = scmp.ne.s32.totalorder %s11073_s4, 1 }
 0xbea   : > { %6806 = sbr.rel (%p9684_p7) target bundleno = 4511 (0x119f), region = 124 }
 0xbf1   : > { %v14893_v22 = vld [vmem:[#allocation2] sm:$0xff]  ;;  %v14895_v31 = vld [vmem:[#allocation2 + $0x8] sm:$0xff]  ;;  %v14897_v1 = vld [vmem:[#allocation2 + $0x70] sm:$0xff] }
 0xbf2   : > { %v6839_v59 = vadd.f32 %v14895_v31, %v14893_v22  ;;  %v14901_v40 = vld [vmem:[#allocation2 + $0x78] sm:$0xff]  ;;  %v14903_v10 = vld [vmem:[#allocation2 + $0x60] sm:$0xff]  ;;  %v14905_v8 = vld [vmem:[#allocation2 + $0x68] sm:$0xff] }
 0xbf3   : > { %v6860_v4 = vadd.f32 %v14901_v40, %v14897_v1  ;;  %v14909_v17 = vld [vmem:[#allocation2 + $0x80] sm:$0xff]  ;;  %v14911_v12 = vld [vmem:[#allocation2 + $0x88] sm:$0xff]  ;;  %v6857_v42 = vadd.f32 %v14905_v8, %v14903_v10  ;;  %v14921_v9 = vld [vmem:[#allocation2 + $0xf0] sm:$0xff] }
 0xbf4   : > { %6840 = vadd.xlane.f32.xlu0 %v6839_v59  ;;  %v6863_v58 = vadd.f32 %v14911_v12, %v14909_v17  ;;  %v14917_v0 = vld [vmem:[#allocation2 + $0xe0] sm:$0xff]  ;;  %v14919_v19 = vld [vmem:[#allocation2 + $0xe8] sm:$0xff]  ;;  %v14923_v32 = vld [vmem:[#allocation2 + $0xf8] sm:$0xff] }
 0xbf5   : > { %6861 = vadd.xlane.f32.xlu1 %v6860_v4  ;;  %v6881_v20 = vadd.f32 %v14919_v19, %v14917_v0  ;;  %v6884_v34 = vadd.f32 %v14923_v32, %v14921_v9  ;;  %v14929_v27 = vld [vmem:[#allocation2 + $0x10] sm:$0xff]  ;;  %v14931_v62 = vld [vmem:[#allocation2 + $0x18] sm:$0xff]  ;;  %v14937_v61 = vld [vmem:[#allocation2 + $0x20] sm:$0xff] }
 0xbf6   : > { %v14933_v18 = vld [vmem:[#allocation2 + $0x90] sm:$0xff]  ;;  %v14935_v3 = vld [vmem:[#allocation2 + $0x98] sm:$0xff]  ;;  %v14939_v48 = vld [vmem:[#allocation2 + $0x28] sm:$0xff]  ;;  %v6842_v26 = vadd.f32 %v14931_v62, %v14929_v27 }
 0xbf7   : > { %v14943_v47 = vld [vmem:[#allocation2 + $0xa0] sm:$0xff]  ;;  %v14945_v30 = vld [vmem:[#allocation2 + $0xa8] sm:$0xff]  ;;  %v6866_v16 = vadd.f32 %v14935_v3, %v14933_v18  ;;  %v14949_v21 = vld [vmem:[#allocation2 + $0x30] sm:$0xff]  ;;  %v6845_v63 = vadd.f32 %v14939_v48, %v14937_v61 }
 0xbf8   : > { %6858 = vadd.xlane.f32.xlu0 %v6857_v42  ;;  %v14951_v6 = vld [vmem:[#allocation2 + $0x38] sm:$0xff]  ;;  %v14955_v36 = vld [vmem:[#allocation2 + $0xb0] sm:$0xff]  ;;  %v6869_v24 = vadd.f32 %v14945_v30, %v14943_v47  ;;  %v14961_v35 = vld [vmem:[#allocation2 + $0x40] sm:$0xff] }
 0xbf9   : > { %6864 = vadd.xlane.f32.xlu1 %v6863_v58  ;;  %v14957_v54 = vld [vmem:[#allocation2 + $0xb8] sm:$0xff]  ;;  %v14963_v60 = vld [vmem:[#allocation2 + $0x48] sm:$0xff]  ;;  %v6848_v14 = vadd.f32 %v14951_v6, %v14949_v21  ;;  %v14967_v28 = vld [vmem:[#allocation2 + $0xc0] sm:$0xff] }
 0xbfa   : > { %v14969_v15 = vld [vmem:[#allocation2 + $0xc8] sm:$0xff]  ;;  %v6872_v43 = vadd.f32 %v14957_v54, %v14955_v36  ;;  %v14973_v51 = vld [vmem:[#allocation2 + $0x50] sm:$0xff]  ;;  %v14975_v23 = vld [vmem:[#allocation2 + $0x58] sm:$0xff]  ;;  %v6851_v5 = vadd.f32 %v14963_v60, %v14961_v35 }
 0xbfb   : > { %v14979_v49 = vld [vmem:[#allocation2 + $0xd0] sm:$0xff]  ;;  %v14981_v41 = vld [vmem:[#allocation2 + $0xd8] sm:$0xff]  ;;  %v6875_v53 = vadd.f32 %v14969_v15, %v14967_v28  ;;  %v6854_v11 = vadd.f32 %v14975_v23, %v14973_v51 }
 0xbfc   : > { %6882 = vadd.xlane.f32.xlu0 %v6881_v20  ;;  %v6878_v33 = vadd.f32 %v14981_v41, %v14979_v49 }
 0xbfd   : > { %6885 = vadd.xlane.f32.xlu1 %v6884_v34 }
 0xc00   : > { %6843 = vadd.xlane.f32.xlu0 %v6842_v26 }
 0xc01   : > { %6867 = vadd.xlane.f32.xlu1 %v6866_v16 }
 0xc04   : > { %6846 = vadd.xlane.f32.xlu0 %v6845_v63 }
 0xc05   : > { %6870 = vadd.xlane.f32.xlu1 %v6869_v24 }
 0xc08   : > { %6849 = vadd.xlane.f32.xlu0 %v6848_v14 }
 0xc09   : > { %6873 = vadd.xlane.f32.xlu1 %v6872_v43 }
 0xc0c   : > { %6852 = vadd.xlane.f32.xlu0 %v6851_v5 }
 0xc0d   : > { %6876 = vadd.xlane.f32.xlu1 %v6875_v53 }
 0xc10   : > { %6855 = vadd.xlane.f32.xlu0 %v6854_v11 }
 0xc11   : > { %6879 = vadd.xlane.f32.xlu1 %v6878_v33 }
 0xc81   : > { %v6841_v56 = vpop.xlane.xlu0 %6840 }
 0xc82   : > { %v6888_v25 = vmul.f32 0.00390625, %v6841_v56  ;;  %v6862_v55 = vpop.xlane.xlu1 %6861 }
 0xc83   : > { %v6895_v46 = vmul.f32 0.00390625, %v6862_v55 }
 0xc84   : > { %v14990_v57 = vsub.f32 %v14893_v22, %v6888_v25  ;;  %v14993_v13 = vsub.f32 %v14895_v31, %v6888_v25 }
 0xc85   : > { %v14996_v38 = vsub.f32 %v14897_v1, %v6895_v46  ;;  %v14999_v2 = vsub.f32 %v14901_v40, %v6895_v46  ;;  %v6859_v44 = vpop.xlane.xlu0 %6858 }
 0xc86   : > { %v6894_v37 = vmul.f32 0.00390625, %v6859_v44  ;;  %v6865_v45 = vpop.xlane.xlu1 %6864  ;;  %v6936_v50 = vmul.f32 %v14990_v57, %v14990_v57  ;;  %v6937_v52 = vmul.f32 %v14993_v13, %v14993_v13 }
 0xc87   : > { %v6896_v39 = vmul.f32 0.00390625, %v6865_v45  ;;  %v6950_v7 = vmul.f32 %v14996_v38, %v14996_v38  ;;  %v6951_v29 = vmul.f32 %v14999_v2, %v14999_v2 }
 0xc88   : > { %v15010_v22 = vsub.f32 %v14903_v10, %v6894_v37  ;;  %v15013_v31 = vsub.f32 %v14905_v8, %v6894_v37  ;;  %v6968_v1 = vadd.f32 %v6937_v52, %v6936_v50 }
 0xc89   : > { %v15016_v59 = vsub.f32 %v14909_v17, %v6896_v39  ;;  %v15019_v40 = vsub.f32 %v14911_v12, %v6896_v39  ;;  %v6883_v4 = vpop.xlane.xlu0 %6882  ;;  %v6989_v20 = vadd.f32 %v6951_v29, %v6950_v7 }
 0xc8a   : > { %v6902_v42 = vmul.f32 0.00390625, %v6883_v4  ;;  %6969 = vadd.xlane.f32.xlu0 %v6968_v1  ;;  %v6886_v58 = vpop.xlane.xlu1 %6885  ;;  %v6948_v34 = vmul.f32 %v15010_v22, %v15010_v22  ;;  %v6949_v10 = vmul.f32 %v15013_v31, %v15013_v31 }
 0xc8b   : > { %v6903_v8 = vmul.f32 0.00390625, %v6886_v58  ;;  %v6952_v26 = vmul.f32 %v15016_v59, %v15016_v59  ;;  %v6953_v17 = vmul.f32 %v15019_v40, %v15019_v40 }
 0xc8c   : > { %v15030_v12 = vsub.f32 %v14917_v0, %v6902_v42  ;;  %v15033_v16 = vsub.f32 %v14919_v19, %v6902_v42  ;;  %v6986_v63 = vadd.f32 %v6949_v10, %v6948_v34 }
 0xc8d   : > { %v15036_v24 = vsub.f32 %v14921_v9, %v6903_v8  ;;  %v15039_v14 = vsub.f32 %v14923_v32, %v6903_v8  ;;  %v6844_v43 = vpop.xlane.xlu0 %6843  ;;  %v6992_v11 = vadd.f32 %v6953_v17, %v6952_v26 }
 0xc8e   : > { %v6889_v5 = vmul.f32 0.00390625, %v6844_v43  ;;  %6990 = vadd.xlane.f32.xlu0 %v6989_v20  ;;  %6987 = vadd.xlane.f32.xlu1 %v6986_v63  ;;  %v6868_v53 = vpop.xlane.xlu1 %6867  ;;  %v6964_v0 = vmul.f32 %v15030_v12, %v15030_v12  ;;  %v6965_v19 = vmul.f32 %v15033_v16, %v15033_v16 }
 0xc8f   : > { %v6897_v33 = vmul.f32 0.00390625, %v6868_v53  ;;  %v6966_v9 = vmul.f32 %v15036_v24, %v15036_v24  ;;  %v6967_v32 = vmul.f32 %v15039_v14, %v15039_v14 }
 0xc90   : > { %v15050_v56 = vsub.f32 %v14929_v27, %v6889_v5  ;;  %v15053_v25 = vsub.f32 %v14931_v62, %v6889_v5  ;;  %v7010_v55 = vadd.f32 %v6965_v19, %v6964_v0 }
 0xc91   : > { %v15056_v46 = vsub.f32 %v14933_v18, %v6897_v33  ;;  %v15059_v44 = vsub.f32 %v14935_v3, %v6897_v33  ;;  %v6847_v37 = vpop.xlane.xlu0 %6846  ;;  %v7013_v52 = vadd.f32 %v6967_v32, %v6966_v9 }
 0xc92   : > { %v6890_v45 = vmul.f32 0.00390625, %v6847_v37  ;;  %6993 = vadd.xlane.f32.xlu1 %v6992_v11  ;;  %7011 = vadd.xlane.f32.xlu0 %v7010_v55  ;;  %v6871_v50 = vpop.xlane.xlu1 %6870  ;;  %v6938_v27 = vmul.f32 %v15050_v56, %v15050_v56  ;;  %v6939_v62 = vmul.f32 %v15053_v25, %v15053_v25 }
 0xc93   : > { %18810 = vst [vmem:[#allocation242_spill] sm:$0xff] %v15059_v44  ;;  %v6898_v39 = vmul.f32 0.00390625, %v6871_v50  ;;  %v6954_v18 = vmul.f32 %v15056_v46, %v15056_v46  ;;  %v6955_v3 = vmul.f32 %v15059_v44, %v15059_v44 }
 0xc94   : > { %v15070_v7 = vsub.f32 %v14937_v61, %v6890_v45  ;;  %v15073_v29 = vsub.f32 %v14939_v48, %v6890_v45  ;;  %v6971_v1 = vadd.f32 %v6939_v62, %v6938_v27 }
 0xc95   : > { %v15076_v4 = vsub.f32 %v14943_v47, %v6898_v39  ;;  %v15079_v42 = vsub.f32 %v14945_v30, %v6898_v39  ;;  %v6850_v58 = vpop.xlane.xlu0 %6849  ;;  %v6995_v10 = vadd.f32 %v6955_v3, %v6954_v18 }
 0xc96   : > { %18811 = vst [vmem:[#allocation243_spill] sm:$0xff] %v15070_v7  ;;  %18812 = vst [vmem:[#allocation244_spill] sm:$0xff] %v15073_v29  ;;  %v6891_v20 = vmul.f32 0.00390625, %v6850_v58  ;;  %7014 = vadd.xlane.f32.xlu1 %v7013_v52  ;;  %6972 = vadd.xlane.f32.xlu0 %v6971_v1  ;;  %v6874_v34 = vpop.xlane.xlu1 %6873  ;;  %v6940_v61 = vmul.f32 %v15070_v7, %v15070_v7  ;;  %v6941_v48 = vmul.f32 %v15073_v29, %v15073_v29 }
 0xc97   : > { %18813 = vst [vmem:[#allocation245_spill] sm:$0xff] %v15076_v4  ;;  %18814 = vst [vmem:[#allocation246_spill] sm:$0xff] %v15079_v42  ;;  %v6899_v8 = vmul.f32 0.00390625, %v6874_v34  ;;  %v6956_v47 = vmul.f32 %v15076_v4, %v15076_v4  ;;  %v6957_v30 = vmul.f32 %v15079_v42, %v15079_v42 }
 0xc98   : > { %v15090_v26 = vsub.f32 %v14949_v21, %v6891_v20  ;;  %v15093_v17 = vsub.f32 %v14951_v6, %v6891_v20  ;;  %v6974_v63 = vadd.f32 %v6941_v48, %v6940_v61 }
 0xc99   : > { %v15096_v43 = vsub.f32 %v14955_v36, %v6899_v8  ;;  %v15099_v5 = vsub.f32 %v14957_v54, %v6899_v8  ;;  %v6853_v53 = vpop.xlane.xlu0 %6852  ;;  %v6998_v19 = vadd.f32 %v6957_v30, %v6956_v47 }
 0xc9a   : > { %18815 = vst [vmem:[#allocation247_spill] sm:$0xff] %v15090_v26  ;;  %18816 = vst [vmem:[#allocation248_spill] sm:$0xff] %v15093_v17  ;;  %v6892_v11 = vmul.f32 0.00390625, %v6853_v53  ;;  %6996 = vadd.xlane.f32.xlu1 %v6995_v10  ;;  %6975 = vadd.xlane.f32.xlu0 %v6974_v63  ;;  %v6877_v0 = vpop.xlane.xlu1 %6876  ;;  %v6942_v21 = vmul.f32 %v15090_v26, %v15090_v26  ;;  %v6943_v6 = vmul.f32 %v15093_v17, %v15093_v17 }
 0xc9b   : > { %18817 = vst [vmem:[#allocation249_spill] sm:$0xff] %v15096_v43  ;;  %18818 = vst [vmem:[#allocation250_spill] sm:$0xff] %v15099_v5  ;;  %v6900_v33 = vmul.f32 0.00390625, %v6877_v0  ;;  %v6958_v36 = vmul.f32 %v15096_v43, %v15096_v43  ;;  %v6959_v54 = vmul.f32 %v15099_v5, %v15099_v5 }
 0xc9c   : > { %v15110_v9 = vsub.f32 %v14961_v35, %v6892_v11  ;;  %v15113_v32 = vsub.f32 %v14963_v60, %v6892_v11  ;;  %v6977_v55 = vadd.f32 %v6943_v6, %v6942_v21 }
 0xc9d   : > { %v15116_v37 = vsub.f32 %v14967_v28, %v6900_v33  ;;  %v15119_v45 = vsub.f32 %v14969_v15, %v6900_v33  ;;  %v6856_v50 = vpop.xlane.xlu0 %6855  ;;  %v7001_v62 = vadd.f32 %v6959_v54, %v6958_v36  ;;  %v7096_v33 = vld [vmem:[%s17748_s12] sm:$0x3]  ;;  %v18827_v54 = vld [vmem:[#allocation70_spill] sm:$0xff] }
 0xc9e   : > { %18819 = vst [vmem:[#allocation251_spill] sm:$0xff] %v15110_v9  ;;  %18820 = vst [vmem:[#allocation252_spill] sm:$0xff] %v15113_v32  ;;  %v6893_v52 = vmul.f32 0.00390625, %v6856_v50  ;;  %6999 = vadd.xlane.f32.xlu1 %v6998_v19  ;;  %6978 = vadd.xlane.f32.xlu0 %v6977_v55  ;;  %v6880_v27 = vpop.xlane.xlu1 %6879  ;;  %v6944_v35 = vmul.f32 %v15110_v9, %v15110_v9  ;;  %v6945_v60 = vmul.f32 %v15113_v32, %v15113_v32  ;;  %v7140_v36 = vld [vmem:[%s17749_s13] sm:$0x3]  ;;  %v18842_v9 = vld [vmem:[#allocation56_spill] sm:$0xff] }
 0xc9f   : > { %18821 = vst [vmem:[#allocation253_spill] sm:$0xff] %v15116_v37  ;;  %18822 = vst [vmem:[#allocation254_spill] sm:$0xff] %v15119_v45  ;;  %v6901_v39 = vmul.f32 0.00390625, %v6880_v27  ;;  %v6960_v28 = vmul.f32 %v15116_v37, %v15116_v37  ;;  %v6961_v15 = vmul.f32 %v15119_v45, %v15119_v45  ;;  %v7734_v55 = vsub.s32 4, %v18827_v54  ;;  %v15159_v50 = vld [vmem:[%s17750_s14] sm:$0xff] }
 0xca0   : > { %v15130_v18 = vsub.f32 %v14973_v51, %v6893_v52  ;;  %v15133_v3 = vsub.f32 %v14975_v23, %v6893_v52  ;;  %v6980_v1 = vadd.f32 %v6945_v60, %v6944_v35  ;;  %v15164_v52 = vld [vmem:[%s17750_s14 + $0x8] sm:$0xff]  ;;  %v8046_v60 = vsub.s32 7, %v18827_v54 }
 0xca1   : > { %v15136_v58 = vsub.f32 %v14979_v49, %v6901_v39  ;;  %v15139_v20 = vsub.f32 %v14981_v41, %v6901_v39  ;;  %v7004_v34 = vadd.f32 %v6961_v15, %v6960_v28  ;;  %v18828_v39 = vld [vmem:[#allocation72_spill] sm:$0xff]  ;;  %v18829_v15 = vld [vmem:[#allocation73_spill] sm:$0xff] }
 0xca2   : > { %18823 = vst [vmem:[#allocation255_spill] sm:$0xff] %v15130_v18  ;;  %18824 = vst [vmem:[#allocation256_spill] sm:$0xff] %v15133_v3  ;;  %7002 = vadd.xlane.f32.xlu1 %v7001_v62  ;;  %6981 = vadd.xlane.f32.xlu0 %v6980_v1  ;;  %v6946_v10 = vmul.f32 %v15130_v18, %v15130_v18  ;;  %v6947_v51 = vmul.f32 %v15133_v3, %v15133_v3 }
 0xca3   : > { %18825 = vst [vmem:[#allocation257_spill] sm:$0xff] %v15136_v58  ;;  %18826 = vst [vmem:[#allocation258_spill] sm:$0xff] %v15139_v20  ;;  %v6962_v23 = vmul.f32 %v15136_v58, %v15136_v58  ;;  %v6963_v61 = vmul.f32 %v15139_v20, %v15139_v20  ;;  %v15168_v28 = vrot.slane %v7096_v33, %v18828_v39 }
 0xca4   : > { %v6983_v49 = vadd.f32 %v6947_v51, %v6946_v10  ;;  %v15171_v1 = vrot.slane %v7096_v33, %v18829_v15  ;;  %v15177_v10 = vrot.slane %v7140_v36, %v18829_v15  ;;  %v15181_v51 = vrot.slane %v15159_v50, %v18829_v15 }
 0xca5   : > { %v7007_v41 = vadd.f32 %v6963_v61, %v6962_v23  ;;  %v15185_v23 = vrot.slane %v15164_v52, %v18829_v15  ;;  %v15188_v61 = vrot.slane %v15159_v50, %v7734_v55 }
 0xca6   : > { %7005 = vadd.xlane.f32.xlu1 %v7004_v34  ;;  %6984 = vadd.xlane.f32.xlu0 %v6983_v49  ;;  %v15174_v34 = vrot.slane %v7140_v36, %v18828_v39  ;;  %v7630_v36 = vsub.s32 3, %v18827_v54 }
 0xca8   : > { %v15239_v58 = vrot.slane %v15164_v52, %v7630_v36 }
 0xcaa   : > { %7008 = vadd.xlane.f32.xlu1 %v7007_v41 }
 0xd17   : > { %v6970_v48 = vpop.xlane.xlu0 %6969 }
 0xd18   : > { %v7016_v8 = vmul.f32 0.00390625, %v6970_v48 }
 0xd1a   : > { %v7032_v47 = vadd.f32 1e-06, %v7016_v8  ;;  %v15191_v8 = vrot.slane %v15164_v52, %v7734_v55 }
 0xd1b   : > { %v6988_v30 = vpop.xlane.xlu1 %6987  ;;  %v6991_v63 = vpop.xlane.xlu0 %6990 }
 0xd1c   : > { %v7022_v53 = vmul.f32 0.00390625, %v6988_v30  ;;  %v7023_v11 = vmul.f32 0.00390625, %v6991_v63  ;;  %10892 = vrsqrt.f32 %v7032_v47 }
 0xd1e   : > { %v7038_v0 = vadd.f32 1e-06, %v7022_v53  ;;  %v7039_v19 = vadd.f32 1e-06, %v7023_v11  ;;  %v15196_v11 = vrot.slane %v15159_v50, %v8046_v60 }
 0xd1f   : > { %v6994_v21 = vpop.xlane.xlu1 %6993  ;;  %v7012_v6 = vpop.xlane.xlu0 %7011 }
 0xd20   : > { %10894 = vrsqrt.f32 %v7038_v0  ;;  %v7024_v27 = vmul.f32 0.00390625, %v6994_v21  ;;  %v7030_v49 = vmul.f32 0.00390625, %v7012_v6  ;;  %v15199_v0 = vrot.slane %v15164_v52, %v8046_v60 }
 0xd21   : > { %10896 = vrsqrt.f32 %v7039_v19  ;;  %v7526_v19 = vsub.s32 2, %v18827_v54 }
 0xd22   : > { %v7040_v63 = vadd.f32 1e-06, %v7024_v27 }
 0xd23   : > { %v7015_v62 = vpop.xlane.xlu1 %7014  ;;  %v6973_v41 = vpop.xlane.xlu0 %6972 }
 0xd24   : > { %v7031_v21 = vmul.f32 0.00390625, %v7015_v62  ;;  %v7017_v15 = vmul.f32 0.00390625, %v6973_v41  ;;  %v7942_v62 = vsub.s32 6, %v18827_v54  ;;  %10898 = vrsqrt.f32 %v7040_v63 }
 0xd26   : > { %v10893_v35 = vpop.eup %10892 }
 0xd27   : > { %v7064_v47 = vmul.f32 %v10893_v35, %v14990_v57  ;;  %v7065_v30 = vmul.f32 %v10893_v35, %v14993_v13  ;;  %v7838_v57 = vsub.s32 5, %v18827_v54  ;;  %v6997_v13 = vpop.xlane.xlu1 %6996  ;;  %v7046_v35 = vadd.f32 1e-06, %v7030_v49 }
 0xd29   : > { %v7108_v60 = vmul.f32 %v15168_v28, %v7064_v47  ;;  %v7109_v20 = vmul.f32 %v15171_v1, %v7065_v30  ;;  %v15222_v47 = vrot.slane %v15159_v50, %v7526_v19  ;;  %v15225_v30 = vrot.slane %v15164_v52, %v7526_v19 }
 0xd2a   : > { %v10895_v48 = vpop.eup %10894  ;;  %10900 = vrsqrt.f32 %v7046_v35  ;;  %v15242_v19 = vrot.slane %v15159_v50, %v7838_v57 }
 0xd2b   : > { %v10897_v53 = vpop.eup %10896  ;;  %v7076_v6 = vmul.f32 %v10895_v48, %v15010_v22  ;;  %v7077_v33 = vmul.f32 %v10895_v48, %v15013_v31  ;;  %v15213_v22 = vrot.slane %v15159_v50, %v18828_v39  ;;  %v15217_v31 = vrot.slane %v15164_v52, %v18828_v39 }
 0xd2c   : > { %v7078_v55 = vmul.f32 %v10897_v53, %v14996_v38  ;;  %v7079_v27 = vmul.f32 %v10897_v53, %v14999_v2  ;;  %v7047_v38 = vadd.f32 1e-06, %v7031_v21  ;;  %v7025_v48 = vmul.f32 0.00390625, %v6997_v13  ;;  %v6976_v2 = vpop.xlane.xlu0 %6975 }
 0xd2d   : > { %v7120_v49 = vmul.f32 %v15168_v28, %v7076_v6  ;;  %v7121_v41 = vmul.f32 %v15171_v1, %v7077_v33  ;;  %v7033_v39 = vadd.f32 1e-06, %v7017_v15  ;;  %v15230_v21 = vadd.f32 %v15174_v34, %v7108_v60  ;;  %v7000_v60 = vpop.xlane.xlu1 %6999 }
 0xd2e   : > { %v7122_v63 = vmul.f32 %v15168_v28, %v7078_v55  ;;  %v7123_v53 = vmul.f32 %v15171_v1, %v7079_v27  ;;  %v15233_v13 = vadd.f32 %v15177_v10, %v7109_v20  ;;  %v15236_v6 = vrot.slane %v15159_v50, %v7630_v36 }
 0xd2f   : > { %v7018_v33 = vmul.f32 0.00390625, %v6976_v2  ;;  %10902 = vrsqrt.f32 %v7047_v38  ;;  %v7041_v55 = vadd.f32 1e-06, %v7025_v48  ;;  %v15245_v15 = vadd.f32 %v15174_v34, %v7120_v49  ;;  %v18833_v48 = vld [vmem:[#allocation86_spill] sm:$0xff] }
 0xd30   : > { %v15248_v27 = vadd.f32 %v15177_v10, %v7121_v41  ;;  %v15251_v20 = vadd.f32 %v15174_v34, %v7122_v63  ;;  %v15254_v35 = vadd.f32 %v15177_v10, %v7123_v53  ;;  %v15257_v36 = vrot.slane %v15164_v52, %v7838_v57  ;;  %v18834_v63 = vld [vmem:[#allocation104_spill] sm:$0xff] }
 0xd31   : > { %18830 = vst [vmem:[#allocation259_spill] sm:$0xff] %v15245_v15  ;;  %v15260_v2 = vrot.slane %v15159_v50, %v7942_v62  ;;  %v15263_v38 = vrot.slane %v15164_v52, %v7942_v62  ;;  %10904 = vrsqrt.f32 %v7033_v39  ;;  %v7326_v49 = vmul.f32 %v15230_v21, %v18833_v48  ;;  %v18836_v50 = vld [vmem:[#allocation236_spill] sm:$0xff]  ;;  %v10899_v39 = vpop.eup %10898 }
 0xd32   : > { %18831 = vst [vmem:[#allocation260_spill] sm:$0xff] %v15248_v27  ;;  %v7327_v41 = vmul.f32 %v15233_v13, %v18833_v48  ;;  %v7700_v53 = vmul.f32 %v15230_v21, %v18834_v63  ;;  %v15271_v3 = vadd.f32 1e-06, %v7018_v33  ;;  %v7701_v57 = vmul.f32 %v15233_v13, %v18834_v63  ;;  %v18843_v62 = vld [vmem:[#allocation144_spill] sm:$0xff] }
 0xd33   : > { %18832 = vst [vmem:[#allocation261_spill] sm:$0xff] %v15263_v38  ;;  %v8042_v18 = vmul.f32 %v15230_v21, %v18836_v50  ;;  %10906 = vrsqrt.f32 %v7041_v55  ;;  %v15277_v52 = vmul.f32 0.00390625, %v7000_v60  ;;  %v15288_v55 = vmul.f32 %v15181_v51, %v7326_v49 }
 0xd34   : > { %18835 = vst [vmem:[#allocation262_spill] sm:$0xff] %v15271_v3  ;;  %v15291_v60 = vmul.f32 %v15185_v23, %v7327_v41  ;;  %v15294_v45 = vmul.f32 %v15188_v61, %v7700_v53  ;;  %v15298_v37 = vmul.f32 %v15233_v13, %v18836_v50  ;;  %v10901_v33 = vpop.eup %10900  ;;  %v15301_v32 = vmul.f32 %v15191_v8, %v7701_v57 }
 0xd35   : > { %18837 = vst [vmem:[#allocation263_spill] sm:$0xff] %v15277_v52  ;;  %v15304_v63 = vmul.f32 %v15196_v11, %v8042_v18  ;;  %v7338_v49 = vmul.f32 %v15245_v15, %v18842_v9  ;;  %v7080_v41 = vmul.f32 %v10899_v39, %v15016_v59  ;;  %v7339_v53 = vmul.f32 %v15248_v27, %v18842_v9  ;;  %v18849_v9 = vld [vmem:[#allocation68_spill] sm:$0xff] }
 0xd36   : > { %18838 = vst [vmem:[#allocation264_spill] sm:$0xff] %v15294_v45  ;;  %18839 = vst [vmem:[#allocation265_spill] sm:$0xff] %v15298_v37  ;;  %v7712_v48 = vmul.f32 %v15245_v15, %v18843_v62  ;;  %v18844_v50 = vrot.slane %v15251_v20, 7  ;;  %v18845_v37 = vrot.slane %v15245_v15, 7  ;;  %v18846_v18 = vrot.slane %v15254_v35, 7 }
 0xd37   : > { %18840 = vst [vmem:[#allocation266_spill] sm:$0xff] %v15301_v32  ;;  %18841 = vst [vmem:[#allocation267_spill] sm:$0xff] %v15304_v63  ;;  %v18847_v63 = vrot.slane %v15248_v27, 7  ;;  %v7442_v17 = vrot.slane %v15251_v20, 1  ;;  %v7443_v26 = vrot.slane %v15254_v35, 1  ;;  %v7081_v4 = vmul.f32 %v10899_v39, %v15019_v40 }
 0xd38   : > { %v7236_v57 = vsel %vm4177_vm6, %v18845_v37, %v18844_v50  ;;  %v7713_v37 = vmul.f32 %v15248_v27, %v18843_v62  ;;  %v18848_v50 = vld [vmem:[#allocation195_spill] sm:$0xff]  ;;  %v7124_v7 = vmul.f32 %v15168_v28, %v7080_v41  ;;  %v15345_v38 = vmul.f32 %v10901_v33, %v15033_v16 }
 0xd39   : > { %v7237_v59 = vsel %vm4177_vm6, %v18847_v63, %v18846_v18  ;;  %v15325_v5 = vpop.eup %10902  ;;  %v8022_v42 = vmul.f32 %v15245_v15, %v18848_v50  ;;  %v15337_v63 = vmul.f32 %v10901_v33, %v15030_v12  ;;  %v7268_v29 = vmul.f32 %v7236_v57, %v18849_v9 }
 0xd3a   : > { %v7269_v43 = vmul.f32 %v7237_v59, %v18849_v9  ;;  %v15348_v62 = vmul.f32 %v15181_v51, %v7338_v49  ;;  %v15351_v3 = vmul.f32 %v15185_v23, %v7339_v53  ;;  %v15354_v40 = vmul.f32 %v15188_v61, %v7712_v48  ;;  %v18854_v9 = vld [vmem:[#allocation87_spill] sm:$0xff] }
 0xd3b   : > { %v15339_v18 = vpop.eup %10904  ;;  %v8023_v12 = vmul.f32 %v15248_v27, %v18848_v50  ;;  %v7340_v41 = vmul.f32 %v15251_v20, %v18854_v9  ;;  %v7341_v16 = vmul.f32 %v15254_v35, %v18854_v9  ;;  %v18855_v33 = vrot.slane %v15245_v15, 1 }
 0xd3c   : > { %18850 = vst [vmem:[#allocation268_spill] sm:$0xff] %v15348_v62  ;;  %18851 = vst [vmem:[#allocation269_spill] sm:$0xff] %v15351_v3  ;;  %v18856_v53 = vrot.slane %v15248_v27, 1  ;;  %v15373_v50 = vmul.f32 %v15191_v8, %v7713_v37  ;;  %v18859_v3 = vld [vmem:[#allocation142_spill] sm:$0xff]  ;;  %v7125_v9 = vmul.f32 %v15171_v1, %v7081_v4  ;;  %v7308_v15 = vmul.f32 %v15213_v22, %v7268_v29 }
 0xd3d   : > { %18852 = vst [vmem:[#allocation270_spill] sm:$0xff] %v15354_v40  ;;  %v15358_v39 = vpop.eup %10906  ;;  %v7476_v49 = vsel %vm4466_vm7, %v18855_v33, %v7442_v17  ;;  %v15376_v40 = vmul.f32 %v15196_v11, %v8022_v42  ;;  %v7610_v62 = vmul.f32 %v7236_v57, %v18859_v3  ;;  %v7309_v32 = vmul.f32 %v15217_v31, %v7269_v43  ;;  %v18861_v37 = vld [vmem:[#allocation14_spill] sm:$0xff]  ;;  %v18862_v43 = vld [vmem:[#allocation160_spill] sm:$0xff] }
 0xd3e   : > { %18853 = vst [vmem:[#allocation271_spill] sm:$0xff] %v15358_v39  ;;  %v7477_v48 = vsel %vm4466_vm7, %v18856_v53, %v7443_v26  ;;  %18857 = vst [vmem:[#allocation272_spill] sm:$0xff] %v15373_v50  ;;  %v7611_v33 = vmul.f32 %v7237_v59, %v18859_v3  ;;  %v15384_v27 = vadd.f32 %v15174_v34, %v7124_v7 }
 0xd3f   : > { %18858 = vst [vmem:[#allocation273_spill] sm:$0xff] %v15376_v40  ;;  %v15387_v53 = vmul.f32 %v15199_v0, %v8023_v12  ;;  %v7506_v50 = vmul.f32 %v7476_v49, %v18861_v37  ;;  %v7507_v42 = vmul.f32 %v7477_v48, %v18861_v37  ;;  %v15392_v40 = vadd.f32 %v15177_v10, %v7125_v9 }
 0xd40   : > { %v7380_v4 = vmul.f32 %v15181_v51, %v7340_v41  ;;  %v7381_v29 = vmul.f32 %v15185_v23, %v7341_v16  ;;  %v7714_v3 = vmul.f32 %v15251_v20, %v18862_v43  ;;  %v15400_v52 = vmul.f32 %v15236_v6, %v7610_v62  ;;  %v18865_v16 = vld [vmem:[#allocation149_spill] sm:$0xff] }
 0xd41   : > { %18860 = vst [vmem:[#allocation274_spill] sm:$0xff] %v15387_v53  ;;  %v7715_v12 = vmul.f32 %v15254_v35, %v18862_v43  ;;  %v18091_v9 = vrot.slane %v15392_v40, 1  ;;  %v15407_v41 = vmul.f32 %v15239_v58, %v7611_v33  ;;  %v7816_v44 = vmul.f32 %v7476_v49, %v18865_v16  ;;  %v18870_v33 = vld [vmem:[#allocation207_spill] sm:$0xff] }
 0xd42   : > { %18863 = vst [vmem:[#allocation275_spill] sm:$0xff] %v15400_v52  ;;  %v7412_v53 = vadd.f32 %v7380_v4, %v7308_v15  ;;  %v7413_v45 = vadd.f32 %v7381_v29, %v7309_v32  ;;  %v15411_v39 = vmul.f32 %v15222_v47, %v7506_v50  ;;  %v15414_v62 = vmul.f32 %v15225_v30, %v7507_v42  ;;  %v18873_v29 = vld [vmem:[#allocation226_spill] sm:$0xff] }
 0xd43   : > { %18864 = vst [vmem:[#allocation276_spill] sm:$0xff] %v15407_v41  ;;  %v18868_v43 = vrot.slane %v15384_v27, 1  ;;  %v15424_v32 = vmul.f32 %v15188_v61, %v7714_v3  ;;  %v7817_v15 = vmul.f32 %v7477_v48, %v18865_v16  ;;  %v7920_v4 = vmul.f32 %v7236_v57, %v18870_v33  ;;  %v18893_v41 = vld [vmem:[#allocation201_spill] sm:$0xff] }
 0xd44   : > { %18866 = vst [vmem:[#allocation277_spill] sm:$0xff] %v15411_v39  ;;  %18867 = vst [vmem:[#allocation278_spill] sm:$0xff] %v15414_v62  ;;  %v15432_v50 = vsel %vm4466_vm7, %v7443_v26, %v18091_v9  ;;  %v15435_v42 = vmul.f32 %v15191_v8, %v7715_v12  ;;  %v8025_v3 = vmul.f32 %v15254_v35, %v18873_v29  ;;  %v18875_v16 = vrot.slane %v15251_v20, 7  ;;  %v18878_v12 = vld [vmem:[#allocation231_spill] sm:$0xff] }
 0xd45   : > { %v15421_v37 = vsel %vm4466_vm7, %v7442_v17, %v18868_v43  ;;  %18869 = vst [vmem:[#allocation279_spill] sm:$0xff] %v15424_v32  ;;  %18871 = vst [vmem:[#allocation280_spill] sm:$0xff] %v15432_v50  ;;  %v8024_v17 = vmul.f32 %v15251_v20, %v18873_v29  ;;  %v18874_v43 = vrot.slane %v15384_v27, 7  ;;  %v15448_v7 = vmul.f32 %v15242_v19, %v7816_v44  ;;  %v18879_v32 = vld [vmem:[#allocation91_spill] sm:$0xff] }
 0xd46   : > { %18872 = vst [vmem:[#allocation281_spill] sm:$0xff] %v15435_v42  ;;  %v15451_v26 = vmul.f32 %v7237_v59, %v18870_v33  ;;  %v8126_v9 = vmul.f32 %v7476_v49, %v18878_v12  ;;  %v7508_v52 = vmul.f32 %v15421_v37, %v18879_v32  ;;  %v15459_v29 = vld [vmem:[%s17750_s14 + $0x10] ss:$0 sm:$0xff]  ;;  %v18881_v20 = vrot.slane %v15392_v40, 7  ;;  %v18886_v42 = vld [vmem:[#allocation66_spill] sm:$0xff] }
 0xd47   : > { %v7234_v57 = vsel %vm4177_vm6, %v18875_v16, %v18874_v43  ;;  %18876 = vst [vmem:[#allocation282_spill] sm:$0xff] %v15448_v7  ;;  %18880 = vst [vmem:[#allocation284_spill] sm:$0xff] %v15459_v29  ;;  %v18882_v43 = vrot.slane %v15254_v35, 7  ;;  %v7509_v59 = vmul.f32 %v15432_v50, %v18879_v32  ;;  %v7094_v49 = vmul.f32 %v15325_v5, %v15036_v24  ;;  %v18889_v24 = vld [vmem:[#allocation44_spill] sm:$0xff] }
 0xd48   : > { %18877 = vst [vmem:[#allocation283_spill] sm:$0xff] %v15451_v26  ;;  %v7095_v33 = vmul.f32 %v15325_v5, %v15039_v14  ;;  %v15474_v16 = vmul.f32 %v15257_v36, %v7817_v15  ;;  %v15477_v7 = vmul.f32 %v15260_v2, %v7920_v4  ;;  %v15480_v35 = vmul.f32 %v7477_v48, %v18878_v12  ;;  %v18890_v5 = vld [vmem:[#allocation105_spill] sm:$0xff] }
 0xd49   : > { %v7235_v44 = vsel %vm4177_vm6, %v18882_v43, %v18881_v20  ;;  %v7270_v20 = vmul.f32 %v7234_v57, %v18886_v42  ;;  %v15484_v43 = vmul.f32 %v15196_v11, %v8024_v17  ;;  %v15487_v32 = vmul.f32 %v15199_v0, %v8025_v3 }
 0xd4a   : > { %18883 = vst [vmem:[#allocation285_spill] sm:$0xff] %v15474_v16  ;;  %18884 = vst [vmem:[#allocation286_spill] sm:$0xff] %v15477_v7  ;;  %v7342_v14 = vmul.f32 %v15384_v27, %v18889_v24  ;;  %v7716_v15 = vmul.f32 %v15384_v27, %v18890_v5  ;;  %v15494_v4 = vmul.f32 %v15459_v29, %v8126_v9 }
 0xd4b   : > { %18885 = vst [vmem:[#allocation287_spill] sm:$0xff] %v15480_v35  ;;  %18887 = vst [vmem:[#allocation288_spill] sm:$0xff] %v15484_v43  ;;  %v7271_v48 = vmul.f32 %v7235_v44, %v18886_v42  ;;  %v7548_v12 = vmul.f32 %v15222_v47, %v7508_v52  ;;  %v7136_v17 = vmul.f32 %v15168_v28, %v15337_v63  ;;  %v18892_v42 = vld [vmem:[#allocation97_spill] sm:$0xff] }
 0xd4c   : > { %18888 = vst [vmem:[#allocation289_spill] sm:$0xff] %v15487_v32  ;;  %18891 = vst [vmem:[#allocation290_spill] sm:$0xff] %v15494_v4  ;;  %v7549_v43 = vmul.f32 %v15225_v30, %v7509_v59  ;;  %v7137_v3 = vmul.f32 %v15171_v1, %v15345_v38  ;;  %v7138_v7 = vmul.f32 %v15168_v28, %v7094_v49 }
 0xd4d   : > { %v7139_v32 = vmul.f32 %v15171_v1, %v7095_v33  ;;  %v7310_v16 = vmul.f32 %v15213_v22, %v7270_v20  ;;  %v7343_v9 = vmul.f32 %v15392_v40, %v18889_v24  ;;  %v7612_v4 = vmul.f32 %v7234_v57, %v18892_v42 }
 0xd4e   : > { %v7717_v52 = vmul.f32 %v15392_v40, %v18890_v5  ;;  %v7382_v63 = vmul.f32 %v15181_v51, %v7342_v14  ;;  %v7613_v59 = vmul.f32 %v7235_v44, %v18892_v42  ;;  %v7756_v38 = vmul.f32 %v15188_v61, %v7716_v15 }
 0xd4f   : > { %v15516_v49 = vmul.f32 %v15339_v18, %v15050_v56  ;;  %v7311_v33 = vmul.f32 %v15217_v31, %v7271_v48  ;;  %v7580_v20 = vadd.f32 %v7548_v12, %v7412_v53  ;;  %v7818_v24 = vmul.f32 %v15421_v37, %v18893_v41 }
 0xd50   : > { %v15522_v62 = vadd.f32 %v15174_v34, %v7136_v17  ;;  %v7581_v5 = vadd.f32 %v7549_v43, %v7413_v45  ;;  %v15525_v14 = vadd.f32 %v15177_v10, %v7137_v3  ;;  %v15528_v42 = vadd.f32 %v15174_v34, %v7138_v7  ;;  %v18896_v45 = vld [vmem:[#allocation175_spill] sm:$0xff] }
 0xd51   : > { %v15531_v15 = vadd.f32 %v15177_v10, %v7139_v32  ;;  %v7383_v56 = vmul.f32 %v15185_v23, %v7343_v9  ;;  %v15534_v48 = vadd.f32 %v7382_v63, %v7310_v16  ;;  %v7652_v53 = vmul.f32 %v15236_v6, %v7612_v4  ;;  %v18898_v9 = vld [vmem:[#allocation202_spill] sm:$0xff] }
 0xd52   : > { %18894 = vst [vmem:[#allocation291_spill] sm:$0xff] %v15522_v62  ;;  %18895 = vst [vmem:[#allocation292_spill] sm:$0xff] %v15525_v14  ;;  %v7757_v12 = vmul.f32 %v15191_v8, %v7717_v52  ;;  %v7653_v17 = vmul.f32 %v15239_v58, %v7613_v59  ;;  %v7922_v43 = vmul.f32 %v7234_v57, %v18896_v45  ;;  %v7218_v3 = vrot.slane %v15528_v42, 7 }
 0xd53   : > { %v7219_v7 = vrot.slane %v15531_v15, 7  ;;  %v7684_v39 = vadd.f32 %v7652_v53, %v7580_v20  ;;  %v15544_v32 = vmul.f32 %v15432_v50, %v18893_v41  ;;  %v8026_v16 = vmul.f32 %v15384_v27, %v18898_v9  ;;  %v18903_v20 = vld [vmem:[#allocation230_spill] sm:$0xff] }
 0xd54   : > { %v18092_v4 = vrot.slane %v15522_v62, 7  ;;  %v15549_v63 = vadd.f32 %v7383_v56, %v7311_v33  ;;  %v7685_v52 = vadd.f32 %v7653_v17, %v7581_v5  ;;  %v15552_v59 = vmul.f32 %v15242_v19, %v7818_v24  ;;  %v18906_v5 = vld [vmem:[#allocation55_spill] sm:$0xff]  ;;  %v18916_v50 = vld [vmem:[#allocation42_spill] sm:$0xff] }
 0xd55   : > { %18897 = vst [vmem:[#allocation293_spill] sm:$0xff] %v15544_v32  ;;  %v18093_v57 = vrot.slane %v15525_v14, 7  ;;  %v15556_v35 = vmul.f32 %v7235_v44, %v18896_v45  ;;  %v15560_v41 = vmul.f32 %v15392_v40, %v18898_v9  ;;  %v15564_v53 = vmul.f32 %v15421_v37, %v18903_v20  ;;  %v18917_v20 = vld [vmem:[#allocation216_spill] sm:$0xff] }
 0xd56   : > { %18899 = vst [vmem:[#allocation294_spill] sm:$0xff] %v15549_v63  ;;  %18900 = vst [vmem:[#allocation295_spill] sm:$0xff] %v15552_v59  ;;  %v15570_v33 = vsel %vm4177_vm6, %v18092_v4, %v7218_v3  ;;  %v15573_v24 = vmul.f32 %v15260_v2, %v7922_v43  ;;  %v7354_v44 = vmul.f32 %v15522_v62, %v18906_v5  ;;  %v18907_v37 = vrot.slane %v15230_v21, 7 }
 0xd57   : > { %18901 = vst [vmem:[#allocation296_spill] sm:$0xff] %v15556_v35  ;;  %18902 = vst [vmem:[#allocation297_spill] sm:$0xff] %v15560_v41  ;;  %v15581_v56 = vsel %vm4177_vm6, %v18093_v57, %v7219_v7  ;;  %v15589_v45 = vadd.f32 %v7756_v38, %v7684_v39  ;;  %v15592_v43 = vmul.f32 %v15196_v11, %v8026_v16  ;;  %v18910_v9 = vrot.slane %v15233_v13, 7 }
 0xd58   : > { %18904 = vst [vmem:[#allocation298_spill] sm:$0xff] %v15564_v53  ;;  %18905 = vst [vmem:[#allocation299_spill] sm:$0xff] %v15573_v24  ;;  %v15587_v17 = vsel %vm4177_vm6, %v7218_v3, %v18907_v37  ;;  %v7458_v57 = vrot.slane %v15528_v42, 1  ;;  %v15601_v53 = vadd.f32 %v7757_v12, %v7685_v52  ;;  %v7355_v24 = vmul.f32 %v15525_v14, %v18906_v5  ;;  %v18912_v3 = vld [vmem:[#allocation110_spill] sm:$0xff] }
 0xd59   : > { %18908 = vst [vmem:[#allocation300_spill] sm:$0xff] %v15589_v45  ;;  %18909 = vst [vmem:[#allocation301_spill] sm:$0xff] %v15592_v43  ;;  %v15598_v4 = vsel %vm4177_vm6, %v7219_v7, %v18910_v9  ;;  %v7252_v39 = vmul.f32 %v15570_v33, %v18912_v3  ;;  %v7459_v38 = vrot.slane %v15531_v15, 1  ;;  %v7253_v7 = vmul.f32 %v15581_v56, %v18912_v3  ;;  %v18913_v9 = vld [vmem:[#allocation111_spill] sm:$0xff]  ;;  %v18915_v52 = vld [vmem:[#allocation146_spill] sm:$0xff] }
 0xd5a   : > { %18911 = vst [vmem:[#allocation302_spill] sm:$0xff] %v15601_v53  ;;  %v7254_v43 = vmul.f32 %v15587_v17, %v18913_v9  ;;  %v15615_v12 = vmul.f32 %v15181_v51, %v7354_v44  ;;  %v7728_v5 = vmul.f32 %v15522_v62, %v18915_v52  ;;  %v7255_v59 = vmul.f32 %v15598_v4, %v18913_v9 }
 0xd5b   : > { %v7324_v16 = vmul.f32 %v15528_v42, %v18916_v50  ;;  %v7729_v37 = vmul.f32 %v15525_v14, %v18915_v52  ;;  %v8038_v3 = vmul.f32 %v15522_v62, %v18917_v20  ;;  %v7325_v41 = vmul.f32 %v15531_v15, %v18916_v50 }
 0xd5c   : > { %18914 = vst [vmem:[#allocation303_spill] sm:$0xff] %v15615_v12  ;;  %v18918_v44 = vrot.slane %v15230_v21, 1  ;;  %v15636_v9 = vmul.f32 %v15185_v23, %v7355_v24  ;;  %v7292_v35 = vmul.f32 %v15213_v22, %v7252_v39  ;;  %v18920_v26 = vrot.slane %v15522_v62, 1  ;;  %v18925_v62 = vld [vmem:[#allocation122_spill] sm:$0xff] }
 0xd5d   : > { %v18921_v32 = vrot.slane %v15233_v13, 1  ;;  %v7293_v53 = vmul.f32 %v15217_v31, %v7253_v7  ;;  %v7294_v24 = vmul.f32 %v15213_v22, %v7254_v43  ;;  %v18923_v39 = vrot.slane %v15525_v14, 1 }
 0xd5e   : > { %v15633_v12 = vsel %vm4466_vm7, %v7458_v57, %v18918_v44  ;;  %18919 = vst [vmem:[#allocation304_spill] sm:$0xff] %v15636_v9  ;;  %v7460_v52 = vsel %vm4466_vm7, %v18920_v26, %v7458_v57  ;;  %v8039_v44 = vmul.f32 %v15525_v14, %v18917_v20  ;;  %v15658_v26 = vmul.f32 %v15188_v61, %v7728_v5  ;;  %v18927_v14 = vld [vmem:[#allocation5_spill] sm:$0xff] }
 0xd5f   : > { %v15647_v50 = vsel %vm4466_vm7, %v7459_v38, %v18921_v32  ;;  %v7461_v9 = vsel %vm4466_vm7, %v18923_v39, %v7459_v38  ;;  %v7295_v57 = vmul.f32 %v15217_v31, %v7255_v59  ;;  %v7364_v32 = vmul.f32 %v15181_v51, %v7324_v16  ;;  %v18929_v16 = vld [vmem:[#allocation137_spill] sm:$0xff] }
 0xd60   : > { %18922 = vst [vmem:[#allocation305_spill] sm:$0xff] %v15647_v50  ;;  %18924 = vst [vmem:[#allocation306_spill] sm:$0xff] %v15658_v26  ;;  %v7492_v45 = vmul.f32 %v15633_v12, %v18925_v62  ;;  %v15665_v20 = vmul.f32 %v15191_v8, %v7729_v37  ;;  %v7365_v43 = vmul.f32 %v15185_v23, %v7325_v41 }
 0xd61   : > { %v7493_v7 = vmul.f32 %v15647_v50, %v18925_v62  ;;  %v7522_v38 = vmul.f32 %v7460_v52, %v18927_v14  ;;  %v15672_v5 = vmul.f32 %v15196_v11, %v8038_v3  ;;  %v7396_v39 = vadd.f32 %v7364_v32, %v7292_v35  ;;  %v18931_v3 = vld [vmem:[#allocation96_spill] sm:$0xff] }
 0xd62   : > { %18926 = vst [vmem:[#allocation307_spill] sm:$0xff] %v15665_v20  ;;  %v7523_v59 = vmul.f32 %v7461_v9, %v18927_v14  ;;  %v7730_v26 = vmul.f32 %v15528_v42, %v18929_v16  ;;  %v15678_v63 = vmul.f32 %v15199_v0, %v8039_v44  ;;  %v7397_v37 = vadd.f32 %v7365_v43, %v7293_v53 }
 0xd63   : > { %18928 = vst [vmem:[#allocation308_spill] sm:$0xff] %v15672_v5  ;;  %v15681_v41 = vadd.f32 %v15288_v55, %v7294_v24  ;;  %v7067_v62 = vmul.f32 %v15339_v18, %v15053_v25  ;;  %v15686_v20 = vadd.f32 %v15291_v60, %v7295_v57  ;;  %v7532_v35 = vmul.f32 %v15222_v47, %v7492_v45  ;;  %v18933_v55 = vld [vmem:[#allocation17_spill] sm:$0xff] }
 0xd64   : > { %18930 = vst [vmem:[#allocation309_spill] sm:$0xff] %v15678_v63  ;;  %v7596_v14 = vmul.f32 %v15587_v17, %v18931_v3  ;;  %v7597_v32 = vmul.f32 %v15598_v4, %v18931_v3  ;;  %v7533_v44 = vmul.f32 %v15225_v30, %v7493_v7  ;;  %v15695_v53 = vmul.f32 %v15222_v47, %v7522_v38  ;;  %v18936_v7 = vld [vmem:[#allocation164_spill] sm:$0xff] }
 0xd65   : > { %v7626_v24 = vmul.f32 %v15570_v33, %v18933_v55  ;;  %v7627_v25 = vmul.f32 %v15581_v56, %v18933_v55  ;;  %v15702_v60 = vmul.f32 %v15225_v30, %v7523_v59  ;;  %v7564_v18 = vadd.f32 %v7532_v35, %v7396_v39  ;;  %v18937_v35 = vld [vmem:[#allocation151_spill] sm:$0xff] }
 0xd66   : > { %18932 = vst [vmem:[#allocation310_spill] sm:$0xff] %v15695_v53  ;;  %v7731_v45 = vmul.f32 %v15531_v15, %v18929_v16  ;;  %v15707_v57 = vmul.f32 %v15188_v61, %v7730_v26  ;;  %v7565_v43 = vadd.f32 %v7533_v44, %v7397_v37  ;;  %v7832_v38 = vmul.f32 %v7460_v52, %v18936_v7  ;;  %v18940_v44 = vld [vmem:[#allocation211_spill] sm:$0xff] }
 0xd67   : > { %18934 = vst [vmem:[#allocation311_spill] sm:$0xff] %v15702_v60  ;;  %v7110_v3 = vmul.f32 %v15168_v28, %v15516_v49  ;;  %v7111_v5 = vmul.f32 %v15171_v1, %v7067_v62  ;;  %v7636_v55 = vmul.f32 %v15236_v6, %v7596_v14  ;;  %v7637_v59 = vmul.f32 %v15239_v58, %v7597_v32 }
 0xd68   : > { %18935 = vst [vmem:[#allocation312_spill] sm:$0xff] %v15707_v57  ;;  %v7833_v39 = vmul.f32 %v7461_v9, %v18936_v7  ;;  %v7834_v16 = vmul.f32 %v15633_v12, %v18937_v35  ;;  %v15719_v26 = vmul.f32 %v15236_v6, %v7626_v24  ;;  %v15722_v37 = vmul.f32 %v15239_v58, %v7627_v25  ;;  %v18943_v7 = vld [vmem:[#allocation223_spill] sm:$0xff] }
 0xd69   : > { %v7936_v49 = vmul.f32 %v15570_v33, %v18940_v44  ;;  %v15727_v62 = vadd.f32 %v15174_v34, %v7110_v3  ;;  %v15730_v14 = vmul.f32 %v15191_v8, %v7731_v45  ;;  %v15734_v32 = vmul.f32 %v15647_v50, %v18937_v35 }
 0xd6a   : > { %18938 = vst [vmem:[#allocation313_spill] sm:$0xff] %v15719_v26  ;;  %18939 = vst [vmem:[#allocation314_spill] sm:$0xff] %v15722_v37  ;;  %v7938_v24 = vmul.f32 %v15587_v17, %v18943_v7  ;;  %v15739_v57 = vadd.f32 %v15177_v10, %v7111_v5  ;;  %v7668_v25 = vadd.f32 %v7636_v55, %v7564_v18  ;;  %v6979_v18 = vpop.xlane.xlu0 %6978  ;;  %v18954_v5 = vld [vmem:[#allocation238_spill] sm:$0xff] }
 0xd6b   : > { %18941 = vst [vmem:[#allocation315_spill] sm:$0xff] %v15730_v14  ;;  %18942 = vst [vmem:[#allocation316_spill] sm:$0xff] %v15734_v32  ;;  %v7669_v26 = vadd.f32 %v7637_v59, %v7565_v43  ;;  %v15742_v33 = vmul.f32 %v15242_v19, %v7832_v38  ;;  %v15746_v3 = vmul.f32 %v15581_v56, %v18940_v44  ;;  %v18950_v38 = vld [vmem:[#allocation198_spill] sm:$0xff]  ;;  %v18960_v44 = vrot.slane %v15230_v21, 1 }
 0xd6c   : > { %v15749_v45 = vmul.f32 %v15257_v36, %v7833_v39  ;;  %v15752_v35 = vmul.f32 %v15242_v19, %v7834_v16  ;;  %v15756_v17 = vmul.f32 %v15598_v4, %v18943_v7  ;;  %v15760_v43 = vmul.f32 %v15260_v2, %v7936_v49  ;;  %v18951_v59 = vld [vmem:[#allocation234_spill] sm:$0xff]  ;;  %v7003_v49 = vpop.xlane.xlu1 %7002 }
 0xd6d   : > { %18944 = vst [vmem:[#allocation317_spill] sm:$0xff] %v15742_v33  ;;  %18945 = vst [vmem:[#allocation318_spill] sm:$0xff] %v15746_v3  ;;  %v8040_v56 = vmul.f32 %v15528_v42, %v18950_v38  ;;  %v8041_v55 = vmul.f32 %v15531_v15, %v18950_v38  ;;  %v8142_v39 = vmul.f32 %v7460_v52, %v18951_v59  ;;  %v18956_v15 = vld [vmem:[#allocation271_spill] sm:$0xff]  ;;  %v18957_v38 = vld [vmem:[#allocation242_spill] sm:$0xff]  ;;  %v18966_v33 = vrot.slane %v15727_v62, 7 }
 0xd6e   : > { %18946 = vst [vmem:[#allocation319_spill] sm:$0xff] %v15749_v45  ;;  %18947 = vst [vmem:[#allocation320_spill] sm:$0xff] %v15752_v35  ;;  %v15768_v16 = vmul.f32 %v15260_v2, %v7938_v24  ;;  %v15771_v4 = vmul.f32 %v7461_v9, %v18951_v59  ;;  %v7082_v52 = vmul.f32 %v18956_v15, %v15056_v46  ;;  %v18959_v59 = vrot.slane %v15727_v62, 1  ;;  %v18978_v45 = vld [vmem:[#allocation19_spill] sm:$0xff]  ;;  %v19000_v32 = vld [vmem:[#allocation98_spill] sm:$0xff] }
 0xd6f   : > { %18948 = vst [vmem:[#allocation321_spill] sm:$0xff] %v15756_v17  ;;  %18949 = vst [vmem:[#allocation322_spill] sm:$0xff] %v15760_v43  ;;  %v15777_v43 = vmul.f32 %v15633_v12, %v18954_v5  ;;  %v7083_v24 = vmul.f32 %v18956_v15, %v18957_v38  ;;  %v18961_v12 = vld [vmem:[#allocation263_spill] sm:$0xff]  ;;  %v7019_v35 = vmul.f32 0.00390625, %v6979_v18  ;;  %v15795_v42 = vmul.f32 %v15196_v11, %v8040_v56 }
 0xd70   : > { %18952 = vst [vmem:[#allocation323_spill] sm:$0xff] %v15768_v16  ;;  %18953 = vst [vmem:[#allocation324_spill] sm:$0xff] %v15771_v4  ;;  %v18958_v16 = vld [vmem:[#allocation264_spill] sm:$0xff]  ;;  %v15791_v7 = vsel %vm4466_vm7, %v18960_v44, %v18959_v59  ;;  %v15798_v46 = vmul.f32 %v15199_v0, %v8041_v55  ;;  %v15801_v15 = vmul.f32 %v15459_v29, %v8142_v39  ;;  %v18967_v44 = vrot.slane %v15230_v21, 7  ;;  %v18971_v39 = vld [vmem:[#allocation262_spill] sm:$0xff] }
 0xd71   : > { %18955 = vst [vmem:[#allocation325_spill] sm:$0xff] %v15777_v43  ;;  %v7772_v9 = vadd.f32 %v18958_v16, %v7668_v25  ;;  %v7042_v43 = vadd.f32 1e-06, %v18961_v12  ;;  %18962 = vst [vmem:[#allocation271_spill] sm:$0xff] %v15795_v42  ;;  %v7027_v25 = vmul.f32 0.00390625, %v7003_v49  ;;  %v18965_v16 = vld [vmem:[#allocation266_spill] sm:$0xff]  ;;  %10908 = vrsqrt.f32 %v18971_v39  ;;  %v6982_v49 = vpop.xlane.xlu0 %6981 }
 0xd72   : > { %18963 = vst [vmem:[#allocation242_spill] sm:$0xff] %v15798_v46  ;;  %18964 = vst [vmem:[#allocation264_spill] sm:$0xff] %v15801_v15  ;;  %v7773_v38 = vadd.f32 %v18965_v16, %v7669_v26  ;;  %v7248_v59 = vsel %vm4177_vm6, %v18967_v44, %v18966_v33  ;;  %v18968_v18 = vrot.slane %v15739_v57, 1  ;;  %v18969_v56 = vrot.slane %v15233_v13, 1  ;;  %v18974_v16 = vld [vmem:[#allocation90_spill] sm:$0xff]  ;;  %v18975_v42 = vld [vmem:[#allocation89_spill] sm:$0xff] }
 0xd73   : > { %v18972_v26 = vrot.slane %v15739_v57, 7  ;;  %v18973_v12 = vrot.slane %v15233_v13, 7  ;;  %v7494_v33 = vmul.f32 %v15791_v7, %v18974_v16  ;;  %v7126_v44 = vmul.f32 %v15168_v28, %v7082_v52  ;;  %v18976_v13 = vld [vmem:[#allocation88_spill] sm:$0xff] }
 0xd74   : > { %v15816_v55 = vsel %vm4466_vm7, %v18969_v56, %v18968_v18  ;;  %v7127_v15 = vmul.f32 %v15171_v1, %v7083_v24  ;;  %v7328_v18 = vmul.f32 %v15727_v62, %v18975_v42  ;;  %v7329_v56 = vmul.f32 %v15739_v57, %v18975_v42  ;;  %v18977_v24 = vld [vmem:[#allocation131_spill] sm:$0xff]  ;;  %v18979_v42 = vld [vmem:[#allocation118_spill] sm:$0xff] }
 0xd75   : > { %18970 = vst [vmem:[#allocation263_spill] sm:$0xff] %v15816_v55  ;;  %v7249_v21 = vsel %vm4177_vm6, %v18973_v12, %v18972_v26  ;;  %10910 = vrsqrt.f32 %v7042_v43  ;;  %v15833_v39 = vadd.f32 1e-06, %v7019_v35  ;;  %v7256_v46 = vmul.f32 %v7248_v59, %v18976_v13 }
 0xd76   : > { %v7495_v26 = vmul.f32 %v15816_v55, %v18974_v16  ;;  %v15838_v12 = vadd.f32 1e-06, %v7027_v25  ;;  %v15840_v4 = vmul.f32 0.00390625, %v6982_v49  ;;  %v7257_v52 = vmul.f32 %v7249_v21, %v18976_v13 }
 0xd77   : > { %v7598_v63 = vmul.f32 %v7248_v59, %v18977_v24  ;;  %v7702_v14 = vmul.f32 %v15727_v62, %v18978_v45  ;;  %v7804_v35 = vmul.f32 %v15791_v7, %v18979_v42  ;;  %v7534_v43 = vmul.f32 %v15222_v47, %v7494_v33 }
 0xd78   : > { %v7703_v37 = vmul.f32 %v15739_v57, %v18978_v45  ;;  %v7805_v25 = vmul.f32 %v15816_v55, %v18979_v42  ;;  %v15854_v49 = vadd.f32 %v15174_v34, %v7126_v44  ;;  %v7368_v16 = vmul.f32 %v15181_v51, %v7328_v18 }
 0xd79   : > { %v7369_v13 = vmul.f32 %v15185_v23, %v7329_v56  ;;  %v7599_v60 = vmul.f32 %v7249_v21, %v18977_v24  ;;  %v15860_v53 = vadd.f32 %v15177_v10, %v7127_v15  ;;  %v7296_v33 = vmul.f32 %v15213_v22, %v7256_v46  ;;  %v18980_v56 = vld [vmem:[#allocation63_spill] sm:$0xff] }
 0xd7a   : > { %v7535_v50 = vmul.f32 %v15225_v30, %v7495_v26  ;;  %v7566_v45 = vadd.f32 %v7534_v43, %v15681_v41  ;;  %v18101_v42 = vrot.slane %v15854_v49, 1  ;;  %v7297_v44 = vmul.f32 %v15217_v31, %v7257_v52 }
 0xd7b   : > { %v7638_v55 = vmul.f32 %v15236_v6, %v7598_v63  ;;  %v7844_v18 = vmul.f32 %v15242_v19, %v7804_v35  ;;  %v7908_v5 = vmul.f32 %v7248_v59, %v18980_v56  ;;  %v7845_v15 = vmul.f32 %v15257_v36, %v7805_v25  ;;  %v10909_v17 = vpop.eup %10908  ;;  %v18982_v35 = vld [vmem:[#allocation8_spill] sm:$0xff] }
 0xd7c   : > { %v7567_v24 = vadd.f32 %v7535_v50, %v15686_v20  ;;  %v7909_v46 = vmul.f32 %v7249_v21, %v18980_v56  ;;  %v18102_v26 = vrot.slane %v15860_v53, 1  ;;  %v7639_v41 = vmul.f32 %v15239_v58, %v7599_v60 }
 0xd7d   : > { %v7876_v43 = vadd.f32 %v7844_v18, %v7772_v9  ;;  %v18981_v63 = vrot.slane %v15384_v27, 1  ;;  %v7670_v50 = vadd.f32 %v7638_v55, %v7566_v45  ;;  %v7877_v20 = vadd.f32 %v7845_v15, %v7773_v38  ;;  %v18986_v15 = vld [vmem:[#allocation124_spill] sm:$0xff] }
 0xd7e   : > { %v8012_v21 = vmul.f32 %v15727_v62, %v18982_v35  ;;  %v8013_v25 = vmul.f32 %v15739_v57, %v18982_v35  ;;  %v7742_v9 = vmul.f32 %v15188_v61, %v7702_v14  ;;  %v7743_v18 = vmul.f32 %v15191_v8, %v7703_v37 }
 0xd7f   : > { %v15882_v59 = vsel %vm4466_vm7, %v18981_v63, %v18101_v42  ;;  %v15888_v60 = vpop.eup %10910  ;;  %v7948_v56 = vmul.f32 %v15260_v2, %v7908_v5  ;;  %v7671_v63 = vadd.f32 %v7639_v41, %v7567_v24  ;;  %v18983_v42 = vld [vmem:[#allocation261_spill] sm:$0xff]  ;;  %v18984_v38 = vrot.slane %v15392_v40, 1 }
 0xd80   : > { %v7949_v55 = vmul.f32 %v18983_v42, %v7909_v46  ;;  %v7510_v14 = vmul.f32 %v15882_v59, %v18986_v15  ;;  %v15905_v35 = vadd.f32 %v7368_v16, %v7296_v33  ;;  %v15907_v37 = vadd.f32 %v7369_v13, %v7297_v44  ;;  %v18991_v44 = vld [vmem:[#allocation69_spill] sm:$0xff] }
 0xd81   : > { %v15901_v45 = vsel %vm4466_vm7, %v18984_v38, %v18102_v26  ;;  %v7980_v5 = vadd.f32 %v7948_v56, %v7876_v43  ;;  %v18987_v24 = vrot.slane %v15854_v49, 7  ;;  %v18988_v46 = vrot.slane %v15384_v27, 7 }
 0xd82   : > { %18985 = vst [vmem:[#allocation266_spill] sm:$0xff] %v15901_v45  ;;  %v15915_v52 = vadd.f32 %v7742_v9, %v7670_v50  ;;  %v7981_v3 = vadd.f32 %v7949_v55, %v7877_v20  ;;  %v8052_v38 = vmul.f32 %v15196_v11, %v8012_v21  ;;  %v8053_v26 = vmul.f32 %v15199_v0, %v8013_v25  ;;  %v18992_v50 = vld [vmem:[#allocation243_spill] sm:$0xff]  ;;  %v18993_v21 = vld [vmem:[#allocation113_spill] sm:$0xff] }
 0xd83   : > { %v7232_v41 = vsel %vm4177_vm6, %v18988_v46, %v18987_v24  ;;  %v18989_v16 = vrot.slane %v15860_v53, 7  ;;  %v18990_v13 = vrot.slane %v15392_v40, 7  ;;  %v7344_v27 = vmul.f32 %v15854_v49, %v18991_v44  ;;  %v18994_v55 = vld [vmem:[#allocation139_spill] sm:$0xff]  ;;  %v18996_v46 = vld [vmem:[#allocation232_spill] sm:$0xff] }
 0xd84   : > { %v7511_v43 = vmul.f32 %v15901_v45, %v18986_v15  ;;  %v7068_v9 = vmul.f32 %v10909_v17, %v18992_v50  ;;  %v15930_v20 = vadd.f32 %v7743_v18, %v7671_v63  ;;  %v7272_v56 = vmul.f32 %v7232_v41, %v18993_v21 }
 0xd85   : > { %v7233_v33 = vsel %vm4177_vm6, %v18990_v13, %v18989_v16  ;;  %v7550_v25 = vmul.f32 %v15222_v47, %v7510_v14  ;;  %v7820_v40 = vmul.f32 %v15882_v59, %v18994_v55  ;;  %v15936_v24 = vadd.f32 %v8052_v38, %v7980_v5  ;;  %v18998_v13 = vld [vmem:[#allocation106_spill] sm:$0xff] }
 0xd86   : > { %v15940_v16 = vmul.f32 %v15791_v7, %v18996_v46  ;;  %v7718_v15 = vmul.f32 %v15854_v49, %v18998_v13  ;;  %v7821_v18 = vmul.f32 %v15901_v45, %v18994_v55  ;;  %v15946_v63 = vadd.f32 %v8053_v26, %v7981_v3  ;;  %v19005_v45 = vld [vmem:[#allocation300_spill] sm:$0xff] }
 0xd87   : > { %18995 = vst [vmem:[#allocation262_spill] sm:$0xff] %v15936_v24  ;;  %v7273_v50 = vmul.f32 %v7233_v33, %v18993_v21  ;;  %v7345_v14 = vmul.f32 %v15860_v53, %v18991_v44  ;;  %v7614_v5 = vmul.f32 %v7232_v41, %v19000_v32  ;;  %v7384_v38 = vmul.f32 %v15181_v51, %v7344_v27 }
 0xd88   : > { %18997 = vst [vmem:[#allocation261_spill] sm:$0xff] %v15940_v16  ;;  %18999 = vst [vmem:[#allocation243_spill] sm:$0xff] %v15946_v63  ;;  %v7551_v7 = vmul.f32 %v15225_v30, %v7511_v43  ;;  %v19001_v16 = vld [vmem:[#allocation244_spill] sm:$0xff]  ;;  %v7112_v24 = vmul.f32 %v15168_v28, %v7068_v9  ;;  %v7312_v29 = vmul.f32 %v15213_v22, %v7272_v56  ;;  %10912 = vrsqrt.f32 %v15833_v39 }
 0xd89   : > { %v7069_v46 = vmul.f32 %v10909_v17, %v19001_v16  ;;  %v7582_v3 = vadd.f32 %v7550_v25, %v15534_v48  ;;  %v7615_v26 = vmul.f32 %v7233_v33, %v19000_v32  ;;  %v7860_v21 = vmul.f32 %v15242_v19, %v7820_v40  ;;  %v19003_v56 = vld [vmem:[#allocation48_spill] sm:$0xff]  ;;  %v19004_v25 = vld [vmem:[#allocation294_spill] sm:$0xff] }
 0xd8a   : > { %v7719_v44 = vmul.f32 %v15860_v53, %v18998_v13  ;;  %v7861_v55 = vmul.f32 %v15257_v36, %v7821_v18  ;;  %v15965_v43 = vadd.f32 %v15174_v34, %v7112_v24  ;;  %v7313_v17 = vmul.f32 %v15217_v31, %v7273_v50 }
 0xd8b   : > { %v7113_v27 = vmul.f32 %v15171_v1, %v7069_v46  ;;  %v7385_v9 = vmul.f32 %v15185_v23, %v7345_v14  ;;  %v7654_v48 = vmul.f32 %v15236_v6, %v7614_v5  ;;  %v7924_v32 = vmul.f32 %v7232_v41, %v19003_v56  ;;  %v19006_v5 = vld [vmem:[#allocation302_spill] sm:$0xff] }
 0xd8c   : > { %19002 = vst [vmem:[#allocation244_spill] sm:$0xff] %v15965_v43  ;;  %v7583_v40 = vadd.f32 %v7551_v7, %v19004_v25  ;;  %v7925_v16 = vmul.f32 %v7233_v33, %v19003_v56  ;;  %v18109_v46 = vrot.slane %v15965_v43, 1  ;;  %v7655_v24 = vmul.f32 %v15239_v58, %v7615_v26  ;;  %v19007_v56 = vld [vmem:[#allocation186_spill] sm:$0xff] }
 0xd8d   : > { %v15974_v13 = vadd.f32 %v15177_v10, %v7113_v27  ;;  %v7686_v18 = vadd.f32 %v7654_v48, %v7582_v3  ;;  %v7758_v50 = vmul.f32 %v15188_v61, %v7718_v15  ;;  %v7892_v14 = vadd.f32 %v7860_v21, %v19005_v45  ;;  %v19008_v3 = vld [vmem:[#allocation245_spill] sm:$0xff] }
 0xd8e   : > { %v15980_v63 = vadd.f32 %v7384_v38, %v7312_v29  ;;  %v7759_v41 = vmul.f32 %v15191_v8, %v7719_v44  ;;  %v7893_v7 = vadd.f32 %v7861_v55, %v19006_v5  ;;  %v18107_v33 = vrot.slane %v15965_v43, 7  ;;  %v19010_v5 = vld [vmem:[#allocation246_spill] sm:$0xff] }
 0xd8f   : > { %v7964_v27 = vmul.f32 %v15260_v2, %v7924_v32  ;;  %v8028_v25 = vmul.f32 %v15854_v49, %v19007_v56  ;;  %v18108_v26 = vrot.slane %v15974_v13, 1  ;;  %v7084_v15 = vmul.f32 %v15888_v60, %v19008_v3 }
 0xd90   : > { %v7687_v48 = vadd.f32 %v7655_v24, %v7583_v40  ;;  %v7965_v29 = vmul.f32 %v18983_v42, %v7925_v16  ;;  %v8029_v45 = vmul.f32 %v15860_v53, %v19007_v56  ;;  %v19009_v38 = vrot.slane %v15727_v62, 1 }
 0xd91   : > { %v16002_v44 = vadd.f32 %v7385_v9, %v7313_v17  ;;  %v16004_v55 = vadd.f32 %v7758_v50, %v7686_v18  ;;  %v7996_v32 = vadd.f32 %v7964_v27, %v7892_v14  ;;  %v7085_v40 = vmul.f32 %v15888_v60, %v19010_v5  ;;  %v19013_v60 = vld [vmem:[#allocation126_spill] sm:$0xff]  ;;  %v19014_v27 = vld [vmem:[#allocation241_spill] sm:$0xff] }
 0xd92   : > { %v16000_v21 = vsel %vm4466_vm7, %v19009_v38, %v18109_v46  ;;  %v7997_v16 = vadd.f32 %v7965_v29, %v7893_v7  ;;  %v18106_v24 = vrot.slane %v15974_v13, 7  ;;  %v19011_v56 = vrot.slane %v15727_v62, 7 }
 0xd93   : > { %v19012_v17 = vrot.slane %v15739_v57, 1  ;;  %v8068_v18 = vmul.f32 %v15196_v11, %v8028_v25  ;;  %v7496_v50 = vmul.f32 %v16000_v21, %v19013_v60  ;;  %v7128_v14 = vmul.f32 %v15168_v28, %v7084_v15  ;;  %v19017_v25 = vld [vmem:[#allocation92_spill] sm:$0xff] }
 0xd94   : > { %v7246_v3 = vsel %vm4177_vm6, %v19011_v56, %v18107_v33  ;;  %v16026_v62 = vadd.f32 %v7759_v41, %v7687_v48  ;;  %v8069_v7 = vmul.f32 %v15199_v0, %v8029_v45  ;;  %v16031_v29 = vmul.f32 %v15882_v59, %v19014_v27  ;;  %v19020_v41 = vld [vmem:[#allocation93_spill] sm:$0xff] }
 0xd95   : > { %v7487_v9 = vsel %vm4466_vm7, %v19012_v17, %v18108_v26  ;;  %10914 = vrsqrt.f32 %v15838_v12  ;;  %v16034_v38 = vadd.f32 %v8068_v18, %v7996_v32  ;;  %v7258_v5 = vmul.f32 %v7246_v3, %v19017_v25  ;;  %v19021_v32 = vld [vmem:[#allocation7_spill] sm:$0xff] }
 0xd96   : > { %19015 = vst [vmem:[#allocation294_spill] sm:$0xff] %v16031_v29  ;;  %v7497_v56 = vmul.f32 %v7487_v9, %v19013_v60  ;;  %v7129_v15 = vmul.f32 %v15171_v1, %v7085_v40  ;;  %v16039_v17 = vadd.f32 %v8069_v7, %v7997_v16  ;;  %v19019_v39 = vrot.slane %v15739_v57, 7  ;;  %v19022_v40 = vld [vmem:[#allocation119_spill] sm:$0xff]  ;;  %v19023_v57 = vld [vmem:[#allocation117_spill] sm:$0xff] }
 0xd97   : > { %19016 = vst [vmem:[#allocation300_spill] sm:$0xff] %v16034_v38  ;;  %v7330_v12 = vmul.f32 %v15965_v43, %v19020_v41  ;;  %v7331_v48 = vmul.f32 %v15974_v13, %v19020_v41  ;;  %v7536_v45 = vmul.f32 %v15222_v47, %v7496_v50  ;;  %v7600_v18 = vmul.f32 %v7246_v3, %v19021_v32 }
 0xd98   : > { %19018 = vst [vmem:[#allocation302_spill] sm:$0xff] %v16039_v17  ;;  %v7247_v59 = vsel %vm4177_vm6, %v19019_v39, %v18106_v24  ;;  %v7806_v16 = vmul.f32 %v16000_v21, %v19022_v40  ;;  %v16056_v60 = vadd.f32 %v15174_v34, %v7128_v14  ;;  %v7704_v7 = vmul.f32 %v15965_v43, %v19023_v57  ;;  %v19024_v24 = vld [vmem:[#allocation10_spill] sm:$0xff] }
 0xd99   : > { %v7807_v39 = vmul.f32 %v7487_v9, %v19022_v40  ;;  %v8014_v33 = vmul.f32 %v15965_v43, %v19024_v24  ;;  %v16064_v41 = vadd.f32 1e-06, %v15840_v4  ;;  %v7259_v50 = vmul.f32 %v7247_v59, %v19017_v25 }
 0xd9a   : > { %v7298_v26 = vmul.f32 %v15213_v22, %v7258_v5  ;;  %v7537_v46 = vmul.f32 %v15225_v30, %v7497_v56  ;;  %v16070_v14 = vadd.f32 %v15177_v10, %v7129_v15  ;;  %v7370_v29 = vmul.f32 %v15181_v51, %v7330_v12  ;;  %v19026_v12 = vld [vmem:[#allocation153_spill] sm:$0xff] }
 0xd9b   : > { %19025 = vst [vmem:[#allocation245_spill] sm:$0xff] %v16064_v41  ;;  %v7371_v27 = vmul.f32 %v15185_v23, %v7331_v48  ;;  %v7601_v40 = vmul.f32 %v7247_v59, %v19021_v32  ;;  %v7705_v17 = vmul.f32 %v15974_v13, %v19023_v57  ;;  %v7568_v4 = vadd.f32 %v7536_v45, %v15905_v35  ;;  %v10913_v32 = vpop.eup %10912 }
 0xd9c   : > { %v7640_v25 = vmul.f32 %v15236_v6, %v7600_v18  ;;  %v7846_v5 = vmul.f32 %v15242_v19, %v7806_v16  ;;  %v18113_v56 = vrot.slane %v16056_v60, 7  ;;  %v7744_v15 = vmul.f32 %v15188_v61, %v7704_v7 }
 0xd9d   : > { %v7847_v41 = vmul.f32 %v15257_v36, %v7807_v39  ;;  %v7910_v38 = vmul.f32 %v7246_v3, %v19026_v12  ;;  %v7911_v48 = vmul.f32 %v7247_v59, %v19026_v12  ;;  %v7299_v43 = vmul.f32 %v15217_v31, %v7259_v50 }
 0xd9e   : > { %v16086_v57 = vadd.f32 %v7370_v29, %v7298_v26  ;;  %v7569_v35 = vadd.f32 %v7537_v46, %v15907_v37  ;;  %v7878_v45 = vadd.f32 %v7846_v5, %v15915_v52  ;;  %v18112_v7 = vrot.slane %v16070_v14, 7  ;;  %v19028_v29 = vld [vmem:[#allocation208_spill] sm:$0xff] }
 0xd9f   : > { %v16090_v18 = vpop.eup %10914  ;;  %v7879_v16 = vadd.f32 %v7847_v41, %v15930_v20  ;;  %v18115_v39 = vrot.slane %v16056_v60, 1  ;;  %v18114_v3 = vrot.slane %v16070_v14, 1  ;;  %v7641_v59 = vmul.f32 %v15239_v58, %v7601_v40 }
 0xda0   : > { %v7672_v12 = vadd.f32 %v7640_v25, %v7568_v4  ;;  %v8015_v26 = vmul.f32 %v15974_v13, %v19024_v24  ;;  %v19027_v52 = vrot.slane %v15854_v49, 7  ;;  %v7950_v20 = vmul.f32 %v15260_v2, %v7910_v38 }
 0xda1   : > { %v7951_v46 = vmul.f32 %v18983_v42, %v7911_v48  ;;  %v8116_v41 = vmul.f32 %v16000_v21, %v19028_v29  ;;  %v19029_v50 = vrot.slane %v15854_v49, 1  ;;  %v7673_v40 = vadd.f32 %v7641_v59, %v7569_v35 }
 0xda2   : > { %v7230_v37 = vsel %vm4177_vm6, %v19027_v52, %v18113_v56  ;;  %v7745_v4 = vmul.f32 %v15191_v8, %v7705_v17  ;;  %v8117_v25 = vmul.f32 %v7487_v9, %v19028_v29  ;;  %v19030_v38 = vrot.slane %v15860_v53, 1  ;;  %v19032_v17 = vld [vmem:[#allocation115_spill] sm:$0xff]  ;;  %v19033_v29 = vld [vmem:[#allocation94_spill] sm:$0xff] }
 0xda3   : > { %v16115_v24 = vsel %vm4466_vm7, %v19029_v50, %v18115_v39  ;;  %v7982_v5 = vadd.f32 %v7950_v20, %v7878_v45  ;;  %v7983_v48 = vadd.f32 %v7951_v46, %v7879_v16  ;;  %v19031_v49 = vrot.slane %v15860_v53, 7  ;;  %v16144_v16 = vld [vmem:[%s17750_s14 + $0x18] ss:$0 sm:$0xff]  ;;  %v19040_v39 = vld [vmem:[#allocation243_spill] sm:$0xff] }
 0xda4   : > { %v16125_v21 = vsel %vm4466_vm7, %v19030_v38, %v18114_v3  ;;  %v7274_v59 = vmul.f32 %v7230_v37, %v19032_v17  ;;  %v16134_v9 = vadd.f32 %v7371_v27, %v7299_v43  ;;  %v8054_v52 = vmul.f32 %v15196_v11, %v8014_v33  ;;  %v19034_v38 = vld [vmem:[#allocation95_spill] sm:$0xff]  ;;  %v19035_v46 = vld [vmem:[#allocation284_spill] sm:$0xff] }
 0xda5   : > { %v7231_v35 = vsel %vm4177_vm6, %v19031_v49, %v18112_v7  ;;  %v7346_v50 = vmul.f32 %v16056_v60, %v19033_v29  ;;  %v7512_v45 = vmul.f32 %v16115_v24, %v19034_v38  ;;  %v16146_v53 = vadd.f32 %v7744_v15, %v7672_v12  ;;  %v19038_v12 = vld [vmem:[#allocation262_spill] sm:$0xff] }
 0xda6   : > { %v8055_v20 = vmul.f32 %v15199_v0, %v8015_v26  ;;  %v8156_v43 = vmul.f32 %v19035_v46, %v8116_v41  ;;  %v7513_v33 = vmul.f32 %v16125_v21, %v19034_v38  ;;  %v16152_v27 = vadd.f32 %v7745_v4, %v7673_v40 }
 0xda7   : > { %v8157_v49 = vmul.f32 %v16144_v16, %v8117_v25  ;;  %v7275_v7 = vmul.f32 %v7231_v35, %v19032_v17  ;;  %v7347_v56 = vmul.f32 %v16070_v14, %v19033_v29  ;;  %v16158_v3 = vadd.f32 %v8054_v52, %v7982_v5  ;;  %v19042_v25 = vld [vmem:[#allocation120_spill] sm:$0xff]  ;;  %v10816_v5 = vld [vmem:[%s17751_s15 + $0x40] sm:$0xff]   ;;  %v19043_v29 = vld [vmem:[#allocation247_spill] sm:$0xff] }
 0xda8   : > { %v16160_v15 = vadd.f32 %v8055_v20, %v7983_v48  ;;  %v16163_v26 = vadd.f32 %v8156_v43, %v19038_v12  ;;  %v7314_v41 = vmul.f32 %v15213_v22, %v7274_v59  ;;  %v7386_v40 = vmul.f32 %v15181_v51, %v7346_v50  ;;  %v10817_v48 = vld [vmem:[%s17751_s15] sm:$0xff]   ;;  %v19045_v12 = vld [vmem:[#allocation103_spill] sm:$0xff]  ;;  %10051 = vmatprep.subr.bf16.mxu0 %v10816_v5 }
 0xda9   : > { %19036 = vst [vmem:[#allocation246_spill] sm:$0xff] %v16158_v3  ;;  %v16167_v38 = vadd.f32 %v8157_v49, %v19040_v39  ;;  %v7552_v4 = vmul.f32 %v15222_v47, %v7512_v45  ;;  %v7822_v17 = vmul.f32 %v16115_v24, %v19042_v25  ;;  %v10818_v39 = vld [vmem:[%s17751_s15 + $0x48] sm:$0xff]   ;;  %v7553_v59 = vmul.f32 %v15225_v30, %v7513_v33  ;;  %v19044_v45 = vld [vmem:[#allocation248_spill] sm:$0xff]  ;;  %v19046_v3 = vld [vmem:[#allocation57_spill] sm:$0xff] }
 0xdaa   : > { %19037 = vst [vmem:[#allocation284_spill] sm:$0xff] %v16160_v15  ;;  %19039 = vst [vmem:[#allocation262_spill] sm:$0xff] %v16163_v26  ;;  %v7823_v52 = vmul.f32 %v16125_v21, %v19042_v25  ;;  %v7070_v50 = vmul.f32 %v10913_v32, %v19043_v29  ;;  %v7071_v20 = vmul.f32 %v10913_v32, %v19044_v45  ;;  %10052 = vmatpush3.bf16.msra.mxu0 %v10817_v48  ;;  %v10819_v32 = vld [vmem:[%s17751_s15 + $0x8] sm:$0xff]   ;;  %v19047_v45 = vld [vmem:[#allocation65_spill] sm:$0xff] }
 0xdab   : > { %19041 = vst [vmem:[#allocation243_spill] sm:$0xff] %v16167_v38  ;;  %v7315_v43 = vmul.f32 %v15217_v31, %v7275_v7  ;;  %v7387_v49 = vmul.f32 %v15185_v23, %v7347_v56  ;;  %v7616_v26 = vmul.f32 %v7230_v37, %v19045_v12  ;;  %v7617_v38 = vmul.f32 %v7231_v35, %v19045_v12 }
 0xdac   : > { %v16191_v15 = vadd.f32 %v7386_v40, %v7314_v41  ;;  %v7720_v33 = vmul.f32 %v16056_v60, %v19046_v3  ;;  %v7114_v25 = vmul.f32 %v15168_v28, %v7070_v50  ;;  %v7115_v29 = vmul.f32 %v15171_v1, %v7071_v20  ;;  %10053 = vmatprep.subr.bf16.mxu0 %v10818_v39  ;;  %v10820_v40 = vld [vmem:[%s17751_s15 + $0x50] sm:$0xff]  }
 0xdad   : > { %v7584_v56 = vadd.f32 %v7552_v4, %v15980_v63  ;;  %v7862_v7 = vmul.f32 %v15242_v19, %v7822_v17  ;;  %v7926_v5 = vmul.f32 %v7230_v37, %v19047_v45  ;;  %v7927_v41 = vmul.f32 %v7231_v35, %v19047_v45 }
 0xdae   : > { %v7585_v50 = vadd.f32 %v7553_v59, %v16002_v44  ;;  %v7863_v48 = vmul.f32 %v15257_v36, %v7823_v52  ;;  %v16210_v20 = vadd.f32 %v15174_v34, %v7114_v25  ;;  %v16213_v63 = vadd.f32 %v15177_v10, %v7115_v29  ;;  %v19048_v59 = vld [vmem:[#allocation12_spill] sm:$0xff]  ;;  %10054 = vmatpush3.bf16.msra.mxu0 %v10819_v32 }
 0xdaf   : > { %v16215_v4 = vadd.f32 %v7387_v49, %v7315_v43  ;;  %v7656_v37 = vmul.f32 %v15236_v6, %v7616_v26  ;;  %v7657_v35 = vmul.f32 %v15239_v58, %v7617_v38  ;;  %v7721_v17 = vmul.f32 %v16070_v14, %v19046_v3  ;;  %v10821_v26 = vld [vmem:[%s17751_s15 + $0x10] sm:$0xff]   ;;  %10055 = vmatprep.subr.bf16.mxu0 %v10820_v40  ;;  %v19049_v29 = vld [vmem:[#allocation140_spill] sm:$0xff] }
 0xdb0   : > { %v7894_v39 = vadd.f32 %v7862_v7, %v16004_v55  ;;  %v7895_v44 = vadd.f32 %v7863_v48, %v16026_v62  ;;  %v8030_v52 = vmul.f32 %v16056_v60, %v19048_v59  ;;  %v8031_v12 = vmul.f32 %v16070_v14, %v19048_v59  ;;  %v10822_v62 = vld [vmem:[%s17751_s15 + $0x58] sm:$0xff]  }
 0xdb1   : > { %v7966_v38 = vmul.f32 %v15260_v2, %v7926_v5  ;;  %v7967_v43 = vmul.f32 %v18983_v42, %v7927_v41  ;;  %v18121_v3 = vrot.slane %v16210_v20, 1  ;;  %v18120_v55 = vrot.slane %v16213_v63, 1 }
 0xdb2   : > { %v7688_v49 = vadd.f32 %v7656_v37, %v7584_v56  ;;  %v7689_v25 = vadd.f32 %v7657_v35, %v7585_v50  ;;  %v8132_v32 = vmul.f32 %v16115_v24, %v19049_v29  ;;  %v8133_v7 = vmul.f32 %v16125_v21, %v19049_v29  ;;  %v19050_v56 = vld [vmem:[#allocation244_spill] sm:$0xff]  ;;  %10056 = vmatpush3.bf16.msra.mxu0 %v10821_v26  ;;  %v10824_v29 = vld [vmem:[%s17751_s15 + $0x60] sm:$0xff]  }
 0xdb3   : > { %v7760_v45 = vmul.f32 %v15188_v61, %v7720_v33  ;;  %v7761_v5 = vmul.f32 %v15191_v8, %v7721_v17  ;;  %v18119_v41 = vrot.slane %v16210_v20, 7  ;;  %v18118_v40 = vrot.slane %v16213_v63, 7  ;;  %v10823_v37 = vld [vmem:[%s17751_s15 + $0x18] sm:$0xff]   ;;  %10057 = vmatprep.subr.bf16.mxu0 %v10822_v62 }
 0xdb4   : > { %v7998_v48 = vadd.f32 %v7966_v38, %v7894_v39  ;;  %v7999_v59 = vadd.f32 %v7967_v43, %v7895_v44  ;;  %v19051_v50 = vrot.slane %v19050_v56, 1  ;;  %v19052_v21 = vrot.slane %v15974_v13, 1  ;;  %v19053_v39 = vld [vmem:[#allocation249_spill] sm:$0xff]  ;;  %v19054_v38 = vld [vmem:[#allocation250_spill] sm:$0xff] }
 0xdb5   : > { %v8070_v35 = vmul.f32 %v15196_v11, %v8030_v52  ;;  %v8071_v17 = vmul.f32 %v15199_v0, %v8031_v12  ;;  %v7086_v44 = vmul.f32 %v16090_v18, %v19053_v39  ;;  %v7087_v43 = vmul.f32 %v16090_v18, %v19054_v38  ;;  %v19064_v39 = vld [vmem:[#allocation302_spill] sm:$0xff] }
 0xdb6   : > { %v16251_v24 = vsel %vm4466_vm7, %v19051_v50, %v18121_v3  ;;  %v16259_v33 = vsel %vm4466_vm7, %v19052_v21, %v18120_v55  ;;  %v16273_v26 = vadd.f32 %v7760_v45, %v7688_v49  ;;  %v16275_v50 = vadd.f32 %v7761_v5, %v7689_v25  ;;  %v19059_v25 = vld [vmem:[#allocation101_spill] sm:$0xff]  ;;  %v19062_v5 = vld [vmem:[#allocation300_spill] sm:$0xff]  ;;  %10058 = vmatpush3.bf16.msra.mxu0 %v10823_v37  ;;  %v10826_v37 = vld [vmem:[%s17751_s15 + $0x68] sm:$0xff]  }
 0xdb7   : > { %v8172_v21 = vmul.f32 %v19035_v46, %v8132_v32  ;;  %v8173_v52 = vmul.f32 %v16144_v16, %v8133_v7  ;;  %v19057_v12 = vrot.slane %v19050_v56, 7  ;;  %v19058_v62 = vrot.slane %v15974_v13, 7  ;;  %v10825_v13 = vld [vmem:[%s17751_s15 + $0x20] sm:$0xff]   ;;  %10059 = vmatprep.subr.bf16.mxu0 %v10824_v29 }
 0xdb8   : > { %19055 = vst [vmem:[#allocation247_spill] sm:$0xff] %v16273_v26  ;;  %19056 = vst [vmem:[#allocation248_spill] sm:$0xff] %v16275_v50  ;;  %v7498_v45 = vmul.f32 %v16251_v24, %v19059_v25  ;;  %v7499_v46 = vmul.f32 %v16259_v33, %v19059_v25  ;;  %v16295_v32 = vadd.f32 %v8070_v35, %v7998_v48  ;;  %v7006_v35 = vpop.xlane.xlu1 %7005  ;;  %v19071_v3 = vld [vmem:[#allocation141_spill] sm:$0xff]  ;;  %v19073_v26 = vld [vmem:[#allocation6_spill] sm:$0xff] }
 0xdb9   : > { %v7244_v18 = vsel %vm4177_vm6, %v19057_v12, %v18119_v41  ;;  %v7245_v49 = vsel %vm4177_vm6, %v19058_v62, %v18118_v40  ;;  %v16297_v7 = vadd.f32 %v8071_v17, %v7999_v59  ;;  %v16300_v56 = vadd.f32 %v8172_v21, %v19062_v5  ;;  %v19066_v12 = vld [vmem:[#allocation100_spill] sm:$0xff]  ;;  %v19067_v59 = vld [vmem:[#allocation245_spill] sm:$0xff]  ;;  %v6985_v17 = vpop.xlane.xlu0 %6984  ;;  %v19069_v40 = vld [vmem:[#allocation26_spill] sm:$0xff] }
 0xdba   : > { %19060 = vst [vmem:[#allocation244_spill] sm:$0xff] %v16295_v32  ;;  %v16303_v38 = vadd.f32 %v8173_v52, %v19064_v39  ;;  %v7332_v62 = vmul.f32 %v16210_v20, %v19066_v12  ;;  %v7130_v25 = vmul.f32 %v15168_v28, %v7086_v44  ;;  %v7131_v48 = vmul.f32 %v15171_v1, %v7087_v43  ;;  %v19068_v21 = vld [vmem:[#allocation116_spill] sm:$0xff]  ;;  %v19070_v41 = vld [vmem:[#allocation9_spill] sm:$0xff] }
 0xdbb   : > { %19061 = vst [vmem:[#allocation249_spill] sm:$0xff] %v16297_v7  ;;  %19063 = vst [vmem:[#allocation250_spill] sm:$0xff] %v16300_v56  ;;  %10916 = vrsqrt.f32 %v19067_v59  ;;  %v7260_v52 = vmul.f32 %v7244_v18, %v19068_v21  ;;  %v7261_v5 = vmul.f32 %v7245_v49, %v19068_v21  ;;  %v7333_v39 = vmul.f32 %v16213_v63, %v19066_v12 }
 0xdbc   : > { %19065 = vst [vmem:[#allocation300_spill] sm:$0xff] %v16303_v38  ;;  %v7706_v44 = vmul.f32 %v16210_v20, %v19069_v40  ;;  %v7538_v43 = vmul.f32 %v15222_v47, %v7498_v45  ;;  %v7539_v59 = vmul.f32 %v15225_v30, %v7499_v46  ;;  %v7602_v29 = vmul.f32 %v7244_v18, %v19070_v41  ;;  %v10827_v45 = vld [vmem:[%s17751_s15 + $0x28] sm:$0xff]  }
 0xdbd   : > { %v7707_v55 = vmul.f32 %v16213_v63, %v19069_v40  ;;  %v7808_v56 = vmul.f32 %v16251_v24, %v19071_v3  ;;  %v7809_v21 = vmul.f32 %v16259_v33, %v19071_v3  ;;  %v16331_v38 = vmul.f32 0.00390625, %v7006_v35  ;;  %10060 = vmatpush3.bf16.msra.mxu0 %v10825_v13  ;;  %v10828_v3 = vld [vmem:[%s17751_s15 + $0x70] sm:$0xff]  }
 0xdbe   : > { %v16333_v12 = vmul.f32 0.00390625, %v6985_v17  ;;  %v7372_v46 = vmul.f32 %v15181_v51, %v7332_v62  ;;  %v7603_v7 = vmul.f32 %v7245_v49, %v19070_v41  ;;  %v16341_v40 = vadd.f32 %v15174_v34, %v7130_v25  ;;  %10061 = vmatprep.subr.bf16.mxu0 %v10826_v37 }
 0xdbf   : > { %v16344_v32 = vadd.f32 %v15177_v10, %v7131_v48  ;;  %v7300_v13 = vmul.f32 %v15213_v22, %v7260_v52  ;;  %v7301_v35 = vmul.f32 %v15217_v31, %v7261_v5  ;;  %v7373_v17 = vmul.f32 %v15185_v23, %v7333_v39  ;;  %v10829_v39 = vld [vmem:[%s17751_s15 + $0x30] sm:$0xff]  }
 0xdc0   : > { %19072 = vst [vmem:[#allocation302_spill] sm:$0xff] %v16333_v12  ;;  %v7746_v62 = vmul.f32 %v15188_v61, %v7706_v44  ;;  %v7570_v41 = vadd.f32 %v7538_v43, %v16086_v57  ;;  %v7571_v25 = vadd.f32 %v7539_v59, %v16134_v9  ;;  %v7642_v48 = vmul.f32 %v15236_v6, %v7602_v29  ;;  %v19074_v9 = vld [vmem:[#allocation134_spill] sm:$0xff] }
 0xdc1   : > { %v7747_v37 = vmul.f32 %v15191_v8, %v7707_v55  ;;  %v7848_v12 = vmul.f32 %v15242_v19, %v7808_v56  ;;  %v7849_v50 = vmul.f32 %v15257_v36, %v7809_v21  ;;  %v7912_v52 = vmul.f32 %v7244_v18, %v19073_v26  ;;  %10062 = vmatpush3.bf16.msra.mxu0 %v10827_v45  ;;  %v10830_v18 = vld [vmem:[%s17751_s15 + $0x78] sm:$0xff]   ;;  %v19075_v45 = vld [vmem:[#allocation138_spill] sm:$0xff] }
 0xdc2   : > { %v7913_v5 = vmul.f32 %v7245_v49, %v19073_v26  ;;  %v7643_v57 = vmul.f32 %v15239_v58, %v7603_v7  ;;  %v8016_v44 = vmul.f32 %v16210_v20, %v19074_v9  ;;  %v18126_v55 = vrot.slane %v16341_v40, 1  ;;  %10063 = vmatprep.subr.bf16.mxu0 %v10828_v3 }
 0xdc3   : > { %v7880_v26 = vadd.f32 %v7848_v12, %v16146_v53  ;;  %v7881_v49 = vadd.f32 %v7849_v50, %v16152_v27  ;;  %v8017_v43 = vmul.f32 %v16213_v63, %v19074_v9  ;;  %v18125_v7 = vrot.slane %v16341_v40, 7 }
 0xdc4   : > { %v7674_v29 = vadd.f32 %v7642_v48, %v7570_v41  ;;  %v7675_v21 = vadd.f32 %v7643_v57, %v7571_v25  ;;  %v8118_v56 = vmul.f32 %v16251_v24, %v19075_v45  ;;  %v19076_v3 = vrot.slane %v16056_v60, 1  ;;  %v10831_v24 = vld [vmem:[%s17751_s15 + $0x38] sm:$0xff]  }
 0xdc5   : > { %v10917_v59 = vpop.eup %10916  ;;  %v7952_v27 = vmul.f32 %v15260_v2, %v7912_v52  ;;  %v7953_v50 = vmul.f32 %v18983_v42, %v7913_v5  ;;  %v8119_v12 = vmul.f32 %v16259_v33, %v19075_v45  ;;  %v18124_v41 = vrot.slane %v16344_v32, 7  ;;  %10064 = vmatpush3.bf16.msra.mxu0 %v10829_v39 }
 0xdc6   : > { %v16385_v53 = vsel %vm4466_vm7, %v19076_v3, %v18126_v55  ;;  %v16395_v25 = vadd.f32 %v7372_v46, %v7300_v13  ;;  %v16397_v48 = vadd.f32 %v7373_v17, %v7301_v35  ;;  %v8056_v57 = vmul.f32 %v15196_v11, %v8016_v44  ;;  %10065 = vmatprep.subr.bf16.mxu0 %v10830_v18  ;;  %v19080_v13 = vld [vmem:[#allocation102_spill] sm:$0xff]  ;;  %v16422_v18 = vld [vmem:[%s17750_s14 + $0x10] ss:$0 sm:$0xff] }
 0xdc7   : > { %v19077_v52 = vrot.slane %v16344_v32, 1  ;;  %v19078_v5 = vrot.slane %v16070_v14, 1  ;;  %v7984_v9 = vadd.f32 %v7952_v27, %v7880_v26  ;;  %v7985_v39 = vadd.f32 %v7953_v50, %v7881_v49  ;;  %v19085_v50 = vld [vmem:[#allocation251_spill] sm:$0xff] }
 0xdc8   : > { %v19079_v45 = vrot.slane %v16056_v60, 7  ;;  %v7514_v35 = vmul.f32 %v16385_v53, %v19080_v13  ;;  %v16414_v17 = vadd.f32 %v7746_v62, %v7674_v29  ;;  %v16416_v44 = vadd.f32 %v7747_v37, %v7675_v21  ;;  %v19083_v37 = vld [vmem:[#allocation64_spill] sm:$0xff]  ;;  %v19084_v21 = vld [vmem:[#allocation99_spill] sm:$0xff] }
 0xdc9   : > { %v7469_v33 = vsel %vm4466_vm7, %v19078_v5, %v19077_v52  ;;  %v8057_v3 = vmul.f32 %v15199_v0, %v8017_v43  ;;  %v8158_v26 = vmul.f32 %v16422_v18, %v8118_v56  ;;  %v8159_v60 = vmul.f32 %v16144_v16, %v8119_v12  ;;  %10066 = vmatpush3.bf16.msra.mxu0 %v10831_v24  ;;  %v19086_v52 = vld [vmem:[#allocation252_spill] sm:$0xff] }
 0xdca   : > { %v7228_v46 = vsel %vm4177_vm6, %v19079_v45, %v18125_v7  ;;  %19081 = vst [vmem:[#allocation245_spill] sm:$0xff] %v16416_v44  ;;  %v19082_v49 = vrot.slane %v16070_v14, 7  ;;  %v7348_v29 = vmul.f32 %v16341_v40, %v19083_v37  ;;  %v7515_v43 = vmul.f32 %v7469_v33, %v19080_v13  ;;  %v19090_v13 = vld [vmem:[#allocation284_spill] sm:$0xff]  ;;  %v19092_v44 = vld [vmem:[#allocation41_spill] sm:$0xff] }
 0xdcb   : > { %v7276_v27 = vmul.f32 %v7228_v46, %v19084_v21  ;;  %v7349_v56 = vmul.f32 %v16344_v32, %v19083_v37  ;;  %v7072_v12 = vmul.f32 %v10917_v59, %v19085_v50  ;;  %v7073_v5 = vmul.f32 %v10917_v59, %v19086_v52 }
 0xdcc   : > { %v7229_v62 = vsel %vm4177_vm6, %v19082_v49, %v18124_v41  ;;  %v16440_v45 = vadd.f32 %v8056_v57, %v7984_v9  ;;  %v16442_v14 = vadd.f32 %v8057_v3, %v7985_v39  ;;  %v19088_v49 = vld [vmem:[#allocation246_spill] sm:$0xff]  ;;  %v7554_v7 = vmul.f32 %v15222_v47, %v7514_v35 }
 0xdcd   : > { %v16445_v41 = vadd.f32 %v8158_v26, %v19088_v49  ;;  %v16449_v24 = vadd.f32 %v8159_v60, %v19090_v13  ;;  %v7277_v55 = vmul.f32 %v7229_v62, %v19084_v21  ;;  %v7824_v37 = vmul.f32 %v16385_v53, %v19092_v44  ;;  %v19093_v9 = vld [vmem:[#allocation114_spill] sm:$0xff]  ;;  %v19094_v49 = vld [vmem:[#allocation155_spill] sm:$0xff] }
 0xdce   : > { %19087 = vst [vmem:[#allocation251_spill] sm:$0xff] %v16442_v14  ;;  %v7825_v50 = vmul.f32 %v7469_v33, %v19092_v44  ;;  %v7388_v59 = vmul.f32 %v15181_v51, %v7348_v29  ;;  %v7555_v57 = vmul.f32 %v15225_v30, %v7515_v43  ;;  %v7618_v39 = vmul.f32 %v7228_v46, %v19093_v9 }
 0xdcf   : > { %19089 = vst [vmem:[#allocation252_spill] sm:$0xff] %v16445_v41  ;;  %19091 = vst [vmem:[#allocation246_spill] sm:$0xff] %v16449_v24  ;;  %v7619_v3 = vmul.f32 %v7229_v62, %v19093_v9  ;;  %v7316_v35 = vmul.f32 %v15213_v22, %v7276_v27  ;;  %v7389_v26 = vmul.f32 %v15185_v23, %v7349_v56  ;;  %v7044_v43 = vadd.f32 1e-06, %v16331_v38  ;;  %v19121_v24 = vld [vmem:[#allocation254_spill] sm:$0xff] }
 0xdd0   : > { %v7116_v60 = vmul.f32 %v15168_v28, %v7072_v12  ;;  %v7117_v21 = vmul.f32 %v15171_v1, %v7073_v5  ;;  %v7586_v52 = vadd.f32 %v7554_v7, %v16191_v15  ;;  %v7928_v44 = vmul.f32 %v7228_v46, %v19094_v49  ;;  %v19096_v5 = vld [vmem:[#allocation247_spill] sm:$0xff] }
 0xdd1   : > { %v7929_v29 = vmul.f32 %v7229_v62, %v19094_v49  ;;  %v7864_v13 = vmul.f32 %v15242_v19, %v7824_v37  ;;  %v7865_v9 = vmul.f32 %v15257_v36, %v7825_v50  ;;  %v7317_v12 = vmul.f32 %v15217_v31, %v7277_v55  ;;  %v19095_v62 = vld [vmem:[#allocation33_spill] sm:$0xff]  ;;  %v19097_v50 = vld [vmem:[#allocation248_spill] sm:$0xff] }
 0xdd2   : > { %v16470_v27 = vadd.f32 %v15174_v34, %v7116_v60  ;;  %v16473_v56 = vadd.f32 %v15177_v10, %v7117_v21  ;;  %v7587_v15 = vadd.f32 %v7555_v57, %v16215_v4  ;;  %v7658_v7 = vmul.f32 %v15236_v6, %v7618_v39  ;;  %v19098_v21 = vld [vmem:[#allocation136_spill] sm:$0xff] }
 0xdd3   : > { %v7659_v46 = vmul.f32 %v15239_v58, %v7619_v3  ;;  %v7722_v38 = vmul.f32 %v16341_v40, %v19095_v62  ;;  %v7896_v37 = vadd.f32 %v7864_v13, %v19096_v5  ;;  %v7897_v49 = vadd.f32 %v7865_v9, %v19097_v50 }
 0xdd4   : > { %10918 = vrsqrt.f32 %v7044_v43  ;;  %v7723_v60 = vmul.f32 %v16344_v32, %v19095_v62  ;;  %v8032_v55 = vmul.f32 %v16341_v40, %v19098_v21  ;;  %v18128_v4 = vrot.slane %v16470_v27, 1  ;;  %v19099_v43 = vld [vmem:[#allocation215_spill] sm:$0xff] }
 0xdd5   : > { %v18129_v57 = vrot.slane %v16473_v56, 1  ;;  %v7690_v39 = vadd.f32 %v7658_v7, %v7586_v52  ;;  %v7968_v3 = vmul.f32 %v15260_v2, %v7928_v44  ;;  %v7969_v41 = vmul.f32 %v18983_v42, %v7929_v29 }
 0xdd6   : > { %v8033_v13 = vmul.f32 %v16344_v32, %v19098_v21  ;;  %v7691_v9 = vadd.f32 %v7659_v46, %v7587_v15  ;;  %v8134_v5 = vmul.f32 %v16385_v53, %v19099_v43  ;;  %v8135_v62 = vmul.f32 %v7469_v33, %v19099_v43 }
 0xdd7   : > { %v19100_v50 = vrot.slane %v16210_v20, 1  ;;  %v16504_v44 = vadd.f32 %v7388_v59, %v7316_v35  ;;  %v7762_v29 = vmul.f32 %v15188_v61, %v7722_v38  ;;  %v8000_v7 = vadd.f32 %v7968_v3, %v7896_v37  ;;  %v19103_v38 = vld [vmem:[#allocation109_spill] sm:$0xff] }
 0xdd8   : > { %v8001_v21 = vadd.f32 %v7969_v41, %v7897_v49  ;;  %v7763_v15 = vmul.f32 %v15191_v8, %v7723_v60  ;;  %v18131_v53 = vrot.slane %v16470_v27, 7  ;;  %v18130_v33 = vrot.slane %v16473_v56, 7 }
 0xdd9   : > { %v16502_v52 = vsel %vm4466_vm7, %v19100_v50, %v18128_v4  ;;  %v19101_v46 = vrot.slane %v16213_v63, 1  ;;  %v16518_v59 = vadd.f32 %v7389_v26, %v7317_v12  ;;  %v8072_v35 = vmul.f32 %v15196_v11, %v8032_v55  ;;  %v7009_v4 = vpop.xlane.xlu1 %7008  ;;  %v19108_v55 = vld [vmem:[#allocation302_spill] sm:$0xff] }
 0xdda   : > { %v8073_v41 = vmul.f32 %v15199_v0, %v8033_v13  ;;  %v7500_v37 = vmul.f32 %v16502_v52, %v19103_v38  ;;  %v16524_v49 = vadd.f32 %v7762_v29, %v7690_v39  ;;  %v16526_v60 = vadd.f32 %v7763_v15, %v7691_v9  ;;  %v19111_v29 = vld [vmem:[#allocation108_spill] sm:$0xff] }
 0xddb   : > { %v16516_v43 = vsel %vm4466_vm7, %v19101_v46, %v18129_v57  ;;  %19102 = vst [vmem:[#allocation284_spill] sm:$0xff] %v16518_v59  ;;  %v8174_v3 = vmul.f32 %v16422_v18, %v8134_v5  ;;  %v8175_v50 = vmul.f32 %v16144_v16, %v8135_v62  ;;  %v16530_v46 = vadd.f32 %v8072_v35, %v8000_v7  ;;  %v19112_v35 = vld [vmem:[#allocation244_spill] sm:$0xff] }
 0xddc   : > { %19104 = vst [vmem:[#allocation247_spill] sm:$0xff] %v16524_v49  ;;  %19105 = vst [vmem:[#allocation248_spill] sm:$0xff] %v16526_v60  ;;  %v16532_v26 = vadd.f32 %v8073_v41, %v8001_v21  ;;  %v7501_v12 = vmul.f32 %v16516_v43, %v19103_v38  ;;  %v7037_v13 = vadd.f32 1e-06, %v19108_v55  ;;  %v19109_v39 = vrot.slane %v16210_v20, 7  ;;  %v19114_v20 = vld [vmem:[#allocation249_spill] sm:$0xff] }
 0xddd   : > { %19106 = vst [vmem:[#allocation326_spill] sm:$0xff] %v16530_v46  ;;  %v19110_v5 = vrot.slane %v16213_v63, 7  ;;  %v7334_v7 = vmul.f32 %v16470_v27, %v19111_v29  ;;  %v7335_v21 = vmul.f32 %v16473_v56, %v19111_v29  ;;  %v16554_v41 = vadd.f32 %v8174_v3, %v19112_v35  ;;  %v19116_v63 = vld [vmem:[#allocation129_spill] sm:$0xff]  ;;  %v19122_v60 = vld [vmem:[#allocation132_spill] sm:$0xff] }
 0xdde   : > { %19107 = vst [vmem:[#allocation327_spill] sm:$0xff] %v16532_v26  ;;  %v7242_v9 = vsel %vm4177_vm6, %v19109_v39, %v18131_v53  ;;  %v10919_v15 = vpop.eup %10918  ;;  %v16557_v38 = vadd.f32 %v8175_v50, %v19114_v20  ;;  %v7540_v55 = vmul.f32 %v15222_v47, %v7500_v37  ;;  %v7029_v39 = vmul.f32 0.00390625, %v7009_v4  ;;  %v19118_v3 = vld [vmem:[#allocation25_spill] sm:$0xff]  ;;  %v19119_v37 = vld [vmem:[#allocation24_spill] sm:$0xff] }
 0xddf   : > { %v7243_v62 = vsel %vm4177_vm6, %v19110_v5, %v18130_v33  ;;  %19113 = vst [vmem:[#allocation302_spill] sm:$0xff] %v16554_v41  ;;  %v7708_v57 = vmul.f32 %v16470_v27, %v19116_v63  ;;  %v7709_v5 = vmul.f32 %v16473_v56, %v19116_v63  ;;  %v19117_v33 = vld [vmem:[#allocation143_spill] sm:$0xff]  ;;  %v7262_v35 = vmul.f32 %v7242_v9, %v19118_v3  ;;  %v19120_v26 = vld [vmem:[#allocation253_spill] sm:$0xff] }
 0xde0   : > { %19115 = vst [vmem:[#allocation244_spill] sm:$0xff] %v16557_v38  ;;  %v7810_v53 = vmul.f32 %v16502_v52, %v19117_v33  ;;  %v7811_v29 = vmul.f32 %v16516_v43, %v19117_v33  ;;  %v7263_v50 = vmul.f32 %v7243_v62, %v19118_v3  ;;  %v7541_v20 = vmul.f32 %v15225_v30, %v7501_v12 }
 0xde1   : > { %v7604_v4 = vmul.f32 %v7242_v9, %v19119_v37  ;;  %v7374_v41 = vmul.f32 %v15181_v51, %v7334_v7  ;;  %v7375_v38 = vmul.f32 %v15185_v23, %v7335_v21  ;;  %v7088_v63 = vmul.f32 %v10919_v15, %v19120_v26 }
 0xde2   : > { %v7089_v14 = vmul.f32 %v10919_v15, %v19121_v24  ;;  %v7572_v46 = vadd.f32 %v7540_v55, %v16395_v25  ;;  %v7605_v33 = vmul.f32 %v7243_v62, %v19119_v37  ;;  %v7914_v49 = vmul.f32 %v7242_v9, %v19122_v60  ;;  %v19123_v55 = vld [vmem:[#allocation245_spill] sm:$0xff] }
 0xde3   : > { %v7915_v3 = vmul.f32 %v7243_v62, %v19122_v60  ;;  %v7850_v12 = vmul.f32 %v15242_v19, %v7810_v53  ;;  %v7851_v59 = vmul.f32 %v15257_v36, %v7811_v29  ;;  %v7132_v7 = vmul.f32 %v15168_v28, %v7088_v63 }
 0xde4   : > { %v7133_v21 = vmul.f32 %v15171_v1, %v7089_v14  ;;  %v7302_v26 = vmul.f32 %v15213_v22, %v7262_v35  ;;  %v7303_v24 = vmul.f32 %v15217_v31, %v7263_v50  ;;  %v7573_v25 = vadd.f32 %v7541_v20, %v16397_v48  ;;  %v19124_v35 = vld [vmem:[#allocation152_spill] sm:$0xff] }
 0xde5   : > { %v7644_v15 = vmul.f32 %v15236_v6, %v7604_v4  ;;  %v7882_v9 = vadd.f32 %v7850_v12, %v16414_v17  ;;  %v7883_v60 = vadd.f32 %v7851_v59, %v19123_v55  ;;  %v16591_v53 = vadd.f32 %v15174_v34, %v7132_v7  ;;  %v19125_v4 = vld [vmem:[#allocation218_spill] sm:$0xff] }
 0xde6   : > { %v16594_v62 = vadd.f32 %v15177_v10, %v7133_v21  ;;  %v7645_v14 = vmul.f32 %v15239_v58, %v7605_v33  ;;  %v7748_v29 = vmul.f32 %v15188_v61, %v7708_v57  ;;  %v8018_v50 = vmul.f32 %v16470_v27, %v19124_v35 }
 0xde7   : > { %v8019_v48 = vmul.f32 %v16473_v56, %v19124_v35  ;;  %v7676_v20 = vadd.f32 %v7644_v15, %v7572_v46  ;;  %v7954_v17 = vmul.f32 %v15260_v2, %v7914_v49  ;;  %v7955_v59 = vmul.f32 %v18983_v42, %v7915_v3 }
 0xde8   : > { %10920 = vrsqrt.f32 %v7037_v13  ;;  %v7677_v37 = vadd.f32 %v7645_v14, %v7573_v25  ;;  %v8120_v63 = vmul.f32 %v16502_v52, %v19125_v4  ;;  %v18136_v33 = vrot.slane %v16591_v53, 1 }
 0xde9   : > { %v18135_v57 = vrot.slane %v16594_v62, 1  ;;  %v7749_v12 = vmul.f32 %v15191_v8, %v7709_v5  ;;  %v7986_v7 = vadd.f32 %v7954_v17, %v7882_v9  ;;  %v7987_v21 = vadd.f32 %v7955_v59, %v7883_v60 }
 0xdea   : > { %v8121_v46 = vmul.f32 %v16516_v43, %v19125_v4  ;;  %v18138_v49 = vrot.slane %v16591_v53, 7  ;;  %v18137_v3 = vrot.slane %v16594_v62, 7  ;;  %v19126_v13 = vrot.slane %v16341_v40, 1 }
 0xdeb   : > { %v7045_v25 = vadd.f32 1e-06, %v7029_v39  ;;  %v16621_v15 = vadd.f32 %v7374_v41, %v7302_v26  ;;  %v16623_v5 = vadd.f32 %v7375_v38, %v7303_v24  ;;  %v8058_v9 = vmul.f32 %v15196_v11, %v8018_v50  ;;  %v19131_v24 = vld [vmem:[#allocation112_spill] sm:$0xff] }
 0xdec   : > { %v16619_v52 = vsel %vm4466_vm7, %v19126_v13, %v18136_v33  ;;  %v8059_v43 = vmul.f32 %v15199_v0, %v8019_v48  ;;  %v16627_v55 = vadd.f32 %v7748_v29, %v7676_v20  ;;  %v16629_v60 = vadd.f32 %v7749_v12, %v7677_v37  ;;  %v19135_v37 = vld [vmem:[#allocation50_spill] sm:$0xff]  ;;  %v19142_v13 = vld [vmem:[#allocation296_spill] sm:$0xff]  ;;  %v19151_v33 = vld [vmem:[#allocation297_spill] sm:$0xff] }
 0xded   : > { %v8160_v14 = vmul.f32 %v16422_v18, %v8120_v63  ;;  %v19127_v35 = vrot.slane %v16344_v32, 1  ;;  %v16638_v39 = vadd.f32 %v8058_v9, %v7986_v7  ;;  %v16643_v26 = vmul.f32 %v16144_v16, %v8121_v46  ;;  %v19136_v63 = vld [vmem:[#allocation293_spill] sm:$0xff]  ;;  %v19144_v9 = vld [vmem:[#allocation318_spill] sm:$0xff] }
 0xdee   : > { %v16640_v38 = vadd.f32 %v8059_v43, %v7987_v21  ;;  %v7516_v29 = vmul.f32 %v16619_v52, %v19131_v24  ;;  %v19133_v48 = vrot.slane %v16341_v40, 7  ;;  %v19134_v17 = vrot.slane %v16344_v32, 7  ;;  %v19138_v40 = vld [vmem:[#allocation316_spill] sm:$0xff]  ;;  %v19140_v21 = vld [vmem:[#allocation283_spill] sm:$0xff] }
 0xdef   : > { %v7467_v41 = vsel %vm4466_vm7, %v19127_v35, %v18135_v57  ;;  %19128 = vst [vmem:[#allocation249_spill] sm:$0xff] %v16638_v39  ;;  %19130 = vst [vmem:[#allocation254_spill] sm:$0xff] %v16643_v26  ;;  %v16648_v50 = vadd.f32 %v8160_v14, %v16440_v45  ;;  %10922 = vrsqrt.f32 %v7045_v25  ;;  %v7350_v4 = vmul.f32 %v16591_v53, %v19135_v37  ;;  %v19146_v35 = vld [vmem:[#allocation107_spill] sm:$0xff] }
 0xdf0   : > { %19129 = vst [vmem:[#allocation253_spill] sm:$0xff] %v16640_v38  ;;  %v7226_v20 = vsel %vm4177_vm6, %v19133_v48, %v18138_v49  ;;  %v7227_v59 = vsel %vm4177_vm6, %v19134_v17, %v18137_v3  ;;  %v7517_v45 = vmul.f32 %v7467_v41, %v19131_v24  ;;  %v16667_v12 = vmul.f32 %v15257_v36, %v19136_v63  ;;  %v19153_v3 = vld [vmem:[#allocation265_spill] sm:$0xff]  ;;  %v19156_v26 = vld [vmem:[#allocation255_spill] sm:$0xff] }
 0xdf1   : > { %19132 = vst [vmem:[#allocation245_spill] sm:$0xff] %v16648_v50  ;;  %v16671_v7 = vmul.f32 %v15257_v36, %v19138_v40  ;;  %v7351_v32 = vmul.f32 %v16594_v62, %v19135_v37  ;;  %v16677_v46 = vmul.f32 %v18983_v42, %v19140_v21  ;;  %v16681_v25 = vmul.f32 %v18983_v42, %v19142_v13  ;;  %v19147_v37 = vld [vmem:[#allocation321_spill] sm:$0xff]  ;;  %v19150_v13 = vld [vmem:[#allocation130_spill] sm:$0xff] }
 0xdf2   : > { %19137 = vst [vmem:[#allocation293_spill] sm:$0xff] %v16667_v12  ;;  %v16685_v43 = vmul.f32 %v18983_v42, %v19144_v9  ;;  %v10921_v14 = vpop.eup %10920  ;;  %v7278_v24 = vmul.f32 %v7226_v20, %v19146_v35  ;;  %v7279_v48 = vmul.f32 %v7227_v59, %v19146_v35  ;;  %v7556_v17 = vmul.f32 %v15222_v47, %v7516_v29  ;;  %v19149_v40 = vld [vmem:[#allocation133_spill] sm:$0xff]  ;;  %v19159_v12 = vld [vmem:[#allocation284_spill] sm:$0xff] }
 0xdf3   : > { %19139 = vst [vmem:[#allocation316_spill] sm:$0xff] %v16671_v7  ;;  %19141 = vst [vmem:[#allocation283_spill] sm:$0xff] %v16677_v46  ;;  %v16692_v63 = vmul.f32 %v18983_v42, %v19147_v37  ;;  %v7724_v21 = vmul.f32 %v16591_v53, %v19149_v40  ;;  %v7826_v57 = vmul.f32 %v16619_v52, %v19150_v13  ;;  %v19165_v39 = vrot.slane %v16470_v27, 7 }
 0xdf4   : > { %19143 = vst [vmem:[#allocation296_spill] sm:$0xff] %v16681_v25  ;;  %19145 = vst [vmem:[#allocation318_spill] sm:$0xff] %v16685_v43  ;;  %v16700_v9 = vmul.f32 %v15199_v0, %v19151_v33  ;;  %v16704_v49 = vmul.f32 %v15199_v0, %v19153_v3  ;;  %v7390_v29 = vmul.f32 %v15181_v51, %v7350_v4  ;;  %v19155_v43 = vld [vmem:[#allocation11_spill] sm:$0xff]  ;;  %v19158_v25 = vld [vmem:[#allocation157_spill] sm:$0xff] }
 0xdf5   : > { %19148 = vst [vmem:[#allocation321_spill] sm:$0xff] %v16692_v63  ;;  %v7557_v35 = vmul.f32 %v15225_v30, %v7517_v45  ;;  %v7725_v37 = vmul.f32 %v16594_v62, %v19149_v40  ;;  %v7827_v50 = vmul.f32 %v7467_v41, %v19150_v13  ;;  %v7391_v63 = vmul.f32 %v15185_v23, %v7351_v32 }
 0xdf6   : > { %19152 = vst [vmem:[#allocation297_spill] sm:$0xff] %v16700_v9  ;;  %19154 = vst [vmem:[#allocation265_spill] sm:$0xff] %v16704_v49  ;;  %v7620_v38 = vmul.f32 %v7226_v20, %v19155_v43  ;;  %v7074_v33 = vmul.f32 %v10921_v14, %v19156_v26  ;;  %v19157_v9 = vld [vmem:[#allocation256_spill] sm:$0xff]  ;;  %v7318_v3 = vmul.f32 %v15213_v22, %v7278_v24 }
 0xdf7   : > { %v7075_v7 = vmul.f32 %v10921_v14, %v19157_v9  ;;  %v7319_v49 = vmul.f32 %v15217_v31, %v7279_v48  ;;  %v7588_v4 = vadd.f32 %v7556_v17, %v16504_v44  ;;  %v7621_v45 = vmul.f32 %v7227_v59, %v19155_v43  ;;  %v19160_v43 = vld [vmem:[#allocation247_spill] sm:$0xff] }
 0xdf8   : > { %v7866_v40 = vmul.f32 %v15242_v19, %v7826_v57  ;;  %v7930_v13 = vmul.f32 %v7226_v20, %v19158_v25  ;;  %v7118_v32 = vmul.f32 %v15168_v28, %v7074_v33  ;;  %v7589_v26 = vadd.f32 %v7557_v35, %v19159_v12 }
 0xdf9   : > { %v7119_v46 = vmul.f32 %v15171_v1, %v7075_v7  ;;  %v7764_v14 = vmul.f32 %v15188_v61, %v7724_v21  ;;  %v7867_v24 = vmul.f32 %v15257_v36, %v7827_v50  ;;  %v7931_v48 = vmul.f32 %v7227_v59, %v19158_v25  ;;  %v10923_v9 = vpop.eup %10922  ;;  %v19161_v21 = vld [vmem:[#allocation248_spill] sm:$0xff]  ;;  %v19162_v50 = vld [vmem:[#allocation154_spill] sm:$0xff] }
 0xdfa   : > { %v7660_v44 = vmul.f32 %v15236_v6, %v7620_v38  ;;  %v7898_v17 = vadd.f32 %v7866_v40, %v19160_v43  ;;  %v16730_v57 = vadd.f32 %v15174_v34, %v7118_v32  ;;  %v7661_v7 = vmul.f32 %v15239_v58, %v7621_v45  ;;  %v19163_v43 = vld [vmem:[#allocation156_spill] sm:$0xff] }
 0xdfb   : > { %v16733_v20 = vadd.f32 %v15177_v10, %v7119_v46  ;;  %v7765_v12 = vmul.f32 %v15191_v8, %v7725_v37  ;;  %v7899_v35 = vadd.f32 %v7867_v24, %v19161_v21  ;;  %v8034_v59 = vmul.f32 %v16591_v53, %v19162_v50 }
 0xdfc   : > { %v7692_v25 = vadd.f32 %v7660_v44, %v7588_v4  ;;  %v7970_v38 = vmul.f32 %v15260_v2, %v7930_v13  ;;  %v8035_v33 = vmul.f32 %v16594_v62, %v19162_v50  ;;  %v7198_v40 = vrot.slane %v16730_v57, 7 }
 0xdfd   : > { %v7693_v32 = vadd.f32 %v7661_v7, %v7589_v26  ;;  %v7971_v46 = vmul.f32 %v18983_v42, %v7931_v48  ;;  %v8136_v45 = vmul.f32 %v16619_v52, %v19163_v43  ;;  %v8137_v37 = vmul.f32 %v7467_v41, %v19163_v43  ;;  %v19166_v48 = vld [vmem:[#allocation257_spill] sm:$0xff]  ;;  %v19171_v43 = vld [vmem:[#allocation259_spill] sm:$0xff] }
 0xdfe   : > { %v16748_v24 = vadd.f32 %v7390_v29, %v7318_v3  ;;  %v8002_v21 = vadd.f32 %v7970_v38, %v7898_v17  ;;  %v7438_v4 = vrot.slane %v16730_v57, 1  ;;  %v7439_v13 = vrot.slane %v16733_v20, 1 }
 0xdff   : > { %v8003_v44 = vadd.f32 %v7971_v46, %v7899_v35  ;;  %v7199_v50 = vrot.slane %v16733_v20, 7  ;;  %v16757_v26 = vsel %vm4177_vm6, %v19165_v39, %v7198_v40  ;;  %v7090_v52 = vmul.f32 %v10923_v9, %v19166_v48  ;;  %v19170_v46 = vld [vmem:[#allocation258_spill] sm:$0xff] }
 0xe00   : > { %19164 = vst [vmem:[#allocation255_spill] sm:$0xff] %v16748_v24  ;;  %v16760_v7 = vadd.f32 %v7391_v63, %v7319_v49  ;;  %v16762_v41 = vadd.f32 %v7764_v14, %v7692_v25  ;;  %v8074_v29 = vmul.f32 %v15196_v11, %v8034_v59  ;;  %v8075_v3 = vmul.f32 %v15199_v0, %v8035_v33  ;;  %v19173_v63 = vld [vmem:[#allocation121_spill] sm:$0xff] }
 0xe01   : > { %v16766_v17 = vadd.f32 %v7765_v12, %v7693_v32  ;;  %v8176_v35 = vmul.f32 %v16422_v18, %v8136_v45  ;;  %v16770_v38 = vmul.f32 %v16144_v16, %v8137_v37  ;;  %v7091_v39 = vmul.f32 %v10923_v9, %v19170_v46  ;;  %v19179_v37 = vld [vmem:[#allocation260_spill] sm:$0xff]  ;;  %v19181_v46 = vld [vmem:[#allocation21_spill] sm:$0xff] }
 0xe02   : > { %19167 = vst [vmem:[#allocation256_spill] sm:$0xff] %v16762_v41  ;;  %v19172_v24 = vrot.slane %v19171_v43, 7  ;;  %v7264_v14 = vmul.f32 %v16757_v26, %v19173_v63  ;;  %v19174_v59 = vrot.slane %v16470_v27, 1  ;;  %v19175_v25 = vrot.slane %v16473_v56, 1 }
 0xe03   : > { %19168 = vst [vmem:[#allocation284_spill] sm:$0xff] %v16766_v17  ;;  %19169 = vst [vmem:[#allocation247_spill] sm:$0xff] %v16770_v38  ;;  %v16793_v33 = vadd.f32 %v8074_v29, %v8002_v21  ;;  %v16795_v32 = vadd.f32 %v8075_v3, %v8003_v44  ;;  %v7134_v27 = vmul.f32 %v15168_v28, %v7090_v52  ;;  %v19182_v29 = vld [vmem:[#allocation128_spill] sm:$0xff]  ;;  %v19183_v3 = vld [vmem:[#allocation326_spill] sm:$0xff]  ;;  %v19186_v52 = vrot.slane %v19171_v43, 1 }
 0xe04   : > { %v16777_v49 = vsel %vm4177_vm6, %v7198_v40, %v19172_v24  ;;  %v16785_v12 = vsel %vm4466_vm7, %v19174_v59, %v7438_v4  ;;  %v16791_v9 = vsel %vm4466_vm7, %v19175_v25, %v7439_v13  ;;  %v19178_v40 = vrot.slane %v16473_v56, 7  ;;  %v19185_v25 = vld [vmem:[#allocation62_spill] sm:$0xff]  ;;  %v19188_v38 = vld [vmem:[#allocation280_spill] sm:$0xff] }
 0xe05   : > { %19176 = vst [vmem:[#allocation248_spill] sm:$0xff] %v16793_v33  ;;  %19177 = vst [vmem:[#allocation257_spill] sm:$0xff] %v16795_v32  ;;  %v19180_v24 = vrot.slane %v19179_v37, 7  ;;  %v7336_v21 = vmul.f32 %v16730_v57, %v19181_v46  ;;  %v7502_v44 = vmul.f32 %v16785_v12, %v19182_v29  ;;  %v7503_v56 = vmul.f32 %v16791_v9, %v19182_v29  ;;  %v19187_v29 = vld [vmem:[#allocation230_spill] sm:$0xff] }
 0xe06   : > { %v16801_v45 = vsel %vm4177_vm6, %v19178_v40, %v7199_v50  ;;  %v16817_v59 = vadd.f32 %v8176_v35, %v19183_v3  ;;  %v7266_v28 = vmul.f32 %v16777_v49, %v19185_v25  ;;  %v7135_v40 = vmul.f32 %v15171_v1, %v7091_v39  ;;  %v19190_v3 = vld [vmem:[#allocation241_spill] sm:$0xff]  ;;  %v19193_v39 = vld [vmem:[#allocation238_spill] sm:$0xff] }
 0xe07   : > { %v16808_v48 = vsel %vm4177_vm6, %v7199_v50, %v19180_v24  ;;  %v16825_v50 = vsel %vm4466_vm7, %v7438_v4, %v19186_v52  ;;  %v7265_v24 = vmul.f32 %v16801_v45, %v19173_v63  ;;  %v7304_v32 = vmul.f32 %v15213_v22, %v7264_v14  ;;  %v19194_v52 = vld [vmem:[#allocation305_spill] sm:$0xff] }
 0xe08   : > { %19184 = vst [vmem:[#allocation258_spill] sm:$0xff] %v16817_v59  ;;  %v16833_v35 = vmul.f32 %v19188_v38, %v19187_v29  ;;  %v19191_v59 = vld [vmem:[#allocation266_spill] sm:$0xff]  ;;  %v7267_v43 = vmul.f32 %v16808_v48, %v19185_v25  ;;  %v7542_v4 = vmul.f32 %v15222_v47, %v7502_v44  ;;  %v7543_v1 = vmul.f32 %v15225_v30, %v7503_v56  ;;  %v19196_v29 = vld [vmem:[#allocation123_spill] sm:$0xff] }
 0xe09   : > { %v16837_v33 = vmul.f32 %v19191_v59, %v19190_v3  ;;  %v16845_v63 = vmul.f32 %v19194_v52, %v19193_v39  ;;  %v7337_v14 = vmul.f32 %v16733_v20, %v19181_v46  ;;  %v7376_v38 = vmul.f32 %v15181_v51, %v7336_v21  ;;  %v19198_v39 = vld [vmem:[#allocation13_spill] sm:$0xff] }
 0xe0a   : > { %19189 = vst [vmem:[#allocation259_spill] sm:$0xff] %v16833_v35  ;;  %v7504_v59 = vmul.f32 %v16825_v50, %v19196_v29  ;;  %v16853_v3 = vadd.f32 %v15174_v34, %v7134_v27  ;;  %v7306_v25 = vmul.f32 %v15213_v22, %v7266_v28  ;;  %v19197_v44 = vrot.slane %v19179_v37, 1  ;;  %v19199_v27 = vld [vmem:[#allocation232_spill] sm:$0xff]  ;;  %v19200_v28 = vld [vmem:[#allocation263_spill] sm:$0xff]  ;;  %v19202_v35 = vld [vmem:[#allocation18_spill] sm:$0xff] }
 0xe0b   : > { %19192 = vst [vmem:[#allocation260_spill] sm:$0xff] %v16837_v33  ;;  %19195 = vst [vmem:[#allocation326_spill] sm:$0xff] %v16845_v63  ;;  %v7606_v52 = vmul.f32 %v16757_v26, %v19198_v39  ;;  %v7607_v46 = vmul.f32 %v16801_v45, %v19198_v39  ;;  %v7305_v21 = vmul.f32 %v15217_v31, %v7265_v24 }
 0xe0c   : > { %v16860_v56 = vsel %vm4466_vm7, %v7439_v13, %v19197_v44  ;;  %v7408_v63 = vadd.f32 %v7376_v38, %v7304_v32  ;;  %v16868_v34 = vadd.f32 %v15177_v10, %v7135_v40  ;;  %v16872_v33 = vmul.f32 %v19200_v28, %v19199_v27  ;;  %v19203_v40 = vld [vmem:[#allocation15_spill] sm:$0xff]  ;;  %v19204_v38 = vld [vmem:[#allocation268_spill] sm:$0xff]  ;;  %v19206_v28 = vld [vmem:[#allocation269_spill] sm:$0xff] }
 0xe0d   : > { %v7307_v37 = vmul.f32 %v15217_v31, %v7267_v43  ;;  %v7574_v13 = vadd.f32 %v7542_v4, %v16621_v15  ;;  %v7575_v44 = vadd.f32 %v7543_v1, %v16623_v5  ;;  %v7710_v17 = vmul.f32 %v16730_v57, %v19202_v35 }
 0xe0e   : > { %19201 = vst [vmem:[#allocation280_spill] sm:$0xff] %v16872_v33  ;;  %v7377_v39 = vmul.f32 %v15185_v23, %v7337_v14  ;;  %v7505_v32 = vmul.f32 %v16860_v56, %v19196_v29  ;;  %v7544_v10 = vmul.f32 %v15222_v47, %v7504_v59  ;;  %v7608_v24 = vmul.f32 %v16777_v49, %v19203_v40  ;;  %v19205_v29 = vld [vmem:[#allocation145_spill] sm:$0xff] }
 0xe0f   : > { %v7410_v27 = vadd.f32 %v19204_v38, %v7306_v25  ;;  %v7646_v43 = vmul.f32 %v15236_v6, %v7606_v52  ;;  %v7647_v15 = vmul.f32 %v15239_v58, %v7607_v46  ;;  %v7711_v5 = vmul.f32 %v16733_v20, %v19202_v35  ;;  %v19207_v38 = vld [vmem:[#allocation287_spill] sm:$0xff] }
 0xe10   : > { %v7409_v4 = vadd.f32 %v7377_v39, %v7305_v21  ;;  %v7576_v1 = vadd.f32 %v7544_v10, %v7408_v63  ;;  %v7609_v14 = vmul.f32 %v16808_v48, %v19203_v40  ;;  %v7812_v59 = vmul.f32 %v16785_v12, %v19205_v29  ;;  %v19208_v21 = vld [vmem:[#allocation147_spill] sm:$0xff]  ;;  %v19209_v10 = vld [vmem:[#allocation277_spill] sm:$0xff] }
 0xe11   : > { %v16895_v33 = vadd.f32 %v19206_v28, %v7307_v37  ;;  %v7678_v41 = vadd.f32 %v7646_v43, %v7574_v13  ;;  %v7679_v25 = vadd.f32 %v7647_v15, %v7575_v44  ;;  %v16899_v52 = vmul.f32 %v16144_v16, %v19207_v38  ;;  %v19210_v28 = vld [vmem:[#allocation150_spill] sm:$0xff] }
 0xe12   : > { %v7545_v46 = vmul.f32 %v15225_v30, %v7505_v32  ;;  %v7648_v35 = vmul.f32 %v15236_v6, %v7608_v24  ;;  %v7813_v63 = vmul.f32 %v16791_v9, %v19205_v29  ;;  %v7814_v39 = vmul.f32 %v16825_v50, %v19208_v21 }
 0xe13   : > { %v16908_v40 = vadd.f32 %v19209_v10, %v7410_v27  ;;  %v7750_v37 = vmul.f32 %v15188_v61, %v7710_v17  ;;  %v7751_v13 = vmul.f32 %v15191_v8, %v7711_v5  ;;  %v7815_v16 = vmul.f32 %v16860_v56, %v19208_v21 }
 0xe14   : > { %v7577_v44 = vadd.f32 %v7545_v46, %v7409_v4  ;;  %v7649_v32 = vmul.f32 %v15239_v58, %v7609_v14  ;;  %v7680_v24 = vadd.f32 %v7648_v35, %v7576_v1  ;;  %v7852_v43 = vmul.f32 %v15242_v19, %v7812_v59  ;;  %v19211_v14 = vld [vmem:[#allocation174_spill] sm:$0xff] }
 0xe15   : > { %v7782_v15 = vadd.f32 %v7750_v37, %v7678_v41  ;;  %v7783_v29 = vadd.f32 %v7751_v13, %v7679_v25  ;;  %v7916_v38 = vmul.f32 %v16757_v26, %v19210_v28  ;;  %v7214_v27 = vrot.slane %v16853_v3, 7  ;;  %v19213_v35 = vld [vmem:[#allocation270_spill] sm:$0xff] }
 0xe16   : > { %v7853_v17 = vmul.f32 %v15257_v36, %v7813_v63  ;;  %v7854_v5 = vmul.f32 %v15242_v19, %v7814_v39  ;;  %v7917_v21 = vmul.f32 %v16801_v45, %v19210_v28  ;;  %v7215_v4 = vrot.slane %v16868_v34, 7 }
 0xe17   : > { %v7855_v1 = vmul.f32 %v15257_v36, %v7815_v16  ;;  %v7918_v41 = vmul.f32 %v16777_v49, %v19211_v14  ;;  %v19212_v59 = vrot.slane %v16591_v53, 7  ;;  %v7454_v25 = vrot.slane %v16853_v3, 1 }
 0xe18   : > { %v16934_v46 = vadd.f32 %v7649_v32, %v7577_v44  ;;  %v16937_v63 = vadd.f32 %v19213_v35, %v7680_v24  ;;  %v7884_v45 = vadd.f32 %v7852_v43, %v16627_v55  ;;  %v7919_v39 = vmul.f32 %v16808_v48, %v19211_v14  ;;  %v19216_v24 = vld [vmem:[#allocation31_spill] sm:$0xff]  ;;  %v19217_v43 = vld [vmem:[#allocation185_spill] sm:$0xff] }
 0xe19   : > { %v16931_v26 = vsel %vm4177_vm6, %v19212_v59, %v7214_v27  ;;  %v7885_v49 = vadd.f32 %v7853_v17, %v16629_v60  ;;  %v7886_v10 = vadd.f32 %v7854_v5, %v7782_v15  ;;  %v16943_v37 = vadd.f32 %v7855_v1, %v7783_v29  ;;  %v19219_v5 = vld [vmem:[#allocation221_spill] sm:$0xff]  ;;  %v19220_v1 = vld [vmem:[#allocation22_spill] sm:$0xff] }
 0xe1a   : > { %19214 = vst [vmem:[#allocation266_spill] sm:$0xff] %v16937_v63  ;;  %v7956_v13 = vmul.f32 %v15260_v2, %v7916_v38  ;;  %v7957_v16 = vmul.f32 %v18983_v42, %v7917_v21  ;;  %v19215_v44 = vrot.slane %v16594_v62, 7  ;;  %v7280_v55 = vmul.f32 %v16931_v26, %v19216_v24 }
 0xe1b   : > { %v7455_v48 = vrot.slane %v16868_v34, 1  ;;  %v7958_v60 = vmul.f32 %v15260_v2, %v7918_v41  ;;  %v8020_v15 = vmul.f32 %v16730_v57, %v19217_v43  ;;  %v8021_v29 = vmul.f32 %v16733_v20, %v19217_v43 }
 0xe1c   : > { %v16951_v32 = vsel %vm4177_vm6, %v19215_v44, %v7215_v4  ;;  %v19218_v28 = vrot.slane %v16591_v53, 1  ;;  %v16968_v17 = vmul.f32 %v18983_v42, %v7919_v39  ;;  %v8122_v21 = vmul.f32 %v16785_v12, %v19219_v5  ;;  %v19222_v53 = vld [vmem:[#allocation291_spill] sm:$0xff] }
 0xe1d   : > { %v7352_v14 = vmul.f32 %v16853_v3, %v19220_v1  ;;  %v19221_v57 = vrot.slane %v16594_v62, 1  ;;  %v19223_v41 = vrot.slane %v19222_v53, 7  ;;  %v7281_v35 = vmul.f32 %v16951_v32, %v19216_v24  ;;  %v19225_v62 = vld [vmem:[#allocation23_spill] sm:$0xff] }
 0xe1e   : > { %v16965_v38 = vsel %vm4466_vm7, %v19218_v28, %v7454_v25  ;;  %v19224_v12 = vrot.slane %v19222_v53, 1  ;;  %v7988_v43 = vadd.f32 %v7956_v13, %v7884_v45  ;;  %v7989_v28 = vadd.f32 %v7957_v16, %v7885_v49  ;;  %v19229_v13 = vld [vmem:[#allocation51_spill] sm:$0xff] }
 0xe1f   : > { %v16978_v20 = vsel %vm4466_vm7, %v19221_v57, %v7455_v48  ;;  %v16984_v59 = vsel %vm4177_vm6, %v7214_v27, %v19223_v41  ;;  %v7518_v44 = vmul.f32 %v16965_v38, %v19225_v62  ;;  %v8123_v57 = vmul.f32 %v16791_v9, %v19219_v5  ;;  %v19226_v41 = vld [vmem:[#allocation292_spill] sm:$0xff] }
 0xe20   : > { %v16992_v39 = vsel %vm4466_vm7, %v7454_v25, %v19224_v12  ;;  %v7320_v27 = vmul.f32 %v15213_v22, %v7280_v55  ;;  %v19227_v63 = vrot.slane %v19226_v41, 7  ;;  %v7353_v25 = vmul.f32 %v16868_v34, %v19220_v1  ;;  %v19231_v12 = vld [vmem:[#allocation220_spill] sm:$0xff] }
 0xe21   : > { %v19228_v53 = vrot.slane %v19226_v41, 1  ;;  %v7519_v9 = vmul.f32 %v16978_v20, %v19225_v62  ;;  %v8060_v49 = vmul.f32 %v15196_v11, %v8020_v15  ;;  %v7282_v16 = vmul.f32 %v16984_v59, %v19229_v13 }
 0xe22   : > { %v17003_v24 = vsel %vm4177_vm6, %v7215_v4, %v19227_v63  ;;  %v7392_v4 = vmul.f32 %v15181_v51, %v7352_v14  ;;  %v19230_v63 = vld [vmem:[#allocation125_spill] sm:$0xff]  ;;  %v17021_v5 = vadd.f32 %v7958_v60, %v7886_v10  ;;  %v8061_v1 = vmul.f32 %v15199_v0, %v8021_v29  ;;  %v19232_v14 = vld [vmem:[#allocation127_spill] sm:$0xff] }
 0xe23   : > { %v17011_v45 = vsel %vm4466_vm7, %v7455_v48, %v19228_v53  ;;  %v7520_v55 = vmul.f32 %v16992_v39, %v19230_v63  ;;  %v7321_v54 = vmul.f32 %v15217_v31, %v7281_v35  ;;  %v7558_v48 = vmul.f32 %v15222_v47, %v7518_v44  ;;  %v19233_v53 = vld [vmem:[#allocation16_spill] sm:$0xff] }
 0xe24   : > { %v8124_v62 = vmul.f32 %v16825_v50, %v19231_v12  ;;  %v7283_v15 = vmul.f32 %v17003_v24, %v19229_v13  ;;  %v7424_v41 = vadd.f32 %v7392_v4, %v7320_v27  ;;  %v7521_v51 = vmul.f32 %v17011_v45, %v19230_v63 }
 0xe25   : > { %v17034_v10 = vmul.f32 %v16860_v56, %v19231_v12  ;;  %v7393_v60 = vmul.f32 %v15185_v23, %v7353_v25  ;;  %v7559_v29 = vmul.f32 %v15225_v30, %v7519_v9  ;;  %v7622_v35 = vmul.f32 %v16931_v26, %v19232_v14  ;;  %v19234_v23 = vld [vmem:[#allocation255_spill] sm:$0xff] }
 0xe26   : > { %v7322_v50 = vmul.f32 %v15213_v22, %v7282_v16  ;;  %v7560_v44 = vmul.f32 %v15222_v47, %v7520_v55  ;;  %v7623_v27 = vmul.f32 %v16951_v32, %v19232_v14  ;;  %v7624_v13 = vmul.f32 %v16984_v59, %v19233_v53 }
 0xe27   : > { %v8092_v4 = vadd.f32 %v8060_v49, %v7988_v43  ;;  %v8162_v56 = vmul.f32 %v16422_v18, %v8122_v21  ;;  %v7425_v63 = vadd.f32 %v7393_v60, %v7321_v54  ;;  %v7590_v25 = vadd.f32 %v7558_v48, %v19234_v23  ;;  %v19235_v43 = vld [vmem:[#allocation135_spill] sm:$0xff]  ;;  %v19240_v23 = vld [vmem:[#allocation310_spill] sm:$0xff] }
 0xe28   : > { %v17048_v9 = vadd.f32 %v8061_v1, %v7989_v28  ;;  %v7323_v12 = vmul.f32 %v15217_v31, %v7283_v15  ;;  %v7561_v22 = vmul.f32 %v15225_v30, %v7521_v51  ;;  %v7592_v16 = vadd.f32 %v7560_v44, %v7424_v41  ;;  %v17061_v28 = vld [vmem:[%s17750_s14 + $0x18] ss:$0 sm:$0xff]  ;;  %v19236_v30 = vld [vmem:[#allocation303_spill] sm:$0xff] }
 0xe29   : > { %v7591_v47 = vadd.f32 %v7559_v29, %v16760_v7  ;;  %v7625_v55 = vmul.f32 %v17003_v24, %v19233_v53  ;;  %v7662_v14 = vmul.f32 %v15236_v6, %v7622_v35  ;;  %v7726_v21 = vmul.f32 %v16853_v3, %v19235_v43  ;;  %v19237_v41 = vld [vmem:[#allocation20_spill] sm:$0xff]  ;;  %v19238_v29 = vld [vmem:[#allocation249_spill] sm:$0xff] }
 0xe2a   : > { %v17064_v31 = vmul.f32 %v17061_v28, %v8123_v57  ;;  %v7426_v49 = vadd.f32 %v19236_v30, %v7322_v50  ;;  %v7663_v7 = vmul.f32 %v15239_v58, %v7623_v27  ;;  %v7664_v1 = vmul.f32 %v15236_v6, %v7624_v13  ;;  %v19239_v57 = vld [vmem:[#allocation304_spill] sm:$0xff]  ;;  %v19245_v30 = vld [vmem:[#allocation311_spill] sm:$0xff] }
 0xe2b   : > { %v7593_v54 = vadd.f32 %v7561_v22, %v7425_v63  ;;  %v7694_v48 = vadd.f32 %v7662_v14, %v7590_v25  ;;  %v7727_v15 = vmul.f32 %v16868_v34, %v19235_v43  ;;  %v7828_v51 = vmul.f32 %v16965_v38, %v19237_v41  ;;  %v19244_v43 = vld [vmem:[#allocation278_spill] sm:$0xff] }
 0xe2c   : > { %v8164_v60 = vmul.f32 %v16422_v18, %v8124_v62  ;;  %v17075_v35 = vadd.f32 %v8162_v56, %v19238_v29  ;;  %v7427_v44 = vadd.f32 %v19239_v57, %v7323_v12  ;;  %v7696_v50 = vadd.f32 %v7664_v1, %v7592_v16  ;;  %v19241_v62 = vld [vmem:[#allocation148_spill] sm:$0xff] }
 0xe2d   : > { %v7665_v27 = vmul.f32 %v15239_v58, %v7625_v55  ;;  %v7695_v53 = vadd.f32 %v7663_v7, %v7591_v47  ;;  %v7766_v6 = vmul.f32 %v15188_v61, %v7726_v21  ;;  %v7829_v13 = vmul.f32 %v16978_v20, %v19237_v41  ;;  %v19242_v47 = vld [vmem:[#allocation306_spill] sm:$0xff] }
 0xe2e   : > { %v17082_v63 = vadd.f32 %v8164_v60, %v8092_v4  ;;  %v17085_v25 = vadd.f32 %v19240_v23, %v7426_v49  ;;  %v7830_v56 = vmul.f32 %v16992_v39, %v19241_v62  ;;  %v7831_v12 = vmul.f32 %v17011_v45, %v19241_v62  ;;  %v19243_v4 = vld [vmem:[#allocation161_spill] sm:$0xff]  ;;  %v19248_v60 = vld [vmem:[#allocation276_spill] sm:$0xff] }
 0xe2f   : > { %v7697_v22 = vadd.f32 %v7665_v27, %v7593_v54  ;;  %v7767_v58 = vmul.f32 %v15191_v8, %v7727_v15  ;;  %v7798_v16 = vadd.f32 %v7766_v6, %v7694_v48  ;;  %v7868_v61 = vmul.f32 %v15242_v19, %v7828_v51  ;;  %v19246_v54 = vld [vmem:[#allocation272_spill] sm:$0xff]  ;;  %v19252_v6 = vld [vmem:[#allocation191_spill] sm:$0xff]  ;;  %v19254_v23 = vld [vmem:[#allocation285_spill] sm:$0xff] }
 0xe30   : > { %v17094_v55 = vadd.f32 %v19242_v47, %v7696_v50  ;;  %v7932_v14 = vmul.f32 %v16931_v26, %v19243_v4  ;;  %v7579_v21 = vadd.f32 %v19244_v43, %v16895_v33  ;;  %v7595_v49 = vadd.f32 %v19245_v30, %v7427_v44  ;;  %v19247_v51 = vld [vmem:[#allocation256_spill] sm:$0xff]  ;;  %v19250_v44 = vld [vmem:[#allocation165_spill] sm:$0xff] }
 0xe31   : > { %v7799_v7 = vadd.f32 %v7767_v58, %v7695_v53  ;;  %v7869_v1 = vmul.f32 %v15257_v36, %v7829_v13  ;;  %v7933_v8 = vmul.f32 %v16951_v32, %v19243_v4  ;;  %v7785_v48 = vadd.f32 %v19246_v54, %v16934_v46  ;;  %v19249_v33 = vld [vmem:[#allocation284_spill] sm:$0xff]  ;;  %v19251_v32 = vld [vmem:[#allocation314_spill] sm:$0xff]  ;;  %v19256_v4 = vld [vmem:[#allocation307_spill] sm:$0xff] }
 0xe32   : > { %v7870_v15 = vmul.f32 %v15242_v19, %v7830_v56  ;;  %v7871_v41 = vmul.f32 %v15257_v36, %v7831_v12  ;;  %v7900_v26 = vadd.f32 %v7868_v61, %v19247_v51  ;;  %v7683_v29 = vadd.f32 %v19248_v60, %v7579_v21  ;;  %v19253_v36 = vld [vmem:[#allocation281_spill] sm:$0xff] }
 0xe33   : > { %v7901_v57 = vadd.f32 %v7869_v1, %v19249_v33  ;;  %v7934_v50 = vmul.f32 %v16984_v59, %v19250_v44  ;;  %v7935_v27 = vmul.f32 %v17003_v24, %v19250_v44  ;;  %v7699_v53 = vadd.f32 %v19251_v32, %v7595_v49  ;;  %v19255_v24 = vld [vmem:[#allocation196_spill] sm:$0xff]  ;;  %v19257_v43 = vld [vmem:[#allocation293_spill] sm:$0xff]  ;;  %v19264_v33 = vld [vmem:[#allocation274_spill] sm:$0xff] }
 0xe34   : > { %v7972_v46 = vmul.f32 %v15260_v2, %v7932_v14  ;;  %v8036_v19 = vmul.f32 %v16853_v3, %v19252_v6  ;;  %v7787_v13 = vadd.f32 %v19253_v36, %v7683_v29  ;;  %v7889_v62 = vadd.f32 %v19254_v23, %v7785_v48  ;;  %v19266_v32 = vld [vmem:[#allocation251_spill] sm:$0xff]  ;;  %v19269_v36 = vld [vmem:[#allocation297_spill] sm:$0xff] }
 0xe35   : > { %v7902_v56 = vadd.f32 %v7870_v15, %v7798_v16  ;;  %v7903_v12 = vadd.f32 %v7871_v41, %v7799_v7  ;;  %v7973_v58 = vmul.f32 %v18983_v42, %v7933_v8  ;;  %v8037_v59 = vmul.f32 %v16868_v34, %v19252_v6  ;;  %v19258_v16 = vld [vmem:[#allocation315_spill] sm:$0xff]  ;;  %v19259_v8 = vld [vmem:[#allocation225_spill] sm:$0xff]  ;;  %v19268_v6 = vld [vmem:[#allocation248_spill] sm:$0xff] }
 0xe36   : > { %v8004_v61 = vadd.f32 %v7972_v46, %v7900_v26  ;;  %v8138_v47 = vmul.f32 %v16965_v38, %v19255_v24  ;;  %v7801_v14 = vadd.f32 %v19256_v4, %v7697_v22  ;;  %v7891_v21 = vadd.f32 %v19257_v43, %v7787_v13  ;;  %v19260_v22 = vld [vmem:[#allocation283_spill] sm:$0xff]  ;;  %v19270_v23 = vld [vmem:[#allocation253_spill] sm:$0xff] }
 0xe37   : > { %v7974_v3 = vmul.f32 %v15260_v2, %v7934_v50  ;;  %v8139_v30 = vmul.f32 %v16978_v20, %v19255_v24  ;;  %v7803_v49 = vadd.f32 %v19258_v16, %v7699_v53  ;;  %v7991_v7 = vadd.f32 %v16968_v17, %v16943_v37  ;;  %v19261_v20 = vld [vmem:[#allocation296_spill] sm:$0xff]  ;;  %v19262_v17 = vld [vmem:[#allocation319_spill] sm:$0xff]  ;;  %v19277_v16 = vld [vmem:[#allocation246_spill] sm:$0xff] }
 0xe38   : > { %v7975_v34 = vmul.f32 %v18983_v42, %v7935_v27  ;;  %v8076_v1 = vmul.f32 %v15196_v11, %v8036_v19  ;;  %v8140_v38 = vmul.f32 %v16992_v39, %v19259_v8  ;;  %v7993_v54 = vadd.f32 %v19260_v22, %v7889_v62  ;;  %v19263_v39 = vld [vmem:[#allocation316_spill] sm:$0xff]  ;;  %v19279_v22 = vld [vmem:[#allocation242_spill] sm:$0xff] }
 0xe39   : > { %v8005_v48 = vadd.f32 %v7973_v58, %v7901_v57  ;;  %v17139_v15 = vadd.f32 %v7974_v3, %v7902_v56  ;;  %v8077_v2 = vmul.f32 %v15199_v0, %v8037_v59  ;;  %v7995_v41 = vadd.f32 %v19261_v20, %v7891_v21  ;;  %v19265_v0 = vld [vmem:[#allocation289_spill] sm:$0xff]  ;;  %v19271_v56 = vld [vmem:[#allocation318_spill] sm:$0xff]  ;;  %v19272_v58 = vld [vmem:[#allocation259_spill] sm:$0xff] }
 0xe3a   : > { %v8108_v51 = vadd.f32 %v8076_v1, %v8004_v61  ;;  %v8141_v37 = vmul.f32 %v17011_v45, %v19259_v8  ;;  %v8178_v42 = vmul.f32 %v16422_v18, %v8138_v47  ;;  %v7905_v11 = vadd.f32 %v19262_v17, %v7801_v14  ;;  %v19267_v45 = vld [vmem:[#allocation254_spill] sm:$0xff]  ;;  %v19273_v61 = vld [vmem:[#allocation321_spill] sm:$0xff]  ;;  %v19275_v14 = vld [vmem:[#allocation260_spill] sm:$0xff] }
 0xe3b   : > { %v8179_v26 = vmul.f32 %v17061_v28, %v8139_v30  ;;  %v7907_v60 = vadd.f32 %v19263_v39, %v7803_v49  ;;  %v8007_v29 = vadd.f32 %v7975_v34, %v7903_v12  ;;  %v8095_v57 = vadd.f32 %v19264_v33, %v7991_v7  ;;  %v19274_v47 = vld [vmem:[#allocation309_spill] sm:$0xff]  ;;  %v19276_v3 = vld [vmem:[#allocation243_spill] sm:$0xff]  ;;  %v19278_v34 = vld [vmem:[#allocation324_spill] sm:$0xff] }
 0xe3c   : > { %v8180_v44 = vmul.f32 %v16422_v18, %v8140_v38  ;;  %v8097_v50 = vadd.f32 %v19265_v0, %v7993_v54  ;;  %v8165_v27 = vmul.f32 %v17061_v28, %v17034_v10  ;;  %v17156_v53 = vadd.f32 %v19267_v45, %v19266_v32  ;;  %v19280_v54 = vld [vmem:[#allocation326_spill] sm:$0xff]  ;;  %v19284_v17 = vld [vmem:[#allocation247_spill] sm:$0xff]  ;;  %v19285_v39 = vld [vmem:[#allocation257_spill] sm:$0xff] }
 0xe3d   : > { %v8109_v46 = vadd.f32 %v8077_v2, %v8005_v48  ;;  %v17159_v19 = vadd.f32 %v8178_v42, %v19268_v6  ;;  %v8099_v13 = vadd.f32 %v19269_v36, %v7995_v41  ;;  %v17164_v62 = vadd.f32 %v17064_v31, %v19270_v23  ;;  %v19281_v2 = vld [vmem:[#allocation280_spill] sm:$0xff] }
 0xe3e   : > { %v17166_v18 = vadd.f32 %v8180_v44, %v8108_v51  ;;  %v8009_v12 = vadd.f32 %v19271_v56, %v7905_v11  ;;  %v8169_v10 = vmul.f32 %v17061_v28, %v19272_v58  ;;  %v17172_v59 = vadd.f32 %v8165_v27, %v17048_v9  ;;  %v19282_v51 = vld [vmem:[#allocation265_spill] sm:$0xff]  ;;  %v19286_v6 = vld [vmem:[#allocation300_spill] sm:$0xff] }
 0xe3f   : > { %v8011_v24 = vadd.f32 %v19273_v61, %v7907_v60  ;;  %v8111_v4 = vadd.f32 %v19274_v47, %v8007_v29  ;;  %v8171_v43 = vmul.f32 %v17061_v28, %v19275_v14  ;;  %v17179_v31 = vadd.f32 %v16899_v52, %v8095_v57 }
 0xe40   : > { %v17181_v21 = vadd.f32 %v8169_v10, %v8097_v50  ;;  %v8253_v30 = vmul.f32 0.044715, %v19276_v3  ;;  %v8255_v49 = vmul.f32 0.044715, %v19277_v16  ;;  %v8257_v7 = vmul.f32 0.044715, %v17156_v53 }
 0xe41   : > { %v8181_v9 = vmul.f32 %v17061_v28, %v8141_v37  ;;  %v8183_v1 = vmul.f32 %v17061_v28, %v19278_v34  ;;  %v17189_v8 = vadd.f32 %v8171_v43, %v8099_v13  ;;  %v8259_v38 = vmul.f32 0.044715, %v17164_v62  ;;  %v19283_v37 = vld [vmem:[#allocation327_spill] sm:$0xff] }
 0xe42   : > { %v8113_v52 = vadd.f32 %v19279_v22, %v8009_v12  ;;  %v8185_v48 = vmul.f32 %v17061_v28, %v19280_v54  ;;  %v8187_v20 = vmul.f32 %v17061_v28, %v19281_v2  ;;  %v8261_v41 = vmul.f32 0.044715, %v17172_v59 }
 0xe43   : > { %v8115_v42 = vadd.f32 %v19282_v51, %v8011_v24  ;;  %v17201_v11 = vadd.f32 %v19284_v17, %v19283_v37  ;;  %v17204_v60 = vadd.f32 %v8179_v26, %v19285_v39  ;;  %v8263_v29 = vmul.f32 0.044715, %v17179_v31 }
 0xe44   : > { %v8265_v33 = vmul.f32 0.044715, %v17181_v21  ;;  %v8285_v57 = vmul.f32 %v8253_v30, %v19276_v3  ;;  %v8287_v44 = vmul.f32 %v8255_v49, %v19277_v16  ;;  %v8289_v28 = vmul.f32 %v8257_v7, %v17156_v53 }
 0xe45   : > { %v17211_v0 = vadd.f32 %v8181_v9, %v8109_v46  ;;  %v17213_v50 = vadd.f32 %v8183_v1, %v8111_v4  ;;  %v8267_v27 = vmul.f32 0.044715, %v17189_v8  ;;  %v8291_v32 = vmul.f32 %v8259_v38, %v17164_v62  ;;  %v19287_v46 = vld [vmem:[#allocation244_spill] sm:$0xff] }
 0xe46   : > { %v17217_v26 = vadd.f32 %v8185_v48, %v8113_v52  ;;  %v17220_v45 = vmul.f32 0.5, %v19276_v3  ;;  %v8269_v36 = vmul.f32 0.044715, %v19286_v6  ;;  %v8293_v13 = vmul.f32 %v8261_v41, %v17172_v59 }
 0xe47   : > { %v17225_v23 = vmul.f32 0.5, %v19277_v16  ;;  %v8271_v56 = vmul.f32 0.044715, %v19287_v46  ;;  %v8273_v12 = vmul.f32 0.044715, %v17201_v11  ;;  %v8295_v58 = vmul.f32 %v8263_v29, %v17179_v31 }
 0xe48   : > { %v8297_v10 = vmul.f32 %v8265_v33, %v17181_v21  ;;  %v8317_v61 = vmul.f32 %v8285_v57, %v19276_v3  ;;  %v8319_v24 = vmul.f32 %v8287_v44, %v19277_v16  ;;  %v8321_v47 = vmul.f32 %v8289_v28, %v17156_v53 }
 0xe49   : > { %v17234_v4 = vadd.f32 %v8187_v20, %v8115_v42  ;;  %v8275_v14 = vmul.f32 0.044715, %v17204_v60  ;;  %v8299_v43 = vmul.f32 %v8267_v27, %v17189_v8  ;;  %v8323_v30 = vmul.f32 %v8291_v32, %v17164_v62 }
 0xe4a   : > { %v8277_v49 = vmul.f32 0.044715, %v17211_v0  ;;  %v8279_v7 = vmul.f32 0.044715, %v17213_v50  ;;  %v8301_v9 = vmul.f32 %v8269_v36, %v19286_v6  ;;  %v8325_v34 = vmul.f32 %v8293_v13, %v17172_v59 }
 0xe4b   : > { %v8281_v1 = vmul.f32 0.044715, %v17217_v26  ;;  %v8303_v38 = vmul.f32 %v8271_v56, %v19287_v46  ;;  %v8305_v22 = vmul.f32 %v8273_v12, %v17201_v11  ;;  %v8327_v52 = vmul.f32 %v8295_v58, %v17179_v31 }
 0xe4c   : > { %v8329_v54 = vmul.f32 %v8297_v10, %v17181_v21  ;;  %v8349_v48 = vadd.f32 %v8317_v61, %v19276_v3  ;;  %v8351_v2 = vadd.f32 %v8319_v24, %v19277_v16  ;;  %v8353_v20 = vadd.f32 %v8321_v47, %v17156_v53 }
 0xe4d   : > { %v8283_v41 = vmul.f32 0.044715, %v17234_v4  ;;  %v8307_v51 = vmul.f32 %v8275_v14, %v17204_v60  ;;  %v8331_v42 = vmul.f32 %v8299_v43, %v17189_v8  ;;  %v8355_v37 = vadd.f32 %v8323_v30, %v17164_v62 }
 0xe4e   : > { %v8309_v17 = vmul.f32 %v8277_v49, %v17211_v0  ;;  %v8311_v39 = vmul.f32 %v8279_v7, %v17213_v50  ;;  %v8333_v29 = vmul.f32 %v8301_v9, %v19286_v6  ;;  %v8357_v3 = vadd.f32 %v8325_v34, %v17172_v59 }
 0xe4f   : > { %v8313_v16 = vmul.f32 %v8281_v1, %v17217_v26  ;;  %v8335_v33 = vmul.f32 %v8303_v38, %v19287_v46  ;;  %v8337_v57 = vmul.f32 %v8305_v22, %v17201_v11  ;;  %v8359_v44 = vadd.f32 %v8327_v52, %v17179_v31 }
 0xe50   : > { %v8361_v28 = vadd.f32 %v8329_v54, %v17181_v21  ;;  %v8381_v27 = vmul.f32 0.7978846, %v8349_v48  ;;  %v8383_v32 = vmul.f32 0.7978846, %v8351_v2  ;;  %v8385_v36 = vmul.f32 0.7978846, %v8353_v20 }
 0xe51   : > { %v8315_v13 = vmul.f32 %v8283_v41, %v17234_v4  ;;  %v8339_v56 = vmul.f32 %v8307_v51, %v17204_v60  ;;  %v8363_v12 = vadd.f32 %v8331_v42, %v17189_v8  ;;  %v8387_v58 = vmul.f32 0.7978846, %v8355_v37  ;;  %v19288_v37 = vld [vmem:[#allocation275_spill] sm:$0xff] }
 0xe52   : > { %v8341_v10 = vmul.f32 %v8309_v17, %v17211_v0  ;;  %v8365_v61 = vadd.f32 %v8333_v29, %v19286_v6  ;;  %v8389_v24 = vmul.f32 0.7978846, %v8357_v3  ;;  %10924 = vtanh.f32 %v8381_v27  ;;  %v19290_v27 = vld [vmem:[#allocation279_spill] sm:$0xff] }
 0xe53   : > { %v8343_v47 = vmul.f32 %v8311_v39, %v17213_v50  ;;  %v8367_v14 = vadd.f32 %v8335_v33, %v19287_v46  ;;  %v8391_v43 = vmul.f32 0.7978846, %v8359_v44  ;;  %10926 = vtanh.f32 %v8383_v32 }
 0xe54   : > { %v8345_v30 = vmul.f32 %v8313_v16, %v17217_v26  ;;  %v8369_v49 = vadd.f32 %v8337_v57, %v17201_v11  ;;  %v8393_v7 = vmul.f32 0.7978846, %v8361_v28  ;;  %10928 = vtanh.f32 %v8385_v36 }
 0xe55   : > { %v8225_v9 = vmul.f32 0.5, %v17156_v53  ;;  %v8371_v34 = vadd.f32 %v8339_v56, %v17204_v60  ;;  %v8395_v1 = vmul.f32 0.7978846, %v8363_v12  ;;  %10930 = vtanh.f32 %v8387_v58 }
 0xe56   : > { %v8347_v38 = vmul.f32 %v8315_v13, %v17234_v4  ;;  %v8373_v22 = vadd.f32 %v8341_v10, %v17211_v0  ;;  %v8397_v52 = vmul.f32 0.7978846, %v8365_v61  ;;  %10932 = vtanh.f32 %v8389_v24  ;;  %v19291_v24 = vld [vmem:[#allocation312_spill] sm:$0xff] }
 0xe57   : > { %v8227_v54 = vmul.f32 0.5, %v17164_v62  ;;  %v8375_v48 = vadd.f32 %v8343_v47, %v17213_v50  ;;  %v8399_v2 = vmul.f32 0.7978846, %v8367_v14  ;;  %10934 = vtanh.f32 %v8391_v43 }
 0xe58   : > { %v8229_v20 = vmul.f32 0.5, %v17172_v59  ;;  %v8377_v53 = vadd.f32 %v8345_v30, %v17217_v26  ;;  %v8401_v41 = vmul.f32 0.7978846, %v8369_v49  ;;  %10936 = vtanh.f32 %v8393_v7  ;;  %v19292_v30 = vld [vmem:[#allocation266_spill] sm:$0xff]  ;;  %v19294_v7 = vld [vmem:[#allocation295_spill] sm:$0xff] }
 0xe59   : > { %v17282_v51 = vmul.f32 0.5, %v17179_v31  ;;  %v8403_v42 = vmul.f32 0.7978846, %v8371_v34  ;;  %10938 = vtanh.f32 %v8395_v1  ;;  %v7682_v17 = vadd.f32 %v19288_v37, %v16908_v40 }
 0xe5a   : > { %v17287_v62 = vmul.f32 0.5, %v17181_v21  ;;  %v8379_v39 = vadd.f32 %v8347_v38, %v17234_v4  ;;  %v8405_v29 = vmul.f32 0.7978846, %v8373_v22  ;;  %10940 = vtanh.f32 %v8397_v52  ;;  %v19289_v21 = vld [vmem:[#allocation313_spill] sm:$0xff] }
 0xe5b   : > { %v17291_v59 = vmul.f32 0.5, %v19286_v6  ;;  %v17294_v3 = vmul.f32 0.5, %v19287_v46  ;;  %v8407_v31 = vmul.f32 0.7978846, %v8375_v48  ;;  %10942 = vtanh.f32 %v8399_v2  ;;  %v19295_v2 = vld [vmem:[#allocation317_spill] sm:$0xff] }
 0xe5c   : > { %v10925_v16 = vpop.eup %10924  ;;  %v17297_v33 = vmul.f32 0.5, %v17189_v8  ;;  %v8409_v40 = vmul.f32 0.7978846, %v8377_v53  ;;  %10944 = vtanh.f32 %v8401_v41  ;;  %v7698_v57 = vadd.f32 %v19289_v21, %v17085_v25  ;;  %v19299_v21 = vld [vmem:[#allocation308_spill] sm:$0xff] }
 0xe5d   : > { %v10927_v44 = vpop.eup %10926  ;;  %v8241_v28 = vmul.f32 0.5, %v17201_v11  ;;  %10946 = vtanh.f32 %v8403_v42  ;;  %v8445_v6 = vadd.f32 1.0, %v10925_v16  ;;  %v7786_v32 = vadd.f32 %v19290_v27, %v7682_v17  ;;  %v19296_v17 = vld [vmem:[#allocation273_spill] sm:$0xff] }
 0xe5e   : > { %v10929_v46 = vpop.eup %10928  ;;  %v8243_v36 = vmul.f32 0.5, %v17204_v60  ;;  %v8411_v13 = vmul.f32 0.7978846, %v8379_v39  ;;  %10948 = vtanh.f32 %v8405_v29  ;;  %v8447_v56 = vadd.f32 1.0, %v10927_v44 }
 0xe5f   : > { %v10931_v8 = vpop.eup %10930  ;;  %v17305_v12 = vmul.f32 0.5, %v17211_v0  ;;  %10950 = vtanh.f32 %v8407_v31  ;;  %v8449_v58 = vadd.f32 1.0, %v10929_v46  ;;  %v17308_v25 = vmul.f32 %v8445_v6, %v17220_v45  ;;  %v19293_v0 = vld [vmem:[#allocation282_spill] sm:$0xff]  ;;  %v19300_v6 = vld [vmem:[#allocation299_spill] sm:$0xff] }
 0xe60   : > { %v10933_v11 = vpop.eup %10932  ;;  %10952 = vtanh.f32 %v8409_v40  ;;  %v8451_v10 = vadd.f32 1.0, %v10931_v8  ;;  %v17311_v61 = vmul.f32 %v8447_v56, %v17225_v23  ;;  %v7802_v60 = vadd.f32 %v19291_v24, %v7698_v57  ;;  %v19301_v56 = vld [vmem:[#allocation322_spill] sm:$0xff] }
 0xe61   : > { %v10935_v47 = vpop.eup %10934  ;;  %v8453_v14 = vadd.f32 1.0, %v10933_v11  ;;  %v17314_v43 = vmul.f32 %v8449_v58, %v8225_v9  ;;  %v7888_v49 = vadd.f32 %v19293_v0, %v19292_v30  ;;  %v7890_v34 = vadd.f32 %v19294_v7, %v7786_v32  ;;  %v19303_v0 = vld [vmem:[#allocation298_spill] sm:$0xff] }
 0xe62   : > { %v10937_v1 = vpop.eup %10936  ;;  %10954 = vtanh.f32 %v8411_v13  ;;  %v8455_v45 = vadd.f32 1.0, %v10935_v47  ;;  %v17319_v38 = vmul.f32 %v8451_v10, %v8227_v54  ;;  %v8521_v23 = vadd.f32 %v17311_v61, %v17308_v25 }
 0xe63   : > { %v10939_v22 = vpop.eup %10938  ;;  %v8247_v52 = vmul.f32 0.5, %v17213_v50  ;;  %v8249_v48 = vmul.f32 0.5, %v17217_v26  ;;  %v8457_v9 = vadd.f32 1.0, %v10937_v1  ;;  %v7904_v53 = vadd.f32 %v19295_v2, %v17094_v55  ;;  %v19297_v50 = vld [vmem:[#allocation320_spill] sm:$0xff]  ;;  %v19298_v26 = vld [vmem:[#allocation286_spill] sm:$0xff]  ;;  %v19306_v2 = vld [vmem:[#allocation271_spill] sm:$0xff] }
 0xe64   : > { %v10941_v41 = vpop.eup %10940  ;;  %v17328_v42 = vmul.f32 0.5, %v17234_v4  ;;  %v17330_v37 = vmul.f32 %v8453_v14, %v8229_v20  ;;  %v8522_v54 = vadd.f32 %v8521_v23, %v17314_v43  ;;  %v8094_v39 = vadd.f32 %v19296_v17, %v17021_v5  ;;  %v19302_v14 = vld [vmem:[#allocation323_spill] sm:$0xff] }
 0xe65   : > { %v10943_v29 = vpop.eup %10942  ;;  %v8461_v31 = vadd.f32 1.0, %v10941_v41  ;;  %v7906_v16 = vadd.f32 %v19297_v50, %v7802_v60  ;;  %v7992_v40 = vadd.f32 %v19298_v26, %v7888_v49  ;;  %v8110_v55 = vadd.f32 %v19299_v21, %v17139_v15  ;;  %v19309_v26 = vld [vmem:[#allocation325_spill] sm:$0xff] }
 0xe66   : > { %v10945_v57 = vpop.eup %10944  ;;  %v8463_v44 = vadd.f32 1.0, %v10943_v29  ;;  %v17340_v4 = vmul.f32 %v8455_v45, %v17282_v51  ;;  %v8523_v20 = vadd.f32 %v8522_v54, %v17319_v38  ;;  %v7994_v27 = vadd.f32 %v19300_v6, %v7890_v34  ;;  %v19304_v45 = vld [vmem:[#allocation288_spill] sm:$0xff] }
 0xe67   : > { %v10947_v32 = vpop.eup %10946  ;;  %v8459_v5 = vadd.f32 1.0, %v10939_v22  ;;  %v8465_v46 = vadd.f32 1.0, %v10945_v57  ;;  %v17345_v13 = vmul.f32 %v8457_v9, %v17287_v62  ;;  %v8008_v8 = vadd.f32 %v19301_v56, %v7904_v53  ;;  %v10996_v62 = vld [vmem:[%s17750_s14 + $0x10] ss:$0 sm:$0xff]  ;;  %v19305_v22 = vld [vmem:[#allocation301_spill] sm:$0xff]  ;;  %v19312_v56 = vld [vmem:[#allocation264_spill] sm:$0xff] }
 0xe68   : > { %v10949_v58 = vpop.eup %10948  ;;  %v8467_v11 = vadd.f32 1.0, %v10947_v32  ;;  %v17349_v15 = vmul.f32 %v8461_v31, %v17291_v59  ;;  %v17352_v51 = vmul.f32 %v8463_v44, %v17294_v3  ;;  %v8524_v10 = vadd.f32 %v8523_v20, %v17330_v37  ;;  %v19307_v31 = vld [vmem:[#allocation267_spill] sm:$0xff] }
 0xe69   : > { %v10951_v24 = vpop.eup %10950  ;;  %v8469_v60 = vadd.f32 1.0, %v10949_v58  ;;  %v17355_v47 = vmul.f32 %v8465_v46, %v8241_v28  ;;  %v8010_v30 = vadd.f32 %v19302_v14, %v7906_v16  ;;  %v8168_v49 = vmul.f32 %v10996_v62, %v19303_v0  ;;  %v19308_v16 = vld [vmem:[#allocation294_spill] sm:$0xff]  ;;  %v19314_v14 = vld [vmem:[#allocation252_spill] sm:$0xff] }
 0xe6a   : > { %v10953_v7 = vpop.eup %10952  ;;  %v8471_v59 = vadd.f32 1.0, %v10951_v24  ;;  %v17362_v34 = vmul.f32 %v8467_v11, %v8243_v36  ;;  %v8525_v3 = vadd.f32 %v8524_v10, %v17340_v4  ;;  %v8547_v1 = vadd.f32 %v17352_v51, %v17349_v15 }
 0xe6b   : > { %v17368_v28 = vmul.f32 %v8459_v5, %v17297_v33  ;;  %v8096_v23 = vadd.f32 %v19304_v45, %v7992_v40  ;;  %v8098_v9 = vadd.f32 %v19305_v22, %v7994_v27  ;;  %v8112_v53 = vadd.f32 %v19306_v2, %v8008_v8  ;;  %v19310_v40 = vld [vmem:[#allocation261_spill] sm:$0xff] }
 0xe6c   : > { %v10955_v41 = vpop.eup %10954  ;;  %v8473_v54 = vadd.f32 1.0, %v10953_v7  ;;  %v17374_v17 = vmul.f32 %v8469_v60, %v17305_v12  ;;  %v8526_v36 = vadd.f32 %v8525_v3, %v17345_v13  ;;  %v8548_v29 = vadd.f32 %v8547_v1, %v17355_v47  ;;  %v19311_v12 = vld [vmem:[#allocation290_spill] sm:$0xff] }
 0xe6d   : > { %v8114_v50 = vadd.f32 %v19307_v31, %v8010_v30  ;;  %v8170_v33 = vmul.f32 %v10996_v62, %v19308_v16  ;;  %v8184_v21 = vmul.f32 %v10996_v62, %v19309_v26  ;;  %v8186_v57 = vmul.f32 %v10996_v62, %v19310_v40  ;;  %v19313_v60 = vld [vmem:[#allocation262_spill] sm:$0xff]  ;;  %v19315_v62 = vld [vmem:[#allocation245_spill] sm:$0xff] }
 0xe6e   : > { %v17382_v44 = vmul.f32 %v8471_v59, %v8247_v52  ;;  %v8527_v20 = vadd.f32 %v8526_v36, %v17368_v28  ;;  %v8549_v6 = vadd.f32 %v8548_v29, %v17362_v34  ;;  %v17387_v27 = vadd.f32 %v19311_v12, %v8094_v39 }
 0xe6f   : > { %v8475_v32 = vadd.f32 1.0, %v10955_v41  ;;  %v17389_v5 = vadd.f32 %v8168_v49, %v8096_v23  ;;  %v17391_v46 = vadd.f32 %v8170_v33, %v8098_v9  ;;  %v17394_v8 = vadd.f32 %v19312_v56, %v8110_v55  ;;  %v19317_v9 = vld [vmem:[#allocation250_spill] sm:$0xff] }
 0xe70   : > { %v17396_v58 = vmul.f32 %v8473_v54, %v8249_v48  ;;  %v8528_v11 = vrot.slane %v8527_v20, 4  ;;  %v8550_v52 = vadd.f32 %v8549_v6, %v17374_v17  ;;  %v17399_v10 = vadd.f32 %v8184_v21, %v8112_v53  ;;  %v19318_v53 = vld [vmem:[#allocation302_spill] sm:$0xff] }
 0xe71   : > { %v17401_v24 = vadd.f32 %v8186_v57, %v8114_v50  ;;  %v8252_v39 = vmul.f32 0.044715, %v19313_v60  ;;  %v8254_v30 = vmul.f32 0.044715, %v19314_v14  ;;  %v8256_v0 = vmul.f32 0.044715, %v19315_v62 }
 0xe72   : > { %v8529_v49 = vadd.f32 %v8528_v11, %v8527_v20  ;;  %v8551_v7 = vadd.f32 %v8550_v52, %v17382_v44  ;;  %v8258_v55 = vmul.f32 0.044715, %v17075_v35  ;;  %v8260_v48 = vmul.f32 0.044715, %v17082_v63  ;;  %v19319_v54 = vld [vmem:[#allocation258_spill] sm:$0xff] }
 0xe73   : > { %v17410_v59 = vmul.f32 %v8475_v32, %v17328_v42  ;;  %v8262_v3 = vmul.f32 0.044715, %v17387_v27  ;;  %v8264_v1 = vmul.f32 0.044715, %v17389_v5  ;;  %v8266_v45 = vmul.f32 0.044715, %v17391_v46 }
 0xe74   : > { %v8530_v23 = vrot.slane %v8529_v49, 2  ;;  %v8552_v22 = vadd.f32 %v8551_v7, %v17396_v58  ;;  %v8268_v2 = vmul.f32 0.044715, %v19317_v9  ;;  %v8270_v41 = vmul.f32 0.044715, %v19318_v53 }
 0xe75   : > { %19316 = vst [vmem:[#allocation305_spill] sm:$0xff] %v17410_v59  ;;  %v8272_v36 = vmul.f32 0.044715, %v19319_v54  ;;  %v8274_v29 = vmul.f32 0.044715, %v17159_v19  ;;  %v8284_v31 = vmul.f32 %v8252_v39, %v19313_v60  ;;  %v8286_v33 = vmul.f32 %v8254_v30, %v19314_v14 }
 0xe76   : > { %v8276_v42 = vmul.f32 0.044715, %v17166_v18  ;;  %v8531_v50 = vadd.f32 %v8530_v23, %v8529_v49  ;;  %v8553_v16 = vadd.f32 %v8552_v22, %v17410_v59  ;;  %v8288_v26 = vmul.f32 %v8256_v0, %v19315_v62 }
 0xe77   : > { %v8278_v21 = vmul.f32 0.044715, %v17394_v8  ;;  %v8280_v40 = vmul.f32 0.044715, %v17399_v10  ;;  %v8282_v57 = vmul.f32 0.044715, %v17401_v24  ;;  %v8290_v20 = vmul.f32 %v8258_v55, %v17075_v35 }
 0xe78   : > { %v8532_v6 = vrot.slane %v8531_v50, 1  ;;  %v8554_v12 = vrot.slane %v8553_v16, 4  ;;  %v8292_v32 = vmul.f32 %v8260_v48, %v17082_v63  ;;  %v8294_v56 = vmul.f32 %v8262_v3, %v17387_v27 }
 0xe79   : > { %v8296_v11 = vmul.f32 %v8264_v1, %v17389_v5  ;;  %v8298_v52 = vmul.f32 %v8266_v45, %v17391_v46  ;;  %v8300_v39 = vmul.f32 %v8268_v2, %v19317_v9  ;;  %v8316_v30 = vmul.f32 %v8284_v31, %v19313_v60 }
 0xe7a   : > { %v8555_v0 = vadd.f32 %v8554_v12, %v8553_v16  ;;  %v8302_v49 = vmul.f32 %v8270_v41, %v19318_v53  ;;  %v8318_v7 = vmul.f32 %v8286_v33, %v19314_v14  ;;  %v8320_v55 = vmul.f32 %v8288_v26, %v19315_v62 }
 0xe7b   : > { %v8533_v23 = vadd.f32 %v8532_v6, %v8531_v50  ;;  %v8304_v48 = vmul.f32 %v8272_v36, %v19319_v54  ;;  %v8306_v3 = vmul.f32 %v8274_v29, %v17159_v19  ;;  %v8322_v1 = vmul.f32 %v8290_v20, %v17075_v35 }
 0xe7c   : > { %v8556_v22 = vrot.slane %v8555_v0, 2  ;;  %v8308_v45 = vmul.f32 %v8276_v42, %v17166_v18  ;;  %v8310_v2 = vmul.f32 %v8278_v21, %v17394_v8  ;;  %v8324_v31 = vmul.f32 %v8292_v32, %v17082_v63 }
 0xe7d   : > { %v8312_v41 = vmul.f32 %v8280_v40, %v17399_v10  ;;  %v8314_v16 = vmul.f32 %v8282_v57, %v17401_v24  ;;  %v8326_v33 = vmul.f32 %v8294_v56, %v17387_v27  ;;  %v8348_v50 = vadd.f32 %v8316_v30, %v19313_v60 }
 0xe7e   : > { %v8557_v36 = vadd.f32 %v8556_v22, %v8555_v0  ;;  %v8328_v29 = vmul.f32 %v8296_v11, %v17389_v5  ;;  %v8350_v26 = vadd.f32 %v8318_v7, %v19314_v14  ;;  %v8352_v20 = vadd.f32 %v8320_v55, %v19315_v62 }
 0xe7f   : > { %v8562_v42 = vmul.f32 0.015625, %v8533_v23  ;;  %v8330_v21 = vmul.f32 %v8298_v52, %v17391_v46  ;;  %v8332_v6 = vmul.f32 %v8300_v39, %v19317_v9  ;;  %v8354_v40 = vadd.f32 %v8322_v1, %v17075_v35 }
 0xe80   : > { %v8558_v12 = vrot.slane %v8557_v36, 1  ;;  %v8334_v57 = vmul.f32 %v8302_v49, %v19318_v53  ;;  %v8336_v32 = vmul.f32 %v8304_v48, %v19319_v54  ;;  %v8356_v56 = vadd.f32 %v8324_v31, %v17082_v63 }
 0xe81   : > { %v8338_v11 = vmul.f32 %v8306_v3, %v17159_v19  ;;  %v8340_v30 = vmul.f32 %v8308_v45, %v17166_v18  ;;  %v8358_v0 = vadd.f32 %v8326_v33, %v17387_v27  ;;  %v8380_v7 = vmul.f32 0.7978846, %v8348_v50 }
 0xe82   : > { %v8559_v55 = vadd.f32 %v8558_v12, %v8557_v36  ;;  %v8360_v52 = vadd.f32 %v8328_v29, %v17389_v5  ;;  %v8382_v39 = vmul.f32 0.7978846, %v8350_v26  ;;  %v8384_v23 = vmul.f32 0.7978846, %v8352_v20 }
 0xe83   : > { %v8566_v1 = vpack.c.bf16 %v8562_v42, %v8562_v42  ;;  %v8362_v22 = vadd.f32 %v8330_v21, %v17391_v46  ;;  %v8386_v49 = vmul.f32 0.7978846, %v8354_v40  ;;  %10956 = vtanh.f32 %v8380_v7 }
 0xe84   : > { %v8564_v48 = vmul.f32 0.015625, %v8559_v55  ;;  %v8364_v31 = vadd.f32 %v8332_v6, %v19317_v9  ;;  %v8388_v59 = vmul.f32 0.7978846, %v8356_v56  ;;  %10958 = vtanh.f32 %v8382_v39 }
 0xe85   : > { %v8342_v3 = vmul.f32 %v8310_v2, %v17394_v8  ;;  %v8366_v45 = vadd.f32 %v8334_v57, %v19318_v53  ;;  %v8390_v33 = vmul.f32 0.7978846, %v8358_v0  ;;  %10960 = vtanh.f32 %v8384_v23 }
 0xe86   : > { %v8568_v50 = vpack.c.bf16 %v8564_v48, %v8564_v48  ;;  %v8344_v36 = vmul.f32 %v8312_v41, %v17399_v10  ;;  %v8368_v29 = vadd.f32 %v8336_v32, %v19319_v54  ;;  %v8392_v26 = vmul.f32 0.7978846, %v8360_v52 }
 0xe87   : > { %v8606_v20 = vunpack.c.l.b16 %v8566_v1  ;;  %v8370_v42 = vadd.f32 %v8338_v11, %v17159_v19  ;;  %v8394_v21 = vmul.f32 0.7978846, %v8362_v22  ;;  %10962 = vtanh.f32 %v8386_v49 }
 0xe88   : > { %v8608_v6 = vunpack.c.l.b16 %v8568_v50  ;;  %v8372_v40 = vadd.f32 %v8340_v30, %v17166_v18  ;;  %v8396_v12 = vmul.f32 0.7978846, %v8364_v31  ;;  %10964 = vtanh.f32 %v8388_v59 }
 0xe89   : > { %v8346_v2 = vmul.f32 %v8314_v16, %v17401_v24  ;;  %v8374_v57 = vadd.f32 %v8342_v3, %v17394_v8  ;;  %v8398_v56 = vmul.f32 0.7978846, %v8366_v45  ;;  %10966 = vtanh.f32 %v8390_v33 }
 0xe8a   : > { %v8610_v41 = vsel %vm2981_vm0, %v8608_v6, %v8606_v20  ;;  %v8376_v32 = vadd.f32 %v8344_v36, %v17399_v10  ;;  %v8400_v0 = vmul.f32 0.7978846, %v8368_v29  ;;  %10968 = vtanh.f32 %v8392_v26 }
 0xe8b   : > { %v8612_v11 = vpack.c.b16 %v8610_v41, %v8610_v41  ;;  %v8402_v7 = vmul.f32 0.7978846, %v8370_v42  ;;  %10970 = vtanh.f32 %v8394_v21  ;;  %v8404_v55 = vmul.f32 0.7978846, %v8372_v40 }
 0xe8c   : > { %10972 = vtanh.f32 %v8396_v12  ;;  %v8378_v59 = vadd.f32 %v8346_v2, %v17401_v24  ;;  %v8406_v16 = vmul.f32 0.7978846, %v8374_v57  ;;  %v8220_v39 = vmul.f32 0.5, %v19313_v60 }
 0xe8d   : > { %v10957_v30 = vpop.eup %10956  ;;  %8743 = vmatprep.mubr.bf16.mxu0 %v8612_v11  ;;  %10974 = vtanh.f32 %v8398_v56  ;;  %v8408_v23 = vmul.f32 0.7978846, %v8376_v32  ;;  %v8222_v49 = vmul.f32 0.5, %v19314_v14  ;;  %v8224_v31 = vmul.f32 0.5, %v19315_v62 }
 0xe8e   : > { %v10959_v52 = vpop.eup %10958  ;;  %10976 = vtanh.f32 %v8400_v0  ;;  %v8444_v1 = vadd.f32 1.0, %v10957_v30  ;;  %v8410_v50 = vmul.f32 0.7978846, %v8378_v59  ;;  %v8226_v29 = vmul.f32 0.5, %v17075_v35 }
 0xe8f   : > { %v10961_v22 = vpop.eup %10960  ;;  %10978 = vtanh.f32 %v8402_v7  ;;  %v8446_v48 = vadd.f32 1.0, %v10959_v52  ;;  %v8228_v42 = vmul.f32 0.5, %v17082_v63  ;;  %v8230_v40 = vmul.f32 0.5, %v17387_v27 }
 0xe90   : > { %10980 = vtanh.f32 %v8404_v55  ;;  %v8448_v3 = vadd.f32 1.0, %v10961_v22  ;;  %v17477_v45 = vmul.f32 %v8444_v1, %v8220_v39  ;;  %v8232_v63 = vmul.f32 0.5, %v17389_v5 }
 0xe91   : > { %v10963_v33 = vpop.eup %10962  ;;  %10982 = vtanh.f32 %v8406_v16  ;;  %v17479_v36 = vmul.f32 %v8446_v48, %v8222_v49  ;;  %v8236_v30 = vmul.f32 0.5, %v19317_v9  ;;  %v8238_v59 = vmul.f32 0.5, %v19318_v53 }
 0xe92   : > { %v10965_v60 = vpop.eup %10964  ;;  %10984 = vtanh.f32 %v8408_v23  ;;  %v8450_v26 = vadd.f32 1.0, %v10963_v33  ;;  %v17482_v20 = vmul.f32 %v8448_v3, %v8224_v31  ;;  %v8240_v16 = vmul.f32 0.5, %v19319_v54 }
 0xe93   : > { %v10967_v14 = vpop.eup %10966  ;;  %v8452_v62 = vadd.f32 1.0, %v10965_v60  ;;  %v8508_v21 = vadd.f32 %v17479_v36, %v17477_v45  ;;  %10986 = vtanh.f32 %v8410_v50  ;;  %v8242_v48 = vmul.f32 0.5, %v17159_v19 }
 0xe94   : > { %v10969_v6 = vpop.eup %10968  ;;  %v8454_v12 = vadd.f32 1.0, %v10967_v14  ;;  %v17488_v2 = vmul.f32 %v8450_v26, %v8226_v29  ;;  %v8234_v53 = vmul.f32 0.5, %v17391_v46  ;;  %v8244_v26 = vmul.f32 0.5, %v17166_v18 }
 0xe95   : > { %v10971_v57 = vpop.eup %10970  ;;  %v8456_v35 = vadd.f32 1.0, %v10969_v6  ;;  %v17490_v56 = vmul.f32 %v8452_v62, %v8228_v42  ;;  %v8509_v41 = vadd.f32 %v8508_v21, %v17482_v20  ;;  %v8246_v46 = vmul.f32 0.5, %v17394_v8 }
 0xe96   : > { %v10973_v32 = vpop.eup %10972  ;;  %v17494_v7 = vmul.f32 %v8454_v12, %v8230_v40  ;;  %v8458_v23 = vadd.f32 1.0, %v10971_v57 }
 0xe97   : > { %v10975_v0 = vpop.eup %10974  ;;  %v8460_v11 = vadd.f32 1.0, %v10973_v32  ;;  %v8510_v55 = vadd.f32 %v8509_v41, %v17488_v2  ;;  %v17500_v22 = vmul.f32 %v8456_v35, %v8232_v63  ;;  %v8248_v35 = vmul.f32 0.5, %v17399_v10 }
 0xe98   : > { %v10977_v27 = vpop.eup %10976  ;;  %v8462_v52 = vadd.f32 1.0, %v10975_v0  ;;  %v17517_v62 = vmul.f32 %v8458_v23, %v8234_v53 }
 0xe99   : > { %v10979_v39 = vpop.eup %10978  ;;  %v8464_v1 = vadd.f32 1.0, %v10977_v27  ;;  %v8511_v5 = vadd.f32 %v8510_v55, %v17490_v56  ;;  %v17504_v3 = vmul.f32 %v8460_v11, %v8236_v30  ;;  %v8250_v27 = vmul.f32 0.5, %v17401_v24 }
 0xe9a   : > { %v10981_v49 = vpop.eup %10980  ;;  %v8466_v31 = vadd.f32 1.0, %v10979_v39  ;;  %v17506_v33 = vmul.f32 %v8462_v52, %v8238_v59 }
 0xe9b   : > { %v10983_v9 = vpop.eup %10982  ;;  %v8468_v54 = vadd.f32 1.0, %v10981_v49  ;;  %v17509_v50 = vmul.f32 %v8464_v1, %v8240_v16  ;;  %v8512_v60 = vadd.f32 %v8511_v5, %v17494_v7 }
 0xe9c   : > { %v10985_v29 = vpop.eup %10984  ;;  %v8470_v14 = vadd.f32 1.0, %v10983_v9  ;;  %v17513_v42 = vmul.f32 %v8466_v31, %v8242_v48  ;;  %v8534_v19 = vadd.f32 %v17506_v33, %v17504_v3 }
 0xe9d   : > { %v8513_v21 = vadd.f32 %v8512_v60, %v17500_v22  ;;  %v8472_v6 = vadd.f32 1.0, %v10985_v29  ;;  %v17521_v40 = vmul.f32 %v8468_v54, %v8244_v26  ;;  %v10987_v57 = vpop.eup %10986 }
 0xe9e   : > { %v8535_v12 = vadd.f32 %v8534_v19, %v17509_v50  ;;  %v17526_v41 = vmul.f32 %v8470_v14, %v8246_v46  ;;  %v8474_v63 = vadd.f32 1.0, %v10987_v57  ;;  %v10832_v46 = vld [vmem:[%s17752_s16 + $0x4] ss:$8 sps:$4 sm:$0xff]   ;;  %v10837_v57 = vld [vmem:[%s17752_s16 + $0x10] ss:$8 sps:$4 sm:$0xff]  }
 0xe9f   : > { %v8514_v18 = vadd.f32 %v8513_v21, %v17517_v62  ;;  %v17529_v11 = vmul.f32 %v8472_v6, %v8248_v35  ;;  %v10834_v6 = vld [vmem:[%s17752_s16] ss:$8 sps:$4 sm:$0xff]   ;;  %8812 = vmatprep.subr.bf16.mxu1 %v10832_v46  ;;  %v10838_v35 = vld [vmem:[%s17752_s16 + $0x24] ss:$8 sps:$4 sm:$0xff]  }
 0xea0   : > { %v8536_v32 = vadd.f32 %v8535_v12, %v17513_v42  ;;  %v17534_v16 = vmul.f32 %v8474_v63, %v8250_v27  ;;  %v10835_v12 = vld [vmem:[%s17752_s16 + $0x14] ss:$8 sps:$4 sm:$0xff]   ;;  %8813 = vmatpush1.bf16.msra.mxu1 %v10834_v6  ;;  %v10843_v63 = vld [vmem:[%s17752_s16 + $0x30] ss:$8 sps:$4 sm:$0xff]  }
 0xea1   : > { %v8515_v0 = vrot.slane %v8514_v18, 4  ;;  %8814 = vmatprep.subr.bf16.mxu1 %v10835_v12  ;;  %v10849_v27 = vld [vmem:[%s17753_s17 + $0x14] ss:$8 sps:$4 sm:$0xff]  }
 0xea2   : > { %v8537_v8 = vadd.f32 %v8536_v32, %v17521_v40  ;;  %v10840_v32 = vld [vmem:[%s17752_s16 + $0x20] ss:$8 sps:$4 sm:$0xff]  }
 0xea3   : > { %v8516_v55 = vadd.f32 %v8515_v0, %v8514_v18  ;;  %v11097_v18 = vmov 0   ;;  %v10841_v0 = vld [vmem:[%s17752_s16 + $0x34] ss:$8 sps:$4 sm:$0xff]  }
 0xea4   : > { %v8538_v30 = vadd.f32 %v8537_v8, %v17526_v41  ;;  %8844 = vmatprep.mubr.bf16.mxu1 %v11097_v18  ;;  %8815 = vmatpush1.bf16.msra.mxu1 %v10837_v57  ;;  %v10844_v8 = vld [vmem:[%s17753_s17] ss:$8 sps:$4 sm:$0xff]  }
 0xea5   : > { %v8517_v59 = vrot.slane %v8516_v55, 2  ;;  %8816 = vmatprep.subr.bf16.mxu1 %v10838_v35 }
 0xea6   : > { %v8539_v10 = vadd.f32 %v8538_v30, %v17529_v11  ;;  %v10847_v30 = vld [vmem:[%s17753_s17 + $0x10] ss:$8 sps:$4 sm:$0xff]  }
 0xea7   : > { %v8518_v52 = vadd.f32 %v8517_v59, %v8516_v55  ;;  %v10846_v55 = vld [vmem:[%s17753_s17 + $0x4] ss:$8 sps:$4 sm:$0xff]  }
 0xea8   : > { %v8540_v39 = vadd.f32 %v8539_v10, %v17534_v16  ;;  %8817 = vmatpush1.bf16.msra.mxu1 %v10840_v32  ;;  %9146 = vmatprep.subr.bf16.mxu0 %v10846_v55  ;;  %v10852_v59 = vld [vmem:[%s17753_s17 + $0x24] ss:$8 sps:$4 sm:$0xff]   ;;  %v10850_v10 = vld [vmem:[%s17753_s17 + $0x20] ss:$8 sps:$4 sm:$0xff]  }
 0xea9   : > { %v8519_v23 = vrot.slane %v8518_v52, 1  ;;  %8818 = vmatprep.subr.bf16.mxu1 %v10841_v0  ;;  %v10870_v0 = vld [vmem:[%s17753_s17 + $0x84] ss:$8 sps:$4 sm:$0xff]  }
 0xeaa   : > { %v8541_v1 = vrot.slane %v8540_v39, 4 }
 0xeab   : > { %v8520_v49 = vadd.f32 %v8519_v23, %v8518_v52  ;;  %v10855_v52 = vld [vmem:[%s17753_s17 + $0x34] ss:$8 sps:$4 sm:$0xff]   ;;  %v10858_v23 = vld [vmem:[%s17753_s17 + $0x44] ss:$8 sps:$4 sm:$0xff]  }
 0xeac   : > { %v8542_v5 = vadd.f32 %v8541_v1, %v8540_v39  ;;  %8819 = vmatpush1.bf16.msra.mxu1 %v10843_v63  ;;  %v10853_v39 = vld [vmem:[%s17753_s17 + $0x30] ss:$8 sps:$4 sm:$0xff]   ;;  %v10856_v1 = vld [vmem:[%s17753_s17 + $0x40] ss:$8 sps:$4 sm:$0xff]  }
 0xead   : > { %v8561_v53 = vmul.f32 0.015625, %v8520_v49  ;;  %10345 = vmatprep.subr.bf16.mxu1 %v10846_v55  ;;  %v10859_v49 = vld [vmem:[%s17753_s17 + $0x50] ss:$8 sps:$4 sm:$0xff]   ;;  %v10868_v63 = vld [vmem:[%s17753_s17 + $0x80] ss:$8 sps:$4 sm:$0xff]  }
 0xeae   : > { %v8543_v48 = vrot.slane %v8542_v5, 2  ;;  %v10871_v55 = vld [vmem:[%s17753_s17 + $0x90] ss:$8 sps:$4 sm:$0xff]  }
 0xeaf   : > { %v8565_v60 = vpack.c.bf16 %v8561_v53, %v8561_v53  ;;  %v10865_v53 = vld [vmem:[%s17753_s17 + $0x70] ss:$8 sps:$4 sm:$0xff]  }
 0xeb0   : > { %v8544_v31 = vadd.f32 %v8543_v48, %v8542_v5  ;;  %v10861_v5 = vld [vmem:[%s17753_s17 + $0x54] ss:$8 sps:$4 sm:$0xff]   ;;  %v10864_v48 = vld [vmem:[%s17753_s17 + $0x64] ss:$8 sps:$4 sm:$0xff]  }
 0xeb1   : > { %v8605_v26 = vunpack.c.l.b16 %v8565_v60 }
 0xeb2   : > { %v8545_v9 = vrot.slane %v8544_v31, 1 }
 0xeb4   : > { %v8546_v54 = vadd.f32 %v8545_v9, %v8544_v31  ;;  %v10862_v31 = vld [vmem:[%s17753_s17 + $0x60] ss:$8 sps:$4 sm:$0xff]   ;;  %v10867_v9 = vld [vmem:[%s17753_s17 + $0x74] ss:$8 sps:$4 sm:$0xff]  }
 0xeb6   : > { %v8563_v24 = vmul.f32 0.015625, %v8546_v54 }
 0xeb8   : > { %v8567_v29 = vpack.c.bf16 %v8563_v24, %v8563_v24 }
 0xeba   : > { %v8607_v14 = vunpack.c.l.b16 %v8567_v29 }
 0xebc   : > { %v8609_v19 = vsel %vm2981_vm0, %v8607_v14, %v8605_v26 }
 0xebd   : > { %v8611_v21 = vpack.c.b16 %v8609_v19, %v8609_v19 }
 0xebf   : > { %8744 = vmatmul.mubr.bf16.vlgmr.msra.gmra.mrb[0].mxu0 %v8611_v21 }
 0xec0   : > { %9147 = vmatpush1.bf16.msra.mxu0 %v10844_v8 }
 0xec1   : > { %9148 = vmatprep.subr.bf16.mxu0 %v10849_v27 }
 0xec4   : > { %9149 = vmatpush1.bf16.msra.mxu0 %v10847_v30 }
 0xec5   : > { %9150 = vmatprep.subr.bf16.mxu0 %v10852_v59 }
 0xec8   : > { %9151 = vmatpush1.bf16.msra.mxu0 %v10850_v10 }
 0xec9   : > { %9152 = vmatprep.subr.bf16.mxu0 %v10855_v52 }
 0xecc   : > { %9153 = vmatpush1.bf16.msra.mxu0 %v10853_v39 }
 0xecd   : > { %9154 = vmatprep.subr.bf16.mxu0 %v10858_v23 }
 0xed0   : > { %9155 = vmatpush1.bf16.msra.mxu0 %v10856_v1 }
 0xed1   : > { %9156 = vmatprep.subr.bf16.mxu0 %v10861_v5 }
 0xed4   : > { %9157 = vmatpush1.bf16.msra.mxu0 %v10859_v49 }
 0xed5   : > { %9158 = vmatprep.subr.bf16.mxu0 %v10864_v48 }
 0xed8   : > { %9159 = vmatpush1.bf16.msra.mxu0 %v10862_v31 }
 0xed9   : > { %9160 = vmatprep.subr.bf16.mxu0 %v10867_v9 }
 0xedc   : > { %9161 = vmatpush1.bf16.msra.mxu0 %v10865_v53 }
 0xedd   : > { %9162 = vmatprep.subr.bf16.mxu0 %v10870_v0 }
 0xee0   : > { %9163 = vmatpush1.bf16.msra.mxu0 %v10868_v63 }
 0xf92   : > { %v10067_v54 = vpop.f32.mrb[0].mxu0 }
 0xf93   : > { %v10068_v24 = vpop.f32.mrb[1].mxu0 }
 0xf94   : > { %v10069_v60 = vadd.f32 %v10068_v24, %v10067_v54  ;;  %v10070_v29 = vpop.f32.mrb[2].mxu0 }
 0xf95   : > { %v10071_v26 = vpop.f32.mrb[3].mxu0 }
 0xf96   : > { %v8752_v14 = vmul.f32 0.044715, %v10069_v60  ;;  %v8751_v57 = vmul.f32 0.5, %v10069_v60 }
 0xf98   : > { %v8753_v19 = vmul.f32 %v10069_v60, %v8752_v14 }
 0xf9a   : > { %v8754_v21 = vmul.f32 %v10069_v60, %v8753_v19 }
 0xf9c   : > { %v8755_v46 = vadd.f32 %v10069_v60, %v8754_v21 }
 0xf9e   : > { %v8756_v6 = vmul.f32 0.7978846, %v8755_v46 }
 0xfa0   : > { %10988 = vtanh.f32 %v8756_v6 }
 0xfaa   : > { %v10989_v12 = vpop.eup %10988 }
 0xfab   : > { %v8758_v18 = vadd.f32 1.0, %v10989_v12 }
 0xfad   : > { %v8759_v35 = vmul.f32 %v8758_v18, %v8751_v57  ;;  %v19320_v57 = vld [vmem:[#allocation71_spill] sm:$0xff] }
 0xfaf   : > { %v8760_v32 = vpack.c.bf16 %v8759_v35, %v8759_v35 }
 0xfb1   : > { %9711 = vmatmul.mubr.msk.bf16.vlgmr.msra.gmra.mrb[0].mxu1 %vm2761_vm4, %v8760_v32 }
 0xfb2   : > { %10361 = vmatpush1.bf16.msra.mxu1 %v10844_v8  ;;  %v10873_v8 = vld [vmem:[%s17753_s17 + $0x94] ss:$8 sps:$4 sm:$0xff]  }
 0xfb3   : > { %10346 = vmatprep.subr.bf16.mxu1 %v10849_v27  ;;  %9164 = vmatprep.subr.bf16.mxu0 %v10873_v8  ;;  %v10876_v27 = vld [vmem:[%s17753_s17 + $0xa4] ss:$8 sps:$4 sm:$0xff]  }
 0xfb4   : > { %9165 = vmatpush1.bf16.msra.mxu0 %v10871_v55 }
 0xfb5   : > { %9166 = vmatprep.subr.bf16.mxu0 %v10876_v27 }
 0xfb6   : > { %10362 = vmatpush1.bf16.msra.mxu1 %v10847_v30  ;;  %v10874_v30 = vld [vmem:[%s17753_s17 + $0xa0] ss:$8 sps:$4 sm:$0xff]  }
 0xfb7   : > { %10347 = vmatprep.subr.bf16.mxu1 %v10852_v59  ;;  %v10879_v59 = vld [vmem:[%s17753_s17 + $0xb4] ss:$8 sps:$4 sm:$0xff]  }
 0xfb8   : > { %9167 = vmatpush1.bf16.msra.mxu0 %v10874_v30 }
 0xfb9   : > { %9168 = vmatprep.subr.bf16.mxu0 %v10879_v59 }
 0xfba   : > { %10363 = vmatpush1.bf16.msra.mxu1 %v10850_v10  ;;  %v10877_v10 = vld [vmem:[%s17753_s17 + $0xb0] ss:$8 sps:$4 sm:$0xff]  }
 0xfbb   : > { %10348 = vmatprep.subr.bf16.mxu1 %v10855_v52  ;;  %v10880_v52 = vld [vmem:[%s17753_s17 + $0xc0] ss:$8 sps:$4 sm:$0xff]  }
 0xfbc   : > { %9169 = vmatpush1.bf16.msra.mxu0 %v10877_v10 }
 0xfbe   : > { %10364 = vmatpush1.bf16.msra.mxu1 %v10853_v39  ;;  %v10882_v39 = vld [vmem:[%s17753_s17 + $0xc4] ss:$8 sps:$4 sm:$0xff]  }
 0xfbf   : > { %10349 = vmatprep.subr.bf16.mxu1 %v10858_v23  ;;  %v10885_v23 = vld [vmem:[%s17753_s17 + $0xd4] ss:$8 sps:$4 sm:$0xff]   ;;  %9170 = vmatprep.subr.bf16.mxu0 %v10882_v39 }
 0xfc0   : > { %9171 = vmatpush1.bf16.msra.mxu0 %v10880_v52 }
 0xfc1   : > { %9172 = vmatprep.subr.bf16.mxu0 %v10885_v23 }
 0xfc2   : > { %10365 = vmatpush1.bf16.msra.mxu1 %v10856_v1  ;;  %v10883_v1 = vld [vmem:[%s17753_s17 + $0xd0] ss:$8 sps:$4 sm:$0xff]  }
 0xfc3   : > { %10350 = vmatprep.subr.bf16.mxu1 %v10861_v5  ;;  %v10888_v5 = vld [vmem:[%s17753_s17 + $0xe4] ss:$8 sps:$4 sm:$0xff]  }
 0xfc4   : > { %9173 = vmatpush1.bf16.msra.mxu0 %v10883_v1 }
 0xfc5   : > { %9174 = vmatprep.subr.bf16.mxu0 %v10888_v5 }
 0xfc6   : > { %10366 = vmatpush1.bf16.msra.mxu1 %v10859_v49  ;;  %v10886_v49 = vld [vmem:[%s17753_s17 + $0xe0] ss:$8 sps:$4 sm:$0xff]  }
 0xfc7   : > { %10351 = vmatprep.subr.bf16.mxu1 %v10864_v48  ;;  %v10891_v48 = vld [vmem:[%s17753_s17 + $0xf4] ss:$8 sps:$4 sm:$0xff]  }
 0xfc8   : > { %9175 = vmatpush1.bf16.msra.mxu0 %v10886_v49 }
 0xfc9   : > { %9176 = vmatprep.subr.bf16.mxu0 %v10891_v48 }
 0xfca   : > { %10367 = vmatpush1.bf16.msra.mxu1 %v10862_v31  ;;  %v10889_v31 = vld [vmem:[%s17753_s17 + $0xf0] ss:$8 sps:$4 sm:$0xff]  }
 0xfcb   : > { %10352 = vmatprep.subr.bf16.mxu1 %v10867_v9 }
 0xfcc   : > { %9177 = vmatpush1.bf16.msra.mxu0 %v10889_v31 }
 0xfce   : > { %10368 = vmatpush1.bf16.msra.mxu1 %v10865_v53 }
 0xfcf   : > { %10353 = vmatprep.subr.bf16.mxu1 %v10870_v0 }
 0xfd2   : > { %10369 = vmatpush1.bf16.msra.mxu1 %v10868_v63  ;;  %v19321_v63 = vld [vmem:[#allocation72_spill] sm:$0xff] }
 0xfd3   : > { %10354 = vmatprep.subr.bf16.mxu1 %v10873_v8 }
 0xfd6   : > { %10370 = vmatpush1.bf16.msra.mxu1 %v10871_v55  ;;  %v19322_v55 = vld [vmem:[#allocation73_spill] sm:$0xff] }
 0xfd7   : > { %10355 = vmatprep.subr.bf16.mxu1 %v10876_v27 }
 0xfda   : > { %10371 = vmatpush1.bf16.msra.mxu1 %v10874_v30 }
 0xfdb   : > { %10356 = vmatprep.subr.bf16.mxu1 %v10879_v59 }
 0xfde   : > { %10372 = vmatpush1.bf16.msra.mxu1 %v10877_v10 }
 0xfdf   : > { %10357 = vmatprep.subr.bf16.mxu1 %v10882_v39 }
 0xfe2   : > { %10373 = vmatpush1.bf16.msra.mxu1 %v10880_v52 }
 0xfe3   : > { %10358 = vmatprep.subr.bf16.mxu1 %v10885_v23 }
 0xfe6   : > { %10374 = vmatpush1.bf16.msra.mxu1 %v10883_v1 }
 0xfe7   : > { %10359 = vmatprep.subr.bf16.mxu1 %v10888_v5 }
 0xfea   : > { %10375 = vmatpush1.bf16.msra.mxu1 %v10886_v49 }
 0xfeb   : > { %10360 = vmatprep.subr.bf16.mxu1 %v10891_v48 }
 0xfee   : > { %10376 = vmatpush1.bf16.msra.mxu1 %v10889_v31 }
0x1084   : > { %v8846_v9 = vpop.f32.mrb[0].mxu1 }
0x1085   : > { %v8853_v53 = vmul.f32 0.5, %v8846_v9  ;;  %v8848_v54 = vpop.f32.mrb[1].mxu1 }
0x1086   : > { %v8854_v24 = vmul.f32 0.5, %v8848_v54  ;;  %v8850_v60 = vpop.f32.mrb[2].mxu1 }
0x1087   : > { %10990 = vtanh.f32 %v8853_v53  ;;  %v8851_v29 = vpop.f32.mrb[3].mxu1 }
0x1088   : > { %10992 = vtanh.f32 %v8854_v24 }
0x1091   : > { %v10991_v26 = vpop.eup %10990 }
0x1092   : > { %v10993_v14 = vpop.eup %10992  ;;  %v8857_v19 = vadd.f32 1.0, %v10991_v26 }
0x1093   : > { %v8858_v21 = vadd.f32 1.0, %v10993_v14 }
0x1094   : > { %v8859_v46 = vmul.f32 0.5, %v8857_v19 }
0x1095   : > { %v8860_v6 = vmul.f32 0.5, %v8858_v21 }
0x1097   : > { %v8863_v12 = vcombine.low %v8859_v46, %v8860_v6  ;;  %v19323_v6 = vld [vmem:[#allocation305_spill] sm:$0xff] }
0x1099   : > { %v8870_v18 = vrot.slane %v8863_v12, %v19320_v57 }
0x109b   : > { %v8871_v35 = vcombine.high %v8870_v18, %v8870_v18  ;;  %v8878_v32 = vrot.slane %v8870_v18, %v19320_v57 }
0x109d   : > { %v8885_v0 = vrot.slane %v8871_v35, %v19320_v57  ;;  %v8889_v8 = vrot.slane %v8878_v32, %v19321_v63  ;;  %v8893_v27 = vrot.slane %v8878_v32, %v19322_v55  ;;  %v10997_v35 = vld [vmem:[#allocation2] sm:$0xff] }
0x109f   : > { %v8901_v30 = vrot.slane %v8885_v0, %v19322_v55  ;;  %v8907_v59 = vmul.f32 %v8893_v27, %v17308_v25  ;;  %v8909_v10 = vmul.f32 %v8893_v27, %v17311_v61  ;;  %v8919_v52 = vmul.f32 %v8893_v27, %v17345_v13 }
0x10a0   : > { %v8921_v39 = vmul.f32 %v8893_v27, %v17368_v28  ;;  %v8906_v23 = vmul.f32 %v8889_v8, %v17477_v45  ;;  %v8908_v1 = vmul.f32 %v8889_v8, %v17479_v36  ;;  %v8918_v49 = vmul.f32 %v8889_v8, %v17500_v22 }
0x10a1   : > { %v8939_v5 = vpack.c.bf16 %v8909_v10, %v8907_v59  ;;  %v8920_v48 = vmul.f32 %v8889_v8, %v17517_v62  ;;  %v8911_v31 = vmul.f32 %v8893_v27, %v17314_v43  ;;  %v8913_v25 = vmul.f32 %v8893_v27, %v17319_v38  ;;  %v11001_v10 = vld [vmem:[#allocation2 + $0x10] sm:$0xff] }
0x10a2   : > { %v8945_v9 = vpack.c.bf16 %v8921_v39, %v8919_v52  ;;  %v8938_v53 = vpack.c.bf16 %v8908_v1, %v8906_v23  ;;  %v8923_v61 = vmul.f32 %v8901_v30, %v17349_v15  ;;  %v8897_v13 = vrot.slane %v8885_v0, %v19321_v63  ;;  %v11002_v39 = vld [vmem:[#allocation2 + $0x70] sm:$0xff]  ;;  %v11003_v1 = vld [vmem:[#allocation2 + $0x18] sm:$0xff] }
0x10a3   : > { %9178 = vmatprep.mubr.bf16.mxu0 %v8939_v5  ;;  %v8944_v28 = vpack.c.bf16 %v8920_v48, %v8918_v49  ;;  %v8925_v45 = vmul.f32 %v8901_v30, %v17352_v51  ;;  %v8941_v36 = vpack.c.bf16 %v8913_v25, %v8911_v31  ;;  %v8910_v43 = vmul.f32 %v8889_v8, %v17482_v20  ;;  %v11004_v48 = vld [vmem:[#allocation2 + $0x78] sm:$0xff] }
0x10a4   : > { %9208 = vmatprep.mubr.bf16.mxu1 %v8945_v9  ;;  %9179 = vmatmul.mubr.bf16.vlgmr.msra.gmra.mrb[4].mxu0 %v8938_v53  ;;  %v8912_v62 = vmul.f32 %v8889_v8, %v17488_v2  ;;  %v8922_v38 = vmul.f32 %v8897_v13, %v17504_v3  ;;  %v8924_v15 = vmul.f32 %v8897_v13, %v17506_v33  ;;  %v11005_v53 = vld [vmem:[#allocation2 + $0x20] sm:$0xff] }
0x10a5   : > { %9209 = vmatmul.mubr.bf16.vlgmr.msra.gmra.mrb[4].mxu1 %v8944_v28  ;;  %v8947_v22 = vpack.c.bf16 %v8925_v45, %v8923_v61  ;;  %9188 = vmatprep.mubr.bf16.mxu0 %v8941_v36  ;;  %v8915_v54 = vmul.f32 %v8893_v27, %v17330_v37  ;;  %v8917_v24 = vmul.f32 %v8893_v27, %v17340_v4  ;;  %v11006_v28 = vld [vmem:[#allocation2 + $0x80] sm:$0xff]  ;;  %v11007_v36 = vld [vmem:[#allocation2 + $0x28] sm:$0xff] }
0x10a6   : > { %v8927_v51 = vmul.f32 %v8901_v30, %v17355_v47  ;;  %v8929_v60 = vmul.f32 %v8901_v30, %v17362_v34  ;;  %v8940_v29 = vpack.c.bf16 %v8912_v62, %v8910_v43  ;;  %v8946_v26 = vpack.c.bf16 %v8924_v15, %v8922_v38  ;;  %v11008_v38 = vld [vmem:[#allocation2 + $0x88] sm:$0xff] }
0x10a7   : > { %9218 = vmatprep.mubr.bf16.mxu1 %v8947_v22  ;;  %v8943_v14 = vpack.c.bf16 %v8917_v24, %v8915_v54  ;;  %v8914_v2 = vmul.f32 %v8889_v8, %v17490_v56  ;;  %v8916_v3 = vmul.f32 %v8889_v8, %v17494_v7  ;;  %v8926_v37 = vmul.f32 %v8897_v13, %v17509_v50  ;;  %v11009_v54 = vld [vmem:[#allocation2 + $0x30] sm:$0xff] }
0x10a8   : > { %v8949_v20 = vpack.c.bf16 %v8929_v60, %v8927_v51  ;;  %v8928_v4 = vmul.f32 %v8897_v13, %v17513_v42  ;;  %v8931_v47 = vmul.f32 %v8901_v30, %v17374_v17  ;;  %v8933_v34 = vmul.f32 %v8901_v30, %v17382_v44 }
0x10a9   : > { %v8942_v33 = vpack.c.bf16 %v8916_v3, %v8914_v2  ;;  %v8930_v46 = vmul.f32 %v8897_v13, %v17521_v40  ;;  %v8932_v56 = vmul.f32 %v8897_v13, %v17526_v41  ;;  %v8935_v7 = vmul.f32 %v8901_v30, %v17396_v58  ;;  %v10998_v41 = vld [vmem:[#allocation2 + $0x60] sm:$0xff]  ;;  %v10999_v58 = vld [vmem:[#allocation2 + $0x8] sm:$0xff]  ;;  %v11012_v3 = vld [vmem:[#allocation2 + $0x98] sm:$0xff] }
0x10aa   : > { %v8948_v19 = vpack.c.bf16 %v8928_v4, %v8926_v37  ;;  %v8951_v21 = vpack.c.bf16 %v8933_v34, %v8931_v47  ;;  %v8937_v50 = vmul.f32 %v8901_v30, %v19323_v6  ;;  %v8934_v17 = vmul.f32 %v8897_v13, %v17529_v11  ;;  %v11000_v30 = vld [vmem:[#allocation2 + $0x68] sm:$0xff]  ;;  %v11013_v47 = vld [vmem:[#allocation2 + $0x40] sm:$0xff] }
0x10ab   : > { %v8950_v12 = vpack.c.bf16 %v8932_v56, %v8930_v46  ;;  %v8936_v44 = vmul.f32 %v8897_v13, %v17534_v16  ;;  %v11015_v56 = vld [vmem:[#allocation2 + $0x48] sm:$0xff] }
0x10ac   : > { %9189 = vmatmul.mubr.bf16.gmra.mrb[8].mxu0 %v8940_v29  ;;  %v8953_v42 = vpack.c.bf16 %v8937_v50, %v8935_v7  ;;  %v11010_v29 = vld [vmem:[#allocation2 + $0x90] sm:$0xff] }
0x10ad   : > { %9219 = vmatmul.mubr.bf16.gmra.mrb[8].mxu1 %v8946_v26  ;;  %9198 = vmatprep.mubr.bf16.mxu0 %v8943_v14  ;;  %v8952_v57 = vpack.c.bf16 %v8936_v44, %v8934_v17  ;;  %v11011_v14 = vld [vmem:[#allocation2 + $0x38] sm:$0xff]  ;;  %v11017_v17 = vld [vmem:[#allocation2 + $0x50] sm:$0xff] }
0x10ae   : > { %9228 = vmatprep.mubr.bf16.mxu1 %v8949_v20 }
0x10b4   : > { %9199 = vmatmul.mubr.bf16.gmra.mrb[12].mxu0 %v8942_v33 }
0x10b5   : > { %9229 = vmatmul.mubr.bf16.gmra.mrb[12].mxu1 %v8948_v19 }
0x10b6   : > { %9238 = vmatprep.mubr.bf16.mxu1 %v8951_v21  ;;  %v11014_v21 = vld [vmem:[#allocation2 + $0xa0] sm:$0xff] }
0x10bd   : > { %9239 = vmatmul.mubr.bf16.gmra.mrb[16].mxu1 %v8950_v12  ;;  %v11016_v12 = vld [vmem:[#allocation2 + $0xa8] sm:$0xff] }
0x10be   : > { %9248 = vmatprep.mubr.bf16.mxu1 %v8953_v42 }
0x10c5   : > { %9249 = vmatmul.mubr.bf16.gmra.mrb[20].mxu1 %v8952_v57 }
0x1177   : > { %v9180_v18 = vpop.f32.mrb[4].mxu0 }
0x1178   : > { %v9181_v32 = vadd.f32 %v10997_v35, %v9180_v18  ;;  %v9210_v40 = vpop.f32.mrb[4].mxu1  ;;  %v9182_v0 = vpop.f32.mrb[5].mxu0  ;;  %v11018_v35 = vld [vmem:[#allocation2 + $0xb0] sm:$0xff] }
0x1179   : > { %v9211_v63 = vadd.f32 %v10998_v41, %v9210_v40  ;;  %v9183_v8 = vadd.f32 %v10999_v58, %v9182_v0  ;;  %v9212_v55 = vpop.f32.mrb[5].mxu1  ;;  %v9184_v27 = vpop.f32.mrb[6].mxu0  ;;  %v11019_v40 = vld [vmem:[#allocation2 + $0x58] sm:$0xff] }
0x117a   : > { %9259 = vst [vmem:[#allocation2] sm:$0xff] %v9181_v32  ;;  %v9213_v59 = vadd.f32 %v11000_v30, %v9212_v55  ;;  %v9185_v11 = vadd.f32 %v11001_v10, %v9184_v27  ;;  %v9214_v52 = vpop.f32.mrb[6].mxu1  ;;  %v9186_v16 = vpop.f32.mrb[7].mxu0  ;;  %v11021_v55 = vld [vmem:[#allocation2 + $0xc0] sm:$0xff] }
0x117b   : > { %9271 = vst [vmem:[#allocation2 + $0x60] sm:$0xff] %v9211_v63  ;;  %9260 = vst [vmem:[#allocation2 + $0x8] sm:$0xff] %v9183_v8  ;;  %v9215_v23 = vadd.f32 %v11002_v39, %v9214_v52  ;;  %v9187_v5 = vadd.f32 %v11003_v1, %v9186_v16  ;;  %v9216_v49 = vpop.f32.mrb[7].mxu1  ;;  %v11020_v63 = vld [vmem:[#allocation2 + $0xb8] sm:$0xff]  ;;  %v11023_v52 = vld [vmem:[#allocation2 + $0xd0] sm:$0xff] }
0x117c   : > { %9272 = vst [vmem:[#allocation2 + $0x68] sm:$0xff] %v9213_v59  ;;  %9261 = vst [vmem:[#allocation2 + $0x10] sm:$0xff] %v9185_v11  ;;  %v9217_v31 = vadd.f32 %v11004_v48, %v9216_v49  ;;  %v11022_v59 = vld [vmem:[#allocation2 + $0xc8] sm:$0xff]  ;;  %v11025_v49 = vld [vmem:[#allocation2 + $0xe0] sm:$0xff] }
0x117d   : > { %9273 = vst [vmem:[#allocation2 + $0x70] sm:$0xff] %v9215_v23  ;;  %9262 = vst [vmem:[#allocation2 + $0x18] sm:$0xff] %v9187_v5  ;;  %v11024_v23 = vld [vmem:[#allocation2 + $0xd8] sm:$0xff] }
0x117e   : > { %9274 = vst [vmem:[#allocation2 + $0x78] sm:$0xff] %v9217_v31 }
0x117f   : > { %v9190_v9 = vpop.f32.mrb[8].mxu0 }
0x1180   : > { %v9191_v25 = vadd.f32 %v11005_v53, %v9190_v9  ;;  %v9220_v61 = vpop.f32.mrb[8].mxu1  ;;  %v9192_v13 = vpop.f32.mrb[9].mxu0  ;;  %v11026_v9 = vld [vmem:[#allocation2 + $0xe8] sm:$0xff] }
0x1181   : > { %v9221_v45 = vadd.f32 %v11006_v28, %v9220_v61  ;;  %v9193_v22 = vadd.f32 %v11007_v36, %v9192_v13  ;;  %v9222_v43 = vpop.f32.mrb[9].mxu1  ;;  %v9194_v62 = vpop.f32.mrb[10].mxu0  ;;  %v11027_v61 = vld [vmem:[#allocation2 + $0xf0] sm:$0xff] }
0x1182   : > { %9263 = vst [vmem:[#allocation2 + $0x20] sm:$0xff] %v9191_v25  ;;  %v9223_v15 = vadd.f32 %v11008_v38, %v9222_v43  ;;  %v9195_v24 = vadd.f32 %v11009_v54, %v9194_v62  ;;  %v9224_v51 = vpop.f32.mrb[10].mxu1  ;;  %v9196_v60 = vpop.f32.mrb[11].mxu0 }
0x1183   : > { %9275 = vst [vmem:[#allocation2 + $0x80] sm:$0xff] %v9221_v45  ;;  %9264 = vst [vmem:[#allocation2 + $0x28] sm:$0xff] %v9193_v22  ;;  %v9225_v26 = vadd.f32 %v11010_v29, %v9224_v51  ;;  %v9197_v20 = vadd.f32 %v11011_v14, %v9196_v60  ;;  %v9226_v2 = vpop.f32.mrb[11].mxu1  ;;  %v11028_v45 = vld [vmem:[#allocation2 + $0xf8] sm:$0xff] }
0x1184   : > { %9276 = vst [vmem:[#allocation2 + $0x88] sm:$0xff] %v9223_v15  ;;  %9265 = vst [vmem:[#allocation2 + $0x30] sm:$0xff] %v9195_v24  ;;  %v9227_v37 = vadd.f32 %v11012_v3, %v9226_v2 }
0x1185   : > { %9277 = vst [vmem:[#allocation2 + $0x90] sm:$0xff] %v9225_v26  ;;  %9266 = vst [vmem:[#allocation2 + $0x38] sm:$0xff] %v9197_v20 }
0x1186   : > { %9278 = vst [vmem:[#allocation2 + $0x98] sm:$0xff] %v9227_v37 }
0x1187   : > { %v9200_v4 = vpop.f32.mrb[12].mxu0 }
0x1188   : > { %v9201_v34 = vadd.f32 %v11013_v47, %v9200_v4  ;;  %v9230_v33 = vpop.f32.mrb[12].mxu1  ;;  %v9202_v19 = vpop.f32.mrb[13].mxu0 }
0x1189   : > { %v9231_v46 = vadd.f32 %v11014_v21, %v9230_v33  ;;  %v9203_v7 = vadd.f32 %v11015_v56, %v9202_v19  ;;  %v9232_v6 = vpop.f32.mrb[13].mxu1  ;;  %v9204_v50 = vpop.f32.mrb[14].mxu0 }
0x118a   : > { %9267 = vst [vmem:[#allocation2 + $0x40] sm:$0xff] %v9201_v34  ;;  %v9233_v42 = vadd.f32 %v11016_v12, %v9232_v6  ;;  %v9205_v44 = vadd.f32 %v11017_v17, %v9204_v50  ;;  %v9234_v57 = vpop.f32.mrb[14].mxu1  ;;  %v9206_v18 = vpop.f32.mrb[15].mxu0 }
0x118b   : > { %9279 = vst [vmem:[#allocation2 + $0xa0] sm:$0xff] %v9231_v46  ;;  %9268 = vst [vmem:[#allocation2 + $0x48] sm:$0xff] %v9203_v7  ;;  %v9235_v32 = vadd.f32 %v11018_v35, %v9234_v57  ;;  %v9207_v0 = vadd.f32 %v11019_v40, %v9206_v18  ;;  %v9236_v41 = vpop.f32.mrb[15].mxu1 }
0x118c   : > { %9280 = vst [vmem:[#allocation2 + $0xa8] sm:$0xff] %v9233_v42  ;;  %9269 = vst [vmem:[#allocation2 + $0x50] sm:$0xff] %v9205_v44  ;;  %v9237_v58 = vadd.f32 %v11020_v63, %v9236_v41 }
0x118d   : > { %9281 = vst [vmem:[#allocation2 + $0xb0] sm:$0xff] %v9235_v32  ;;  %9270 = vst [vmem:[#allocation2 + $0x58] sm:$0xff] %v9207_v0 }
0x118e   : > { %9282 = vst [vmem:[#allocation2 + $0xb8] sm:$0xff] %v9237_v58 }
0x1190   : > { %v9240_v8 = vpop.f32.mrb[16].mxu1 }
0x1191   : > { %v9241_v27 = vadd.f32 %v11021_v55, %v9240_v8  ;;  %v9242_v30 = vpop.f32.mrb[17].mxu1 }
0x1192   : > { %v9243_v10 = vadd.f32 %v11022_v59, %v9242_v30  ;;  %v9244_v11 = vpop.f32.mrb[18].mxu1 }
0x1193   : > { %9283 = vst [vmem:[#allocation2 + $0xc0] sm:$0xff] %v9241_v27  ;;  %v9245_v16 = vadd.f32 %v11023_v52, %v9244_v11  ;;  %v9246_v39 = vpop.f32.mrb[19].mxu1 }
0x1194   : > { %9284 = vst [vmem:[#allocation2 + $0xc8] sm:$0xff] %v9243_v10  ;;  %v9247_v1 = vadd.f32 %v11024_v23, %v9246_v39 }
0x1195   : > { %9285 = vst [vmem:[#allocation2 + $0xd0] sm:$0xff] %v9245_v16 }
0x1196   : > { %9286 = vst [vmem:[#allocation2 + $0xd8] sm:$0xff] %v9247_v1 }
0x1198   : > { %v9250_v5 = vpop.f32.mrb[20].mxu1 }
0x1199   : > { %v9251_v48 = vadd.f32 %v11025_v49, %v9250_v5  ;;  %v9252_v31 = vpop.f32.mrb[21].mxu1 }
0x119a   : > { %v9253_v53 = vadd.f32 %v11026_v9, %v9252_v31  ;;  %v9254_v25 = vpop.f32.mrb[22].mxu1 }
0x119b   : > { %9287 = vst [vmem:[#allocation2 + $0xe0] sm:$0xff] %v9251_v48  ;;  %v9255_v13 = vadd.f32 %v11027_v61, %v9254_v25  ;;  %v9256_v28 = vpop.f32.mrb[23].mxu1 }
0x119c   : > { %9288 = vst [vmem:[#allocation2 + $0xe8] sm:$0xff] %v9253_v53  ;;  %v9257_v36 = vadd.f32 %v11028_v45, %v9256_v28 }
0x119d   : > { %9289 = vst [vmem:[#allocation2 + $0xf0] sm:$0xff] %v9255_v13 }
0x119e   : > { %9290 = vst [vmem:[#allocation2 + $0xf8] sm:$0xff] %v9257_v36 }
0x119f PF: > { %s19324_s6 = sadd.s32 4294967295, %s11081_s24   ;;  %s11098_s2 = smov [#allocation2]  }
0x11a0   : > { %p17701_p8 = scmp.eq.s32.totalorder %s19324_s6, 1  ;;  %s9300_s10 = sshll.u32 %s11098_s2, 4  ;;  %s9301_s10 = int_to_ptr.vmem [resolvable:$true] %s9300_s10 }
0x11a1   : > { %s11029_s11 = scalar_lea.vmem %s9301_s10, 4096  ;;  %p11036_p12 = scmp.lt.s32.totalorder %s9301_s10, %s9301_s10 }
0x11a2   : > { %p11030_p9 = scmp.ne.s32.totalorder %s9301_s10, %s11029_s11  ;;  %p11037_p13 = scmp.lt.s32.totalorder %s11029_s11, %s11029_s11 }
0x11a4   : > { %p11031_p10 = pnand %p11030_p9, %p17701_p8  ;;  %p11038_p0 = por %p11037_p13, %p11036_p12 }
0x11a6   : > { %p11032_p11 = pneg %p11031_p10 }
0x11a8   : > { %p11039_p1 = pnand %p11038_p0, %p11032_p11 }
0x11aa   : > { %11042 = shalt.err (!%p11039_p1)
}
0x11ab   : > { %s11043_s28 = scalar_lea.hbm %s17759_s23, 4096 }
0x11ac   : > { %p11044_p2 = scmp.ne.s32.totalorder %s17759_s23, %s11043_s28  ;;  %p11049_p5 = scmp.lt.u32.totalorder %s11043_s28, %s17759_s23 }
0x11ae   : > { %p11045_p3 = pnand %p11044_p2, %p17701_p8 }
0x11b0   : > { %p11046_p4 = pneg %p11045_p3 }
0x11b2   : > { %p11051_p6 = pnand %p11049_p5, %p11046_p4 }
0x11b4   : > { %11054 = shalt.err (!%p11051_p6)
}
0x11b5   : > { %s11099_s3 = smov 256   ;;  %s11100_s27 = smov 16  }
0x11b6   : > { %10381 = dma.vmem_to_hbm [thread:$0]  (%p17701_p8), %s9301_s10, 4096, %s17759_s23, [#allocation3], %s11099_s3, %s11099_s3, %s11100_s27  }
0x11b7   : > { %11068 = dma.done.wait (%p17701_p8), [#allocation3], 4096  }
0x11b8   : > { %11070 = vsyncadd (%p17701_p8), [#allocation3], 4294963200 }
0x11b9 PF: > { %s34_s24 = sadd.s32 1, %s11081_s24   ;;  %s19326_s4 = smov %s11077_s30 }
0x11ba   : > { %p31_p7 = scmp.ge.s32.totalorder %s34_s24, 4   ;;  %s19327_s30 = smov %s19329_s5 }
0x11bc   :  { %33 = sbr.rel (!%p31_p7) target bundleno = 13 (0xd), region = 169 }
0x11c3   :  { %9316 = vsyncpa [#allocation3], 1 }
0x11c4   :  { %9318 = vsyncpa [#allocation3 + $0x1], 1 }

</bundles_post_ra>
